<compile_context>
chip_gen: v6e
topology: v6e:2x2x1
jax: 0.10.0
libtpu: 0.0.40
codegen_flags: <defaults>
</compile_context>

<pallas_src>
import functools
import math

import jax
import jax.numpy as jnp
from jax import lax
from jax.experimental import pallas as pl
from jax.experimental.pallas import tpu as pltpu

_BN_EPS = 1e-5   # PyTorch BatchNorm2d default
_WOFF = 16       # W-axis offset of the image inside the pad scratch (bf16 sublane tile = 16);
                 # taps read column starts _WOFF-1, _WOFF, _WOFF+1.


def _round_up(x, m):
    return ((x + m - 1) // m) * m


def _pick_row_block(H, W, pool):
    """Largest row block th that divides H, is even when pooling, with th*W ~ 512 rows."""
    target = max(2 if pool else 1, 512 // max(W, 1))
    target = min(target, H)
    for th in range(target, 0, -1):
        if H % th == 0 and (not pool or th % 2 == 0):
            return th
    return H


# ----------------------------------------------------------------------------
# Fused conv3x3 + folded-BN bias + ReLU (+ optional fused 2x2 maxpool) kernel
# Grid = (batch, row-block).  The input image block is resident across the row axis.
# ----------------------------------------------------------------------------
def _conv3x3_bn_relu_kernel(x_ref, w_ref, b_ref, *refs,
                            H, W, Cin, Cout, th, pool, tap):
    """x_ref : (1, H, W, Cin) bf16 (same block for every row step -> fetched once per image)
       w_ref : (9*Cin, Cout)  bf16 weights, BN scale pre-folded, rows ordered (dy, dx, cin)
       b_ref : (1, Cout)      f32 folded BN bias
       refs  : output refs (tap and/or pooled) followed by two VMEM scratches:
                 xpad (th+2, _WOFF+W+1, Cin) bf16 pad scratch, col (th*W, 9*Cin) bf16 im2col."""
    col_ref = refs[-1]
    xpad_ref = refs[-2]
    out_refs = refs[:-2]

    r = pl.program_id(1)
    r_last = pl.num_programs(1) - 1
    r0 = r * th
    if th & (th - 1) == 0:
        r0 = pl.multiple_of(r0, th)

    zrow = jnp.zeros((1, W + 2, Cin), jnp.bfloat16)
    zcol = jnp.zeros((th + 2, 1, Cin), jnp.bfloat16)

    # --- fill the (th+2)-row pad scratch for this row block (self-contained per step) ---
    xpad_ref[1:th + 1, _WOFF:_WOFF + W, :] = x_ref[0, pl.ds(r0, th), :, :]

    @pl.when(r == 0)                                   # top halo row
    def _():
        xpad_ref[0:1, _WOFF - 1:_WOFF + W + 1, :] = zrow

    @pl.when(r > 0)
    def _():
        xpad_ref[0:1, _WOFF:_WOFF + W, :] = x_ref[0, pl.ds(r0 - 1, 1), :, :]

    @pl.when(r == r_last)                              # bottom halo row
    def _():
        xpad_ref[th + 1:th + 2, _WOFF - 1:_WOFF + W + 1, :] = zrow

    @pl.when(r < r_last)
    def _():
        xpad_ref[th + 1:th + 2, _WOFF:_WOFF + W, :] = x_ref[0, pl.ds(r0 + th, 1), :, :]

    # only the two halo columns the taps read (interior is fully overwritten above)
    xpad_ref[:, _WOFF - 1:_WOFF, :] = zcol
    xpad_ref[:, _WOFF + W:_WOFF + W + 1, :] = zcol

    # --- persistent im2col: nine statically-offset stores, then ONE K=9*Cin MXU matmul ---
    for k in range(9):
        dy, dx = divmod(k, 3)
        c0 = _WOFF - 1 + dx
        col_ref[:, k * Cin:(k + 1) * Cin] = (
            xpad_ref[dy:dy + th, c0:c0 + W, :].reshape(th * W, Cin))

    acc = jnp.dot(col_ref[...], w_ref[...], preferred_element_type=jnp.float32)
    y = jnp.maximum(acc + b_ref[...], 0.0).reshape(th, W, Cout)   # bias + ReLU epilogue (f32)

    if tap or not pool:                                # full-resolution (pre-pool) output
        out_refs[0][0, :, :, :] = y.astype(out_refs[0].dtype)
    if pool:                                           # fused 2x2 / stride-2 maxpool
        p2 = jnp.max(y.reshape(th // 2, 2, W, Cout), axis=1)
        p2 = jnp.max(p2.reshape(th // 2, W // 2, 2, Cout), axis=2)
        out_refs[-1][0, :, :, :] = p2.astype(out_refs[-1].dtype)


def conv3x3_bn_relu(x, w, bias, *, pool=False, tap=False):
    """x: (N,H,W,Cin) bf16, w: (9*Cin,Cout) bf16 (BN folded), bias: (1,Cout) f32.
    pool=True fuses the following 2x2 maxpool; tap=True additionally returns the pre-pool
    activation.  Returns full-res, pooled, or (pre_pool, pooled)."""
    N, H, W, Cin = x.shape
    Cout = w.shape[-1]
    assert w.shape[0] == 9 * Cin
    if pool:
        assert H % 2 == 0 and W % 2 == 0, (H, W)
    th = _pick_row_block(H, W, pool)
    assert H % th == 0 and (not pool or th % 2 == 0), (H, th)
    n_rb = H // th

    out_shapes, out_specs = [], []
    if tap or not pool:
        out_shapes.append(jax.ShapeDtypeStruct((N, H, W, Cout), jnp.bfloat16))
        out_specs.append(pl.BlockSpec((1, th, W, Cout), lambda b, r: (b, r, 0, 0)))
    if pool:
        out_shapes.append(jax.ShapeDtypeStruct((N, H // 2, W // 2, Cout), jnp.bfloat16))
        out_specs.append(pl.BlockSpec((1, th // 2, W // 2, Cout), lambda b, r: (b, r, 0, 0)))

    # explicit VMEM budget (double-buffered blocks + scratch), capped for v7x's 64 MiB
    blk_out = 0
    if tap or not pool:
        blk_out += th * W * Cout * 2
    if pool:
        blk_out += (th // 2) * (W // 2) * Cout * 2
    est = (2 * H * W * Cin * 2 + 2 * (9 * Cin * Cout * 2 + Cout * 4) + 2 * blk_out
           + (th + 2) * (_WOFF + W + 1) * Cin * 2 + th * W * 9 * Cin * 2)
    vlim = int(min(64 * 2**20, max(32 * 2**20, 2 * est)))

    kern = functools.partial(_conv3x3_bn_relu_kernel, H=H, W=W, Cin=Cin, Cout=Cout,
                             th=th, pool=pool, tap=tap)
    outs = pl.pallas_call(
        kern,
        out_shape=tuple(out_shapes),
        grid=(N, n_rb),
        in_specs=[
            pl.BlockSpec((1, H, W, Cin), lambda b, r: (b, 0, 0, 0)),
            pl.BlockSpec((9 * Cin, Cout), lambda b, r: (0, 0)),
            pl.BlockSpec((1, Cout), lambda b, r: (0, 0)),
        ],
        out_specs=tuple(out_specs),
        scratch_shapes=[
            pltpu.VMEM((th + 2, _WOFF + W + 1, Cin), jnp.bfloat16),
            pltpu.VMEM((th * W, 9 * Cin), jnp.bfloat16),
        ],
        compiler_params=pltpu.CompilerParams(
            dimension_semantics=("parallel", "parallel"),
            vmem_limit_bytes=vlim),
    )(x, w, bias)
    return outs if len(outs) > 1 else outs[0]


# ----------------------------------------------------------------------------
# Fused small-spatial tail: layers 7..14 + last conv in ONE pallas_call, activations in VMEM
# ----------------------------------------------------------------------------
def _fused_tail_kernel(x_ref, *refs, Ht, Wt, plan):
    n = len(plan)
    w_refs = refs[:n]
    b_refs = refs[n:2 * n]
    out_refs = refs[2 * n:-1]
    xpad_ref = refs[-1]                                # (Ht+2, Wt+2, cmax) bf16 pad scratch

    def conv3x3(xv, w_ref, b_ref, Hc, Wc, Cin, Cout):
        # zero only the halo border of the used (Hc+2, Wc+2, Cin) sub-box
        xpad_ref[0:1, 0:Wc + 2, 0:Cin] = jnp.zeros((1, Wc + 2, Cin), jnp.bfloat16)
        xpad_ref[Hc + 1:Hc + 2, 0:Wc + 2, 0:Cin] = jnp.zeros((1, Wc + 2, Cin), jnp.bfloat16)
        xpad_ref[0:Hc + 2, 0:1, 0:Cin] = jnp.zeros((Hc + 2, 1, Cin), jnp.bfloat16)
        xpad_ref[0:Hc + 2, Wc + 1:Wc + 2, 0:Cin] = jnp.zeros((Hc + 2, 1, Cin), jnp.bfloat16)
        xpad_ref[1:Hc + 1, 1:Wc + 1, 0:Cin] = xv
        cols = []
        for dy in range(3):
            for dx in range(3):
                cols.append(xpad_ref[dy:dy + Hc, dx:dx + Wc, 0:Cin].reshape(Hc * Wc, Cin))
        lhs = jnp.concatenate(cols, axis=1)                            # (Hc*Wc, 9*Cin), tiny
        acc = jnp.dot(lhs, w_ref[...], preferred_element_type=jnp.float32)
        y = jnp.maximum(acc + b_ref[...], 0.0)
        return y.reshape(Hc, Wc, Cout).astype(jnp.bfloat16)

    def pool2(y, Hc, Wc, C):
        p = jnp.max(y.reshape(Hc // 2, 2, Wc, C), axis=1)
        p = jnp.max(p.reshape(Hc // 2, Wc // 2, 2, C), axis=2)
        return p

    xv = x_ref[0, :, :, :]
    Hc, Wc = Ht, Wt
    ti = 0
    for li, (cin, cout, do_pool, is_tap) in enumerate(plan):
        xv = conv3x3(xv, w_refs[li], b_refs[li], Hc, Wc, cin, cout)
        if is_tap:
            out_refs[ti][0, :, :, :] = xv
            ti += 1
        if do_pool:
            xv = pool2(xv, Hc, Wc, cout)
            Hc, Wc = Hc // 2, Wc // 2


def fused_tail(x, tail_params, *, plan):
    """x: (N, Ht, Wt, C0) bf16; tail_params: [(w,(9*Cin,Cout) bf16, bias (1,Cout) f32)] matching plan.
    plan: [(cin, cout, pool_after, is_tap)].  Returns the tap outputs in order."""
    N, Ht, Wt, C0 = x.shape
    assert Ht % 4 == 0 and Wt % 4 == 0, (Ht, Wt)
    cmax = max(cin for cin, _, _, _ in plan)

    tap_shapes = []
    Hc, Wc = Ht, Wt
    for cin, cout, do_pool, is_tap in plan:
        if is_tap:
            tap_shapes.append((N, Hc, Wc, cout))
        if do_pool:
            Hc, Wc = Hc // 2, Wc // 2

    out_shapes = tuple(jax.ShapeDtypeStruct(s, jnp.bfloat16) for s in tap_shapes)
    out_specs = tuple(pl.BlockSpec((1,) + s[1:], lambda b: (b, 0, 0, 0)) for s in tap_shapes)

    in_specs = [pl.BlockSpec((1, Ht, Wt, C0), lambda b: (b, 0, 0, 0))]
    in_specs += [pl.BlockSpec(w.shape, lambda b: (0, 0)) for w, _ in tail_params]
    in_specs += [pl.BlockSpec(b.shape, lambda b_: (0, 0)) for _, b in tail_params]
    args = [x] + [w for w, _ in tail_params] + [b for _, b in tail_params]

    w_bytes = sum(math.prod(w.shape) * 2 + math.prod(b.shape) * 4 for w, b in tail_params)
    out_bytes = sum(math.prod(s) * 2 // N for s in tap_shapes)
    est = (2 * Ht * Wt * C0 * 2 + 2 * w_bytes + 2 * out_bytes
           + (Ht + 2) * (Wt + 2) * cmax * 2 + Ht * Wt * 9 * cmax * 2 + Ht * Wt * cmax * 16)
    vlim = int(min(64 * 2**20, max(32 * 2**20, 2 * est)))

    kern = functools.partial(_fused_tail_kernel, Ht=Ht, Wt=Wt, plan=tuple(plan))
    return pl.pallas_call(
        kern,
        out_shape=out_shapes,
        grid=(N,),
        in_specs=in_specs,
        out_specs=out_specs,
        scratch_shapes=[pltpu.VMEM((Ht + 2, Wt + 2, cmax), jnp.bfloat16)],
        compiler_params=pltpu.CompilerParams(
            dimension_semantics=("parallel",),
            vmem_limit_bytes=vlim),
    )(*args)


# ----------------------------------------------------------------------------
# Parameter construction (deterministic, synthetic; BN folded at build time)
# ----------------------------------------------------------------------------
def _make_conv_bn_params(key, cin, cout, cout_pad=None):
    kw, kg, kb, km, kv = jax.random.split(key, 5)
    fan_in = cin * 9
    w = jax.random.normal(kw, (3, 3, cin, cout), jnp.float32) * (1.0 / math.sqrt(fan_in))
    gamma = jax.random.uniform(kg, (cout,), jnp.float32, 0.8, 1.2)
    beta = jax.random.normal(kb, (cout,), jnp.float32) * 0.1
    rmean = jax.random.normal(km, (cout,), jnp.float32) * 0.1
    rvar = jax.random.uniform(kv, (cout,), jnp.float32, 0.8, 1.2)
    scale = gamma / jnp.sqrt(rvar + _BN_EPS)            # BN inference scale
    bias = beta - rmean * scale                          # BN inference bias
    w_hwio = w * scale[None, None, None, :]              # folded, f32 (reference / XLA layer 0)
    cp = cout if cout_pad is None else cout_pad          # lane-dense padding of Cout
    w_mat = jnp.zeros((9 * cin, cp), jnp.float32).at[:, :cout].set(w_hwio.reshape(9 * cin, cout))
    bias_p = jnp.zeros((1, cp), jnp.float32).at[:, :cout].set(bias[None, :])
    return {"w_hwio": w_hwio, "bias_ref": bias,
            "w": w_mat.astype(jnp.bfloat16), "bias": bias_p,
            "cout": cout, "cout_pad": cp}


def make_vggnet_params(key, planes=(16, 16, 32, 48, 64, 80)):
    # (cin, cout, fuse_following_pool, is_out_idx_tap); taps are pre-pool (out_idx=[5,8,11,14])
    plan = [
        (3,         planes[0], True,  False),   # layers[0]  (+ pool idx 1)  -- XLA
        (planes[0], planes[1], True,  False),   # layers[2]  (+ pool idx 3)
        (planes[1], planes[2], False, False),   # layers[4]
        (planes[2], planes[2], True,  True),    # layers[5]  -> out[0] (+ pool idx 6)
        (planes[2], planes[3], False, False),   # layers[7]
        (planes[3], planes[3], True,  True),    # layers[8]  -> out[1] (+ pool idx 9)
        (planes[3], planes[4], False, False),   # layers[10]
        (planes[4], planes[4], True,  True),    # layers[11] -> out[2] (+ pool idx 12)
        (planes[4], planes[5], False, False),   # layers[13]
        (planes[5], planes[5], False, False),   # layers[14] (feeds last_layer -> out[3])
    ]
    layers = []
    for cin, cout, pool, tap in plan:
        key, sub = jax.random.split(key)
        layers.append({**_make_conv_bn_params(sub, cin, cout), "pool": pool, "tap": tap})
    key, sub = jax.random.split(key)
    last = _make_conv_bn_params(sub, planes[5], planes[5] * 6,
                                cout_pad=_round_up(planes[5] * 6, 128))  # 480 -> 512
    return {"layers": layers, "last": last}


# ----------------------------------------------------------------------------
# Forward pass (matches VGGNet.forward), NCHW in / NCHW f32 out
# ----------------------------------------------------------------------------
def _run_layer(x, p):
    if p["pool"] and p["tap"]:
        tap_out, xo = conv3x3_bn_relu(x, p["w"], p["bias"], pool=True, tap=True)
        return xo, tap_out
    if p["pool"]:
        return conv3x3_bn_relu(x, p["w"], p["bias"], pool=True), None
    xo = conv3x3_bn_relu(x, p["w"], p["bias"])
    return xo, (xo if p["tap"] else None)


def vggnet_forward(x_nchw, params):
    layers = params["layers"]
    last = params["last"]
    x = jnp.transpose(x_nchw, (0, 2, 3, 1)).astype(jnp.float32)   # NCHW -> NHWC

    # ---- layer 0 (Cin=3) + maxpool via XLA (see header note / perf review) ----
    l0 = layers[0]
    y = lax.conv_general_dilated(x, l0["w_hwio"], (1, 1), "SAME",
                                 dimension_numbers=("NHWC", "HWIO", "NHWC"))
    y = jnp.maximum(y + l0["bias_ref"][None, None, None, :], 0.0)
    y = lax.reduce_window(y, -jnp.inf, lax.max, (1, 2, 2, 1), (1, 2, 2, 1), "VALID")
    x = y.astype(jnp.bfloat16)

    outs = []
    for p in layers[1:4]:                    # layers[2], [4], [5](tap) + their pools
        x, tap_out = _run_layer(x, p)
        if tap_out is not None:
            outs.append(tap_out)

    # ---- small-spatial tail (layers[7..14] + last conv) ----
    N, Ht, Wt, _ = x.shape
    tail_layers = layers[4:]
    tail_plan = [(p["w"].shape[0] // 9, p["cout_pad"], p["pool"], p["tap"]) for p in tail_layers]
    tail_plan.append((last["w"].shape[0] // 9, last["cout_pad"], False, True))
    tail_params = [(p["w"], p["bias"]) for p in tail_layers] + [(last["w"], last["bias"])]

    if Ht * Wt <= 1024 and Ht % 4 == 0 and Wt % 4 == 0:
        tail_outs = fused_tail(x, tail_params, plan=tail_plan)
        outs.extend(tail_outs[:-1])
        out3 = tail_outs[-1]
    else:                                    # fallback for large spatial sizes
        for p in tail_layers:
            x, tap_out = _run_layer(x, p)
            if tap_out is not None:
                outs.append(tap_out)
        out3 = conv3x3_bn_relu(x, last["w"], last["bias"])
    outs.append(out3[..., :last["cout"]])    # slice off the 480->512 lane padding

    return [jnp.transpose(o, (0, 3, 1, 2)).astype(jnp.float32) for o in outs]


def vggnet_forward_reference(x_nchw, params):
    """Pure-XLA fp32 reference with the same folded weights (for the tolerance check)."""
    layers = params["layers"]
    last = params["last"]
    x = jnp.transpose(x_nchw, (0, 2, 3, 1)).astype(jnp.float32)
    outs = []
    for p in layers:
        y = lax.conv_general_dilated(x, p["w_hwio"], (1, 1), "SAME",
                                     dimension_numbers=("NHWC", "HWIO", "NHWC"))
        y = jnp.maximum(y + p["bias_ref"][None, None, None, :], 0.0)
        if p["tap"]:
            outs.append(y)
        if p["pool"]:
            y = lax.reduce_window(y, -jnp.inf, lax.max, (1, 2, 2, 1), (1, 2, 2, 1), "VALID")
        x = y
    y = lax.conv_general_dilated(x, last["w_hwio"], (1, 1), "SAME",
                                 dimension_numbers=("NHWC", "HWIO", "NHWC"))
    y = jnp.maximum(y + last["bias_ref"][None, None, None, :], 0.0)
    outs.append(y)
    return [jnp.transpose(o, (0, 3, 1, 2)) for o in outs]


# ----------------------------------------------------------------------------
if __name__ == "__main__":
    key = jax.random.PRNGKey(0)
    pkey, xkey = jax.random.split(key)

    planes = (16, 16, 32, 48, 64, 80)
    params = make_vggnet_params(pkey, planes)

    # small input consistent with the module: batch=2, RGB, 64x64 spatial (5 pools -> 2x2)
    x = jax.random.normal(xkey, (2, 3, 64, 64), jnp.float32)

    outs = [jax.block_until_ready(o) for o in vggnet_forward(x, params)]
    refs = [jax.block_until_ready(o) for o in vggnet_forward_reference(x, params)]

    expected = [
        (2, planes[2], 16, 16),
        (2, planes[3], 8, 8),
        (2, planes[4], 4, 4),
        (2, planes[5] * 6, 2, 2),
    ]
    for i, (o, r, e) in enumerate(zip(outs, refs, expected)):
        assert o.shape == e, (i, o.shape, e)
        assert r.shape == e, (i, r.shape, e)
        assert bool(jnp.all(jnp.isfinite(o))), i
        assert bool(jnp.all(o >= 0.0)), i                     # ReLU output
        scale = float(jnp.max(jnp.abs(r))) + 1e-6
        err = float(jnp.max(jnp.abs(o - r)))
        assert err <= 0.15 * scale + 1e-3, (i, err, scale)    # bf16 kernel vs fp32 reference

    print("KERNEL_OK")
</pallas_src>

<mosaic_0001>
module attributes {stable_mosaic.version = 11 : i64} {
  func.func @_conv3x3_bn_relu_kernel(%arg0: i32, %arg1: i32, %arg2: memref<1x32x32x16xbf16, #tpu.memory_space<vmem>>, %arg3: memref<144x16xbf16, #tpu.memory_space<vmem>>, %arg4: memref<1x16xf32, #tpu.memory_space<vmem>>, %arg5: memref<1x8x16x16xbf16, #tpu.memory_space<vmem>>, %arg6: memref<18x49x16xbf16, #tpu.memory_space<vmem>>, %arg7: memref<512x144xbf16, #tpu.memory_space<vmem>>) attributes {dimension_semantics = [#tpu.dimension_semantics<parallel>, #tpu.dimension_semantics<parallel>], iteration_bounds = array<i64: 2, 2>, scalar_prefetch = 0 : i64, scratch_operands = 2 : i64, tpu.core_type = #tpu.core_type<tc>, window_params = [{transform_indices = @transform_0, window_bounds = array<i64: 1, 32, 32, 16>}, {pipeline_mode = #tpu.pipeline_mode<synchronous>, transform_indices = @transform_1, window_bounds = array<i64: 144, 16>}, {pipeline_mode = #tpu.pipeline_mode<synchronous>, transform_indices = @transform_2, window_bounds = array<i64: 1, 16>}, {transform_indices = @transform_3, window_bounds = array<i64: 1, 8, 16, 16>}]} {
    %c16_i32 = arith.constant 16 : i32
    %0 = arith.muli %arg1, %c16_i32 : i32
    %1 = tpu.assume_multiple %0, 16 : i32
    %cst = arith.constant 0.000000e+00 : bf16
    %2 = vector.broadcast %cst : bf16 to vector<1x34x16xbf16>
    %cst_0 = arith.constant 0.000000e+00 : bf16
    %3 = vector.broadcast %cst_0 : bf16 to vector<18x1x16xbf16>
    %c0 = arith.constant 0 : index
    %4 = arith.index_cast %1 : i32 to index
    %c0_1 = arith.constant 0 : index
    %c0_2 = arith.constant 0 : index
    %5 = vector.load %arg2[%c0, %4, %c0_1, %c0_2] : memref<1x32x32x16xbf16, #tpu.memory_space<vmem>>, vector<1x16x32x16xbf16>
    %6 = vector.shape_cast %5 : vector<1x16x32x16xbf16> to vector<16x32x16xbf16>
    %c1 = arith.constant 1 : index
    %c16 = arith.constant 16 : index
    %c0_3 = arith.constant 0 : index
    %7 = vector.load %arg6[%c1, %c16, %c0_3] : memref<18x49x16xbf16, #tpu.memory_space<vmem>>, vector<16x32x16xbf16>
    tpu.vector_store %arg6[%c1, %c16, %c0_3], %6 {strides = array<i32>} : memref<18x49x16xbf16, #tpu.memory_space<vmem>>, vector<16x32x16xbf16>,
    %c0_i32 = arith.constant 0 : i32
    %8 = arith.cmpi eq, %arg1, %c0_i32 : i32
    %9 = arith.extui %8 : i1 to i32
    %c0_i32_4 = arith.constant 0 : i32
    %10 = arith.cmpi ne, %9, %c0_i32_4 : i32
    scf.if %10 {
      %c0_65 = arith.constant 0 : index
      %c15_66 = arith.constant 15 : index
      %c0_67 = arith.constant 0 : index
      %66 = vector.load %arg6[%c0_65, %c15_66, %c0_67] : memref<18x49x16xbf16, #tpu.memory_space<vmem>>, vector<1x34x16xbf16>
      tpu.vector_store %arg6[%c0_65, %c15_66, %c0_67], %2 {strides = array<i32>} : memref<18x49x16xbf16, #tpu.memory_space<vmem>>, vector<1x34x16xbf16>,
    } else {
    }
    %c0_i32_5 = arith.constant 0 : i32
    %11 = arith.cmpi sgt, %arg1, %c0_i32_5 : i32
    %12 = arith.extui %11 : i1 to i32
    %c0_i32_6 = arith.constant 0 : i32
    %13 = arith.cmpi ne, %12, %c0_i32_6 : i32
    scf.if %13 {
      %c1_i32_65 = arith.constant 1 : i32
      %66 = arith.subi %1, %c1_i32_65 : i32
      %c0_66 = arith.constant 0 : index
      %67 = arith.index_cast %66 : i32 to index
      %c0_67 = arith.constant 0 : index
      %c0_68 = arith.constant 0 : index
      %68 = vector.load %arg2[%c0_66, %67, %c0_67, %c0_68] : memref<1x32x32x16xbf16, #tpu.memory_space<vmem>>, vector<1x1x32x16xbf16>
      %69 = vector.shape_cast %68 : vector<1x1x32x16xbf16> to vector<1x32x16xbf16>
      %c0_69 = arith.constant 0 : index
      %c16_70 = arith.constant 16 : index
      %c0_71 = arith.constant 0 : index
      %70 = vector.load %arg6[%c0_69, %c16_70, %c0_71] : memref<18x49x16xbf16, #tpu.memory_space<vmem>>, vector<1x32x16xbf16>
      tpu.vector_store %arg6[%c0_69, %c16_70, %c0_71], %69 {strides = array<i32>} : memref<18x49x16xbf16, #tpu.memory_space<vmem>>, vector<1x32x16xbf16>,
    } else {
    }
    %c1_i32 = arith.constant 1 : i32
    %14 = arith.cmpi eq, %arg1, %c1_i32 : i32
    %15 = arith.extui %14 : i1 to i32
    %c0_i32_7 = arith.constant 0 : i32
    %16 = arith.cmpi ne, %15, %c0_i32_7 : i32
    scf.if %16 {
      %c17_65 = arith.constant 17 : index
      %c15_66 = arith.constant 15 : index
      %c0_67 = arith.constant 0 : index
      %66 = vector.load %arg6[%c17_65, %c15_66, %c0_67] : memref<18x49x16xbf16, #tpu.memory_space<vmem>>, vector<1x34x16xbf16>
      tpu.vector_store %arg6[%c17_65, %c15_66, %c0_67], %2 {strides = array<i32>} : memref<18x49x16xbf16, #tpu.memory_space<vmem>>, vector<1x34x16xbf16>,
    } else {
    }
    %c1_i32_8 = arith.constant 1 : i32
    %17 = arith.cmpi slt, %arg1, %c1_i32_8 : i32
    %18 = arith.extui %17 : i1 to i32
    %c0_i32_9 = arith.constant 0 : i32
    %19 = arith.cmpi ne, %18, %c0_i32_9 : i32
    scf.if %19 {
      %c16_i32_65 = arith.constant 16 : i32
      %66 = arith.addi %1, %c16_i32_65 : i32
      %c0_66 = arith.constant 0 : index
      %67 = arith.index_cast %66 : i32 to index
      %c0_67 = arith.constant 0 : index
      %c0_68 = arith.constant 0 : index
      %68 = vector.load %arg2[%c0_66, %67, %c0_67, %c0_68] : memref<1x32x32x16xbf16, #tpu.memory_space<vmem>>, vector<1x1x32x16xbf16>
      %69 = vector.shape_cast %68 : vector<1x1x32x16xbf16> to vector<1x32x16xbf16>
      %c17_69 = arith.constant 17 : index
      %c16_70 = arith.constant 16 : index
      %c0_71 = arith.constant 0 : index
      %70 = vector.load %arg6[%c17_69, %c16_70, %c0_71] : memref<18x49x16xbf16, #tpu.memory_space<vmem>>, vector<1x32x16xbf16>
      tpu.vector_store %arg6[%c17_69, %c16_70, %c0_71], %69 {strides = array<i32>} : memref<18x49x16xbf16, #tpu.memory_space<vmem>>, vector<1x32x16xbf16>,
    } else {
    }
    %c0_10 = arith.constant 0 : index
    %c15 = arith.constant 15 : index
    %c0_11 = arith.constant 0 : index
    %20 = vector.load %arg6[%c0_10, %c15, %c0_11] : memref<18x49x16xbf16, #tpu.memory_space<vmem>>, vector<18x1x16xbf16>
    tpu.vector_store %arg6[%c0_10, %c15, %c0_11], %3 {strides = array<i32>} : memref<18x49x16xbf16, #tpu.memory_space<vmem>>, vector<18x1x16xbf16>,
    %c0_12 = arith.constant 0 : index
    %c48 = arith.constant 48 : index
    %c0_13 = arith.constant 0 : index
    %21 = vector.load %arg6[%c0_12, %c48, %c0_13] : memref<18x49x16xbf16, #tpu.memory_space<vmem>>, vector<18x1x16xbf16>
    tpu.vector_store %arg6[%c0_12, %c48, %c0_13], %3 {strides = array<i32>} : memref<18x49x16xbf16, #tpu.memory_space<vmem>>, vector<18x1x16xbf16>,
    %c0_14 = arith.constant 0 : index
    %c15_15 = arith.constant 15 : index
    %c0_16 = arith.constant 0 : index
    %22 = vector.load %arg6[%c0_14, %c15_15, %c0_16] : memref<18x49x16xbf16, #tpu.memory_space<vmem>>, vector<16x32x16xbf16>
    %23 = vector.shape_cast %22 : vector<16x32x16xbf16> to vector<512x16xbf16>
    %c0_17 = arith.constant 0 : index
    %c0_18 = arith.constant 0 : index
    %24 = vector.load %arg7[%c0_17, %c0_18] : memref<512x144xbf16, #tpu.memory_space<vmem>>, vector<512x16xbf16>
    tpu.vector_store %arg7[%c0_17, %c0_18], %23 {strides = array<i32>} : memref<512x144xbf16, #tpu.memory_space<vmem>>, vector<512x16xbf16>,
    %c0_19 = arith.constant 0 : index
    %c16_20 = arith.constant 16 : index
    %c0_21 = arith.constant 0 : index
    %25 = vector.load %arg6[%c0_19, %c16_20, %c0_21] : memref<18x49x16xbf16, #tpu.memory_space<vmem>>, vector<16x32x16xbf16>
    %26 = vector.shape_cast %25 : vector<16x32x16xbf16> to vector<512x16xbf16>
    %c0_22 = arith.constant 0 : index
    %c16_23 = arith.constant 16 : index
    %27 = vector.load %arg7[%c0_22, %c16_23] : memref<512x144xbf16, #tpu.memory_space<vmem>>, vector<512x16xbf16>
    tpu.vector_store %arg7[%c0_22, %c16_23], %26 {strides = array<i32>} : memref<512x144xbf16, #tpu.memory_space<vmem>>, vector<512x16xbf16>,
    %c0_24 = arith.constant 0 : index
    %c17 = arith.constant 17 : index
    %c0_25 = arith.constant 0 : index
    %28 = vector.load %arg6[%c0_24, %c17, %c0_25] : memref<18x49x16xbf16, #tpu.memory_space<vmem>>, vector<16x32x16xbf16>
    %29 = vector.shape_cast %28 : vector<16x32x16xbf16> to vector<512x16xbf16>
    %c0_26 = arith.constant 0 : index
    %c32 = arith.constant 32 : index
    %30 = vector.load %arg7[%c0_26, %c32] : memref<512x144xbf16, #tpu.memory_space<vmem>>, vector<512x16xbf16>
    tpu.vector_store %arg7[%c0_26, %c32], %29 {strides = array<i32>} : memref<512x144xbf16, #tpu.memory_space<vmem>>, vector<512x16xbf16>,
    %c1_27 = arith.constant 1 : index
    %c15_28 = arith.constant 15 : index
    %c0_29 = arith.constant 0 : index
    %31 = vector.load %arg6[%c1_27, %c15_28, %c0_29] : memref<18x49x16xbf16, #tpu.memory_space<vmem>>, vector<16x32x16xbf16>
    %32 = vector.shape_cast %31 : vector<16x32x16xbf16> to vector<512x16xbf16>
    %c0_30 = arith.constant 0 : index
    %c48_31 = arith.constant 48 : index
    %33 = vector.load %arg7[%c0_30, %c48_31] : memref<512x144xbf16, #tpu.memory_space<vmem>>, vector<512x16xbf16>
    tpu.vector_store %arg7[%c0_30, %c48_31], %32 {strides = array<i32>} : memref<512x144xbf16, #tpu.memory_space<vmem>>, vector<512x16xbf16>,
    %c1_32 = arith.constant 1 : index
    %c16_33 = arith.constant 16 : index
    %c0_34 = arith.constant 0 : index
    %34 = vector.load %arg6[%c1_32, %c16_33, %c0_34] : memref<18x49x16xbf16, #tpu.memory_space<vmem>>, vector<16x32x16xbf16>
    %35 = vector.shape_cast %34 : vector<16x32x16xbf16> to vector<512x16xbf16>
    %c0_35 = arith.constant 0 : index
    %c64 = arith.constant 64 : index
    %36 = vector.load %arg7[%c0_35, %c64] : memref<512x144xbf16, #tpu.memory_space<vmem>>, vector<512x16xbf16>
    tpu.vector_store %arg7[%c0_35, %c64], %35 {strides = array<i32>} : memref<512x144xbf16, #tpu.memory_space<vmem>>, vector<512x16xbf16>,
    %c1_36 = arith.constant 1 : index
    %c17_37 = arith.constant 17 : index
    %c0_38 = arith.constant 0 : index
    %37 = vector.load %arg6[%c1_36, %c17_37, %c0_38] : memref<18x49x16xbf16, #tpu.memory_space<vmem>>, vector<16x32x16xbf16>
    %38 = vector.shape_cast %37 : vector<16x32x16xbf16> to vector<512x16xbf16>
    %c0_39 = arith.constant 0 : index
    %c80 = arith.constant 80 : index
    %39 = vector.load %arg7[%c0_39, %c80] : memref<512x144xbf16, #tpu.memory_space<vmem>>, vector<512x16xbf16>
    tpu.vector_store %arg7[%c0_39, %c80], %38 {strides = array<i32>} : memref<512x144xbf16, #tpu.memory_space<vmem>>, vector<512x16xbf16>,
    %c2 = arith.constant 2 : index
    %c15_40 = arith.constant 15 : index
    %c0_41 = arith.constant 0 : index
    %40 = vector.load %arg6[%c2, %c15_40, %c0_41] : memref<18x49x16xbf16, #tpu.memory_space<vmem>>, vector<16x32x16xbf16>
    %41 = vector.shape_cast %40 : vector<16x32x16xbf16> to vector<512x16xbf16>
    %c0_42 = arith.constant 0 : index
    %c96 = arith.constant 96 : index
    %42 = vector.load %arg7[%c0_42, %c96] : memref<512x144xbf16, #tpu.memory_space<vmem>>, vector<512x16xbf16>
    tpu.vector_store %arg7[%c0_42, %c96], %41 {strides = array<i32>} : memref<512x144xbf16, #tpu.memory_space<vmem>>, vector<512x16xbf16>,
    %c2_43 = arith.constant 2 : index
    %c16_44 = arith.constant 16 : index
    %c0_45 = arith.constant 0 : index
    %43 = vector.load %arg6[%c2_43, %c16_44, %c0_45] : memref<18x49x16xbf16, #tpu.memory_space<vmem>>, vector<16x32x16xbf16>
    %44 = vector.shape_cast %43 : vector<16x32x16xbf16> to vector<512x16xbf16>
    %c0_46 = arith.constant 0 : index
    %c112 = arith.constant 112 : index
    %45 = vector.load %arg7[%c0_46, %c112] : memref<512x144xbf16, #tpu.memory_space<vmem>>, vector<512x16xbf16>
    tpu.vector_store %arg7[%c0_46, %c112], %44 {strides = array<i32>} : memref<512x144xbf16, #tpu.memory_space<vmem>>, vector<512x16xbf16>,
    %c2_47 = arith.constant 2 : index
    %c17_48 = arith.constant 17 : index
    %c0_49 = arith.constant 0 : index
    %46 = vector.load %arg6[%c2_47, %c17_48, %c0_49] : memref<18x49x16xbf16, #tpu.memory_space<vmem>>, vector<16x32x16xbf16>
    %47 = vector.shape_cast %46 : vector<16x32x16xbf16> to vector<512x16xbf16>
    %c0_50 = arith.constant 0 : index
    %c128 = arith.constant 128 : index
    %48 = vector.load %arg7[%c0_50, %c128] : memref<512x144xbf16, #tpu.memory_space<vmem>>, vector<512x16xbf16>
    tpu.vector_store %arg7[%c0_50, %c128], %47 {strides = array<i32>} : memref<512x144xbf16, #tpu.memory_space<vmem>>, vector<512x16xbf16>,
    %c0_51 = arith.constant 0 : index
    %c0_52 = arith.constant 0 : index
    %49 = vector.load %arg7[%c0_51, %c0_52] : memref<512x144xbf16, #tpu.memory_space<vmem>>, vector<512x144xbf16>
    %c0_53 = arith.constant 0 : index
    %c0_54 = arith.constant 0 : index
    %50 = vector.load %arg3[%c0_53, %c0_54] : memref<144x16xbf16, #tpu.memory_space<vmem>>, vector<144x16xbf16>
    %cst_55 = arith.constant dense<0.000000e+00> : vector<512x16xf32>
    %51 = tpu.matmul %49, %50, %cst_55 {dimension_numbers = #tpu.dot_dimension_numbers<[1], [0], [0], [1], [0, 0, 1, 1], [], []>} : vector<512x144xbf16>, vector<144x16xbf16>, vector<512x16xf32> -> vector<512x16xf32>
    %c0_56 = arith.constant 0 : index
    %c0_57 = arith.constant 0 : index
    %52 = vector.load %arg4[%c0_56, %c0_57] : memref<1x16xf32, #tpu.memory_space<vmem>>, vector<1x16xf32>
    %53 = vector.broadcast %52 : vector<1x16xf32> to vector<512x16xf32>
    %54 = arith.addf %51, %53 : vector<512x16xf32>
    %cst_58 = arith.constant 0.000000e+00 : f32
    %55 = vector.broadcast %cst_58 : f32 to vector<512x16xf32>
    %56 = arith.maximumf %54, %55 : vector<512x16xf32>
    %57 = vector.shape_cast %56 : vector<512x16xf32> to vector<16x32x16xf32>
    %58 = vector.shape_cast %57 : vector<16x32x16xf32> to vector<8x2x32x16xf32>
    %cst_59 = arith.constant dense<0xFF800000> : vector<8x32x16xf32>
    %59 = vector.multi_reduction <maximumf>, %58, %cst_59 [1] : vector<8x2x32x16xf32> to vector<8x32x16xf32>
    %60 = vector.shape_cast %59 : vector<8x32x16xf32> to vector<8x16x2x16xf32>
    %cst_60 = arith.constant dense<0xFF800000> : vector<8x16x16xf32>
    %61 = vector.multi_reduction <maximumf>, %60, %cst_60 [2] : vector<8x16x2x16xf32> to vector<8x16x16xf32>
    %62 = arith.truncf %61 : vector<8x16x16xf32> to vector<8x16x16xbf16>
    %c0_61 = arith.constant 0 : index
    %c0_62 = arith.constant 0 : index
    %c0_63 = arith.constant 0 : index
    %c0_64 = arith.constant 0 : index
    %63 = vector.load %arg5[%c0_61, %c0_62, %c0_63, %c0_64] : memref<1x8x16x16xbf16, #tpu.memory_space<vmem>>, vector<1x8x16x16xbf16>
    %64 = vector.shape_cast %63 : vector<1x8x16x16xbf16> to vector<8x16x16xbf16>
    %65 = vector.shape_cast %62 : vector<8x16x16xbf16> to vector<1x8x16x16xbf16>
    tpu.vector_store %arg5[%c0_61, %c0_62, %c0_63, %c0_64], %65 {strides = array<i32>} : memref<1x8x16x16xbf16, #tpu.memory_space<vmem>>, vector<1x8x16x16xbf16>,
    return
  }
  func.func @transform_0(%arg0: i32, %arg1: i32) -> (i32, i32, i32, i32) {
    %c0_i32 = arith.constant 0 : i32
    %c0_i32_0 = arith.constant 0 : i32
    %c0_i32_1 = arith.constant 0 : i32
    %c0_i32_2 = arith.constant 0 : i32
    return %arg0, %c0_i32, %c0_i32_0, %c0_i32_1 : i32, i32, i32, i32
  }
  func.func @transform_1(%arg0: i32, %arg1: i32) -> (i32, i32) {
    %c0_i32 = arith.constant 0 : i32
    %c0_i32_0 = arith.constant 0 : i32
    %c0_i32_1 = arith.constant 0 : i32
    return %c0_i32, %c0_i32_0 : i32, i32
  }
  func.func @transform_2(%arg0: i32, %arg1: i32) -> (i32, i32) {
    %c0_i32 = arith.constant 0 : i32
    %c0_i32_0 = arith.constant 0 : i32
    %c0_i32_1 = arith.constant 0 : i32
    return %c0_i32, %c0_i32_0 : i32, i32
  }
  func.func @transform_3(%arg0: i32, %arg1: i32) -> (i32, i32, i32, i32) {
    %c0_i32 = arith.constant 0 : i32
    %c0_i32_0 = arith.constant 0 : i32
    %c0_i32_1 = arith.constant 0 : i32
    return %arg0, %arg1, %c0_i32, %c0_i32_0 : i32, i32, i32, i32
  }
}

</mosaic_0001>

<bundles_post_ra>
// kernel: tpu_custom_call.1
= control target key start
LH: loop header
LB: loop body
LE: loop exit
PB: predicated region body
PF: predicated region fallthrough
CT: control target
= control target key end

     0   :  { %8 = vsyncpa [#allocation5], 0  ;;  %s16661_s0 = inlined_call_operand.vmem [shape: bf16[2,32,32,16], index: 0, kind: input, shape index: {}]   ;;  %s16662_s1 = inlined_call_operand.vmem [shape: bf16[144,16], index: 1, kind: input, shape index: {}]   ;;  %s16663_s2 = inlined_call_operand.vmem [shape: f32[1,16], index: 2, kind: input, shape index: {}]   ;;  %s16664_s3 = inlined_call_operand.hbm [shape: bf16[2,16,16,16], index: 3, kind: output, shape index: {}]  }
   0x1   :  { %10 = vsyncpa [#allocation5 + $0x1], 0  ;;  %s11705_s12 = smov 0   ;;  %s11707_s13 = smov 0  }
   0x2   :  { %s11709_s14 = smov 0   ;;  %s11711_s15 = smov 0  }
   0x3   :  { %s11713_s16 = smov 0   ;;  %s11715_s17 = smov 0  }
   0x4   :  { %s11717_s18 = smov 0   ;;  %s11719_s19 = smov 0  }
   0x5 LB: > { %s10950_s20 = sadd.s32 4294967295, %s11670_s19   ;;  %s10951_s21 = sadd.s32 4294967294, %s11670_s19   ;;  %s11670_s19 = sphi %s11719_s19, %s16_s19   ;;  %s11666_s18 = sphi %s11717_s18, %s16759_s18   ;;  %s11662_s17 = sphi %s11715_s17, %s16758_s17   ;;  %s11658_s16 = sphi %s11713_s16, %s16757_s16   ;;  %s11654_s15 = sphi %s11711_s15, %s16756_s15   ;;  %s11650_s14 = sphi %s11709_s14, %s16755_s14   ;;  %s11646_s13 = sphi %s11707_s13, %s16754_s13   ;;  %s11642_s12 = sphi %s11705_s12, %s16753_s12  }
   0x6   : > { %s25_s22 = sadd.s32 1, %s11662_s17  ;;  %s28_s23 = sadd.s32 1, %s11666_s18 }
   0x7   : > { %p26_p0 = scmp.ge.s32.totalorder %s25_s22, 2  ;;  %p115_p1 = scmp.ne.s32.totalorder %s11650_s14, %s11646_s13 }
   0x8   : > { %p116_p2 = scmp.eq.s32.totalorder %s10950_s20, 3  ;;  %p121_p5 = scmp.ne.s32.totalorder %s11646_s13, %s11642_s12 }
   0x9   : > { %s16761_s22 = smov (%p26_p0, %s25_s22), 0  ;;  %s16763_s23 = smov (!%p26_p0, %s28_s23), %s11666_s18 }
   0xa   : > { %s101_s24 = ssub.s32 %s11662_s17, %s16761_s22  ;;  %p11756_p3 = por %p116_p2, %p115_p1 }
   0xb   : > { %p30_p4 = scmp.ge.s32.totalorder %s16763_s23, 2  ;;  %p122_p6 = scmp.eq.s32.totalorder %s10951_s21, 3 }
   0xc   : > { %p10954_p7 = scmp.ge.s32.totalorder %s11670_s19, 1  ;;  %p154_p9 = scmp.lt.s32.totalorder %s11670_s19, 5 }
   0xd   : > { %s16765_s23 = smov (%p30_p4, %s16763_s23), 0  ;;  %p11765_p8 = por %p122_p6, %p121_p5 }
   0xe   : > { %s100_s27 = ssub.s32 %s11666_s18, %s16765_s23  ;;  %s105_s28 = sadd.s32 1, %s11650_s14 }
   0xf   : > { %s102_s29 = sor.u32 %s101_s24, %s100_s27  ;;  %p155_p10 = pnand %p10954_p7, %p154_p9 }
  0x10   : > { %p103_p11 = scmp.eq.s32.totalorder %s102_s29, 0 }
  0x11   : > { %158 = sbr.rel (%p155_p10) target bundleno = 1527 (0x5f7), region = 32 }
  0x12   : > { %s11774_s30 = scalar_select %p103_p11, %s11650_s14, %s105_s28  }
  0x16   : > { %s175_s4 = sand.u32 1, %s11646_s13   ;;  %p178_p12 = scmp.lt.s32.totalorder %s11658_s16, 1  ;;  %vm254_vm0 = vcmask 125952  }
  0x17   : > { %s11780_s5 = sshll.u32 %s175_s4, 6  ;;  %s10958_s6 = sshll.u32 %s11654_s15, 4 }
  0x18   : > { %s179_s7 = scalar_select %p178_p12, %s11658_s16, 1 }
  0x19   : > { %s11265_s8 = sshll.u32 %s11654_s15, 8  ;;  %s11922_s24 = scalar_lea.vmem [#allocation4], %s11780_s5 }
  0x1a   : > { %s11263_s9 = sshll.u32 %s179_s7, 9  ;;  %p10961_p13 = scmp.ne.s32.totalorder %s11654_s15, 0 }
  0x1b   : > { %s11788_s20 = scalar_lea.vmem %s16661_s0, %s11263_s9 }
  0x1c   : > { %s11791_s21 = scalar_lea.vmem %s11788_s20, %s11265_s8 }
  0x1d   : > { %v189_v0 = vld [vmem:[%s11791_s21] sm:$0xf]  ;;  %v190_v1 = vld [vmem:[%s11791_s21 + $0x4] sm:$0xf]  ;;  %v191_v2 = vld [vmem:[%s11791_s21 + $0x8] sm:$0xf] }
  0x1e   : > { %255 = vst.msk [vmem:[#allocation2 + $0x24] sm:$0xf] %vm254_vm0, %v189_v0  ;;  %256 = vst.msk [vmem:[#allocation2 + $0x28] sm:$0xf] %vm254_vm0, %v190_v1  ;;  %v192_v3 = vld [vmem:[%s11791_s21 + $0xc] sm:$0xf] }
  0x1f   : > { %257 = vst.msk [vmem:[#allocation2 + $0x2c] sm:$0xf] %vm254_vm0, %v191_v2  ;;  %v193_v4 = vld [vmem:[%s11791_s21 + $0x10] sm:$0xf]  ;;  %v194_v5 = vld [vmem:[%s11791_s21 + $0x14] sm:$0xf] }
  0x20   : > { %258 = vst.msk [vmem:[#allocation2 + $0x30] sm:$0xf] %vm254_vm0, %v192_v3  ;;  %259 = vst.msk [vmem:[#allocation2 + $0x40] sm:$0xf] %vm254_vm0, %v193_v4  ;;  %v195_v6 = vld [vmem:[%s11791_s21 + $0x18] sm:$0xf] }
  0x21   : > { %260 = vst.msk [vmem:[#allocation2 + $0x44] sm:$0xf] %vm254_vm0, %v194_v5  ;;  %v196_v7 = vld [vmem:[%s11791_s21 + $0x1c] sm:$0xf]  ;;  %v197_v8 = vld [vmem:[%s11791_s21 + $0x20] sm:$0xf] }
  0x22   : > { %261 = vst.msk [vmem:[#allocation2 + $0x48] sm:$0xf] %vm254_vm0, %v195_v6  ;;  %262 = vst.msk [vmem:[#allocation2 + $0x4c] sm:$0xf] %vm254_vm0, %v196_v7  ;;  %v198_v9 = vld [vmem:[%s11791_s21 + $0x24] sm:$0xf] }
  0x23   : > { %263 = vst.msk [vmem:[#allocation2 + $0x5c] sm:$0xf] %vm254_vm0, %v197_v8  ;;  %v199_v10 = vld [vmem:[%s11791_s21 + $0x28] sm:$0xf]  ;;  %v200_v11 = vld [vmem:[%s11791_s21 + $0x2c] sm:$0xf] }
  0x24   : > { %264 = vst.msk [vmem:[#allocation2 + $0x60] sm:$0xf] %vm254_vm0, %v198_v9  ;;  %265 = vst.msk [vmem:[#allocation2 + $0x64] sm:$0xf] %vm254_vm0, %v199_v10  ;;  %v201_v12 = vld [vmem:[%s11791_s21 + $0x30] sm:$0xf] }
  0x25   : > { %266 = vst.msk [vmem:[#allocation2 + $0x68] sm:$0xf] %vm254_vm0, %v200_v11  ;;  %v202_v13 = vld [vmem:[%s11791_s21 + $0x34] sm:$0xf]  ;;  %v203_v14 = vld [vmem:[%s11791_s21 + $0x38] sm:$0xf] }
  0x26   : > { %267 = vst.msk [vmem:[#allocation2 + $0x78] sm:$0xf] %vm254_vm0, %v201_v12  ;;  %268 = vst.msk [vmem:[#allocation2 + $0x7c] sm:$0xf] %vm254_vm0, %v202_v13  ;;  %v204_v15 = vld [vmem:[%s11791_s21 + $0x3c] sm:$0xf] }
  0x27   : > { %269 = vst.msk [vmem:[#allocation2 + $0x80] sm:$0xf] %vm254_vm0, %v203_v14  ;;  %v205_v16 = vld [vmem:[%s11791_s21 + $0x40] sm:$0xf]  ;;  %v206_v17 = vld [vmem:[%s11791_s21 + $0x44] sm:$0xf] }
  0x28   : > { %270 = vst.msk [vmem:[#allocation2 + $0x84] sm:$0xf] %vm254_vm0, %v204_v15  ;;  %271 = vst.msk [vmem:[#allocation2 + $0x94] sm:$0xf] %vm254_vm0, %v205_v16  ;;  %v207_v18 = vld [vmem:[%s11791_s21 + $0x48] sm:$0xf] }
  0x29   : > { %272 = vst.msk [vmem:[#allocation2 + $0x98] sm:$0xf] %vm254_vm0, %v206_v17  ;;  %v208_v19 = vld [vmem:[%s11791_s21 + $0x4c] sm:$0xf]  ;;  %v209_v20 = vld [vmem:[%s11791_s21 + $0x50] sm:$0xf] }
  0x2a   : > { %273 = vst.msk [vmem:[#allocation2 + $0x9c] sm:$0xf] %vm254_vm0, %v207_v18  ;;  %274 = vst.msk [vmem:[#allocation2 + $0xa0] sm:$0xf] %vm254_vm0, %v208_v19  ;;  %v210_v21 = vld [vmem:[%s11791_s21 + $0x54] sm:$0xf] }
  0x2b   : > { %275 = vst.msk [vmem:[#allocation2 + $0xb0] sm:$0xf] %vm254_vm0, %v209_v20  ;;  %v211_v22 = vld [vmem:[%s11791_s21 + $0x58] sm:$0xf]  ;;  %v212_v23 = vld [vmem:[%s11791_s21 + $0x5c] sm:$0xf] }
  0x2c   : > { %276 = vst.msk [vmem:[#allocation2 + $0xb4] sm:$0xf] %vm254_vm0, %v210_v21  ;;  %277 = vst.msk [vmem:[#allocation2 + $0xb8] sm:$0xf] %vm254_vm0, %v211_v22  ;;  %v213_v24 = vld [vmem:[%s11791_s21 + $0x60] sm:$0xf] }
  0x2d   : > { %278 = vst.msk [vmem:[#allocation2 + $0xbc] sm:$0xf] %vm254_vm0, %v212_v23  ;;  %v214_v25 = vld [vmem:[%s11791_s21 + $0x64] sm:$0xf]  ;;  %v215_v26 = vld [vmem:[%s11791_s21 + $0x68] sm:$0xf] }
  0x2e   : > { %279 = vst.msk [vmem:[#allocation2 + $0xcc] sm:$0xf] %vm254_vm0, %v213_v24  ;;  %280 = vst.msk [vmem:[#allocation2 + $0xd0] sm:$0xf] %vm254_vm0, %v214_v25  ;;  %v216_v27 = vld [vmem:[%s11791_s21 + $0x6c] sm:$0xf] }
  0x2f   : > { %281 = vst.msk [vmem:[#allocation2 + $0xd4] sm:$0xf] %vm254_vm0, %v215_v26  ;;  %v217_v28 = vld [vmem:[%s11791_s21 + $0x70] sm:$0xf]  ;;  %v218_v29 = vld [vmem:[%s11791_s21 + $0x74] sm:$0xf] }
  0x30   : > { %282 = vst.msk [vmem:[#allocation2 + $0xd8] sm:$0xf] %vm254_vm0, %v216_v27  ;;  %283 = vst.msk [vmem:[#allocation2 + $0xe8] sm:$0xf] %vm254_vm0, %v217_v28  ;;  %v219_v30 = vld [vmem:[%s11791_s21 + $0x78] sm:$0xf] }
  0x31   : > { %284 = vst.msk [vmem:[#allocation2 + $0xec] sm:$0xf] %vm254_vm0, %v218_v29  ;;  %v220_v31 = vld [vmem:[%s11791_s21 + $0x7c] sm:$0xf]  ;;  %v221_v32 = vld [vmem:[%s11791_s21 + $0x80] sm:$0xf] }
  0x32   : > { %285 = vst.msk [vmem:[#allocation2 + $0xf0] sm:$0xf] %vm254_vm0, %v219_v30  ;;  %286 = vst.msk [vmem:[#allocation2 + $0xf4] sm:$0xf] %vm254_vm0, %v220_v31  ;;  %v222_v33 = vld [vmem:[%s11791_s21 + $0x84] sm:$0xf] }
  0x33   : > { %287 = vst.msk [vmem:[#allocation2 + $0x104] sm:$0xf] %vm254_vm0, %v221_v32  ;;  %v223_v34 = vld [vmem:[%s11791_s21 + $0x88] sm:$0xf]  ;;  %v224_v35 = vld [vmem:[%s11791_s21 + $0x8c] sm:$0xf] }
  0x34   : > { %288 = vst.msk [vmem:[#allocation2 + $0x108] sm:$0xf] %vm254_vm0, %v222_v33  ;;  %289 = vst.msk [vmem:[#allocation2 + $0x10c] sm:$0xf] %vm254_vm0, %v223_v34  ;;  %v225_v36 = vld [vmem:[%s11791_s21 + $0x90] sm:$0xf] }
  0x35   : > { %290 = vst.msk [vmem:[#allocation2 + $0x110] sm:$0xf] %vm254_vm0, %v224_v35  ;;  %v226_v37 = vld [vmem:[%s11791_s21 + $0x94] sm:$0xf]  ;;  %v227_v38 = vld [vmem:[%s11791_s21 + $0x98] sm:$0xf] }
  0x36   : > { %291 = vst.msk [vmem:[#allocation2 + $0x120] sm:$0xf] %vm254_vm0, %v225_v36  ;;  %292 = vst.msk [vmem:[#allocation2 + $0x124] sm:$0xf] %vm254_vm0, %v226_v37  ;;  %v228_v39 = vld [vmem:[%s11791_s21 + $0x9c] sm:$0xf] }
  0x37   : > { %293 = vst.msk [vmem:[#allocation2 + $0x128] sm:$0xf] %vm254_vm0, %v227_v38  ;;  %v229_v40 = vld [vmem:[%s11791_s21 + $0xa0] sm:$0xf]  ;;  %v230_v41 = vld [vmem:[%s11791_s21 + $0xa4] sm:$0xf] }
  0x38   : > { %294 = vst.msk [vmem:[#allocation2 + $0x12c] sm:$0xf] %vm254_vm0, %v228_v39  ;;  %295 = vst.msk [vmem:[#allocation2 + $0x13c] sm:$0xf] %vm254_vm0, %v229_v40  ;;  %v231_v42 = vld [vmem:[%s11791_s21 + $0xa8] sm:$0xf] }
  0x39   : > { %296 = vst.msk [vmem:[#allocation2 + $0x140] sm:$0xf] %vm254_vm0, %v230_v41  ;;  %v232_v43 = vld [vmem:[%s11791_s21 + $0xac] sm:$0xf]  ;;  %v233_v44 = vld [vmem:[%s11791_s21 + $0xb0] sm:$0xf] }
  0x3a   : > { %297 = vst.msk [vmem:[#allocation2 + $0x144] sm:$0xf] %vm254_vm0, %v231_v42  ;;  %298 = vst.msk [vmem:[#allocation2 + $0x148] sm:$0xf] %vm254_vm0, %v232_v43  ;;  %v234_v45 = vld [vmem:[%s11791_s21 + $0xb4] sm:$0xf] }
  0x3b   : > { %299 = vst.msk [vmem:[#allocation2 + $0x158] sm:$0xf] %vm254_vm0, %v233_v44  ;;  %v235_v46 = vld [vmem:[%s11791_s21 + $0xb8] sm:$0xf]  ;;  %v236_v47 = vld [vmem:[%s11791_s21 + $0xbc] sm:$0xf] }
  0x3c   : > { %300 = vst.msk [vmem:[#allocation2 + $0x15c] sm:$0xf] %vm254_vm0, %v234_v45  ;;  %301 = vst.msk [vmem:[#allocation2 + $0x160] sm:$0xf] %vm254_vm0, %v235_v46  ;;  %v237_v48 = vld [vmem:[%s11791_s21 + $0xc0] sm:$0xf] }
  0x3d   : > { %302 = vst.msk [vmem:[#allocation2 + $0x164] sm:$0xf] %vm254_vm0, %v236_v47  ;;  %v238_v49 = vld [vmem:[%s11791_s21 + $0xc4] sm:$0xf]  ;;  %v239_v50 = vld [vmem:[%s11791_s21 + $0xc8] sm:$0xf] }
  0x3e   : > { %303 = vst.msk [vmem:[#allocation2 + $0x174] sm:$0xf] %vm254_vm0, %v237_v48  ;;  %304 = vst.msk [vmem:[#allocation2 + $0x178] sm:$0xf] %vm254_vm0, %v238_v49  ;;  %v240_v51 = vld [vmem:[%s11791_s21 + $0xcc] sm:$0xf] }
  0x3f   : > { %305 = vst.msk [vmem:[#allocation2 + $0x17c] sm:$0xf] %vm254_vm0, %v239_v50  ;;  %v241_v52 = vld [vmem:[%s11791_s21 + $0xd0] sm:$0xf]  ;;  %v242_v53 = vld [vmem:[%s11791_s21 + $0xd4] sm:$0xf] }
  0x40   : > { %306 = vst.msk [vmem:[#allocation2 + $0x180] sm:$0xf] %vm254_vm0, %v240_v51  ;;  %307 = vst.msk [vmem:[#allocation2 + $0x190] sm:$0xf] %vm254_vm0, %v241_v52  ;;  %v243_v54 = vld [vmem:[%s11791_s21 + $0xd8] sm:$0xf] }
  0x41   : > { %308 = vst.msk [vmem:[#allocation2 + $0x194] sm:$0xf] %vm254_vm0, %v242_v53  ;;  %v244_v55 = vld [vmem:[%s11791_s21 + $0xdc] sm:$0xf]  ;;  %v245_v56 = vld [vmem:[%s11791_s21 + $0xe0] sm:$0xf] }
  0x42   : > { %309 = vst.msk [vmem:[#allocation2 + $0x198] sm:$0xf] %vm254_vm0, %v243_v54  ;;  %310 = vst.msk [vmem:[#allocation2 + $0x19c] sm:$0xf] %vm254_vm0, %v244_v55  ;;  %v246_v57 = vld [vmem:[%s11791_s21 + $0xe4] sm:$0xf] }
  0x43   : > { %311 = vst.msk [vmem:[#allocation2 + $0x1ac] sm:$0xf] %vm254_vm0, %v245_v56  ;;  %v247_v58 = vld [vmem:[%s11791_s21 + $0xe8] sm:$0xf]  ;;  %v248_v59 = vld [vmem:[%s11791_s21 + $0xec] sm:$0xf] }
  0x44   : > { %312 = vst.msk [vmem:[#allocation2 + $0x1b0] sm:$0xf] %vm254_vm0, %v246_v57  ;;  %313 = vst.msk [vmem:[#allocation2 + $0x1b4] sm:$0xf] %vm254_vm0, %v247_v58  ;;  %v249_v60 = vld [vmem:[%s11791_s21 + $0xf0] sm:$0xf] }
  0x45   : > { %314 = vst.msk [vmem:[#allocation2 + $0x1b8] sm:$0xf] %vm254_vm0, %v248_v59  ;;  %v250_v61 = vld [vmem:[%s11791_s21 + $0xf4] sm:$0xf]  ;;  %v251_v62 = vld [vmem:[%s11791_s21 + $0xf8] sm:$0xf] }
  0x46   : > { %315 = vst.msk [vmem:[#allocation2 + $0x1c8] sm:$0xf] %vm254_vm0, %v249_v60  ;;  %316 = vst.msk [vmem:[#allocation2 + $0x1cc] sm:$0xf] %vm254_vm0, %v250_v61  ;;  %v252_v63 = vld [vmem:[%s11791_s21 + $0xfc] sm:$0xf] }
  0x47   : > { %317 = vst.msk [vmem:[#allocation2 + $0x1d0] sm:$0xf] %vm254_vm0, %v251_v62  ;;  %318 = vst.msk [vmem:[#allocation2 + $0x1d4] sm:$0xf] %vm254_vm0, %v252_v63  ;;  %322 = sbr.rel (%p10961_p13) target bundleno = 82 (0x52), region = 36 }
  0x4c   : > { %vm323_vm1 = vcmask 125955   ;;  %vm324_vm2 = vsmask.f32 7950  ;;  %v326_v0 = vld [vmem:[#allocation2 + $0x4] sm:$0x8]  ;;  %v11672_v1 = vmov 0  }
  0x4d   : > { %vm325_vm3 = vmand %vm323_vm1, %vm324_vm2  ;;  %329 = vst.msk [vmem:[#allocation2 + $0x8] sm:$0xf] %vm254_vm0, %v11672_v1  ;;  %vm333_vm4 = vcmask 122880   ;;  %vm334_vm5 = vsmask.f32 256 }
  0x4e   : > { %330 = vst.msk [vmem:[#allocation2 + $0xc] sm:$0xf] %vm254_vm0, %v11672_v1  ;;  %331 = vst.msk [vmem:[#allocation2 + $0x10] sm:$0xf] %vm254_vm0, %v11672_v1  ;;  %v336_v2 = vld [vmem:[#allocation2 + $0x18] sm:$0x1] }
  0x4f   : > { %332 = vst.msk [vmem:[#allocation2 + $0x14] sm:$0xf] %vm254_vm0, %v11672_v1  ;;  %v327_v3 = vsel %vm325_vm3, 0, %v326_v0  ;;  %vm335_vm6 = vmand %vm333_vm4, %vm334_vm5 }
  0x50   : > { %328 = vst [vmem:[#allocation2 + $0x4] sm:$0x8] %v327_v3  ;;  %v337_v4 = vsel %vm335_vm6, 0, %v336_v2 }
  0x51   : > { %338 = vst [vmem:[#allocation2 + $0x18] sm:$0x1] %v337_v4 }
  0x52 PF: > { %p10962_p0 = scmp.le.s32.totalorder %s11654_s15, 0 }
  0x53   : > { %s10963_s27 = sadd.s32 (!%p10962_p0), 4294967295, %s10958_s6 }
  0x54   : > { %342 = sbr.rel (%p10962_p0) target bundleno = 92 (0x5c), region = 40  ;;  %s11266_s28 = sshll.u32 (!%p10962_p0), %s10963_s27, 4 }
  0x55   : > { %s346_s29 = scalar_lea.vmem (!%p10962_p0), %s11788_s20, %s11266_s28 }
  0x59   : > { %v347_v5 = vld [vmem:[%s346_s29] sm:$0xf]  ;;  %v348_v6 = vld [vmem:[%s346_s29 + $0x4] sm:$0xf]  ;;  %v349_v7 = vld [vmem:[%s346_s29 + $0x8] sm:$0xf] }
  0x5a   : > { %351 = vst.msk [vmem:[#allocation2 + $0x8] sm:$0xf] %vm254_vm0, %v347_v5  ;;  %352 = vst.msk [vmem:[#allocation2 + $0xc] sm:$0xf] %vm254_vm0, %v348_v6  ;;  %v350_v8 = vld [vmem:[%s346_s29 + $0xc] sm:$0xf] }
  0x5b   : > { %353 = vst.msk [vmem:[#allocation2 + $0x10] sm:$0xf] %vm254_vm0, %v349_v7  ;;  %354 = vst.msk [vmem:[#allocation2 + $0x14] sm:$0xf] %vm254_vm0, %v350_v8 }
  0x5c PF: > { %p10966_p1 = scmp.ne.s32.totalorder %s11654_s15, 1 }
  0x5e   : > { %358 = sbr.rel (%p10966_p1) target bundleno = 105 (0x69), region = 44 }
  0x63   : > { %vm360_vm7 = vcmask 125955   ;;  %vm361_vm8 = vsmask.f32 7950  ;;  %v363_v9 = vld [vmem:[#allocation2 + $0x1e0] sm:$0x8]  ;;  %v11673_v10 = vmov 0  }
  0x64   : > { %vm362_vm9 = vmand %vm360_vm7, %vm361_vm8  ;;  %366 = vst.msk [vmem:[#allocation2 + $0x1e4] sm:$0xf] %vm254_vm0, %v11673_v10  ;;  %vm370_vm10 = vcmask 122880   ;;  %vm371_vm11 = vsmask.f32 256 }
  0x65   : > { %367 = vst.msk [vmem:[#allocation2 + $0x1e8] sm:$0xf] %vm254_vm0, %v11673_v10  ;;  %368 = vst.msk [vmem:[#allocation2 + $0x1ec] sm:$0xf] %vm254_vm0, %v11673_v10  ;;  %v373_v11 = vld [vmem:[#allocation2 + $0x1f4] sm:$0x1] }
  0x66   : > { %369 = vst.msk [vmem:[#allocation2 + $0x1f0] sm:$0xf] %vm254_vm0, %v11673_v10  ;;  %v364_v12 = vsel %vm362_vm9, 0, %v363_v9  ;;  %vm372_vm12 = vmand %vm370_vm10, %vm371_vm11 }
  0x67   : > { %365 = vst [vmem:[#allocation2 + $0x1e0] sm:$0x8] %v364_v12  ;;  %v374_v13 = vsel %vm372_vm12, 0, %v373_v11 }
  0x68   : > { %375 = vst [vmem:[#allocation2 + $0x1f4] sm:$0x1] %v374_v13 }
  0x69 PF: > { %p10967_p2 = scmp.ge.s32.totalorder %s11654_s15, 1 }
  0x6b   : > { %379 = sbr.rel (%p10967_p2) target bundleno = 115 (0x73), region = 48 }
  0x70   : > { %v10970_v14 = vld [vmem:[%s11791_s21 + $0x100] sm:$0xf]  ;;  %v10971_v15 = vld [vmem:[%s11791_s21 + $0x104] sm:$0xf]  ;;  %v10972_v16 = vld [vmem:[%s11791_s21 + $0x108] sm:$0xf] }
  0x71   : > { %389 = vst.msk [vmem:[#allocation2 + $0x1e4] sm:$0xf] %vm254_vm0, %v10970_v14  ;;  %390 = vst.msk [vmem:[#allocation2 + $0x1e8] sm:$0xf] %vm254_vm0, %v10971_v15  ;;  %v10973_v17 = vld [vmem:[%s11791_s21 + $0x10c] sm:$0xf] }
  0x72   : > { %391 = vst.msk [vmem:[#allocation2 + $0x1ec] sm:$0xf] %vm254_vm0, %v10972_v16  ;;  %392 = vst.msk [vmem:[#allocation2 + $0x1f0] sm:$0xf] %vm254_vm0, %v10973_v17 }
  0x73 PF: > { %v1359_v18 = vld [vmem:[#allocation2 + $0x10] sm:$0xf]  ;;  %v1357_v19 = vld [vmem:[#allocation2 + $0x8] sm:$0xf]  ;;  %s11674_s5 = smov 16   ;;  %vm393_vm15 = vcmask 125955  }
  0x74   : > { %1489 = vrot.lane.b32.xlu1 %v1359_v18, %s11674_s5  ;;  %1485 = vrot.lane.b32.xlu0 %v1357_v19, %s11674_s5  ;;  %v1360_v20 = vld [vmem:[#allocation2 + $0x14] sm:$0xf]  ;;  %v1358_v21 = vld [vmem:[#allocation2 + $0xc] sm:$0xf]  ;;  %v1362_v22 = vld [vmem:[#allocation2 + $0x28] sm:$0xf] }
  0x75   : > { %v1361_v23 = vld [vmem:[#allocation2 + $0x24] sm:$0xf]  ;;  %v1364_v24 = vld [vmem:[#allocation2 + $0x30] sm:$0xf]  ;;  %v1363_v25 = vld [vmem:[#allocation2 + $0x2c] sm:$0xf] }
  0x76   : > { %v1366_v26 = vld [vmem:[#allocation2 + $0x44] sm:$0xf]  ;;  %v1365_v27 = vld [vmem:[#allocation2 + $0x40] sm:$0xf]  ;;  %v1368_v28 = vld [vmem:[#allocation2 + $0x4c] sm:$0xf] }
  0x77   : > { %v1367_v29 = vld [vmem:[#allocation2 + $0x48] sm:$0xf]  ;;  %vm451_vm13 = vsmask.f32 256  ;;  %v1370_v30 = vld [vmem:[#allocation2 + $0x60] sm:$0xf] }
  0x78   : > { %1491 = vrot.lane.b32.xlu1 %v1360_v20, %s11674_s5  ;;  %1487 = vrot.lane.b32.xlu0 %v1358_v21, %s11674_s5  ;;  %v509_v31 = vld [vmem:[#allocation2 + $0xc] sm:$0xf]  ;;  %v510_v32 = vld [vmem:[#allocation2 + $0x10] sm:$0xf]  ;;  %vm587_vm14 = vsmask.f32 4368 }
  0x79   : > { %v604_v33 = vshrl.u32 %v509_v31, 16  ;;  %v613_v34 = vshrl.u32 %v510_v32, 16  ;;  %v616_v35 = vshll.u32 %v510_v32, 16  ;;  %v396_v36 = vld [vmem:[#allocation2 + $0x4] sm:$0x8]  ;;  %vm11969_vm3 = vmor %vm451_vm13, %vm587_vm14  ;;  %v607_v47 = vshll.u32 %v509_v31, 16 }
  0x7a   : > { %v1369_v37 = vld [vmem:[#allocation2 + $0x5c] sm:$0xf]  ;;  %vm394_vm1 = vsmask.f32 7950  ;;  %v508_v38 = vld [vmem:[#allocation2 + $0x8] sm:$0xf] }
  0x7b   : > { %v606_v39 = vrot.slane %v604_v33, 7  ;;  %v615_v40 = vrot.slane %v613_v34, 7  ;;  %vm11963_vm2 = vmand %vm393_vm15, %vm394_vm1  ;;  %v595_v42 = vshrl.u32 %v508_v38, 16  ;;  %v1372_v43 = vld [vmem:[#allocation2 + $0x68] sm:$0xf]  ;;  %v598_v52 = vshll.u32 %v508_v38, 16 }
  0x7c   : > { %1495 = vrot.lane.b32.xlu1 %v1362_v22, %s11674_s5  ;;  %1493 = vrot.lane.b32.xlu0 %v1361_v23, %s11674_s5  ;;  %v397_v45 = vsel %vm11963_vm2, 0, %v396_v36  ;;  %v511_v46 = vld [vmem:[#allocation2 + $0x14] sm:$0xf]  ;;  %v1371_v48 = vld [vmem:[#allocation2 + $0x64] sm:$0xf]  ;;  %vm450_vm7 = vcmask 122880  }
  0x7d   : > { %v611_v49 = vrot.slane %v606_v39, 4  ;;  %v618_v50 = vor.u32 %v616_v35, %v615_v40  ;;  %398 = vst [vmem:[#allocation2 + $0x4] sm:$0x8] %v397_v45  ;;  %v597_v51 = vrot.slane %v595_v42, 7  ;;  %v622_v53 = vshrl.u32 %v511_v46, 16  ;;  %vm12054_vm8 = vmand %vm450_vm7, %vm451_vm13  ;;  %s11675_s7 = smov 32  }
  0x7e   : > { %v625_v54 = vshll.u32 %v511_v46, 16  ;;  %v609_v55 = vor.u32 %v607_v47, %v606_v39  ;;  %v513_v56 = vld [vmem:[#allocation2 + $0x24] sm:$0xf]  ;;  %v514_v57 = vld [vmem:[#allocation2 + $0x28] sm:$0xf]  ;;  %v620_v59 = vrot.slane %v615_v40, 4 }
  0x7f   : > { %v619_v58 = vsel %vm11969_vm3, %v611_v49, %v618_v50  ;;  %v602_v60 = vrot.slane %v597_v51, 4  ;;  %v635_v61 = vshrl.u32 %v513_v56, 16  ;;  %v399_v62 = vld [vmem:[#allocation2 + $0x20] sm:$0x8]  ;;  %v1374_v63 = vld [vmem:[#allocation2 + $0x7c] sm:$0xf]  ;;  %v600_v5 = vor.u32 %v598_v52, %v597_v51 }
  0x80   : > { %1499 = vrot.lane.b32.xlu1 %v1364_v24, %s11674_s5  ;;  %1497 = vrot.lane.b32.xlu0 %v1363_v25, %s11674_s5  ;;  %v1373_v0 = vld [vmem:[#allocation2 + $0x78] sm:$0xf]  ;;  %1295 = vst.msk [vmem:[#allocation3 + $0x10] sm:$0xf] %vm254_vm0, %v619_v58  ;;  %v624_v1 = vrot.slane %v622_v53, 7  ;;  %v644_v2 = vshrl.u32 %v514_v57, 16 }
  0x81   : > { %v647_v3 = vshll.u32 %v514_v57, 16  ;;  %v400_v4 = vsel %vm11963_vm2, 0, %v399_v62  ;;  %v610_v6 = vsel %vm11969_vm3, %v602_v60, %v609_v55  ;;  %v637_v7 = vrot.slane %v635_v61, 7  ;;  %v515_v9 = vld [vmem:[#allocation2 + $0x2c] sm:$0xf]  ;;  %s11676_s8 = smov 48  }
  0x82   : > { %401 = vst [vmem:[#allocation2 + $0x20] sm:$0x8] %v400_v4  ;;  %v638_v8 = vshll.u32 %v513_v56, 16  ;;  %v516_v10 = vld [vmem:[#allocation2 + $0x30] sm:$0xf]  ;;  %v627_v11 = vor.u32 %v625_v54, %v624_v1  ;;  %v646_v12 = vrot.slane %v644_v2, 7 }
  0x83   : > { %1294 = vst.msk [vmem:[#allocation3 + $0x8] sm:$0xf] %vm254_vm0, %v610_v6  ;;  %v653_v13 = vshrl.u32 %v515_v9, 16  ;;  %v662_v14 = vshrl.u32 %v516_v10, 16  ;;  %v1743_v15 = vld [vmem:[#allocation2 + $0xc] sm:$0xf] }
  0x84   : > { %1503 = vrot.lane.b32.xlu1 %v1366_v26, %s11674_s5  ;;  %1501 = vrot.lane.b32.xlu0 %v1365_v27, %s11674_s5  ;;  %v642_v16 = vrot.slane %v637_v7, 4  ;;  %v11987_v17 = vor.u32 %v638_v8, %v637_v7  ;;  %v665_v18 = vshll.u32 %v516_v10, 16  ;;  %v656_v19 = vshll.u32 %v515_v9, 16  ;;  %v11989_v20 = vld [vmem:[#allocation2 + $0x10] sm:$0xf]  ;;  %s11677_s9 = smov 64  }
  0x85   : > { %v507_v21 = vld [vmem:[#allocation2 + $0x4] sm:$0x8]  ;;  %v628_v22 = vsel %vm11969_vm3, %v620_v59, %v627_v11  ;;  %v649_v23 = vor.u32 %v647_v3, %v646_v12  ;;  %v655_v24 = vrot.slane %v653_v13, 7  ;;  %v664_v25 = vrot.slane %v662_v14, 7  ;;  %v1742_v26 = vld [vmem:[#allocation2 + $0x8] sm:$0xf] }
  0x86   : > { %v590_v27 = vshrl.u32 %v507_v21, 16  ;;  %1296 = vst.msk [vmem:[#allocation3 + $0x18] sm:$0xf] %vm254_vm0, %v628_v22  ;;  %vm1822_vm4 = vsmask.f32 3328  ;;  %v1835_v36 = vshll.u32 %v1743_v15, 16 }
  0x87   : > { %vm1823_vm5 = vsmask.f32 7440  ;;  %v650_v31 = vsel %vm11969_vm3, %v642_v16, %v649_v23  ;;  %v660_v32 = vrot.slane %v655_v24, 4  ;;  %v667_v33 = vor.u32 %v665_v18, %v664_v25  ;;  %v518_v39 = vld [vmem:[#allocation2 + $0x40] sm:$0xf]  ;;  %s11679_s10 = smov 80  }
  0x88   : > { %1507 = vrot.lane.b32.xlu1 %v1368_v28, %s11674_s5  ;;  %1505 = vrot.lane.b32.xlu0 %v1367_v29, %s11674_s5  ;;  %v651_v28 = vrot.slane %v646_v12, 4  ;;  %v1376_v29 = vld [vmem:[#allocation2 + $0x84] sm:$0xf]  ;;  %v658_v34 = vor.u32 %v656_v19, %v655_v24  ;;  %v10974_v35 = vrot.slane %v590_v27, 11  ;;  %1298 = vst.msk [vmem:[#allocation3 + $0x28] sm:$0xf] %vm254_vm0, %v650_v31  ;;  %vm12019_vm6 = vmor %vm1822_vm4, %vm1823_vm5 }
  0x89   : > { %v1845_v38 = vshll.u32 %v11989_v20, 16  ;;  %v1378_v40 = vld [vmem:[#allocation2 + $0x98] sm:$0xf]  ;;  %v512_v42 = vld [vmem:[#allocation2 + $0x20] sm:$0x8]  ;;  %v1849_v46 = vshrl.u32 %v11989_v20, 16 }
  0x8a   : > { %v659_v45 = vsel %vm11969_vm3, %v651_v28, %v658_v34  ;;  %v1826_v47 = vshrl.u32 %v1742_v26, 16  ;;  %v601_v49 = vsel %vm11969_vm3, %v10974_v35, %v600_v5  ;;  %v630_v50 = vshrl.u32 %v512_v42, 16  ;;  %v402_v53 = vld [vmem:[#allocation2 + $0x3c] sm:$0x8]  ;;  %v1377_v54 = vld [vmem:[#allocation2 + $0x94] sm:$0xf] }
  0x8b   : > { %1299 = vst.msk [vmem:[#allocation3 + $0x30] sm:$0xf] %vm254_vm0, %v659_v45  ;;  %v12011_v51 = vrot.slane %v1835_v36, 5  ;;  %1293 = vst.msk [vmem:[#allocation3] sm:$0xf] %vm254_vm0, %v601_v49  ;;  %v12014_v55 = vrot.slane %v1845_v38, 5 }
  0x8c   : > { %1511 = vrot.lane.b32.xlu1 %v1370_v30, %s11674_s5  ;;  %1509 = vrot.lane.b32.xlu0 %v1369_v37, %s11674_s5  ;;  %v1375_v30 = vld [vmem:[#allocation2 + $0x80] sm:$0xf]  ;;  %v1839_v37 = vshrl.u32 %v1743_v15, 16  ;;  %v1828_v56 = vrot.slane %v1826_v47, 4  ;;  %v1829_v57 = vshll.u32 %v1742_v26, 16  ;;  %v675_v58 = vshrl.u32 %v518_v39, 16 }
  0x8d   : > { %v10975_v59 = vrot.slane %v630_v50, 11  ;;  %v403_v4 = vsel %vm11963_vm2, 0, %v402_v53  ;;  %v678_v5 = vshll.u32 %v518_v39, 16  ;;  %v1851_v9 = vrot.slane %v1849_v46, 4  ;;  %v520_v10 = vld [vmem:[#allocation2 + $0x48] sm:$0xf] }
  0x8e   : > { %v1841_v52 = vrot.slane %v1839_v37, 4  ;;  %v1831_v2 = vrot.slane %v1829_v57, 5  ;;  %v677_v3 = vrot.slane %v675_v58, 7  ;;  %404 = vst [vmem:[#allocation2 + $0x3c] sm:$0x8] %v403_v4  ;;  %v693_v26 = vshrl.u32 %v520_v10, 16 }
  0x8f   : > { %v641_v6 = vsel %vm11969_vm3, %v10975_v59, %v11987_v17  ;;  %v1379_v11 = vld [vmem:[#allocation2 + $0x9c] sm:$0xf]  ;;  %v521_v16 = vld [vmem:[#allocation2 + $0x4c] sm:$0xf]  ;;  %v1852_v19 = vor.u32 %v1851_v9, %v12014_v55  ;;  %v453_v21 = vld [vmem:[#allocation2 + $0x18] sm:$0x1] }
  0x90   : > { %1515 = vrot.lane.b32.xlu1 %v1372_v43, %s11674_s5  ;;  %1513 = vrot.lane.b32.xlu0 %v1371_v48, %s11674_s5  ;;  %v668_v43 = vsel %vm11969_vm3, %v660_v32, %v667_v33  ;;  %v519_v48 = vld [vmem:[#allocation2 + $0x44] sm:$0xf]  ;;  %v1842_v60 = vor.u32 %v1841_v52, %v12011_v51  ;;  %1297 = vst.msk [vmem:[#allocation3 + $0x20] sm:$0xf] %vm254_vm0, %v641_v6  ;;  %v682_v13 = vrot.slane %v677_v3, 4  ;;  %v702_v31 = vshrl.u32 %v521_v16, 16 }
  0x91   : > { %1300 = vst.msk [vmem:[#allocation3 + $0x38] sm:$0xf] %vm254_vm0, %v668_v43  ;;  %v684_v61 = vshrl.u32 %v519_v48, 16  ;;  %v687_v62 = vshll.u32 %v519_v48, 16  ;;  %v1832_v12 = vor.u32 %v1831_v2, %v1828_v56  ;;  %v12035_v14 = vor.u32 %v678_v5, %v677_v3  ;;  %v1382_v22 = vld [vmem:[#allocation2 + $0xb4] sm:$0xf] }
  0x92   : > { %v12030_v7 = vrot.slane %v1842_v60, 4  ;;  %v1381_v23 = vld [vmem:[#allocation2 + $0xb0] sm:$0xf]  ;;  %v12051_v28 = vrot.slane %v1852_v19, 4  ;;  %v1747_v32 = vld [vmem:[#allocation2 + $0x24] sm:$0xf] }
  0x93   : > { %v12032_v8 = vrot.slane %v684_v61, 7  ;;  %v12043_v24 = vrot.slane %v1832_v12, 4  ;;  %v454_v34 = vsel %vm12054_vm8, 0, %v453_v21  ;;  %v695_v35 = vrot.slane %v693_v26, 7  ;;  %v1748_v37 = vld [vmem:[#allocation2 + $0x28] sm:$0xf] }
  0x94   : > { %1519 = vrot.lane.b32.xlu1 %v1374_v63, %s11674_s5  ;;  %1517 = vrot.lane.b32.xlu0 %v1373_v0, %s11674_s5  ;;  %v1745_v63 = vld [vmem:[#allocation2 + $0x14] sm:$0xf]  ;;  %v1380_v0 = vld [vmem:[#allocation2 + $0xa0] sm:$0xf]  ;;  %v705_v36 = vshll.u32 %v521_v16, 16  ;;  %v696_v49 = vshll.u32 %v520_v10, 16 }
  0x95   : > { %v1855_v15 = vshll.u32 %v1745_v63, 16  ;;  %v689_v18 = vor.u32 %v687_v62, %v12032_v8  ;;  %v1859_v20 = vshrl.u32 %v1745_v63, 16  ;;  %455 = vst [vmem:[#allocation2 + $0x18] sm:$0x1] %v454_v34  ;;  %v691_v42 = vrot.slane %v12032_v8, 4  ;;  %s11680_s28 = smov 96  }
  0x96   : > { %v1749_v43 = vld [vmem:[#allocation2 + $0x2c] sm:$0xf]  ;;  %v1384_v45 = vld [vmem:[#allocation2 + $0xbc] sm:$0xf]  ;;  %v1383_v46 = vld [vmem:[#allocation2 + $0xb8] sm:$0xf]  ;;  %v698_v59 = vor.u32 %v696_v49, %v695_v35 }
  0x97   : > { %v12045_v25 = vrot.slane %v1855_v15, 5  ;;  %v690_v27 = vsel %vm11969_vm3, %v682_v13, %v689_v18  ;;  %v517_v47 = vld [vmem:[#allocation2 + $0x3c] sm:$0x8]  ;;  %v700_v48 = vrot.slane %v695_v35, 4  ;;  %v1870_v50 = vshrl.u32 %v1747_v32, 16  ;;  %s11681_s11 = smov 112  }
  0x98   : > { %1523 = vrot.lane.b32.xlu1 %v1376_v29, %s11674_s5  ;;  %1521 = vrot.lane.b32.xlu0 %v1375_v30, %s11674_s5  ;;  %v1861_v30 = vrot.slane %v1859_v20, 4  ;;  %1302 = vst.msk [vmem:[#allocation3 + $0x48] sm:$0xf] %vm254_vm0, %v690_v27  ;;  %v1873_v52 = vshll.u32 %v1747_v32, 16  ;;  %v670_v53 = vshrl.u32 %v517_v47, 16  ;;  %v1879_v57 = vshll.u32 %v1748_v37, 16 }
  0x99   : > { %v523_v58 = vld [vmem:[#allocation2 + $0x5c] sm:$0xf]  ;;  %v1872_v60 = vrot.slane %v1870_v50, 4  ;;  %v1883_v62 = vshrl.u32 %v1748_v37, 16  ;;  %v524_v63 = vld [vmem:[#allocation2 + $0x60] sm:$0xf]  ;;  %v699_v9 = vsel %vm11969_vm3, %v691_v42, %v698_v59 }
  0x9a   : > { %v1862_v39 = vor.u32 %v1861_v30, %v12045_v25  ;;  %v1875_v61 = vrot.slane %v1873_v52, 5  ;;  %v12077_v3 = vrot.slane %v1879_v57, 5  ;;  %v1889_v4 = vshll.u32 %v1749_v43, 16  ;;  %v405_v5 = vld [vmem:[#allocation2 + $0x58] sm:$0x8]  ;;  %s10866_s20 = sshll.u32 %s11922_s24, 4  ;;  %s16602_s20 = int_to_ptr.vmem [resolvable:$true] %s10866_s20 }
  0x9b   : > { %v1386_v6 = vld [vmem:[#allocation2 + $0xd0] sm:$0xf]  ;;  %v1385_v8 = vld [vmem:[#allocation2 + $0xcc] sm:$0xf]  ;;  %v1893_v12 = vshrl.u32 %v1749_v43, 16  ;;  %v715_v16 = vshrl.u32 %v523_v58, 16 }
  0x9c   : > { %1527 = vrot.lane.b32.xlu1 %v1378_v40, %s11674_s5  ;;  %1525 = vrot.lane.b32.xlu0 %v1377_v54, %s11674_s5  ;;  %v704_v40 = vrot.slane %v702_v31, 7  ;;  %v12073_v54 = vrot.slane %v1862_v39, 4  ;;  %v1876_v10 = vor.u32 %v1875_v61, %v1872_v60  ;;  %1303 = vst.msk [vmem:[#allocation3 + $0x50] sm:$0xf] %vm254_vm0, %v699_v9  ;;  %v12088_v15 = vrot.slane %v1889_v4, 5  ;;  %s16608_s15 = scalar_lea.sflag [#allocation5], %s175_s4 }
  0x9d   : > { %v724_v18 = vshrl.u32 %v524_v63, 16  ;;  %v1750_v19 = vld [vmem:[#allocation2 + $0x30] sm:$0xf]  ;;  %v1746_v20 = vld [vmem:[#allocation2 + $0x18] sm:$0x1]  ;;  %v406_v26 = vsel %vm11963_vm2, 0, %v405_v5 }
  0x9e   : > { %v707_v56 = vor.u32 %v705_v36, %v704_v40  ;;  %v12091_v21 = vrot.slane %v1876_v10, 4  ;;  %v1865_v27 = vshll.u32 %v1746_v20, 16  ;;  %407 = vst [vmem:[#allocation2 + $0x58] sm:$0x8] %v406_v26  ;;  %v718_v31 = vshll.u32 %v523_v58, 16 }
  0x9f   : > { %v12096_v30 = vrot.slane %v724_v18, 7  ;;  %v456_v32 = vld [vmem:[#allocation2 + $0x34] sm:$0x1]  ;;  %v1895_v36 = vrot.slane %v1893_v12, 4  ;;  %v1899_v37 = vshll.u32 %v1750_v19, 16  ;;  %vm1677_vm9 = vcmask 257152  }
  0xa0   : > { %1531 = vrot.lane.b32.xlu1 %v1380_v0, %s11674_s5  ;;  %1529 = vrot.lane.b32.xlu0 %v1379_v11, %s11674_s5  ;;  %v10976_v0 = vrot.slane %v670_v53, 11  ;;  %v708_v2 = vsel %vm11969_vm3, %v700_v48, %v707_v56  ;;  %v1885_v11 = vrot.slane %v1883_v62, 4  ;;  %v525_v39 = vld [vmem:[#allocation2 + $0x64] sm:$0xf]  ;;  %v1388_v40 = vld [vmem:[#allocation2 + $0xd8] sm:$0xf] }
  0xa1   : > { %1304 = vst.msk [vmem:[#allocation3 + $0x58] sm:$0xf] %vm254_vm0, %v708_v2  ;;  %v12106_v42 = vrot.slane %v1865_v27, 5  ;;  %v526_v47 = vld [vmem:[#allocation2 + $0x68] sm:$0xf]  ;;  %v1896_v50 = vor.u32 %v1895_v36, %v12088_v15  ;;  %v12116_v52 = vrot.slane %v1899_v37, 5 }
  0xa2   : > { %v681_v13 = vsel %vm11969_vm3, %v10976_v0, %v12035_v14  ;;  %v717_v14 = vrot.slane %v715_v16, 7  ;;  %v1387_v48 = vld [vmem:[#allocation2 + $0xd4] sm:$0xf]  ;;  %v1903_v53 = vshrl.u32 %v1750_v19, 16  ;;  %v1752_v56 = vld [vmem:[#allocation2 + $0x40] sm:$0xf] }
  0xa3   : > { %1301 = vst.msk [vmem:[#allocation3 + $0x40] sm:$0xf] %vm254_vm0, %v681_v13  ;;  %v457_v59 = vsel %vm12054_vm8, 0, %v456_v32  ;;  %v733_v60 = vshrl.u32 %v525_v39, 16  ;;  %v1390_v61 = vld [vmem:[#allocation2 + $0xec] sm:$0xf] }
  0xa4   : > { %1535 = vrot.lane.b32.xlu1 %v1382_v22, %s11674_s5  ;;  %1533 = vrot.lane.b32.xlu0 %v1381_v23, %s11674_s5  ;;  %v1886_v22 = vor.u32 %v1885_v11, %v12077_v3  ;;  %v727_v23 = vshll.u32 %v524_v63, 16  ;;  %v722_v43 = vrot.slane %v717_v14, 4  ;;  %v1389_v62 = vld [vmem:[#allocation2 + $0xe8] sm:$0xf]  ;;  %v12127_v63 = vrot.slane %v1896_v50, 4 }
  0xa5   : > { %458 = vst [vmem:[#allocation2 + $0x34] sm:$0x1] %v457_v59  ;;  %v1905_v0 = vrot.slane %v1903_v53, 4  ;;  %v742_v2 = vshrl.u32 %v526_v47, 16  ;;  %v745_v4 = vshll.u32 %v526_v47, 16  ;;  %v735_v5 = vrot.slane %v733_v60, 7 }
  0xa6   : > { %v12102_v35 = vrot.slane %v1886_v22, 4  ;;  %v1753_v9 = vld [vmem:[#allocation2 + $0x44] sm:$0xf]  ;;  %v1914_v10 = vshrl.u32 %v1752_v56, 16  ;;  %v522_v11 = vld [vmem:[#allocation2 + $0x58] sm:$0x8] }
  0xa7   : > { %v1906_v13 = vor.u32 %v1905_v0, %v12116_v52  ;;  %v744_v16 = vrot.slane %v742_v2, 7  ;;  %v1917_v18 = vshll.u32 %v1752_v56, 16  ;;  %v1754_v19 = vld [vmem:[#allocation2 + $0x48] sm:$0xf]  ;;  %v710_v20 = vshrl.u32 %v522_v11, 16 }
  0xa8   : > { %1539 = vrot.lane.b32.xlu1 %v1384_v45, %s11674_s5  ;;  %1537 = vrot.lane.b32.xlu0 %v1383_v46, %s11674_s5  ;;  %v729_v45 = vor.u32 %v727_v23, %v12096_v30  ;;  %v12109_v46 = vor.u32 %v718_v31, %v717_v14  ;;  %v740_v22 = vrot.slane %v735_v5, 4  ;;  %v1916_v26 = vrot.slane %v1914_v10, 4  ;;  %v1392_v27 = vld [vmem:[#allocation2 + $0xf4] sm:$0xf]  ;;  %v528_v36 = vld [vmem:[#allocation2 + $0x78] sm:$0xf] }
  0xa9   : > { %v12137_v14 = vrot.slane %v1906_v13, 4  ;;  %v1919_v31 = vrot.slane %v1917_v18, 5  ;;  %v1923_v32 = vshll.u32 %v1753_v9, 16  ;;  %v10977_v37 = vrot.slane %v710_v20, 11  ;;  %v1391_v47 = vld [vmem:[#allocation2 + $0xf0] sm:$0xf] }
  0xaa   : > { %v730_v58 = vsel %vm11969_vm3, %v722_v43, %v729_v45  ;;  %v1933_v43 = vshll.u32 %v1754_v19, 16  ;;  %v529_v45 = vld [vmem:[#allocation2 + $0x7c] sm:$0xf]  ;;  %v1937_v56 = vshrl.u32 %v1754_v19, 16  ;;  %v755_v0 = vshrl.u32 %v528_v36, 16 }
  0xab   : > { %1306 = vst.msk [vmem:[#allocation3 + $0x68] sm:$0xf] %vm254_vm0, %v730_v58  ;;  %v1920_v50 = vor.u32 %v1919_v31, %v1916_v26  ;;  %v12146_v53 = vrot.slane %v1923_v32, 5  ;;  %v408_v58 = vld [vmem:[#allocation2 + $0x74] sm:$0x8]  ;;  %v721_v59 = vsel %vm11969_vm3, %v10977_v37, %v12109_v46  ;;  %vm2721_vm10 = vcmask 388352  }
  0xac   : > { %1543 = vrot.lane.b32.xlu1 %v1386_v6, %s11674_s5  ;;  %1541 = vrot.lane.b32.xlu0 %v1385_v8, %s11674_s5  ;;  %v731_v6 = vrot.slane %v12096_v30, 4  ;;  %v736_v8 = vshll.u32 %v525_v39, 16  ;;  %v747_v30 = vor.u32 %v745_v4, %v744_v16  ;;  %v1751_v60 = vld [vmem:[#allocation2 + $0x34] sm:$0x1]  ;;  %v1394_v2 = vld [vmem:[#allocation2 + $0x108] sm:$0xf] }
  0xad   : > { %v1393_v4 = vld [vmem:[#allocation2 + $0x104] sm:$0xf]  ;;  %1305 = vst.msk [vmem:[#allocation3 + $0x60] sm:$0xf] %vm254_vm0, %v721_v59  ;;  %v1755_v10 = vld [vmem:[#allocation2 + $0x4c] sm:$0xf] }
  0xae   : > { %v738_v23 = vor.u32 %v736_v8, %v735_v5  ;;  %v1909_v5 = vshll.u32 %v1751_v60, 16  ;;  %v764_v8 = vshrl.u32 %v529_v45, 16  ;;  %v757_v11 = vrot.slane %v755_v0, 7  ;;  %v459_v18 = vld [vmem:[#allocation2 + $0x50] sm:$0x1] }
  0xaf   : > { %v409_v13 = vsel %vm11963_vm2, 0, %v408_v58  ;;  %v758_v16 = vshll.u32 %v528_v36, 16  ;;  %v530_v26 = vld [vmem:[#allocation2 + $0x80] sm:$0xf]  ;;  %v1943_v32 = vshll.u32 %v1755_v10, 16  ;;  %vm3698_vm11 = vcmask 519552  }
  0xb0   : > { %1547 = vrot.lane.b32.xlu1 %v1388_v40, %s11674_s5  ;;  %1545 = vrot.lane.b32.xlu0 %v1387_v48, %s11674_s5  ;;  %v739_v39 = vsel %vm11969_vm3, %v731_v6, %v738_v23  ;;  %v1927_v40 = vshrl.u32 %v1753_v9, 16  ;;  %v748_v48 = vsel %vm11969_vm3, %v740_v22, %v747_v30  ;;  %v12155_v6 = vrot.slane %v1920_v50, 4  ;;  %410 = vst [vmem:[#allocation2 + $0x74] sm:$0x8] %v409_v13  ;;  %v531_v37 = vld [vmem:[#allocation2 + $0x84] sm:$0xf] }
  0xb1   : > { %1307 = vst.msk [vmem:[#allocation3 + $0x70] sm:$0xf] %vm254_vm0, %v739_v39  ;;  %1308 = vst.msk [vmem:[#allocation3 + $0x78] sm:$0xf] %vm254_vm0, %v748_v48  ;;  %v767_v9 = vshll.u32 %v529_v45, 16  ;;  %v12162_v19 = vrot.slane %v1909_v5, 5  ;;  %v12170_v31 = vor.u32 %v758_v16, %v757_v11 }
  0xb2   : > { %v766_v22 = vrot.slane %v764_v8, 7  ;;  %v1939_v23 = vrot.slane %v1937_v56, 4  ;;  %v762_v30 = vrot.slane %v757_v11, 4  ;;  %v1396_v36 = vld [vmem:[#allocation2 + $0x110] sm:$0xf]  ;;  %v12183_v50 = vrot.slane %v1943_v32, 5 }
  0xb3   : > { %v1395_v39 = vld [vmem:[#allocation2 + $0x10c] sm:$0xf]  ;;  %v460_v56 = vsel %vm12054_vm8, 0, %v459_v18  ;;  %v773_v58 = vshrl.u32 %v530_v26, 16  ;;  %v1757_v59 = vld [vmem:[#allocation2 + $0x5c] sm:$0xf] }
  0xb4   : > { %1551 = vrot.lane.b32.xlu1 %v1390_v61, %s11674_s5  ;;  %1549 = vrot.lane.b32.xlu0 %v1389_v62, %s11674_s5  ;;  %v1929_v61 = vrot.slane %v1927_v40, 4  ;;  %v12152_v62 = vrot.slane %v1933_v43, 5  ;;  %v769_v43 = vor.u32 %v767_v9, %v766_v22  ;;  %461 = vst [vmem:[#allocation2 + $0x50] sm:$0x1] %v460_v56  ;;  %v785_v8 = vshll.u32 %v531_v37, 16 }
  0xb5   : > { %v775_v5 = vrot.slane %v773_v58, 7  ;;  %v771_v9 = vrot.slane %v766_v22, 4  ;;  %v1397_v11 = vld [vmem:[#allocation2 + $0x120] sm:$0xf]  ;;  %v533_v32 = vld [vmem:[#allocation2 + $0x94] sm:$0xf] }
  0xb6   : > { %v1930_v46 = vor.u32 %v1929_v61, %v12146_v53  ;;  %v1940_v45 = vor.u32 %v1939_v23, %v12152_v62  ;;  %v770_v60 = vsel %vm11969_vm3, %v762_v30, %v769_v43  ;;  %v1958_v23 = vshrl.u32 %v1757_v59, 16  ;;  %v1759_v30 = vld [vmem:[#allocation2 + $0x64] sm:$0xf]  ;;  %v534_v13 = vld [vmem:[#allocation2 + $0x98] sm:$0xf] }
  0xb7   : > { %1310 = vst.msk [vmem:[#allocation3 + $0x88] sm:$0xf] %vm254_vm0, %v770_v60  ;;  %v780_v22 = vrot.slane %v775_v5, 4  ;;  %v1961_v43 = vshll.u32 %v1757_v59, 16  ;;  %v1400_v20 = vld [vmem:[#allocation2 + $0x12c] sm:$0xf] }
  0xb8   : > { %1555 = vrot.lane.b32.xlu1 %v1392_v27, %s11674_s5  ;;  %1553 = vrot.lane.b32.xlu0 %v1391_v47, %s11674_s5  ;;  %v12168_v27 = vrot.slane %v1930_v46, 4  ;;  %v1947_v47 = vshrl.u32 %v1755_v10, 16  ;;  %v12189_v61 = vrot.slane %v1940_v45, 4  ;;  %v776_v10 = vshll.u32 %v530_v26, 16  ;;  %v1398_v46 = vld [vmem:[#allocation2 + $0x124] sm:$0xf] }
  0xb9   : > { %v1960_v60 = vrot.slane %v1958_v23, 4  ;;  %v1977_v59 = vshll.u32 %v1759_v30, 16  ;;  %v804_v23 = vshrl.u32 %v534_v13, 16  ;;  %v1764_v12 = vld [vmem:[#allocation2 + $0x80] sm:$0xf]  ;;  %vm4083_vm12 = vcmask 650752  }
  0xba   : > { %v1949_v0 = vrot.slane %v1947_v47, 4  ;;  %v778_v26 = vor.u32 %v776_v10, %v775_v5  ;;  %v1981_v10 = vshrl.u32 %v1759_v30, 16  ;;  %v807_v30 = vshll.u32 %v534_v13, 16  ;;  %v1403_v13 = vld [vmem:[#allocation2 + $0x144] sm:$0xf] }
  0xbb   : > { %v538_v57 = vld [vmem:[#allocation2 + $0xb0] sm:$0xf]  ;;  %v1768_v17 = vld [vmem:[#allocation2 + $0x98] sm:$0xf]  ;;  %vm5124_vm13 = vcmask 781952   ;;  %vm6102_vm14 = vcmask 913152  }
  0xbc   : > { %1559 = vrot.lane.b32.xlu1 %v1394_v2, %s11674_s5  ;;  %1557 = vrot.lane.b32.xlu0 %v1393_v4, %s11674_s5  ;;  %v782_v2 = vshrl.u32 %v531_v37, 16  ;;  %v1758_v4 = vld [vmem:[#allocation2 + $0x60] sm:$0xf]  ;;  %v1950_v16 = vor.u32 %v1949_v0, %v12183_v50  ;;  %v527_v37 = vld [vmem:[#allocation2 + $0x74] sm:$0x8]  ;;  %v779_v0 = vsel %vm11969_vm3, %v771_v9, %v778_v26  ;;  %vm6487_vm15 = vcmask 1044352  }
  0xbd   : > { %v1967_v45 = vshll.u32 %v1758_v4, 16  ;;  %v750_v47 = vshrl.u32 %v527_v37, 16  ;;  %1311 = vst.msk [vmem:[#allocation3 + $0x90] sm:$0xf] %vm254_vm0, %v779_v0  ;;  %v1399_v37 = vld [vmem:[#allocation2 + $0x128] sm:$0xf] }
  0xbe   : > { %v784_v18 = vrot.slane %v782_v2, 7  ;;  %v12199_v56 = vrot.slane %v1950_v16, 4  ;;  %v1963_v2 = vrot.slane %v1961_v43, 5  ;;  %v411_v16 = vld [vmem:[#allocation2 + $0x90] sm:$0x8]  ;;  %v12214_v43 = vrot.slane %v1977_v59, 5 }
  0xbf   : > { %v12203_v48 = vrot.slane %v1967_v45, 5  ;;  %v412_v0 = vsel %vm11963_vm2, 0, %v411_v16  ;;  %v536_v16 = vld [vmem:[#allocation2 + $0xa0] sm:$0xf]  ;;  %vm7895_vm1 = vcmask 130048   ;;  %vm10684_vm4 = vcmask 1042434  }
  0xc0   : > { %1563 = vrot.lane.b32.xlu1 %v1396_v36, %s11674_s5  ;;  %1561 = vrot.lane.b32.xlu0 %v1395_v39, %s11674_s5  ;;  %v787_v58 = vor.u32 %v785_v8, %v784_v18  ;;  %v1971_v36 = vshrl.u32 %v1758_v4, 16  ;;  %v10978_v39 = vrot.slane %v750_v47, 11  ;;  %v1756_v8 = vld [vmem:[#allocation2 + $0x50] sm:$0x1]  ;;  %v1964_v9 = vor.u32 %v1963_v2, %v1960_v60  ;;  %413 = vst [vmem:[#allocation2 + $0x90] sm:$0x8] %v412_v0 }
  0xc1   : > { %v795_v4 = vshrl.u32 %v533_v32, 16  ;;  %v1953_v26 = vshll.u32 %v1756_v8, 16  ;;  %v12220_v47 = vrot.slane %v804_v23, 7  ;;  %v1983_v2 = vrot.slane %v1981_v10, 4  ;;  %v535_v8 = vld [vmem:[#allocation2 + $0x9c] sm:$0xf] }
  0xc2   : > { %v788_v5 = vsel %vm11969_vm3, %v780_v22, %v787_v58  ;;  %v1973_v18 = vrot.slane %v1971_v36, 4  ;;  %v761_v22 = vsel %vm11969_vm3, %v10978_v39, %v12170_v31  ;;  %v1760_v58 = vld [vmem:[#allocation2 + $0x68] sm:$0xf]  ;;  %v798_v31 = vshll.u32 %v533_v32, 16  ;;  %v462_v36 = vld [vmem:[#allocation2 + $0x6c] sm:$0x1] }
  0xc3   : > { %1312 = vst.msk [vmem:[#allocation3 + $0x98] sm:$0xf] %vm254_vm0, %v788_v5  ;;  %1309 = vst.msk [vmem:[#allocation3 + $0x80] sm:$0xf] %vm254_vm0, %v761_v22  ;;  %v797_v45 = vrot.slane %v795_v4, 7  ;;  %v12222_v60 = vrot.slane %v1953_v26, 5  ;;  %v809_v59 = vor.u32 %v807_v30, %v12220_v47 }
  0xc4   : > { %1567 = vrot.lane.b32.xlu1 %v1398_v46, %s11674_s5  ;;  %1565 = vrot.lane.b32.xlu0 %v1397_v11, %s11674_s5  ;;  %v12217_v46 = vrot.slane %v1964_v9, 4  ;;  %v1974_v11 = vor.u32 %v1973_v18, %v12203_v48  ;;  %v1402_v32 = vld [vmem:[#allocation2 + $0x140] sm:$0xf]  ;;  %v1401_v10 = vld [vmem:[#allocation2 + $0x13c] sm:$0xf]  ;;  %v1984_v18 = vor.u32 %v1983_v2, %v12214_v43  ;;  %v1987_v4 = vshll.u32 %v1760_v58, 16 }
  0xc5   : > { %v802_v5 = vrot.slane %v797_v45, 4  ;;  %v12239_v9 = vor.u32 %v798_v31, %v797_v45  ;;  %v1991_v22 = vshrl.u32 %v1760_v58, 16  ;;  %v463_v26 = vsel %vm12054_vm8, 0, %v462_v36  ;;  %v1762_v30 = vld [vmem:[#allocation2 + $0x78] sm:$0xf] }
  0xc6   : > { %v12232_v39 = vrot.slane %v1974_v11, 4  ;;  %v12251_v11 = vrot.slane %v1984_v18, 4  ;;  %v12253_v45 = vrot.slane %v1987_v4, 5  ;;  %464 = vst [vmem:[#allocation2 + $0x6c] sm:$0x1] %v463_v26  ;;  %v813_v0 = vshrl.u32 %v535_v8, 16 }
  0xc7   : > { %v822_v31 = vshrl.u32 %v536_v16, 16  ;;  %v1763_v2 = vld [vmem:[#allocation2 + $0x7c] sm:$0xf]  ;;  %v1993_v58 = vrot.slane %v1991_v22, 4  ;;  %v811_v36 = vrot.slane %v12220_v47, 4  ;;  %v816_v23 = vshll.u32 %v535_v8, 16 }
  0xc8   : > { %1571 = vrot.lane.b32.xlu1 %v1400_v20, %s11674_s5  ;;  %1569 = vrot.lane.b32.xlu0 %v1399_v37, %s11674_s5  ;;  %v810_v37 = vsel %vm11969_vm3, %v802_v5, %v809_v59  ;;  %16691 = vst [vmem:[#allocation7_spill] sm:$0xff] %v12253_v45  ;;  %v1404_v5 = vld [vmem:[#allocation2 + $0x148] sm:$0xf]  ;;  %v825_v59 = vshll.u32 %v536_v16, 16  ;;  %v815_v4 = vrot.slane %v813_v0, 7  ;;  %v2002_v26 = vshrl.u32 %v1762_v30, 16 }
  0xc9   : > { %1314 = vst.msk [vmem:[#allocation3 + $0xa8] sm:$0xf] %vm254_vm0, %v810_v37  ;;  %v824_v37 = vrot.slane %v822_v31, 7  ;;  %v1994_v20 = vor.u32 %v1993_v58, %v12253_v45  ;;  %v2011_v40 = vshll.u32 %v1763_v2, 16  ;;  %v1406_v22 = vld [vmem:[#allocation2 + $0x15c] sm:$0xf] }
  0xca   : > { %v532_v16 = vld [vmem:[#allocation2 + $0x90] sm:$0x8]  ;;  %v820_v49 = vrot.slane %v815_v4, 4  ;;  %v818_v8 = vor.u32 %v816_v23, %v815_v4  ;;  %v2004_v34 = vrot.slane %v2002_v26, 4  ;;  %v2021_v4 = vshll.u32 %v1764_v12, 16 }
  0xcb   : > { %v827_v47 = vor.u32 %v825_v59, %v824_v37  ;;  %v790_v0 = vshrl.u32 %v532_v16, 16  ;;  %v12265_v31 = vrot.slane %v1994_v20, 4  ;;  %v12267_v58 = vrot.slane %v2011_v40, 5  ;;  %v414_v37 = vld [vmem:[#allocation2 + $0xac] sm:$0x8] }
  0xcc   : > { %1575 = vrot.lane.b32.xlu1 %v1402_v32, %s11674_s5  ;;  %1573 = vrot.lane.b32.xlu0 %v1401_v10, %s11674_s5  ;;  %v2005_v32 = vshll.u32 %v1762_v30, 16  ;;  %v2015_v10 = vshrl.u32 %v1763_v2, 16  ;;  %v539_v30 = vld [vmem:[#allocation2 + $0xb4] sm:$0xf]  ;;  %v1405_v2 = vld [vmem:[#allocation2 + $0x158] sm:$0xf]  ;;  %v819_v23 = vsel %vm11969_vm3, %v811_v36, %v818_v8 }
  0xcd   : > { %16692 = vst [vmem:[#allocation8_spill] sm:$0xff] %v12265_v31  ;;  %16693 = vst [vmem:[#allocation9_spill] sm:$0xff] %v12267_v58  ;;  %v828_v38 = vsel %vm11969_vm3, %v820_v49, %v827_v47  ;;  %v1761_v26 = vld [vmem:[#allocation2 + $0x6c] sm:$0x1]  ;;  %v2025_v40 = vshrl.u32 %v1764_v12, 16  ;;  %v835_v20 = vshrl.u32 %v538_v57, 16 }
  0xce   : > { %v2007_v18 = vrot.slane %v2005_v32, 5  ;;  %v2017_v59 = vrot.slane %v2015_v10, 4  ;;  %1316 = vst.msk [vmem:[#allocation3 + $0xb8] sm:$0xf] %vm254_vm0, %v828_v38  ;;  %1315 = vst.msk [vmem:[#allocation3 + $0xb0] sm:$0xf] %vm254_vm0, %v819_v23 }
  0xcf   : > { %v1408_v32 = vld [vmem:[#allocation2 + $0x164] sm:$0xf]  ;;  %v1407_v16 = vld [vmem:[#allocation2 + $0x160] sm:$0xf]  ;;  %v1997_v33 = vshll.u32 %v1761_v26, 16  ;;  %v12276_v47 = vrot.slane %v2021_v4, 5 }
  0xd0   : > { %1579 = vrot.lane.b32.xlu1 %v1404_v5, %s11674_s5  ;;  %1577 = vrot.lane.b32.xlu0 %v1403_v13, %s11674_s5  ;;  %v10979_v5 = vrot.slane %v790_v0, 11  ;;  %v2008_v13 = vor.u32 %v2007_v18, %v2004_v34  ;;  %v2018_v49 = vor.u32 %v2017_v59, %v12267_v58  ;;  %v844_v36 = vshrl.u32 %v539_v30, 16  ;;  %v1765_v10 = vld [vmem:[#allocation2 + $0x84] sm:$0xf]  ;;  %v465_v8 = vld [vmem:[#allocation2 + $0x88] sm:$0x1] }
  0xd1   : > { %16694 = vst [vmem:[#allocation10_spill] sm:$0xff] %v12276_v47  ;;  %v837_v12 = vrot.slane %v835_v20, 7  ;;  %v847_v18 = vshll.u32 %v539_v30, 16  ;;  %v12286_v0 = vrot.slane %v1997_v33, 5  ;;  %v838_v30 = vshll.u32 %v538_v57, 16 }
  0xd2   : > { %v801_v38 = vsel %vm11969_vm3, %v10979_v5, %v12239_v9  ;;  %v12283_v34 = vrot.slane %v2008_v13, 4  ;;  %v12288_v23 = vrot.slane %v2018_v49, 4  ;;  %v846_v59 = vrot.slane %v844_v36, 7  ;;  %v541_v26 = vld [vmem:[#allocation2 + $0xbc] sm:$0xf] }
  0xd3   : > { %1313 = vst.msk [vmem:[#allocation3 + $0xa0] sm:$0xf] %vm254_vm0, %v801_v38  ;;  %16696 = vst [vmem:[#allocation12_spill] sm:$0xff] %v12286_v0  ;;  %v842_v4 = vrot.slane %v837_v12, 4  ;;  %v2027_v5 = vrot.slane %v2025_v40, 4  ;;  %v2031_v49 = vshll.u32 %v1765_v10, 16  ;;  %v12306_v40 = vor.u32 %v838_v30, %v837_v12 }
  0xd4   : > { %1583 = vrot.lane.b32.xlu1 %v1406_v22, %s11674_s5  ;;  %1581 = vrot.lane.b32.xlu0 %v1405_v2, %s11674_s5  ;;  %16695 = vst [vmem:[#allocation11_spill] sm:$0xff] %v12283_v34  ;;  %16697 = vst [vmem:[#allocation13_spill] sm:$0xff] %v12288_v23  ;;  %v415_v22 = vsel %vm11963_vm2, 0, %v414_v37  ;;  %v540_v2 = vld [vmem:[#allocation2 + $0xb8] sm:$0xf]  ;;  %v849_v20 = vor.u32 %v847_v18, %v846_v59  ;;  %v2035_v38 = vshrl.u32 %v1765_v10, 16 }
  0xd5   : > { %416 = vst [vmem:[#allocation2 + $0xac] sm:$0x8] %v415_v22  ;;  %v1410_v13 = vld [vmem:[#allocation2 + $0x178] sm:$0xf]  ;;  %v1409_v57 = vld [vmem:[#allocation2 + $0x174] sm:$0xf]  ;;  %v2028_v36 = vor.u32 %v2027_v5, %v12276_v47 }
  0xd6   : > { %v466_v22 = vsel %vm12054_vm8, 0, %v465_v8  ;;  %v1767_v9 = vld [vmem:[#allocation2 + $0x94] sm:$0xf]  ;;  %v850_v33 = vsel %vm11969_vm3, %v842_v4, %v849_v20  ;;  %v12313_v37 = vrot.slane %v2031_v49, 5  ;;  %v853_v18 = vshrl.u32 %v540_v2, 16 }
  0xd7   : > { %467 = vst [vmem:[#allocation2 + $0x88] sm:$0x1] %v466_v22  ;;  %1318 = vst.msk [vmem:[#allocation3 + $0xc8] sm:$0xf] %vm254_vm0, %v850_v33  ;;  %v2037_v12 = vrot.slane %v2035_v38, 4  ;;  %v865_v30 = vshll.u32 %v541_v26, 16 }
  0xd8   : > { %1587 = vrot.lane.b32.xlu1 %v1408_v32, %s11674_s5  ;;  %1585 = vrot.lane.b32.xlu0 %v1407_v16, %s11674_s5  ;;  %16698 = vst [vmem:[#allocation14_spill] sm:$0xff] %v12313_v37  ;;  %v862_v32 = vshrl.u32 %v541_v26, 16  ;;  %v12316_v16 = vrot.slane %v2028_v36, 4  ;;  %v851_v10 = vrot.slane %v846_v59, 4  ;;  %v1412_v5 = vld [vmem:[#allocation2 + $0x180] sm:$0xf] }
  0xd9   : > { %v855_v47 = vrot.slane %v853_v18, 7  ;;  %v856_v23 = vshll.u32 %v540_v2, 16  ;;  %v2046_v58 = vshrl.u32 %v1767_v9, 16  ;;  %v1411_v4 = vld [vmem:[#allocation2 + $0x17c] sm:$0xf]  ;;  %v2038_v20 = vor.u32 %v2037_v12, %v12313_v37 }
  0xda   : > { %v864_v8 = vrot.slane %v862_v32, 7  ;;  %v2049_v26 = vshll.u32 %v1767_v9, 16  ;;  %v2055_v59 = vshll.u32 %v1768_v17, 16  ;;  %v1769_v49 = vld [vmem:[#allocation2 + $0x9c] sm:$0xf]  ;;  %v2059_v33 = vshrl.u32 %v1768_v17, 16 }
  0xdb   : > { %v860_v38 = vrot.slane %v855_v47, 4  ;;  %v858_v22 = vor.u32 %v856_v23, %v855_v47  ;;  %v2048_v18 = vrot.slane %v2046_v58, 4  ;;  %v544_v31 = vld [vmem:[#allocation2 + $0xd0] sm:$0xf]  ;;  %v1414_v45 = vld [vmem:[#allocation2 + $0x194] sm:$0xf] }
  0xdc   : > { %1591 = vrot.lane.b32.xlu1 %v1410_v13, %s11674_s5  ;;  %1589 = vrot.lane.b32.xlu0 %v1409_v57, %s11674_s5  ;;  %v537_v36 = vld [vmem:[#allocation2 + $0xac] sm:$0x8]  ;;  %v867_v2 = vor.u32 %v865_v30, %v864_v8  ;;  %v12325_v57 = vrot.slane %v2038_v20, 4  ;;  %v2051_v34 = vrot.slane %v2049_v26, 5  ;;  %v12327_v0 = vrot.slane %v2055_v59, 5 }
  0xdd   : > { %v543_v13 = vld [vmem:[#allocation2 + $0xcc] sm:$0xf]  ;;  %v830_v32 = vshrl.u32 %v537_v36, 16  ;;  %v859_v9 = vsel %vm11969_vm3, %v851_v10, %v858_v22  ;;  %v2065_v37 = vshll.u32 %v1769_v49, 16  ;;  %v417_v30 = vld [vmem:[#allocation2 + $0xc8] sm:$0x8] }
  0xde   : > { %16699 = vst [vmem:[#allocation15_spill] sm:$0xff] %v12325_v57  ;;  %16700 = vst [vmem:[#allocation16_spill] sm:$0xff] %v12327_v0  ;;  %v868_v12 = vsel %vm11969_vm3, %v860_v38, %v867_v2  ;;  %v1766_v47 = vld [vmem:[#allocation2 + $0x88] sm:$0x1]  ;;  %v2052_v23 = vor.u32 %v2051_v34, %v2048_v18  ;;  %v2069_v8 = vshrl.u32 %v1769_v49, 16  ;;  %v875_v20 = vshrl.u32 %v543_v13, 16 }
  0xdf   : > { %v10980_v58 = vrot.slane %v830_v32, 11  ;;  %1320 = vst.msk [vmem:[#allocation3 + $0xd8] sm:$0xf] %vm254_vm0, %v868_v12  ;;  %1319 = vst.msk [vmem:[#allocation3 + $0xd0] sm:$0xf] %vm254_vm0, %v859_v9  ;;  %v2041_v59 = vshll.u32 %v1766_v47, 16 }
  0xe0   : > { %1595 = vrot.lane.b32.xlu1 %v1412_v5, %s11674_s5  ;;  %1593 = vrot.lane.b32.xlu0 %v1411_v4, %s11674_s5  ;;  %v1413_v26 = vld [vmem:[#allocation2 + $0x190] sm:$0xf]  ;;  %v2061_v36 = vrot.slane %v2059_v33, 4  ;;  %v12337_v10 = vrot.slane %v2065_v37, 5  ;;  %v884_v17 = vshrl.u32 %v544_v31, 16  ;;  %v12342_v4 = vrot.slane %v2052_v23, 4 }
  0xe1   : > { %v841_v5 = vsel %vm11969_vm3, %v10980_v58, %v12306_v40  ;;  %v877_v38 = vrot.slane %v875_v20, 7  ;;  %v887_v2 = vshll.u32 %v544_v31, 16  ;;  %v1770_v22 = vld [vmem:[#allocation2 + $0xa0] sm:$0xf]  ;;  %v1416_v32 = vld [vmem:[#allocation2 + $0x19c] sm:$0xf] }
  0xe2   : > { %16701 = vst [vmem:[#allocation17_spill] sm:$0xff] %v12337_v10  ;;  %16702 = vst [vmem:[#allocation18_spill] sm:$0xff] %v12342_v4  ;;  %v12345_v34 = vrot.slane %v2041_v59, 5  ;;  %v2062_v49 = vor.u32 %v2061_v36, %v12327_v0  ;;  %v12348_v33 = vrot.slane %v884_v17, 7  ;;  %v418_v37 = vsel %vm11963_vm2, 0, %v417_v30 }
  0xe3   : > { %1317 = vst.msk [vmem:[#allocation3 + $0xc0] sm:$0xf] %vm254_vm0, %v841_v5  ;;  %v468_v18 = vld [vmem:[#allocation2 + $0xa4] sm:$0x1]  ;;  %v882_v40 = vrot.slane %v877_v38, 4  ;;  %v878_v12 = vshll.u32 %v543_v13, 16 }
  0xe4   : > { %16703 = vst [vmem:[#allocation19_spill] sm:$0xff] %v12345_v34  ;;  %1599 = vrot.lane.b32.xlu1 %v1414_v45, %s11674_s5  ;;  %1597 = vrot.lane.b32.xlu0 %v1413_v26, %s11674_s5  ;;  %419 = vst [vmem:[#allocation2 + $0xc8] sm:$0x8] %v418_v37  ;;  %v2071_v9 = vrot.slane %v2069_v8, 4  ;;  %v545_v58 = vld [vmem:[#allocation2 + $0xd4] sm:$0xf]  ;;  %v889_v45 = vor.u32 %v887_v2, %v12348_v33 }
  0xe5   : > { %v1415_v47 = vld [vmem:[#allocation2 + $0x198] sm:$0xf]  ;;  %v12362_v23 = vrot.slane %v2062_v49, 4  ;;  %v2075_v20 = vshll.u32 %v1770_v22, 16  ;;  %v12365_v17 = vor.u32 %v878_v12, %v877_v38  ;;  %v2079_v8 = vshrl.u32 %v1770_v22, 16 }
  0xe6   : > { %v546_v26 = vld [vmem:[#allocation2 + $0xd8] sm:$0xf]  ;;  %v1490_v59 = vpop.permute.xlu1 %1489  ;;  %v1486_v36 = vpop.permute.xlu0 %1485  ;;  %v2072_v13 = vor.u32 %v2071_v9, %v12337_v10  ;;  %v469_v5 = vsel %vm12054_vm8, 0, %v468_v18  ;;  %v1772_v37 = vld [vmem:[#allocation2 + $0xb0] sm:$0xf]  ;;  %v890_v38 = vsel %vm11969_vm3, %v882_v40, %v889_v45  ;;  %v893_v22 = vshrl.u32 %v545_v58, 16 }
  0xe7   : > { %16704 = vst [vmem:[#allocation20_spill] sm:$0xff] %v12362_v23  ;;  %1680 = vst.msk [vmem:[#allocation3 + $0x10] sm:$0xf] %vm1677_vm9, %v1490_v59  ;;  %v1418_v49 = vld [vmem:[#allocation2 + $0x1b0] sm:$0xf]  ;;  %v12378_v12 = vrot.slane %v2075_v20, 5 }
  0xe8   : > { %1678 = vst.msk [vmem:[#allocation3] sm:$0xf] %vm1677_vm9, %v1486_v36  ;;  %470 = vst [vmem:[#allocation2 + $0xa4] sm:$0x1] %v469_v5  ;;  %1603 = vrot.lane.b32.xlu1 %v1416_v32, %s11674_s5  ;;  %1601 = vrot.lane.b32.xlu0 %v1415_v47, %s11674_s5  ;;  %v12383_v18 = vrot.slane %v2072_v13, 4  ;;  %v2081_v9 = vrot.slane %v2079_v8, 4 }
  0xe9   : > { %16705 = vst [vmem:[#allocation21_spill] sm:$0xff] %v12378_v12  ;;  %1322 = vst.msk [vmem:[#allocation3 + $0xe8] sm:$0xf] %vm254_vm0, %v890_v38  ;;  %v902_v59 = vshrl.u32 %v546_v26, 16  ;;  %v905_v36 = vshll.u32 %v546_v26, 16  ;;  %v895_v30 = vrot.slane %v893_v22, 7 }
  0xea   : > { %16706 = vst [vmem:[#allocation22_spill] sm:$0xff] %v12383_v18  ;;  %v1773_v31 = vld [vmem:[#allocation2 + $0xb4] sm:$0xf]  ;;  %v1417_v2 = vld [vmem:[#allocation2 + $0x1ac] sm:$0xf]  ;;  %v891_v40 = vrot.slane %v12348_v33, 4  ;;  %v1492_v5 = vpop.permute.xlu1 %1491  ;;  %v1488_v10 = vpop.permute.xlu0 %1487  ;;  %v2082_v47 = vor.u32 %v2081_v9, %v12378_v12 }
  0xeb   : > { %v896_v45 = vshll.u32 %v545_v58, 16  ;;  %v2090_v20 = vshrl.u32 %v1772_v37, 16  ;;  %v904_v13 = vrot.slane %v902_v59, 7  ;;  %v2093_v8 = vshll.u32 %v1772_v37, 16  ;;  %v1774_v38 = vld [vmem:[#allocation2 + $0xb8] sm:$0xf] }
  0xec   : > { %1681 = vst.msk [vmem:[#allocation3 + $0x18] sm:$0xf] %vm1677_vm9, %v1492_v5  ;;  %1679 = vst.msk [vmem:[#allocation3 + $0x8] sm:$0xf] %vm1677_vm9, %v1488_v10  ;;  %v1420_v26 = vld [vmem:[#allocation2 + $0x1b8] sm:$0xf]  ;;  %1607 = vrot.lane.b32.xlu1 %v1418_v49, %s11674_s5  ;;  %1605 = vrot.lane.b32.xlu0 %v1417_v2, %s11674_s5 }
  0xed   : > { %v1419_v33 = vld [vmem:[#allocation2 + $0x1b4] sm:$0xf]  ;;  %v542_v58 = vld [vmem:[#allocation2 + $0xc8] sm:$0x8]  ;;  %v900_v22 = vrot.slane %v895_v30, 4  ;;  %v898_v23 = vor.u32 %v896_v45, %v895_v30  ;;  %v2092_v0 = vrot.slane %v2090_v20, 4  ;;  %v907_v37 = vor.u32 %v905_v36, %v904_v13 }
  0xee   : > { %v2099_v4 = vshll.u32 %v1773_v31, 16  ;;  %v870_v32 = vshrl.u32 %v542_v58, 16  ;;  %v12395_v9 = vrot.slane %v2082_v47, 4  ;;  %v2095_v59 = vrot.slane %v2093_v8, 5  ;;  %v548_v12 = vld [vmem:[#allocation2 + $0xe8] sm:$0xf]  ;;  %v1496_v45 = vpop.permute.xlu1 %1495  ;;  %v1494_v20 = vpop.permute.xlu0 %1493 }
  0xef   : > { %v899_v10 = vsel %vm11969_vm3, %v891_v40, %v898_v23  ;;  %v2103_v18 = vshrl.u32 %v1773_v31, 16  ;;  %v2109_v34 = vshll.u32 %v1774_v38, 16  ;;  %v549_v30 = vld [vmem:[#allocation2 + $0xec] sm:$0xf]  ;;  %v1771_v49 = vld [vmem:[#allocation2 + $0xa4] sm:$0x1]  ;;  %v908_v2 = vsel %vm11969_vm3, %v900_v22, %v907_v37 }
  0xf0   : > { %v12399_v5 = vrot.slane %v2099_v4, 5  ;;  %v10981_v57 = vrot.slane %v870_v32, 11  ;;  %1323 = vst.msk [vmem:[#allocation3 + $0xf0] sm:$0xf] %vm254_vm0, %v899_v10  ;;  %v2096_v36 = vor.u32 %v2095_v59, %v2092_v0  ;;  %v2113_v47 = vshrl.u32 %v1774_v38, 16  ;;  %1611 = vrot.lane.b32.xlu1 %v1420_v26, %s11674_s5  ;;  %1609 = vrot.lane.b32.xlu0 %v1419_v33, %s11674_s5 }
  0xf1   : > { %v420_v13 = vld [vmem:[#allocation2 + $0xe4] sm:$0x8]  ;;  %1683 = vst.msk [vmem:[#allocation3 + $0x28] sm:$0xf] %vm1677_vm9, %v1496_v45  ;;  %1682 = vst.msk [vmem:[#allocation3 + $0x20] sm:$0xf] %vm1677_vm9, %v1494_v20 }
  0xf2   : > { %v2085_v4 = vshll.u32 %v1771_v49, 16  ;;  %1324 = vst.msk [vmem:[#allocation3 + $0xf8] sm:$0xf] %vm254_vm0, %v908_v2  ;;  %v2105_v31 = vrot.slane %v2103_v18, 4  ;;  %v12407_v23 = vrot.slane %v2109_v34, 5  ;;  %v915_v40 = vshrl.u32 %v548_v12, 16  ;;  %v1500_v37 = vpop.permute.xlu1 %1499  ;;  %v1498_v59 = vpop.permute.xlu0 %1497 }
  0xf3   : > { %v881_v0 = vsel %vm11969_vm3, %v10981_v57, %v12365_v17  ;;  %v12414_v32 = vrot.slane %v2096_v36, 4  ;;  %v924_v8 = vshrl.u32 %v549_v30, 16  ;;  %v927_v38 = vshll.u32 %v549_v30, 16  ;;  %v1775_v58 = vld [vmem:[#allocation2 + $0xbc] sm:$0xf] }
  0xf4   : > { %1321 = vst.msk [vmem:[#allocation3 + $0xe0] sm:$0xf] %vm254_vm0, %v881_v0  ;;  %v12417_v22 = vrot.slane %v2085_v4, 5  ;;  %v2106_v34 = vor.u32 %v2105_v31, %v12399_v5  ;;  %v917_v18 = vrot.slane %v915_v40, 7  ;;  %v421_v26 = vsel %vm11963_vm2, 0, %v420_v13 }
  0xf5   : > { %v471_v33 = vld [vmem:[#allocation2 + $0xc0] sm:$0x1]  ;;  %v2102_v57 = vsel %vm12019_vm6, %v12414_v32, %v12399_v5  ;;  %v12426_v17 = vrot.slane %v924_v8, 7  ;;  %422 = vst [vmem:[#allocation2 + $0xe4] sm:$0x8] %v421_v26  ;;  %v918_v10 = vshll.u32 %v548_v12, 16  ;;  %v16707_v12 = vsel %vm12019_vm6, %v12030_v7, %v12014_v55 }
  0xf6   : > { %v2115_v30 = vrot.slane %v2113_v47, 4  ;;  %v550_v45 = vld [vmem:[#allocation2 + $0xf0] sm:$0xf]  ;;  %1685 = vst.msk [vmem:[#allocation3 + $0x38] sm:$0xf] %vm1677_vm9, %v1500_v37  ;;  %v2088_v20 = vsel %vm12019_vm6, %v12395_v9, %v12417_v22  ;;  %v12434_v49 = vrot.slane %v2106_v34, 4  ;;  %2531 = vrot.lane.b32.xlu1 %v16707_v12, %s11675_s7  ;;  %v16708_v47 = vsel %vm12019_vm6, %v12043_v24, %v12011_v51  ;;  %v1504_v24 = vpop.permute.xlu1 %1503  ;;  %v1502_v26 = vpop.permute.xlu0 %1501 }
  0xf7   : > { %1684 = vst.msk [vmem:[#allocation3 + $0x30] sm:$0xf] %vm1677_vm9, %v1498_v59  ;;  %v922_v2 = vrot.slane %v917_v18, 4  ;;  %v2119_v36 = vshll.u32 %v1775_v58, 16  ;;  %v551_v13 = vld [vmem:[#allocation2 + $0xf4] sm:$0xf]  ;;  %2529 = vrot.lane.b32.xlu0 %v16708_v47, %s11675_s7  ;;  %v929_v4 = vor.u32 %v927_v38, %v12426_v17  ;;  %v12449_v31 = vor.u32 %v918_v10, %v917_v18 }
  0xf8   : > { %v2116_v40 = vor.u32 %v2115_v30, %v12407_v23  ;;  %v2123_v0 = vshrl.u32 %v1775_v58, 16  ;;  %v2112_v55 = vsel %vm12019_vm6, %v12434_v49, %v12407_v23  ;;  %v472_v8 = vsel %vm12054_vm8, 0, %v471_v33  ;;  %v1777_v51 = vld [vmem:[#allocation2 + $0xcc] sm:$0xf]  ;;  %v1778_v59 = vld [vmem:[#allocation2 + $0xd0] sm:$0xf] }
  0xf9   : > { %v12456_v7 = vrot.slane %v2119_v36, 5  ;;  %v933_v34 = vshrl.u32 %v550_v45, 16  ;;  %v930_v38 = vsel %vm11969_vm3, %v922_v2, %v929_v4  ;;  %473 = vst [vmem:[#allocation2 + $0xc0] sm:$0x1] %v472_v8  ;;  %v942_v37 = vshrl.u32 %v551_v13, 16 }
  0xfa   : > { %v12462_v18 = vrot.slane %v2116_v40, 4  ;;  %v2125_v58 = vrot.slane %v2123_v0, 4  ;;  %1687 = vst.msk [vmem:[#allocation3 + $0x48] sm:$0xf] %vm1677_vm9, %v1504_v24  ;;  %1686 = vst.msk [vmem:[#allocation3 + $0x40] sm:$0xf] %vm1677_vm9, %v1502_v26  ;;  %v16709_v2 = vsel %vm12019_vm6, %v12051_v28, %v12045_v25  ;;  %v16710_v12 = vsel %vm12019_vm6, %v12073_v54, %v12106_v42  ;;  %v1508_v24 = vpop.permute.xlu1 %1507  ;;  %v1506_v54 = vpop.permute.xlu0 %1505 }
  0xfb   : > { %1326 = vst.msk [vmem:[#allocation3 + $0x108] sm:$0xf] %vm254_vm0, %v930_v38  ;;  %v935_v33 = vrot.slane %v933_v34, 7  ;;  %v945_v10 = vshll.u32 %v551_v13, 16  ;;  %v931_v30 = vrot.slane %v12426_v17, 4  ;;  %v936_v36 = vshll.u32 %v550_v45, 16  ;;  %2533 = vrot.lane.b32.xlu0 %v16709_v2, %s11675_s7  ;;  %2535 = vrot.lane.b32.xlu1 %v16710_v12, %s11675_s7 }
  0xfc   : > { %v2126_v45 = vor.u32 %v2125_v58, %v12456_v7  ;;  %v944_v13 = vrot.slane %v942_v37, 7  ;;  %v2134_v47 = vshrl.u32 %v1777_v51, 16  ;;  %v1779_v4 = vld [vmem:[#allocation2 + $0xd4] sm:$0xf]  ;;  %v12485_v40 = vld [vmem:[#allocation2 + $0x104] sm:$0xf] }
  0xfd   : > { %v547_v25 = vld [vmem:[#allocation2 + $0xe4] sm:$0x8]  ;;  %v940_v28 = vrot.slane %v935_v33, 4  ;;  %v938_v0 = vor.u32 %v936_v36, %v935_v33  ;;  %v2137_v8 = vshll.u32 %v1777_v51, 16  ;;  %v2143_v34 = vshll.u32 %v1778_v59, 16 }
  0xfe   : > { %v910_v42 = vshrl.u32 %v547_v25, 16  ;;  %v12487_v26 = vrot.slane %v2126_v45, 4  ;;  %v947_v38 = vor.u32 %v945_v10, %v944_v13  ;;  %v2136_v2 = vrot.slane %v2134_v47, 4  ;;  %v554_v12 = vld [vmem:[#allocation2 + $0x108] sm:$0xf] }
  0xff   : > { %1689 = vst.msk [vmem:[#allocation3 + $0x58] sm:$0xf] %vm1677_vm9, %v1508_v24  ;;  %1688 = vst.msk [vmem:[#allocation3 + $0x50] sm:$0xf] %vm1677_vm9, %v1506_v54  ;;  %v939_v58 = vsel %vm11969_vm3, %v931_v30, %v938_v0  ;;  %v2139_v37 = vrot.slane %v2137_v8, 5  ;;  %v12493_v17 = vrot.slane %v2143_v34, 5  ;;  %v16711_v33 = vsel %vm12019_vm6, %v12091_v21, %v12077_v3  ;;  %v1512_v8 = vpop.permute.xlu1 %1511 }
 0x100   : > { %v2147_v51 = vshrl.u32 %v1778_v59, 16  ;;  %2537 = vrot.lane.b32.xlu0 %v16711_v33, %s11675_s7  ;;  %v16712_v10 = vsel %vm12019_vm6, %v12102_v35, %v12088_v15  ;;  %v10982_v36 = vrot.slane %v910_v42, 11  ;;  %v948_v30 = vsel %vm11969_vm3, %v940_v28, %v947_v38  ;;  %1327 = vst.msk [vmem:[#allocation3 + $0x110] sm:$0xf] %vm254_vm0, %v939_v58  ;;  %v423_v13 = vld [vmem:[#allocation2 + $0x100] sm:$0x8]  ;;  %v1510_v15 = vpop.permute.xlu0 %1509 }
 0x101   : > { %2539 = vrot.lane.b32.xlu1 %v16712_v10, %s11675_s7  ;;  %v2153_v59 = vshll.u32 %v1779_v4, 16  ;;  %v2157_v45 = vshrl.u32 %v1779_v4, 16  ;;  %v1776_v47 = vld [vmem:[#allocation2 + $0xc0] sm:$0x1]  ;;  %1328 = vst.msk [vmem:[#allocation3 + $0x118] sm:$0xf] %vm254_vm0, %v948_v30  ;;  %v2140_v3 = vor.u32 %v2139_v37, %v2136_v2 }
 0x102   : > { %v2149_v21 = vrot.slane %v2147_v51, 4  ;;  %v955_v25 = vshrl.u32 %v12485_v40, 16  ;;  %v964_v0 = vshrl.u32 %v554_v12, 16  ;;  %v921_v35 = vsel %vm11969_vm3, %v10982_v36, %v12449_v31  ;;  %1691 = vst.msk [vmem:[#allocation3 + $0x68] sm:$0xf] %vm1677_vm9, %v1512_v8 }
 0x103   : > { %v2129_v28 = vshll.u32 %v1776_v47, 16  ;;  %v12515_v34 = vrot.slane %v2153_v59, 5  ;;  %v967_v24 = vshll.u32 %v554_v12, 16  ;;  %1690 = vst.msk [vmem:[#allocation3 + $0x60] sm:$0xf] %vm1677_vm9, %v1510_v15  ;;  %v12520_v4 = vrot.slane %v2140_v3, 4  ;;  %v1516_v59 = vpop.permute.xlu1 %1515 }
 0x104   : > { %1325 = vst.msk [vmem:[#allocation3 + $0x100] sm:$0xf] %vm254_vm0, %v921_v35  ;;  %v2150_v54 = vor.u32 %v2149_v21, %v12493_v17  ;;  %v957_v42 = vrot.slane %v955_v25, 7  ;;  %v12523_v38 = vrot.slane %v964_v0, 7  ;;  %v1780_v2 = vld [vmem:[#allocation2 + $0xd8] sm:$0xf]  ;;  %v16713_v31 = vsel %vm12019_vm6, %v12127_v63, %v12116_v52  ;;  %v1514_v47 = vpop.permute.xlu0 %1513 }
 0x105   : > { %2541 = vrot.lane.b32.xlu0 %v16713_v31, %s11675_s7  ;;  %v16714_v12 = vsel %vm12019_vm6, %v12137_v14, %v12162_v19  ;;  %v12537_v58 = vrot.slane %v2129_v28, 5  ;;  %v424_v37 = vsel %vm11963_vm2, 0, %v423_v13  ;;  %v958_v51 = vshll.u32 %v12485_v40, 16  ;;  %v474_v10 = vld [vmem:[#allocation2 + $0xdc] sm:$0x1] }
 0x106   : > { %2543 = vrot.lane.b32.xlu1 %v16714_v12, %s11675_s7  ;;  %v2159_v33 = vrot.slane %v2157_v45, 4  ;;  %v2146_v52 = vsel %vm12019_vm6, %v12520_v4, %v12493_v17  ;;  %v12546_v63 = vrot.slane %v2150_v54, 4  ;;  %v962_v36 = vrot.slane %v957_v42, 4  ;;  %425 = vst [vmem:[#allocation2 + $0x100] sm:$0x8] %v424_v37 }
 0x107   : > { %v969_v14 = vor.u32 %v967_v24, %v12523_v38  ;;  %v555_v19 = vld [vmem:[#allocation2 + $0x10c] sm:$0xf]  ;;  %v556_v30 = vld [vmem:[#allocation2 + $0x110] sm:$0xf]  ;;  %v2132_v40 = vsel %vm12019_vm6, %v12487_v26, %v12537_v58  ;;  %v12553_v45 = vor.u32 %v958_v51, %v957_v42  ;;  %v2163_v3 = vshll.u32 %v1780_v2, 16  ;;  %v1520_v51 = vpop.permute.xlu1 %1519 }
 0x108   : > { %v2160_v13 = vor.u32 %v2159_v33, %v12515_v34  ;;  %1693 = vst.msk [vmem:[#allocation3 + $0x78] sm:$0xf] %vm1677_vm9, %v1516_v59  ;;  %1692 = vst.msk [vmem:[#allocation3 + $0x70] sm:$0xf] %vm1677_vm9, %v1514_v47  ;;  %v2156_v21 = vsel %vm12019_vm6, %v12546_v63, %v12515_v34  ;;  %v2167_v0 = vshrl.u32 %v1780_v2, 16  ;;  %v475_v8 = vsel %vm12054_vm8, 0, %v474_v10  ;;  %v1518_v33 = vpop.permute.xlu0 %1517 }
 0x109   : > { %v970_v25 = vsel %vm11969_vm3, %v962_v36, %v969_v14  ;;  %v1782_v15 = vld [vmem:[#allocation2 + $0xe8] sm:$0xf]  ;;  %v16715_v35 = vsel %vm12019_vm6, %v12155_v6, %v12146_v53  ;;  %v16716_v28 = vsel %vm12019_vm6, %v12168_v27, %v12152_v62  ;;  %v12581_v54 = vrot.slane %v2163_v3, 5  ;;  %476 = vst [vmem:[#allocation2 + $0xdc] sm:$0x1] %v475_v8 }
 0x10a   : > { %2545 = vrot.lane.b32.xlu0 %v16715_v35, %s11675_s7  ;;  %2547 = vrot.lane.b32.xlu1 %v16716_v28, %s11675_s7  ;;  %1330 = vst.msk [vmem:[#allocation3 + $0x128] sm:$0xf] %vm254_vm0, %v970_v25  ;;  %v12579_v24 = vrot.slane %v2160_v13, 4  ;;  %v973_v42 = vshrl.u32 %v555_v19, 16  ;;  %v982_v2 = vshrl.u32 %v556_v30, 16  ;;  %v2169_v12 = vrot.slane %v2167_v0, 4 }
 0x10b   : > { %v1783_v31 = vld [vmem:[#allocation2 + $0xec] sm:$0xf]  ;;  %v985_v53 = vshll.u32 %v556_v30, 16  ;;  %v971_v6 = vrot.slane %v12523_v38, 4  ;;  %v976_v37 = vshll.u32 %v555_v19, 16  ;;  %v2178_v36 = vshrl.u32 %v1782_v15, 16 }
 0x10c   : > { %v2166_v62 = vsel %vm12019_vm6, %v12579_v24, %v12581_v54  ;;  %v975_v27 = vrot.slane %v973_v42, 7  ;;  %v984_v10 = vrot.slane %v982_v2, 7  ;;  %1695 = vst.msk [vmem:[#allocation3 + $0x88] sm:$0xf] %vm1677_vm9, %v1520_v51  ;;  %1694 = vst.msk [vmem:[#allocation3 + $0x80] sm:$0xf] %vm1677_vm9, %v1518_v33  ;;  %v2170_v14 = vor.u32 %v2169_v12, %v12581_v54  ;;  %v1522_v12 = vpop.permute.xlu0 %1521 }
 0x10d   : > { %v2181_v30 = vshll.u32 %v1782_v15, 16  ;;  %v2187_v59 = vshll.u32 %v1783_v31, 16  ;;  %v2191_v38 = vshrl.u32 %v1783_v31, 16  ;;  %v1784_v19 = vld [vmem:[#allocation2 + $0xf0] sm:$0xf]  ;;  %v16717_v47 = vsel %vm12019_vm6, %v12189_v61, %v12183_v50  ;;  %v1524_v31 = vpop.permute.xlu1 %1523 }
 0x10e   : > { %2549 = vrot.lane.b32.xlu0 %v16717_v47, %s11675_s7  ;;  %v16718_v13 = vsel %vm12019_vm6, %v12199_v56, %v12222_v60  ;;  %v552_v3 = vld [vmem:[#allocation2 + $0x100] sm:$0x8]  ;;  %v980_v25 = vrot.slane %v975_v27, 4  ;;  %v987_v0 = vor.u32 %v985_v53, %v984_v10  ;;  %v978_v8 = vor.u32 %v976_v37, %v975_v27  ;;  %v559_v61 = vld [vmem:[#allocation2 + $0x124] sm:$0xf] }
 0x10f   : > { %2551 = vrot.lane.b32.xlu1 %v16718_v13, %s11675_s7  ;;  %v2180_v15 = vrot.slane %v2178_v36, 4  ;;  %v12603_v35 = vld [vmem:[#allocation2 + $0x120] sm:$0xf]  ;;  %v950_v28 = vshrl.u32 %v552_v3, 16  ;;  %v12605_v42 = vrot.slane %v2170_v14, 4  ;;  %v2183_v2 = vrot.slane %v2181_v30, 5 }
 0x110   : > { %v12607_v50 = vrot.slane %v2187_v59, 5  ;;  %v988_v56 = vsel %vm11969_vm3, %v980_v25, %v987_v0  ;;  %v979_v60 = vsel %vm11969_vm3, %v971_v6, %v978_v8  ;;  %v2193_v53 = vrot.slane %v2191_v38, 4  ;;  %1697 = vst.msk [vmem:[#allocation3 + $0x98] sm:$0xf] %vm1677_vm9, %v1524_v31  ;;  %1696 = vst.msk [vmem:[#allocation3 + $0x90] sm:$0xf] %vm1677_vm9, %v1522_v12  ;;  %v1526_v8 = vpop.permute.xlu0 %1525 }
 0x111   : > { %v2197_v37 = vshll.u32 %v1784_v19, 16  ;;  %v10983_v51 = vrot.slane %v950_v28, 11  ;;  %v1781_v33 = vld [vmem:[#allocation2 + $0xdc] sm:$0x1]  ;;  %1332 = vst.msk [vmem:[#allocation3 + $0x138] sm:$0xf] %vm254_vm0, %v988_v56  ;;  %v2184_v27 = vor.u32 %v2183_v2, %v2180_v15  ;;  %v16719_v6 = vsel %vm12019_vm6, %v12217_v46, %v12203_v48  ;;  %v1528_v0 = vpop.permute.xlu1 %1527 }
 0x112   : > { %1331 = vst.msk [vmem:[#allocation3 + $0x130] sm:$0xf] %vm254_vm0, %v979_v60  ;;  %v2201_v10 = vshrl.u32 %v1784_v19, 16  ;;  %v995_v36 = vshrl.u32 %v12603_v35, 16  ;;  %2553 = vrot.lane.b32.xlu0 %v16719_v6, %s11675_s7  ;;  %v16720_v14 = vsel %vm12019_vm6, %v12232_v39, %v12214_v43  ;;  %v2173_v30 = vshll.u32 %v1781_v33, 16  ;;  %v16724_v33 = vld [vmem:[#allocation12_spill] sm:$0xff] }
 0x113   : > { %2555 = vrot.lane.b32.xlu1 %v16720_v14, %s11675_s7  ;;  %v2194_v59 = vor.u32 %v2193_v53, %v12607_v50  ;;  %v12631_v38 = vrot.slane %v2197_v37, 5  ;;  %v1004_v19 = vshrl.u32 %v559_v61, 16  ;;  %v426_v47 = vld [vmem:[#allocation2 + $0x11c] sm:$0x8]  ;;  %v961_v13 = vsel %vm11969_vm3, %v10983_v51, %v12553_v45  ;;  %v1785_v25 = vld [vmem:[#allocation2 + $0xf4] sm:$0xf] }
 0x114   : > { %v12636_v48 = vrot.slane %v2184_v27, 4  ;;  %v2203_v46 = vrot.slane %v2201_v10, 4  ;;  %v997_v3 = vrot.slane %v995_v36, 7  ;;  %1329 = vst.msk [vmem:[#allocation3 + $0x120] sm:$0xf] %vm254_vm0, %v961_v13  ;;  %v12639_v43 = vrot.slane %v2173_v30, 5 }
 0x115   : > { %v12641_v39 = vrot.slane %v2194_v59, 4  ;;  %v12643_v15 = vrot.slane %v1004_v19, 7  ;;  %v1007_v28 = vshll.u32 %v559_v61, 16  ;;  %v477_v2 = vld [vmem:[#allocation2 + $0xf8] sm:$0x1]  ;;  %v427_v56 = vsel %vm11963_vm2, 0, %v426_v47  ;;  %v1532_v13 = vpop.permute.xlu1 %1531 }
 0x116   : > { %1699 = vst.msk [vmem:[#allocation3 + $0xa8] sm:$0xf] %vm1677_vm9, %v1528_v0  ;;  %1698 = vst.msk [vmem:[#allocation3 + $0xa0] sm:$0xf] %vm1677_vm9, %v1526_v8  ;;  %v2204_v31 = vor.u32 %v2203_v46, %v12631_v38  ;;  %v1002_v12 = vrot.slane %v997_v3, 4  ;;  %v16721_v61 = vld [vmem:[#allocation7_spill] sm:$0xff]  ;;  %v2176_v10 = vsel %vm12019_vm6, %v12605_v42, %v12639_v43  ;;  %v1530_v46 = vpop.permute.xlu0 %1529 }
 0x117   : > { %v560_v60 = vld [vmem:[#allocation2 + $0x128] sm:$0xf]  ;;  %v561_v53 = vld [vmem:[#allocation2 + $0x12c] sm:$0xf]  ;;  %v16722_v37 = vsel %vm12019_vm6, %v12251_v11, %v16721_v61  ;;  %v16723_v51 = vld [vmem:[#allocation8_spill] sm:$0xff]  ;;  %v1009_v11 = vor.u32 %v1007_v28, %v12643_v15  ;;  %v998_v6 = vshll.u32 %v12603_v35, 16 }
 0x118   : > { %2557 = vrot.lane.b32.xlu0 %v16722_v37, %s11675_s7  ;;  %v16725_v27 = vsel %vm12019_vm6, %v16723_v51, %v16724_v33  ;;  %428 = vst [vmem:[#allocation2 + $0x11c] sm:$0x8] %v427_v56  ;;  %v12676_v14 = vrot.slane %v2204_v31, 4  ;;  %v2207_v30 = vshll.u32 %v1785_v25, 16  ;;  %v2211_v59 = vshrl.u32 %v1785_v25, 16  ;;  %v16729_v51 = vld [vmem:[#allocation13_spill] sm:$0xff] }
 0x119   : > { %2559 = vrot.lane.b32.xlu1 %v16725_v27, %s11675_s7  ;;  %v478_v19 = vsel %vm12054_vm8, 0, %v477_v2  ;;  %v1787_v47 = vld [vmem:[#allocation2 + $0x104] sm:$0xf]  ;;  %v1010_v0 = vsel %vm11969_vm3, %v1002_v12, %v1009_v11  ;;  %v12682_v8 = vor.u32 %v998_v6, %v997_v3  ;;  %v1013_v28 = vshrl.u32 %v560_v60, 16  ;;  %v1788_v61 = vld [vmem:[#allocation2 + $0x108] sm:$0xf] }
 0x11a   : > { %479 = vst [vmem:[#allocation2 + $0xf8] sm:$0x1] %v478_v19  ;;  %v1022_v56 = vshrl.u32 %v561_v53, 16  ;;  %1701 = vst.msk [vmem:[#allocation3 + $0xb8] sm:$0xf] %vm1677_vm9, %v1532_v13  ;;  %v12687_v35 = vrot.slane %v2207_v30, 5 }
 0x11b   : > { %1700 = vst.msk [vmem:[#allocation3 + $0xb0] sm:$0xf] %vm1677_vm9, %v1530_v46  ;;  %v2213_v25 = vrot.slane %v2211_v59, 4  ;;  %v1025_v2 = vshll.u32 %v561_v53, 16  ;;  %v1011_v31 = vrot.slane %v12643_v15, 4  ;;  %v16726_v3 = vld [vmem:[#allocation11_spill] sm:$0xff] }
 0x11c   : > { %1334 = vst.msk [vmem:[#allocation3 + $0x148] sm:$0xf] %vm254_vm0, %v1010_v0  ;;  %v16727_v12 = vld [vmem:[#allocation9_spill] sm:$0xff]  ;;  %v16730_v33 = vld [vmem:[#allocation10_spill] sm:$0xff]  ;;  %v1015_v11 = vrot.slane %v1013_v28, 7  ;;  %v1024_v6 = vrot.slane %v1022_v56, 7  ;;  %v1536_v0 = vpop.permute.xlu1 %1535 }
 0x11d   : > { %v16728_v37 = vsel %vm12019_vm6, %v16726_v3, %v16727_v12  ;;  %v16731_v27 = vsel %vm12019_vm6, %v16729_v51, %v16730_v33  ;;  %v1016_v30 = vshll.u32 %v560_v60, 16  ;;  %v2222_v53 = vshrl.u32 %v1787_v47, 16  ;;  %v1789_v46 = vld [vmem:[#allocation2 + $0x10c] sm:$0xf]  ;;  %v1534_v3 = vpop.permute.xlu0 %1533  ;;  %v563_v28 = vld [vmem:[#allocation2 + $0x13c] sm:$0xf] }
 0x11e   : > { %2561 = vrot.lane.b32.xlu0 %v16728_v37, %s11675_s7  ;;  %2563 = vrot.lane.b32.xlu1 %v16731_v27, %s11675_s7  ;;  %v2214_v59 = vor.u32 %v2213_v25, %v12687_v35  ;;  %v2225_v19 = vshll.u32 %v1787_v47, 16  ;;  %v2231_v13 = vshll.u32 %v1788_v61, 16  ;;  %v1020_v12 = vrot.slane %v1015_v11, 4  ;;  %v564_v56 = vld [vmem:[#allocation2 + $0x140] sm:$0xf] }
 0x11f   : > { %v1027_v37 = vor.u32 %v1025_v2, %v1024_v6  ;;  %v1018_v51 = vor.u32 %v1016_v30, %v1015_v11  ;;  %v2224_v33 = vrot.slane %v2222_v53, 4  ;;  %1703 = vst.msk [vmem:[#allocation3 + $0xc8] sm:$0xf] %vm1677_vm9, %v1536_v0  ;;  %1702 = vst.msk [vmem:[#allocation3 + $0xc0] sm:$0xf] %vm1677_vm9, %v1534_v3  ;;  %v2235_v47 = vshrl.u32 %v1788_v61, 16 }
 0x120   : > { %v557_v60 = vld [vmem:[#allocation2 + $0x11c] sm:$0x8]  ;;  %v12709_v27 = vrot.slane %v2214_v59, 4  ;;  %v2227_v15 = vrot.slane %v2225_v19, 5  ;;  %v12711_v25 = vrot.slane %v2231_v13, 5  ;;  %v16732_v2 = vld [vmem:[#allocation14_spill] sm:$0xff] }
 0x121   : > { %v16733_v11 = vsel %vm12019_vm6, %v12316_v16, %v16732_v2  ;;  %v16734_v6 = vld [vmem:[#allocation15_spill] sm:$0xff]  ;;  %v990_v59 = vshrl.u32 %v557_v60, 16  ;;  %v1028_v19 = vsel %vm11969_vm3, %v1020_v12, %v1027_v37  ;;  %v1019_v61 = vsel %vm11969_vm3, %v1011_v31, %v1018_v51 }
 0x122   : > { %2565 = vrot.lane.b32.xlu0 %v16733_v11, %s11675_s7  ;;  %v16735_v30 = vld [vmem:[#allocation19_spill] sm:$0xff]  ;;  %v2241_v13 = vshll.u32 %v1789_v46, 16  ;;  %1336 = vst.msk [vmem:[#allocation3 + $0x158] sm:$0xf] %vm254_vm0, %v1028_v19  ;;  %1335 = vst.msk [vmem:[#allocation3 + $0x150] sm:$0xf] %vm254_vm0, %v1019_v61  ;;  %v2228_v16 = vor.u32 %v2227_v15, %v2224_v33 }
 0x123   : > { %v16736_v53 = vsel %vm12019_vm6, %v16734_v6, %v16735_v30  ;;  %v429_v0 = vld [vmem:[#allocation2 + $0x138] sm:$0x8]  ;;  %v1786_v3 = vld [vmem:[#allocation2 + $0xf8] sm:$0x1]  ;;  %v2237_v2 = vrot.slane %v2235_v47, 4  ;;  %v2245_v11 = vshrl.u32 %v1789_v46, 16  ;;  %v1540_v6 = vpop.permute.xlu1 %1539  ;;  %v1538_v30 = vpop.permute.xlu0 %1537 }
 0x124   : > { %2567 = vrot.lane.b32.xlu1 %v16736_v53, %s11675_s7  ;;  %v1035_v36 = vshrl.u32 %v563_v28, 16  ;;  %v10984_v60 = vrot.slane %v990_v59, 11  ;;  %v2217_v53 = vshll.u32 %v1786_v3, 16  ;;  %v12731_v45 = vrot.slane %v2241_v13, 5  ;;  %1705 = vst.msk [vmem:[#allocation3 + $0xd8] sm:$0xf] %vm1677_vm9, %v1540_v6 }
 0x125   : > { %v1044_v12 = vshrl.u32 %v564_v56, 16  ;;  %1704 = vst.msk [vmem:[#allocation3 + $0xd0] sm:$0xf] %vm1677_vm9, %v1538_v30  ;;  %v12735_v31 = vrot.slane %v2228_v16, 4  ;;  %v2238_v37 = vor.u32 %v2237_v2, %v12711_v25  ;;  %v1047_v15 = vshll.u32 %v564_v56, 16  ;;  %v16737_v46 = vld [vmem:[#allocation18_spill] sm:$0xff] }
 0x126   : > { %v1037_v51 = vrot.slane %v1035_v36, 7  ;;  %v1790_v33 = vld [vmem:[#allocation2 + $0x110] sm:$0xf]  ;;  %v16738_v47 = vld [vmem:[#allocation16_spill] sm:$0xff]  ;;  %v16741_v61 = vld [vmem:[#allocation17_spill] sm:$0xff]  ;;  %v1001_v36 = vsel %vm11969_vm3, %v10984_v60, %v12682_v8  ;;  %v12753_v56 = vrot.slane %v2217_v53, 5 }
 0x127   : > { %v16739_v59 = vsel %vm12019_vm6, %v16737_v46, %v16738_v47  ;;  %v16740_v19 = vld [vmem:[#allocation20_spill] sm:$0xff]  ;;  %v12755_v3 = vrot.slane %v1044_v12, 7  ;;  %v430_v16 = vsel %vm11963_vm2, 0, %v429_v0  ;;  %v480_v2 = vld [vmem:[#allocation2 + $0x114] sm:$0x1]  ;;  %v12764_v30 = vrot.slane %v2238_v37, 4  ;;  %v1544_v53 = vpop.permute.xlu1 %1543  ;;  %v1542_v12 = vpop.permute.xlu0 %1541 }
 0x128   : > { %2569 = vrot.lane.b32.xlu0 %v16739_v59, %s11675_s7  ;;  %v16742_v13 = vsel %vm12019_vm6, %v16740_v19, %v16741_v61  ;;  %1333 = vst.msk [vmem:[#allocation3 + $0x140] sm:$0xf] %vm254_vm0, %v1001_v36  ;;  %v1042_v46 = vrot.slane %v1037_v51, 4  ;;  %431 = vst [vmem:[#allocation2 + $0x138] sm:$0x8] %v430_v16  ;;  %v1038_v8 = vshll.u32 %v563_v28, 16 }
 0x129   : > { %2571 = vrot.lane.b32.xlu1 %v16742_v13, %s11675_s7  ;;  %v565_v60 = vld [vmem:[#allocation2 + $0x144] sm:$0xf]  ;;  %v1049_v47 = vor.u32 %v1047_v15, %v12755_v3  ;;  %v2247_v59 = vrot.slane %v2245_v11, 4  ;;  %v2251_v19 = vshll.u32 %v1790_v33, 16  ;;  %v566_v61 = vld [vmem:[#allocation2 + $0x148] sm:$0xf] }
 0x12a   : > { %1707 = vst.msk [vmem:[#allocation3 + $0xe8] sm:$0xf] %vm1677_vm9, %v1544_v53  ;;  %1706 = vst.msk [vmem:[#allocation3 + $0xe0] sm:$0xf] %vm1677_vm9, %v1542_v12  ;;  %v12777_v37 = vor.u32 %v1038_v8, %v1037_v51  ;;  %v2255_v13 = vshrl.u32 %v1790_v33, 16  ;;  %v481_v36 = vsel %vm12054_vm8, 0, %v480_v2 }
 0x12b   : > { %v1792_v16 = vld [vmem:[#allocation2 + $0x120] sm:$0xf]  ;;  %v16743_v11 = vld [vmem:[#allocation22_spill] sm:$0xff]  ;;  %v16744_v15 = vld [vmem:[#allocation21_spill] sm:$0xff]  ;;  %v1050_v51 = vsel %vm11969_vm3, %v1042_v46, %v1049_v47  ;;  %v2248_v33 = vor.u32 %v2247_v59, %v12731_v45  ;;  %v12796_v2 = vrot.slane %v2251_v19, 5  ;;  %v1053_v8 = vshrl.u32 %v565_v60, 16  ;;  %v1548_v6 = vpop.permute.xlu1 %1547  ;;  %v1546_v9 = vpop.permute.xlu0 %1545 }
 0x12c   : > { %v16745_v53 = vsel %vm12019_vm6, %v16743_v11, %v16744_v15  ;;  %482 = vst [vmem:[#allocation2 + $0x114] sm:$0x1] %v481_v36  ;;  %v1793_v12 = vld [vmem:[#allocation2 + $0x124] sm:$0xf]  ;;  %1338 = vst.msk [vmem:[#allocation3 + $0x168] sm:$0xf] %vm254_vm0, %v1050_v51 }
 0x12d   : > { %2573 = vrot.lane.b32.xlu0 %v16745_v53, %s11675_s7  ;;  %2575 = vrot.lane.b32.xlu1 %v2088_v20, %s11675_s7  ;;  %v2257_v11 = vrot.slane %v2255_v13, 4  ;;  %v1062_v15 = vshrl.u32 %v566_v61, 16  ;;  %v1065_v53 = vshll.u32 %v566_v61, 16  ;;  %v1051_v28 = vrot.slane %v12755_v3, 4  ;;  %1709 = vst.msk [vmem:[#allocation3 + $0xf8] sm:$0xf] %vm1677_vm9, %v1548_v6 }
 0x12e   : > { %v12800_v22 = vrot.slane %v2248_v33, 4  ;;  %v1055_v20 = vrot.slane %v1053_v8, 7  ;;  %v1056_v46 = vshll.u32 %v565_v60, 16  ;;  %v2266_v47 = vshrl.u32 %v1792_v16, 16  ;;  %1708 = vst.msk [vmem:[#allocation3 + $0xf0] sm:$0xf] %vm1677_vm9, %v1546_v9 }
 0x12f   : > { %v2258_v59 = vor.u32 %v2257_v11, %v12796_v2  ;;  %v1064_v19 = vrot.slane %v1062_v15, 7  ;;  %v2269_v36 = vshll.u32 %v1792_v16, 16  ;;  %v2275_v13 = vshll.u32 %v1793_v12, 16  ;;  %v1794_v51 = vld [vmem:[#allocation2 + $0x128] sm:$0xf]  ;;  %v1552_v11 = vpop.permute.xlu1 %1551  ;;  %v1550_v15 = vpop.permute.xlu0 %1549 }
 0x130   : > { %v562_v3 = vld [vmem:[#allocation2 + $0x138] sm:$0x8]  ;;  %v2254_v6 = vsel %vm12019_vm6, %v12800_v22, %v12796_v2  ;;  %v1060_v60 = vrot.slane %v1055_v20, 4  ;;  %v1058_v61 = vor.u32 %v1056_v46, %v1055_v20  ;;  %v2268_v16 = vrot.slane %v2266_v47, 4  ;;  %v569_v0 = vld [vmem:[#allocation2 + $0x15c] sm:$0xf] }
 0x131   : > { %2577 = vrot.lane.b32.xlu0 %v2102_v57, %s11675_s7  ;;  %2579 = vrot.lane.b32.xlu1 %v2112_v55, %s11675_s7  ;;  %v1030_v33 = vshrl.u32 %v562_v3, 16  ;;  %v12821_v8 = vrot.slane %v2258_v59, 4  ;;  %v1067_v5 = vor.u32 %v1065_v53, %v1064_v19  ;;  %v2271_v32 = vrot.slane %v2269_v36, 5  ;;  %v568_v57 = vld [vmem:[#allocation2 + $0x158] sm:$0xf] }
 0x132   : > { %v1059_v23 = vsel %vm11969_vm3, %v1051_v28, %v1058_v61  ;;  %v12825_v49 = vrot.slane %v2275_v13, 5  ;;  %v2279_v55 = vshrl.u32 %v1793_v12, 16  ;;  %v2285_v9 = vshll.u32 %v1794_v51, 16  ;;  %1711 = vst.msk [vmem:[#allocation3 + $0x108] sm:$0xf] %vm1677_vm9, %v1552_v11 }
 0x133   : > { %1710 = vst.msk [vmem:[#allocation3 + $0x100] sm:$0xf] %vm1677_vm9, %v1550_v15  ;;  %v10985_v20 = vrot.slane %v1030_v33, 11  ;;  %v1791_v46 = vld [vmem:[#allocation2 + $0x114] sm:$0x1]  ;;  %v1068_v53 = vsel %vm11969_vm3, %v1060_v60, %v1067_v5  ;;  %v2272_v47 = vor.u32 %v2271_v32, %v2268_v16  ;;  %v2289_v59 = vshrl.u32 %v1794_v51, 16  ;;  %v1556_v16 = vpop.permute.xlu1 %1555  ;;  %v1554_v33 = vpop.permute.xlu0 %1553 }
 0x134   : > { %1339 = vst.msk [vmem:[#allocation3 + $0x170] sm:$0xf] %vm254_vm0, %v1059_v23  ;;  %v432_v19 = vld [vmem:[#allocation2 + $0x154] sm:$0x8]  ;;  %v16746_v28 = vsel %vm12019_vm6, %v12462_v18, %v12456_v7  ;;  %v2261_v12 = vshll.u32 %v1791_v46, 16  ;;  %v2281_v36 = vrot.slane %v2279_v55, 4 }
 0x135   : > { %2581 = vrot.lane.b32.xlu0 %v16746_v28, %s11675_s7  ;;  %2583 = vrot.lane.b32.xlu1 %v2132_v40, %s11675_s7  ;;  %1340 = vst.msk [vmem:[#allocation3 + $0x178] sm:$0xf] %vm254_vm0, %v1068_v53  ;;  %v12845_v13 = vrot.slane %v2285_v9, 5  ;;  %v1075_v51 = vshrl.u32 %v568_v57, 16  ;;  %v1041_v3 = vsel %vm11969_vm3, %v10985_v20, %v12777_v37  ;;  %v12850_v7 = vrot.slane %v2272_v47, 4 }
 0x136   : > { %v1084_v18 = vshrl.u32 %v569_v0, 16  ;;  %v1087_v60 = vshll.u32 %v569_v0, 16  ;;  %v1795_v61 = vld [vmem:[#allocation2 + $0x12c] sm:$0xf]  ;;  %1337 = vst.msk [vmem:[#allocation3 + $0x160] sm:$0xf] %vm254_vm0, %v1041_v3  ;;  %v2282_v58 = vor.u32 %v2281_v36, %v12825_v49 }
 0x137   : > { %v12853_v26 = vrot.slane %v2261_v12, 5  ;;  %v1077_v40 = vrot.slane %v1075_v51, 7  ;;  %v433_v5 = vsel %vm11963_vm2, 0, %v432_v19  ;;  %v483_v32 = vld [vmem:[#allocation2 + $0x130] sm:$0x1]  ;;  %v2278_v0 = vsel %vm12019_vm6, %v12850_v7, %v12825_v49  ;;  %v1560_v47 = vpop.permute.xlu1 %1559 }
 0x138   : > { %1713 = vst.msk [vmem:[#allocation3 + $0x118] sm:$0xf] %vm1677_vm9, %v1556_v16  ;;  %1712 = vst.msk [vmem:[#allocation3 + $0x110] sm:$0xf] %vm1677_vm9, %v1554_v33  ;;  %v1086_v37 = vrot.slane %v1084_v18, 7  ;;  %v1078_v11 = vshll.u32 %v568_v57, 16 }
 0x139   : > { %434 = vst [vmem:[#allocation2 + $0x154] sm:$0x8] %v433_v5  ;;  %v2291_v15 = vrot.slane %v2289_v59, 4  ;;  %v570_v23 = vld [vmem:[#allocation2 + $0x160] sm:$0xf]  ;;  %2585 = vrot.lane.b32.xlu0 %v2146_v52, %s11675_s7  ;;  %2587 = vrot.lane.b32.xlu1 %v2156_v21, %s11675_s7  ;;  %v2264_v57 = vsel %vm12019_vm6, %v12821_v8, %v12853_v26  ;;  %v12880_v55 = vrot.slane %v2282_v58, 4  ;;  %v1558_v59 = vpop.permute.xlu0 %1557 }
 0x13a   : > { %v1082_v9 = vrot.slane %v1077_v40, 4  ;;  %v2295_v20 = vshll.u32 %v1795_v61, 16  ;;  %v571_v46 = vld [vmem:[#allocation2 + $0x164] sm:$0xf]  ;;  %v1089_v53 = vor.u32 %v1087_v60, %v1086_v37  ;;  %v12882_v17 = vor.u32 %v1078_v11, %v1077_v40  ;;  %v1797_v28 = vld [vmem:[#allocation2 + $0x13c] sm:$0xf] }
 0x13b   : > { %v2292_v4 = vor.u32 %v2291_v15, %v12845_v13  ;;  %v2299_v52 = vshrl.u32 %v1795_v61, 16  ;;  %v2288_v34 = vsel %vm12019_vm6, %v12880_v55, %v12845_v13  ;;  %v484_v21 = vsel %vm12054_vm8, 0, %v483_v32  ;;  %1715 = vst.msk [vmem:[#allocation3 + $0x128] sm:$0xf] %vm1677_vm9, %v1560_v47  ;;  %1714 = vst.msk [vmem:[#allocation3 + $0x120] sm:$0xf] %vm1677_vm9, %v1558_v59  ;;  %v1564_v42 = vpop.permute.xlu1 %1563 }
 0x13c   : > { %v12889_v63 = vrot.slane %v2295_v20, 5  ;;  %v1093_v19 = vshrl.u32 %v570_v23, 16  ;;  %v1090_v12 = vsel %vm11969_vm3, %v1082_v9, %v1089_v53  ;;  %485 = vst [vmem:[#allocation2 + $0x130] sm:$0x1] %v484_v21  ;;  %v1102_v3 = vshrl.u32 %v571_v46, 16 }
 0x13d   : > { %v12897_v36 = vrot.slane %v2292_v4, 4  ;;  %v2301_v51 = vrot.slane %v2299_v52, 4  ;;  %v1798_v18 = vld [vmem:[#allocation2 + $0x140] sm:$0xf]  ;;  %2589 = vrot.lane.b32.xlu0 %v2166_v62, %s11675_s7  ;;  %2591 = vrot.lane.b32.xlu1 %v2176_v10, %s11675_s7  ;;  %1342 = vst.msk [vmem:[#allocation3 + $0x188] sm:$0xf] %vm254_vm0, %v1090_v12  ;;  %v1562_v43 = vpop.permute.xlu0 %1561  ;;  %v16747_v4 = vsel %vm12019_vm6, %v12636_v48, %v12607_v50  ;;  %v16748_v52 = vsel %vm12019_vm6, %v12641_v39, %v12631_v38 }
 0x13e   : > { %v1095_v60 = vrot.slane %v1093_v19, 7  ;;  %v1105_v61 = vshll.u32 %v571_v46, 16  ;;  %v1091_v16 = vrot.slane %v1086_v37, 4  ;;  %v1096_v33 = vshll.u32 %v570_v23, 16  ;;  %v1799_v40 = vld [vmem:[#allocation2 + $0x144] sm:$0xf] }
 0x13f   : > { %v2298_v58 = vsel %vm12019_vm6, %v12897_v36, %v12889_v63  ;;  %v2302_v24 = vor.u32 %v2301_v51, %v12889_v63  ;;  %v1104_v54 = vrot.slane %v1102_v3, 7  ;;  %v2310_v62 = vshrl.u32 %v1797_v28, 16  ;;  %v12917_v5 = vld [vmem:[#allocation2 + $0x174] sm:$0xf]  ;;  %1717 = vst.msk [vmem:[#allocation3 + $0x138] sm:$0xf] %vm1677_vm9, %v1564_v42  ;;  %v1568_v3 = vpop.permute.xlu1 %1567 }
 0x140   : > { %v567_v10 = vld [vmem:[#allocation2 + $0x154] sm:$0x8]  ;;  %v1100_v32 = vrot.slane %v1095_v60, 4  ;;  %v1098_v11 = vor.u32 %v1096_v33, %v1095_v60  ;;  %v2313_v15 = vshll.u32 %v1797_v28, 16  ;;  %v2319_v37 = vshll.u32 %v1798_v18, 16 }
 0x141   : > { %1716 = vst.msk [vmem:[#allocation3 + $0x130] sm:$0xf] %vm1677_vm9, %v1562_v43  ;;  %v1070_v23 = vshrl.u32 %v567_v10, 16  ;;  %v12921_v9 = vrot.slane %v2302_v24, 4  ;;  %v1107_v20 = vor.u32 %v1105_v61, %v1104_v54  ;;  %v2312_v46 = vrot.slane %v2310_v62, 4  ;;  %2593 = vrot.lane.b32.xlu0 %v16747_v4, %s11675_s7  ;;  %2595 = vrot.lane.b32.xlu1 %v16748_v52, %s11675_s7  ;;  %v1566_v60 = vpop.permute.xlu0 %1565 }
 0x142   : > { %v574_v53 = vld [vmem:[#allocation2 + $0x178] sm:$0xf]  ;;  %v1099_v47 = vsel %vm11969_vm3, %v1091_v16, %v1098_v11  ;;  %v2315_v59 = vrot.slane %v2313_v15, 5  ;;  %v12937_v21 = vrot.slane %v2319_v37, 5  ;;  %v2323_v19 = vshrl.u32 %v1798_v18, 16 }
 0x143   : > { %v10986_v28 = vrot.slane %v1070_v23, 11  ;;  %v1108_v12 = vsel %vm11969_vm3, %v1100_v32, %v1107_v20  ;;  %1343 = vst.msk [vmem:[#allocation3 + $0x190] sm:$0xf] %vm254_vm0, %v1099_v47  ;;  %v2329_v50 = vshll.u32 %v1799_v40, 16  ;;  %v2333_v48 = vshrl.u32 %v1799_v40, 16 }
 0x144   : > { %v435_v51 = vld [vmem:[#allocation2 + $0x170] sm:$0x8]  ;;  %v1796_v38 = vld [vmem:[#allocation2 + $0x130] sm:$0x1]  ;;  %1344 = vst.msk [vmem:[#allocation3 + $0x198] sm:$0xf] %vm254_vm0, %v1108_v12  ;;  %v2316_v39 = vor.u32 %v2315_v59, %v2312_v46  ;;  %v16749_v42 = vsel %vm12019_vm6, %v12676_v14, %v12687_v35  ;;  %v16750_v43 = vsel %vm12019_vm6, %v12709_v27, %v12753_v56  ;;  %v1572_v56 = vpop.permute.xlu1 %1571 }
 0x145   : > { %v2325_v61 = vrot.slane %v2323_v19, 4  ;;  %v1115_v16 = vshrl.u32 %v12917_v5, 16  ;;  %v1124_v33 = vshrl.u32 %v574_v53, 16  ;;  %1719 = vst.msk [vmem:[#allocation3 + $0x148] sm:$0xf] %vm1677_vm9, %v1568_v3  ;;  %v1081_v18 = vsel %vm11969_vm3, %v10986_v28, %v12882_v17  ;;  %2597 = vrot.lane.b32.xlu0 %v16749_v42, %s11675_s7  ;;  %2599 = vrot.lane.b32.xlu1 %v16750_v43, %s11675_s7  ;;  %v1570_v20 = vpop.permute.xlu0 %1569 }
 0x146   : > { %1718 = vst.msk [vmem:[#allocation3 + $0x140] sm:$0xf] %vm1677_vm9, %v1566_v60  ;;  %v2305_v24 = vshll.u32 %v1796_v38, 16  ;;  %v12949_v54 = vrot.slane %v2329_v50, 5  ;;  %v1127_v62 = vshll.u32 %v574_v53, 16  ;;  %v12964_v17 = vrot.slane %v2316_v39, 4 }
 0x147   : > { %v1800_v40 = vld [vmem:[#allocation2 + $0x148] sm:$0xf]  ;;  %1341 = vst.msk [vmem:[#allocation3 + $0x180] sm:$0xf] %vm254_vm0, %v1081_v18  ;;  %v2326_v10 = vor.u32 %v2325_v61, %v12937_v21  ;;  %v1117_v32 = vrot.slane %v1115_v16, 7  ;;  %v12967_v11 = vrot.slane %v1124_v33, 7  ;;  %v16751_v50 = vsel %vm12019_vm6, %v12735_v31, %v12711_v25 }
 0x148   : > { %v486_v15 = vld [vmem:[#allocation2 + $0x14c] sm:$0x1]  ;;  %v12969_v37 = vrot.slane %v2305_v24, 5  ;;  %v436_v14 = vsel %vm11963_vm2, 0, %v435_v51  ;;  %v1118_v35 = vshll.u32 %v12917_v5, 16  ;;  %v2335_v23 = vrot.slane %v2333_v48, 4  ;;  %v1576_v61 = vpop.permute.xlu1 %1575 }
 0x149   : > { %v575_v27 = vld [vmem:[#allocation2 + $0x17c] sm:$0xf]  ;;  %v2322_v46 = vsel %vm12019_vm6, %v12964_v17, %v12937_v21  ;;  %v12978_v53 = vrot.slane %v2326_v10, 4  ;;  %v1122_v4 = vrot.slane %v1117_v32, 4  ;;  %v1129_v52 = vor.u32 %v1127_v62, %v12967_v11  ;;  %437 = vst [vmem:[#allocation2 + $0x170] sm:$0x8] %v436_v14  ;;  %2601 = vrot.lane.b32.xlu0 %v16751_v50, %s11675_s7  ;;  %v1574_v16 = vpop.permute.xlu0 %1573 }
 0x14a   : > { %v576_v47 = vld [vmem:[#allocation2 + $0x180] sm:$0xf]  ;;  %v1802_v59 = vld [vmem:[#allocation2 + $0x158] sm:$0xf]  ;;  %1721 = vst.msk [vmem:[#allocation3 + $0x158] sm:$0xf] %vm1677_vm9, %v1572_v56  ;;  %v2308_v5 = vsel %vm12019_vm6, %v12921_v9, %v12969_v37  ;;  %v12987_v19 = vor.u32 %v1118_v35, %v1117_v32  ;;  %v2336_v28 = vor.u32 %v2335_v23, %v12949_v54  ;;  %v16752_v48 = vsel %vm12019_vm6, %v12764_v30, %v12731_v45 }
 0x14b   : > { %1720 = vst.msk [vmem:[#allocation3 + $0x150] sm:$0xf] %vm1677_vm9, %v1570_v20  ;;  %v2339_v12 = vshll.u32 %v1800_v40, 16  ;;  %2603 = vrot.lane.b32.xlu1 %v16752_v48, %s11675_s7  ;;  %v2332_v51 = vsel %vm12019_vm6, %v12978_v53, %v12949_v54  ;;  %v1130_v3 = vsel %vm11969_vm3, %v1122_v4, %v1129_v52  ;;  %v2343_v60 = vshrl.u32 %v1800_v40, 16  ;;  %v1803_v39 = vld [vmem:[#allocation2 + $0x15c] sm:$0xf] }
 0x14c   : > { %v487_v25 = vsel %vm12054_vm8, 0, %v486_v15  ;;  %1346 = vst.msk [vmem:[#allocation3 + $0x1a8] sm:$0xf] %vm254_vm0, %v1130_v3  ;;  %v13011_v31 = vrot.slane %v2336_v28, 4  ;;  %v1133_v45 = vshrl.u32 %v575_v27, 16  ;;  %v1142_v30 = vshrl.u32 %v576_v47, 16  ;;  %v1580_v2 = vpop.permute.xlu1 %1579 }
 0x14d   : > { %v13013_v38 = vrot.slane %v2339_v12, 5  ;;  %488 = vst [vmem:[#allocation2 + $0x14c] sm:$0x1] %v487_v25  ;;  %v2345_v33 = vrot.slane %v2343_v60, 4  ;;  %v1145_v18 = vshll.u32 %v576_v47, 16  ;;  %v1131_v24 = vrot.slane %v12967_v11, 4  ;;  %2605 = vrot.lane.b32.xlu0 %v2254_v6, %s11675_s7  ;;  %v1578_v22 = vpop.permute.xlu0 %1577 }
 0x14e   : > { %v1136_v62 = vshll.u32 %v575_v27, 16  ;;  %v13016_v40 = vld [vmem:[#allocation2 + $0x160] sm:$0xf]  ;;  %1723 = vst.msk [vmem:[#allocation3 + $0x168] sm:$0xf] %vm1677_vm9, %v1576_v61  ;;  %v1135_v43 = vrot.slane %v1133_v45, 7 }
 0x14f   : > { %1722 = vst.msk [vmem:[#allocation3 + $0x160] sm:$0xf] %vm1677_vm9, %v1574_v16  ;;  %v2342_v42 = vsel %vm12019_vm6, %v13011_v31, %v13013_v38  ;;  %v1144_v10 = vrot.slane %v1142_v30, 7  ;;  %v2354_v32 = vshrl.u32 %v1802_v59, 16  ;;  %v13024_v15 = vld [vmem:[#allocation2 + $0x190] sm:$0xf]  ;;  %2607 = vrot.lane.b32.xlu1 %v2264_v57, %s11675_s7  ;;  %v2346_v11 = vor.u32 %v2345_v33, %v13013_v38 }
 0x150   : > { %v2357_v14 = vshll.u32 %v1802_v59, 16  ;;  %v2363_v35 = vshll.u32 %v1803_v39, 16  ;;  %v2367_v23 = vshrl.u32 %v1803_v39, 16  ;;  %v572_v27 = vld [vmem:[#allocation2 + $0x170] sm:$0x8]  ;;  %v1140_v56 = vrot.slane %v1135_v43, 4  ;;  %v1584_v55 = vpop.permute.xlu1 %1583 }
 0x151   : > { %v1147_v20 = vor.u32 %v1145_v18, %v1144_v10  ;;  %v1138_v4 = vor.u32 %v1136_v62, %v1135_v43  ;;  %v2356_v52 = vrot.slane %v2354_v32, 4  ;;  %v579_v47 = vld [vmem:[#allocation2 + $0x194] sm:$0xf]  ;;  %v1110_v6 = vshrl.u32 %v572_v27, 16  ;;  %v438_v8 = vld [vmem:[#allocation2 + $0x18c] sm:$0x8]  ;;  %2609 = vrot.lane.b32.xlu0 %v2278_v0, %s11675_s7 }
 0x152   : > { %v13039_v28 = vrot.slane %v2346_v11, 4  ;;  %v2359_v12 = vrot.slane %v2357_v14, 5  ;;  %v13041_v50 = vrot.slane %v2363_v35, 5  ;;  %1725 = vst.msk [vmem:[#allocation3 + $0x178] sm:$0xf] %vm1677_vm9, %v1580_v2  ;;  %v2369_v59 = vrot.slane %v2367_v23, 4 }
 0x153   : > { %1724 = vst.msk [vmem:[#allocation3 + $0x170] sm:$0xf] %vm1677_vm9, %v1578_v22  ;;  %v1148_v26 = vsel %vm11969_vm3, %v1140_v56, %v1147_v20  ;;  %v1139_v57 = vsel %vm11969_vm3, %v1131_v24, %v1138_v4  ;;  %v2373_v48 = vshll.u32 %v13016_v40, 16  ;;  %2611 = vrot.lane.b32.xlu1 %v2288_v34, %s11675_s7  ;;  %v10987_v3 = vrot.slane %v1110_v6, 11  ;;  %v1805_v49 = vld [vmem:[#allocation2 + $0x164] sm:$0xf]  ;;  %v1582_v34 = vpop.permute.xlu0 %1581 }
 0x154   : > { %v1801_v60 = vld [vmem:[#allocation2 + $0x14c] sm:$0x1]  ;;  %1348 = vst.msk [vmem:[#allocation3 + $0x1b8] sm:$0xf] %vm254_vm0, %v1148_v26  ;;  %1347 = vst.msk [vmem:[#allocation3 + $0x1b0] sm:$0xf] %vm254_vm0, %v1139_v57  ;;  %v2360_v25 = vor.u32 %v2359_v12, %v2356_v52  ;;  %v2370_v0 = vor.u32 %v2369_v59, %v13041_v50  ;;  %v1588_v27 = vpop.permute.xlu1 %1587 }
 0x155   : > { %v2377_v45 = vshrl.u32 %v13016_v40, 16  ;;  %v1155_v30 = vshrl.u32 %v13024_v15, 16  ;;  %v2349_v7 = vshll.u32 %v1801_v60, 16  ;;  %v13067_v39 = vrot.slane %v2373_v48, 5  ;;  %v489_v13 = vld [vmem:[#allocation2 + $0x168] sm:$0x1]  ;;  %2613 = vrot.lane.b32.xlu0 %v2298_v58, %s11675_s7 }
 0x156   : > { %v1164_v61 = vshrl.u32 %v579_v47, 16  ;;  %v1121_v16 = vsel %vm11969_vm3, %v10987_v3, %v12987_v19  ;;  %v13072_v33 = vrot.slane %v2360_v25, 4  ;;  %v1167_v24 = vshll.u32 %v579_v47, 16  ;;  %v580_v62 = vld [vmem:[#allocation2 + $0x198] sm:$0xf] }
 0x157   : > { %v1157_v18 = vrot.slane %v1155_v30, 7  ;;  %1727 = vst.msk [vmem:[#allocation3 + $0x188] sm:$0xf] %vm1677_vm9, %v1584_v55  ;;  %1726 = vst.msk [vmem:[#allocation3 + $0x180] sm:$0xf] %vm1677_vm9, %v1582_v34  ;;  %v2351_v40 = vrot.slane %v2349_v7, 5  ;;  %2615 = vrot.lane.b32.xlu1 %v2308_v5, %s11675_s7  ;;  %v1586_v56 = vpop.permute.xlu0 %1585 }
 0x158   : > { %1345 = vst.msk [vmem:[#allocation3 + $0x1a0] sm:$0xf] %vm254_vm0, %v1121_v16  ;;  %v13077_v43 = vrot.slane %v2370_v0, 4  ;;  %v13079_v10 = vrot.slane %v1164_v61, 7  ;;  %v439_v32 = vsel %vm11963_vm2, 0, %v438_v8  ;;  %v2366_v11 = vsel %vm12019_vm6, %v13072_v33, %v13041_v50 }
 0x159   : > { %v581_v19 = vld [vmem:[#allocation2 + $0x19c] sm:$0xf]  ;;  %v1162_v14 = vrot.slane %v1157_v18, 4  ;;  %440 = vst [vmem:[#allocation2 + $0x18c] sm:$0x8] %v439_v32  ;;  %v1158_v35 = vshll.u32 %v13024_v15, 16  ;;  %v2352_v63 = vsel %vm12019_vm6, %v13039_v28, %v2351_v40  ;;  %2617 = vrot.lane.b32.xlu0 %v2322_v46, %s11675_s7  ;;  %v1592_v46 = vpop.permute.xlu1 %1591 }
 0x15a   : > { %v2379_v23 = vrot.slane %v2377_v45, 4  ;;  %v2376_v36 = vsel %vm12019_vm6, %v13077_v43, %v13067_v39  ;;  %v1169_v58 = vor.u32 %v1167_v24, %v13079_v10  ;;  %v2383_v9 = vshll.u32 %v1805_v49, 16  ;;  %v1807_v37 = vld [vmem:[#allocation2 + $0x174] sm:$0xf]  ;;  %v13108_v5 = vld [vmem:[#allocation2 + $0x178] sm:$0xf] }
 0x15b   : > { %v13110_v20 = vor.u32 %v1158_v35, %v1157_v18  ;;  %v2387_v4 = vshrl.u32 %v1805_v49, 16  ;;  %v490_v52 = vsel %vm12054_vm8, 0, %v489_v13  ;;  %1729 = vst.msk [vmem:[#allocation3 + $0x198] sm:$0xf] %vm1677_vm9, %v1588_v27  ;;  %1728 = vst.msk [vmem:[#allocation3 + $0x190] sm:$0xf] %vm1677_vm9, %v1586_v56  ;;  %2619 = vrot.lane.b32.xlu1 %v2332_v51, %s11675_s7  ;;  %v1590_v3 = vpop.permute.xlu0 %1589 }
 0x15c   : > { %v2380_v15 = vor.u32 %v2379_v23, %v13067_v39  ;;  %v1170_v47 = vsel %vm11969_vm3, %v1162_v14, %v1169_v58  ;;  %v13119_v2 = vrot.slane %v2383_v9, 5  ;;  %491 = vst [vmem:[#allocation2 + $0x168] sm:$0x1] %v490_v52  ;;  %v1173_v22 = vshrl.u32 %v580_v62, 16  ;;  %v1809_v17 = vld [vmem:[#allocation2 + $0x17c] sm:$0xf] }
 0x15d   : > { %v1182_v6 = vshrl.u32 %v581_v19, 16  ;;  %1350 = vst.msk [vmem:[#allocation3 + $0x1c8] sm:$0xf] %vm254_vm0, %v1170_v47  ;;  %v2389_v12 = vrot.slane %v2387_v4, 4  ;;  %v1185_v8 = vshll.u32 %v581_v19, 16  ;;  %v1171_v26 = vrot.slane %v13079_v10, 4  ;;  %2621 = vrot.lane.b32.xlu0 %v2342_v42, %s11675_s7  ;;  %v1596_v32 = vpop.permute.xlu1 %1595 }
 0x15e   : > { %v13134_v28 = vrot.slane %v2380_v15, 4  ;;  %v1175_v57 = vrot.slane %v1173_v22, 7  ;;  %v1176_v48 = vshll.u32 %v580_v62, 16  ;;  %v2398_v21 = vshrl.u32 %v1807_v37, 16  ;;  %v13143_v25 = vld [vmem:[#allocation2 + $0x1ac] sm:$0xf] }
 0x15f   : > { %v1184_v59 = vrot.slane %v1182_v6, 7  ;;  %v2390_v53 = vor.u32 %v2389_v12, %v13119_v2  ;;  %v2401_v51 = vshll.u32 %v1807_v37, 16  ;;  %v2407_v60 = vshll.u32 %v13108_v5, 16  ;;  %1731 = vst.msk [vmem:[#allocation3 + $0x1a8] sm:$0xf] %vm1677_vm9, %v1592_v46  ;;  %2623 = vrot.lane.b32.xlu1 %v2352_v63, %s11675_s7  ;;  %v1594_v31 = vpop.permute.xlu0 %1593 }
 0x160   : > { %v2386_v54 = vsel %vm12019_vm6, %v13134_v28, %v13119_v2  ;;  %1730 = vst.msk [vmem:[#allocation3 + $0x1a0] sm:$0xf] %vm1677_vm9, %v1590_v3  ;;  %v577_v45 = vld [vmem:[#allocation2 + $0x18c] sm:$0x8]  ;;  %v1180_v30 = vrot.slane %v1175_v57, 4  ;;  %v1178_v7 = vor.u32 %v1176_v48, %v1175_v57  ;;  %v2400_v0 = vrot.slane %v2398_v21, 4 }
 0x161   : > { %v1187_v49 = vor.u32 %v1185_v8, %v1184_v59  ;;  %v584_v61 = vld [vmem:[#allocation2 + $0x1b0] sm:$0xf]  ;;  %v1150_v13 = vshrl.u32 %v577_v45, 16  ;;  %v2391_v55 = vrot.slane %v2390_v53, 4  ;;  %v2403_v34 = vrot.slane %v2401_v51, 5  ;;  %2625 = vrot.lane.b32.xlu0 %v2366_v11, %s11675_s7  ;;  %v1600_v39 = vpop.permute.xlu1 %1599 }
 0x162   : > { %v13154_v16 = vrot.slane %v2407_v60, 5  ;;  %v1179_v24 = vsel %vm11969_vm3, %v1171_v26, %v1178_v7  ;;  %v2411_v62 = vshrl.u32 %v13108_v5, 16  ;;  %v2417_v40 = vshll.u32 %v1809_v17, 16  ;;  %v441_v10 = vld [vmem:[#allocation2 + $0x1a8] sm:$0x8] }
 0x163   : > { %v1188_v18 = vsel %vm11969_vm3, %v1180_v30, %v1187_v49  ;;  %v10988_v38 = vrot.slane %v1150_v13, 11  ;;  %v1806_v42 = vld [vmem:[#allocation2 + $0x168] sm:$0x1]  ;;  %1351 = vst.msk [vmem:[#allocation3 + $0x1d0] sm:$0xf] %vm254_vm0, %v1179_v24  ;;  %v2404_v19 = vor.u32 %v2403_v34, %v2400_v0  ;;  %v2421_v14 = vshrl.u32 %v1809_v17, 16  ;;  %2627 = vrot.lane.b32.xlu1 %v2376_v36, %s11675_s7  ;;  %v1598_v43 = vpop.permute.xlu0 %1597 }
 0x164   : > { %1352 = vst.msk [vmem:[#allocation3 + $0x1d8] sm:$0xf] %vm254_vm0, %v1188_v18  ;;  %v1195_v35 = vshrl.u32 %v13143_v25, 16  ;;  %v1810_v23 = vld [vmem:[#allocation2 + $0x180] sm:$0xf]  ;;  %v2393_v63 = vshll.u32 %v1806_v42, 16 }
 0x165   : > { %1733 = vst.msk [vmem:[#allocation3 + $0x1b8] sm:$0xf] %vm1677_vm9, %v1596_v32  ;;  %1732 = vst.msk [vmem:[#allocation3 + $0x1b0] sm:$0xf] %vm1677_vm9, %v1594_v31  ;;  %v2413_v58 = vrot.slane %v2411_v62, 4  ;;  %v2419_v9 = vrot.slane %v2417_v40, 5  ;;  %v1161_v5 = vsel %vm11969_vm3, %v10988_v38, %v13110_v20  ;;  %2629 = vrot.lane.b32.xlu0 %v2386_v54, %s11675_s7  ;;  %v1604_v28 = vpop.permute.xlu1 %1603 }
 0x166   : > { %v1204_v37 = vshrl.u32 %v584_v61, 16  ;;  %v2405_v27 = vrot.slane %v2404_v19, 4  ;;  %v1197_v56 = vrot.slane %v1195_v35, 7  ;;  %v1207_v15 = vshll.u32 %v584_v61, 16  ;;  %1349 = vst.msk [vmem:[#allocation3 + $0x1c0] sm:$0xf] %vm254_vm0, %v1161_v5 }
 0x167   : > { %v2395_v4 = vrot.slane %v2393_v63, 5  ;;  %v2414_v50 = vor.u32 %v2413_v58, %v13154_v16  ;;  %v442_v11 = vsel %vm11963_vm2, 0, %v441_v10  ;;  %v492_v52 = vld [vmem:[#allocation2 + $0x184] sm:$0x1]  ;;  %v1198_v47 = vshll.u32 %v13143_v25, 16  ;;  %v1602_v54 = vpop.permute.xlu0 %1601 }
 0x168   : > { %v13183_v33 = vrot.slane %v1204_v37, 7  ;;  %v2410_v36 = vsel %vm12019_vm6, %v2405_v27, %v13154_v16  ;;  %v1202_v20 = vrot.slane %v1197_v56, 4  ;;  %443 = vst [vmem:[#allocation2 + $0x1a8] sm:$0x8] %v442_v11  ;;  %v2423_v22 = vrot.slane %v2421_v14, 4 }
 0x169   : > { %v585_v6 = vld [vmem:[#allocation2 + $0x1b4] sm:$0xf]  ;;  %1735 = vst.msk [vmem:[#allocation3 + $0x1c8] sm:$0xf] %vm1677_vm9, %v1600_v39  ;;  %1734 = vst.msk [vmem:[#allocation3 + $0x1c0] sm:$0xf] %vm1677_vm9, %v1598_v43  ;;  %v2396_v12 = vsel %vm12019_vm6, %v2391_v55, %v2395_v4  ;;  %v13203_v48 = vor.u32 %v1198_v47, %v1197_v56  ;;  %2633 = vrot.lane.b32.xlu0 %v2410_v36, %s11675_s7  ;;  %v1608_v42 = vpop.permute.xlu1 %1607 }
 0x16a   : > { %v2415_v8 = vrot.slane %v2414_v50, 4  ;;  %v1209_v26 = vor.u32 %v1207_v15, %v13183_v33  ;;  %v2427_v57 = vshll.u32 %v1810_v23, 16  ;;  %v586_v59 = vld [vmem:[#allocation2 + $0x1b8] sm:$0xf]  ;;  %2631 = vrot.lane.b32.xlu1 %v2396_v12, %s11675_s7  ;;  %v2424_v21 = vor.u32 %v2423_v22, %v2419_v9  ;;  %v1812_v3 = vld [vmem:[#allocation2 + $0x190] sm:$0xf] }
 0x16b   : > { %v2431_v17 = vshrl.u32 %v1810_v23, 16  ;;  %v493_v46 = vsel %vm12054_vm8, 0, %v492_v52  ;;  %v1213_v2 = vshrl.u32 %v585_v6, 16  ;;  %v1222_v30 = vshrl.u32 %v586_v59, 16  ;;  %v1813_v7 = vld [vmem:[#allocation2 + $0x194] sm:$0xf]  ;;  %v1606_v19 = vpop.permute.xlu0 %1605 }
 0x16c   : > { %v2420_v53 = vsel %vm12019_vm6, %v2415_v8, %v2419_v9  ;;  %v1210_v51 = vsel %vm11969_vm3, %v1202_v20, %v1209_v26  ;;  %v2429_v60 = vrot.slane %v2427_v57, 5  ;;  %494 = vst [vmem:[#allocation2 + $0x184] sm:$0x1] %v493_v46  ;;  %v2425_v25 = vrot.slane %v2424_v21, 4  ;;  %1737 = vst.msk [vmem:[#allocation3 + $0x1d8] sm:$0xf] %vm1677_vm9, %v1604_v28 }
 0x16d   : > { %1354 = vst.msk [vmem:[#allocation3 + $0x1e8] sm:$0xf] %vm254_vm0, %v1210_v51  ;;  %v2433_v45 = vrot.slane %v2431_v17, 4  ;;  %v1225_v49 = vshll.u32 %v586_v59, 16  ;;  %v1215_v0 = vrot.slane %v1213_v2, 7  ;;  %v1211_v61 = vrot.slane %v13183_v33, 4  ;;  %v1612_v47 = vpop.permute.xlu1 %1611 }
 0x16e   : > { %1736 = vst.msk [vmem:[#allocation3 + $0x1d0] sm:$0xf] %vm1677_vm9, %v1602_v54  ;;  %v1216_v13 = vshll.u32 %v585_v6, 16  ;;  %v2442_v55 = vshrl.u32 %v1812_v3, 16  ;;  %2635 = vrot.lane.b32.xlu1 %v2420_v53, %s11675_s7  ;;  %v2430_v34 = vsel %vm12019_vm6, %v2425_v25, %v2429_v60  ;;  %v1224_v18 = vrot.slane %v1222_v30, 7 }
 0x16f   : > { %v2434_v16 = vor.u32 %v2433_v45, %v2429_v60  ;;  %v2445_v24 = vshll.u32 %v1812_v3, 16  ;;  %v1814_v62 = vld [vmem:[#allocation2 + $0x198] sm:$0xf]  ;;  %v582_v40 = vld [vmem:[#allocation2 + $0x1a8] sm:$0x8]  ;;  %v1220_v10 = vrot.slane %v1215_v0, 4  ;;  %2637 = vrot.lane.b32.xlu0 %v2430_v34, %s11675_s7  ;;  %v1610_v22 = vpop.permute.xlu0 %1609 }
 0x170   : > { %v1218_v32 = vor.u32 %v1216_v13, %v1215_v0  ;;  %v2444_v31 = vrot.slane %v2442_v55, 4  ;;  %v2451_v38 = vshll.u32 %v1813_v7, 16  ;;  %v1190_v14 = vshrl.u32 %v582_v40, 16  ;;  %1739 = vst.msk [vmem:[#allocation3 + $0x1e8] sm:$0xf] %vm1677_vm9, %v1608_v42 }
 0x171   : > { %v2435_v35 = vrot.slane %v2434_v16, 4  ;;  %v1227_v23 = vor.u32 %v1225_v49, %v1224_v18  ;;  %v2447_v63 = vrot.slane %v2445_v24, 5  ;;  %v2455_v37 = vshrl.u32 %v1813_v7, 16  ;;  %v1815_v27 = vld [vmem:[#allocation2 + $0x19c] sm:$0xf]  ;;  %v2532_v25 = vpop.permute.xlu1 %2531 }
 0x172   : > { %v1219_v58 = vsel %vm11969_vm3, %v1211_v61, %v1218_v32  ;;  %v2453_v9 = vrot.slane %v2451_v38, 5  ;;  %v2461_v5 = vshll.u32 %v1814_v62, 16  ;;  %v10989_v56 = vrot.slane %v1190_v14, 11  ;;  %v495_v11 = vld [vmem:[#allocation2 + $0x1a0] sm:$0x1] }
 0x173   : > { %v1811_v15 = vld [vmem:[#allocation2 + $0x184] sm:$0x1]  ;;  %v1228_v4 = vsel %vm11969_vm3, %v1220_v10, %v1227_v23  ;;  %1355 = vst.msk [vmem:[#allocation3 + $0x1f0] sm:$0xf] %vm254_vm0, %v1219_v58  ;;  %v2448_v50 = vor.u32 %v2447_v63, %v2444_v31  ;;  %v2465_v33 = vshrl.u32 %v1814_v62, 16  ;;  %v2457_v39 = vrot.slane %v2455_v37, 4  ;;  %v2530_v45 = vpop.permute.xlu0 %2529 }
 0x174   : > { %v2437_v52 = vshll.u32 %v1811_v15, 16  ;;  %1356 = vst.msk [vmem:[#allocation3 + $0x1f8] sm:$0xf] %vm254_vm0, %v1228_v4  ;;  %v2463_v43 = vrot.slane %v2461_v5, 5  ;;  %v1817_v36 = vld [vmem:[#allocation2 + $0x1ac] sm:$0xf]  ;;  %v1201_v20 = vsel %vm11969_vm3, %v10989_v56, %v13203_v48 }
 0x175   : > { %v2449_v6 = vrot.slane %v2448_v50, 4  ;;  %v2467_v12 = vrot.slane %v2465_v33, 4  ;;  %v2471_v8 = vshll.u32 %v1815_v27, 16  ;;  %1353 = vst.msk [vmem:[#allocation3 + $0x1e0] sm:$0xf] %vm254_vm0, %v1201_v20  ;;  %v2458_v57 = vor.u32 %v2457_v39, %v2453_v9 }
 0x176   : > { %v2439_v26 = vrot.slane %v2437_v52, 5  ;;  %1741 = vst.msk [vmem:[#allocation3 + $0x1f8] sm:$0xf] %vm1677_vm9, %v1612_v47  ;;  %1740 = vst.msk [vmem:[#allocation3 + $0x1f0] sm:$0xf] %vm1677_vm9, %v1610_v22  ;;  %v2475_v59 = vshrl.u32 %v1815_v27, 16 }
 0x177   : > { %v496_v21 = vsel %vm12054_vm8, 0, %v495_v11  ;;  %v1818_v17 = vld [vmem:[#allocation2 + $0x1b0] sm:$0xf]  ;;  %1738 = vst.msk [vmem:[#allocation3 + $0x1e0] sm:$0xf] %vm1677_vm9, %v1606_v19  ;;  %v2454_v48 = vsel %vm12019_vm6, %v2449_v6, %v2453_v9  ;;  %v2468_v46 = vor.u32 %v2467_v12, %v2463_v43  ;;  %v2473_v3 = vrot.slane %v2471_v8, 5  ;;  %v2534_v14 = vpop.permute.xlu0 %2533 }
 0x178   : > { %497 = vst [vmem:[#allocation2 + $0x1a0] sm:$0x1] %v496_v21  ;;  %v2486_v53 = vshrl.u32 %v1817_v36, 16  ;;  %v1819_v51 = vld [vmem:[#allocation2 + $0x1b4] sm:$0xf]  ;;  %v2440_v60 = vsel %vm12019_vm6, %v2435_v35, %v2439_v26  ;;  %2641 = vrot.lane.b32.xlu0 %v2454_v48, %s11675_s7  ;;  %v2459_v2 = vrot.slane %v2458_v57, 4  ;;  %v2536_v35 = vpop.permute.xlu1 %2535 }
 0x179   : > { %v2477_v28 = vrot.slane %v2475_v59, 4  ;;  %v2489_v54 = vshll.u32 %v1817_v36, 16  ;;  %2639 = vrot.lane.b32.xlu1 %v2440_v60, %s11675_s7  ;;  %v2469_v30 = vrot.slane %v2468_v46, 4  ;;  %v2495_v7 = vshll.u32 %v1818_v17, 16  ;;  %v1820_v61 = vld [vmem:[#allocation2 + $0x1b8] sm:$0xf] }
 0x17a   : > { %v2488_v49 = vrot.slane %v2486_v53, 4  ;;  %v2499_v0 = vshrl.u32 %v1818_v17, 16  ;;  %v2464_v13 = vsel %vm12019_vm6, %v2459_v2, %v2463_v43  ;;  %2723 = vst.msk [vmem:[#allocation3 + $0x8] sm:$0xf] %vm2721_vm10, %v2532_v25  ;;  %2722 = vst.msk [vmem:[#allocation3] sm:$0xf] %vm2721_vm10, %v2530_v45 }
 0x17b   : > { %v2478_v55 = vor.u32 %v2477_v28, %v2473_v3  ;;  %v2491_v34 = vrot.slane %v2489_v54, 5  ;;  %v2505_v16 = vshll.u32 %v1819_v51, 16  ;;  %v498_v18 = vld [vmem:[#allocation2 + $0x1bc] sm:$0x1]  ;;  %v2474_v24 = vsel %vm12019_vm6, %v2469_v30, %v2473_v3  ;;  %v2787_v32 = vld [vmem:[#allocation2 + $0x24] sm:$0xf]  ;;  %v2538_v22 = vpop.permute.xlu0 %2537 }
 0x17c   : > { %v2497_v62 = vrot.slane %v2495_v7, 5  ;;  %v2501_v40 = vrot.slane %v2499_v0, 4  ;;  %v2509_v10 = vshrl.u32 %v1819_v51, 16  ;;  %2645 = vrot.lane.b32.xlu0 %v2474_v24, %s11675_s7  ;;  %v2515_v42 = vshll.u32 %v1820_v61, 16  ;;  %v13251_v19 = vld [vmem:[#allocation2 + $0x28] sm:$0xf]  ;;  %v2540_v6 = vpop.permute.xlu1 %2539 }
 0x17d   : > { %v2492_v31 = vor.u32 %v2491_v34, %v2488_v49  ;;  %v13249_v38 = vrot.slane %v2505_v16, 5  ;;  %2643 = vrot.lane.b32.xlu1 %v2464_v13, %s11675_s7  ;;  %v2519_v58 = vshrl.u32 %v1820_v61, 16  ;;  %v499_v9 = vsel %vm12054_vm8, 0, %v498_v18  ;;  %2724 = vst.msk [vmem:[#allocation3 + $0x10] sm:$0xf] %vm2721_vm10, %v2534_v14 }
 0x17e   : > { %v2502_v23 = vor.u32 %v2501_v40, %v2497_v62  ;;  %v2511_v63 = vrot.slane %v2509_v10, 4  ;;  %v2479_v5 = vrot.slane %v2478_v55, 4  ;;  %2725 = vst.msk [vmem:[#allocation3 + $0x18] sm:$0xf] %vm2721_vm10, %v2536_v35  ;;  %v2517_v56 = vrot.slane %v2515_v42, 5 }
 0x17f   : > { %v1816_v37 = vld [vmem:[#allocation2 + $0x1a0] sm:$0x1]  ;;  %v2493_v27 = vrot.slane %v2492_v31, 4  ;;  %500 = vst [vmem:[#allocation2 + $0x1bc] sm:$0x1] %v499_v9  ;;  %v2872_v15 = vshrl.u32 %v2787_v32, 16  ;;  %v2542_v49 = vpop.permute.xlu0 %2541 }
 0x180   : > { %v2481_v4 = vshll.u32 %v1816_v37, 16  ;;  %v2512_v50 = vor.u32 %v2511_v63, %v13249_v38  ;;  %v2521_v33 = vrot.slane %v2519_v58, 4  ;;  %v2881_v11 = vshrl.u32 %v13251_v19, 16  ;;  %v2786_v52 = vld [vmem:[#allocation2 + $0x20] sm:$0x8]  ;;  %v2544_v7 = vpop.permute.xlu1 %2543 }
 0x181   : > { %v2498_v39 = vsel %vm12019_vm6, %v2493_v27, %v2497_v62  ;;  %v13262_v43 = vrot.slane %v2872_v15, 7  ;;  %v2789_v36 = vld [vmem:[#allocation2 + $0x2c] sm:$0xf]  ;;  %v2503_v47 = vrot.slane %v2502_v23, 4  ;;  %v13265_v26 = vld [vmem:[#allocation2 + $0x30] sm:$0xf] }
 0x182   : > { %v2483_v20 = vrot.slane %v2481_v4, 5  ;;  %2649 = vrot.lane.b32.xlu0 %v2498_v39, %s11675_s7  ;;  %v2513_v12 = vrot.slane %v2512_v50, 4  ;;  %v2522_v8 = vor.u32 %v2521_v33, %v2517_v56  ;;  %2726 = vst.msk [vmem:[#allocation3 + $0x20] sm:$0xf] %vm2721_vm10, %v2538_v22  ;;  %2727 = vst.msk [vmem:[#allocation3 + $0x28] sm:$0xf] %vm2721_vm10, %v2540_v6 }
 0x183   : > { %v2867_v57 = vshrl.u32 %v2786_v52, 16  ;;  %v2875_v59 = vshll.u32 %v2787_v32, 16  ;;  %v2883_v48 = vrot.slane %v2881_v11, 7  ;;  %v2890_v46 = vshrl.u32 %v2789_v36, 16  ;;  %v2792_v3 = vld [vmem:[#allocation2 + $0x40] sm:$0xf]  ;;  %v2546_v14 = vpop.permute.xlu0 %2545 }
 0x184   : > { %v2484_v21 = vsel %vm12019_vm6, %v2479_v5, %v2483_v20  ;;  %v2518_v17 = vsel %vm12019_vm6, %v2513_v12, %v2517_v56  ;;  %v13273_v53 = vld [vmem:[#allocation2 + $0x44] sm:$0xf]  ;;  %v2884_v51 = vshll.u32 %v13251_v19, 16  ;;  %v2899_v28 = vshrl.u32 %v13265_v26, 16  ;;  %v2791_v54 = vld [vmem:[#allocation2 + $0x3c] sm:$0x8]  ;;  %v2548_v35 = vpop.permute.xlu1 %2547 }
 0x185   : > { %2647 = vrot.lane.b32.xlu1 %v2484_v21, %s11675_s7  ;;  %v10990_v60 = vrot.slane %v2867_v57, 11  ;;  %v2877_v2 = vor.u32 %v2875_v59, %v13262_v43  ;;  %v2508_v25 = vsel %vm12019_vm6, %v2503_v47, %v13249_v38  ;;  %v2523_v30 = vrot.slane %v2522_v8, 4  ;;  %2728 = vst.msk [vmem:[#allocation3 + $0x30] sm:$0xf] %vm2721_vm10, %v2542_v49  ;;  %2729 = vst.msk [vmem:[#allocation3 + $0x38] sm:$0xf] %vm2721_vm10, %v2544_v7 }
 0x186   : > { %2653 = vrot.lane.b32.xlu0 %v2518_v17, %s11675_s7  ;;  %v1821_v45 = vld [vmem:[#allocation2 + $0x1bc] sm:$0x1]  ;;  %v2892_v0 = vrot.slane %v2890_v46, 7  ;;  %v2893_v61 = vshll.u32 %v2789_v36, 16  ;;  %v2888_v34 = vrot.slane %v2883_v48, 4  ;;  %v2912_v16 = vshrl.u32 %v2792_v3, 16 }
 0x187   : > { %v2525_v13 = vshll.u32 %v1821_v45, 16  ;;  %v2878_v55 = vsel %vm11969_vm3, %v10990_v60, %v2877_v2  ;;  %v2794_v18 = vld [vmem:[#allocation2 + $0x48] sm:$0xf]  ;;  %v2901_v24 = vrot.slane %v2899_v28, 7  ;;  %v2902_v62 = vshll.u32 %v13265_v26, 16  ;;  %v2550_v22 = vpop.permute.xlu0 %2549 }
 0x188   : > { %v2895_v40 = vor.u32 %v2893_v61, %v2892_v0  ;;  %v13289_v32 = vrot.slane %v2912_v16, 7  ;;  %v2921_v31 = vshrl.u32 %v13273_v53, 16  ;;  %v2907_v38 = vshrl.u32 %v2791_v54, 16  ;;  %v2797_v58 = vld [vmem:[#allocation2 + $0x5c] sm:$0xf]  ;;  %v2552_v6 = vpop.permute.xlu1 %2551 }
 0x189   : > { %2651 = vrot.lane.b32.xlu1 %v2508_v25, %s11675_s7  ;;  %v2527_v10 = vrot.slane %v2525_v13, 5  ;;  %v2879_v42 = vrot.slane %v13262_v43, 4  ;;  %v2886_v19 = vor.u32 %v2884_v51, %v2883_v48  ;;  %v2915_v23 = vshll.u32 %v2792_v3, 16  ;;  %2730 = vst.msk [vmem:[#allocation3 + $0x40] sm:$0xf] %vm2721_vm10, %v2546_v14 }
 0x18a   : > { %3506 = vrot.lane.b32.xlu0 %v2878_v55, %s11676_s8  ;;  %v2930_v63 = vshrl.u32 %v2794_v18, 16  ;;  %2731 = vst.msk [vmem:[#allocation3 + $0x48] sm:$0xf] %vm2721_vm10, %v2548_v35  ;;  %v2896_v37 = vsel %vm11969_vm3, %v2888_v34, %v2895_v40  ;;  %v10991_v5 = vrot.slane %v2907_v38, 11  ;;  %v2795_v27 = vld [vmem:[#allocation2 + $0x4c] sm:$0xf]  ;;  %v2904_v52 = vor.u32 %v2902_v62, %v2901_v24 }
 0x18b   : > { %v2528_v9 = vsel %vm12019_vm6, %v2523_v30, %v2527_v10  ;;  %v13300_v56 = vld [vmem:[#allocation2 + $0x60] sm:$0xf]  ;;  %v2897_v15 = vrot.slane %v2892_v0, 4  ;;  %v2924_v4 = vshll.u32 %v13273_v53, 16  ;;  %v2917_v50 = vor.u32 %v2915_v23, %v13289_v32  ;;  %v2796_v11 = vld [vmem:[#allocation2 + $0x58] sm:$0x8]  ;;  %v2554_v54 = vpop.permute.xlu0 %2553 }
 0x18c   : > { %v13304_v33 = vrot.slane %v2930_v63, 7  ;;  %v2923_v39 = vrot.slane %v2921_v31, 7  ;;  %v2933_v43 = vshll.u32 %v2794_v18, 16  ;;  %v2952_v36 = vshrl.u32 %v2797_v58, 16  ;;  %v2799_v20 = vld [vmem:[#allocation2 + $0x64] sm:$0xf]  ;;  %v2556_v25 = vpop.permute.xlu1 %2555 }
 0x18d   : > { %2655 = vrot.lane.b32.xlu1 %v2528_v9, %s11675_s7  ;;  %v2887_v47 = vsel %vm11969_vm3, %v2879_v42, %v2886_v19  ;;  %v2939_v12 = vshrl.u32 %v2795_v27, 16  ;;  %2732 = vst.msk [vmem:[#allocation3 + $0x50] sm:$0xf] %vm2721_vm10, %v2550_v22  ;;  %2733 = vst.msk [vmem:[#allocation3 + $0x58] sm:$0xf] %vm2721_vm10, %v2552_v6  ;;  %v2918_v8 = vsel %vm11969_vm3, %v10991_v5, %v2917_v50  ;;  %v2961_v21 = vshrl.u32 %v13300_v56, 16 }
 0x18e   : > { %3510 = vrot.lane.b32.xlu0 %v2896_v37, %s11676_s8  ;;  %v2928_v26 = vrot.slane %v2923_v39, 4  ;;  %v2935_v57 = vor.u32 %v2933_v43, %v13304_v33  ;;  %v13315_v59 = vrot.slane %v2952_v36, 7  ;;  %v2947_v17 = vshrl.u32 %v2796_v11, 16  ;;  %v2800_v2 = vld [vmem:[#allocation2 + $0x68] sm:$0xf] }
 0x18f   : > { %v2955_v48 = vshll.u32 %v2797_v58, 16  ;;  %v2970_v46 = vshrl.u32 %v2799_v20, 16  ;;  %v2905_v3 = vsel %vm11969_vm3, %v2897_v15, %v2904_v52  ;;  %v2919_v53 = vrot.slane %v13289_v32, 4  ;;  %v2802_v28 = vld [vmem:[#allocation2 + $0x78] sm:$0xf]  ;;  %v2558_v32 = vpop.permute.xlu0 %2557 }
 0x190   : > { %v2926_v51 = vor.u32 %v2924_v4, %v2923_v39  ;;  %v2942_v60 = vshll.u32 %v2795_v27, 16  ;;  %v2941_v45 = vrot.slane %v2939_v12, 7  ;;  %v10992_v30 = vrot.slane %v2947_v17, 11  ;;  %2734 = vst.msk [vmem:[#allocation3 + $0x60] sm:$0xf] %vm2721_vm10, %v2554_v54  ;;  %v2560_v31 = vpop.permute.xlu1 %2559 }
 0x191   : > { %3508 = vrot.lane.b32.xlu1 %v2887_v47, %s11676_s8  ;;  %v2957_v49 = vor.u32 %v2955_v48, %v13315_v59  ;;  %v13324_v7 = vrot.slane %v2970_v46, 7  ;;  %2735 = vst.msk [vmem:[#allocation3 + $0x68] sm:$0xf] %vm2721_vm10, %v2556_v25  ;;  %v2936_v0 = vsel %vm11969_vm3, %v2928_v26, %v2935_v57  ;;  %v2801_v61 = vld [vmem:[#allocation2 + $0x74] sm:$0x8]  ;;  %v2963_v13 = vrot.slane %v2961_v21, 7 }
 0x192   : > { %3514 = vrot.lane.b32.xlu0 %v2918_v8, %s11676_s8  ;;  %v2979_v55 = vshrl.u32 %v2800_v2, 16  ;;  %v2973_v34 = vshll.u32 %v2799_v20, 16  ;;  %v2992_v16 = vshrl.u32 %v2802_v28, 16  ;;  %v2804_v18 = vld [vmem:[#allocation2 + $0x80] sm:$0xf]  ;;  %v2927_v24 = vsel %vm11969_vm3, %v2919_v53, %v2926_v51 }
 0x193   : > { %v2937_v62 = vrot.slane %v13304_v33, 4  ;;  %v2964_v40 = vshll.u32 %v13300_v56, 16  ;;  %v2944_v10 = vor.u32 %v2942_v60, %v2941_v45  ;;  %v2958_v38 = vsel %vm11969_vm3, %v10992_v30, %v2957_v49  ;;  %v2803_v14 = vld [vmem:[#allocation2 + $0x7c] sm:$0xf]  ;;  %2736 = vst.msk [vmem:[#allocation3 + $0x70] sm:$0xf] %vm2721_vm10, %v2558_v32  ;;  %v2562_v50 = vpop.permute.xlu0 %2561 }
 0x194   : > { %v2968_v42 = vrot.slane %v2963_v13, 4  ;;  %v2975_v19 = vor.u32 %v2973_v34, %v13324_v7  ;;  %2737 = vst.msk [vmem:[#allocation3 + $0x78] sm:$0xf] %vm2721_vm10, %v2560_v31  ;;  %v13341_v35 = vrot.slane %v2992_v16, 7  ;;  %v2987_v23 = vshrl.u32 %v2801_v61, 16  ;;  %v2564_v33 = vpop.permute.xlu1 %2563 }
 0x195   : > { %3512 = vrot.lane.b32.xlu1 %v2905_v3, %s11676_s8  ;;  %v2995_v63 = vshll.u32 %v2802_v28, 16  ;;  %v3010_v58 = vshrl.u32 %v2804_v18, 16  ;;  %v2807_v9 = vld [vmem:[#allocation2 + $0x94] sm:$0xf]  ;;  %v2981_v37 = vrot.slane %v2979_v55, 7  ;;  %v2982_v5 = vshll.u32 %v2800_v2, 16 }
 0x196   : > { %3518 = vrot.lane.b32.xlu0 %v2936_v0, %s11676_s8  ;;  %v2959_v27 = vrot.slane %v13315_v59, 4  ;;  %v2966_v56 = vor.u32 %v2964_v40, %v2963_v13  ;;  %v3001_v15 = vshrl.u32 %v2803_v14, 16  ;;  %v2945_v4 = vsel %vm11969_vm3, %v2937_v62, %v2944_v10  ;;  %v2805_v52 = vld [vmem:[#allocation2 + $0x84] sm:$0xf]  ;;  %v2806_v43 = vld [vmem:[#allocation2 + $0x90] sm:$0x8] }
 0x197   : > { %v2976_v11 = vsel %vm11969_vm3, %v2968_v42, %v2975_v19  ;;  %v3032_v39 = vshrl.u32 %v2807_v9, 16  ;;  %2738 = vst.msk [vmem:[#allocation3 + $0x80] sm:$0xf] %vm2721_vm10, %v2562_v50  ;;  %2739 = vst.msk [vmem:[#allocation3 + $0x88] sm:$0xf] %vm2721_vm10, %v2564_v33  ;;  %v10993_v36 = vrot.slane %v2987_v23, 11  ;;  %v2997_v20 = vor.u32 %v2995_v63, %v13341_v35  ;;  %v2566_v48 = vpop.permute.xlu0 %2565 }
 0x198   : > { %v13353_v47 = vrot.slane %v3010_v58, 7  ;;  %v3013_v22 = vshll.u32 %v2804_v18, 16  ;;  %v2809_v6 = vld [vmem:[#allocation2 + $0x9c] sm:$0xf]  ;;  %v2977_v12 = vrot.slane %v13324_v7, 4  ;;  %v2984_v8 = vor.u32 %v2982_v5, %v2981_v37  ;;  %v2568_v46 = vpop.permute.xlu1 %2567 }
 0x199   : > { %3516 = vrot.lane.b32.xlu1 %v2927_v24, %s11676_s8  ;;  %v2967_v26 = vsel %vm11969_vm3, %v2959_v27, %v2966_v56  ;;  %v3003_v57 = vrot.slane %v3001_v15, 7  ;;  %v3004_v59 = vshll.u32 %v2803_v14, 16  ;;  %v3019_v21 = vshrl.u32 %v2805_v52, 16  ;;  %v2808_v17 = vld [vmem:[#allocation2 + $0x98] sm:$0xf] }
 0x19a   : > { %3522 = vrot.lane.b32.xlu0 %v2958_v38, %s11676_s8  ;;  %v13360_v3 = vrot.slane %v3032_v39, 7  ;;  %v3027_v53 = vshrl.u32 %v2806_v43, 16  ;;  %v3035_v51 = vshll.u32 %v2807_v9, 16  ;;  %v3050_v60 = vshrl.u32 %v2809_v6, 16  ;;  %2740 = vst.msk [vmem:[#allocation3 + $0x90] sm:$0xf] %vm2721_vm10, %v2566_v48 }
 0x19b   : > { %2741 = vst.msk [vmem:[#allocation3 + $0x98] sm:$0xf] %vm2721_vm10, %v2568_v46  ;;  %v2998_v2 = vsel %vm11969_vm3, %v10993_v36, %v2997_v20  ;;  %v3008_v28 = vrot.slane %v3003_v57, 4  ;;  %v3015_v54 = vor.u32 %v3013_v22, %v13353_v47  ;;  %v2985_v25 = vsel %vm11969_vm3, %v2977_v12, %v2984_v8  ;;  %v2812_v30 = vld [vmem:[#allocation2 + $0xb0] sm:$0xf]  ;;  %v2570_v55 = vpop.permute.xlu0 %2569 }
 0x19c   : > { %v3041_v45 = vshrl.u32 %v2808_v17, 16  ;;  %v2999_v49 = vrot.slane %v13341_v35, 4  ;;  %v3006_v7 = vor.u32 %v3004_v59, %v3003_v57  ;;  %v3021_v0 = vrot.slane %v3019_v21, 7  ;;  %v2810_v13 = vld [vmem:[#allocation2 + $0xa0] sm:$0xf]  ;;  %v2572_v34 = vpop.permute.xlu1 %2571 }
 0x19d   : > { %3520 = vrot.lane.b32.xlu1 %v2945_v4, %s11676_s8  ;;  %v3022_v61 = vshll.u32 %v2805_v52, 16  ;;  %v10994_v16 = vrot.slane %v3027_v53, 11  ;;  %v3037_v18 = vor.u32 %v3035_v51, %v13360_v3  ;;  %v13373_v24 = vrot.slane %v3050_v60, 7  ;;  %2742 = vst.msk [vmem:[#allocation3 + $0xa0] sm:$0xf] %vm2721_vm10, %v2570_v55 }
 0x19e   : > { %3526 = vrot.lane.b32.xlu0 %v2976_v11, %s11676_s8  ;;  %v3053_v62 = vshll.u32 %v2809_v6, 16  ;;  %2743 = vst.msk [vmem:[#allocation3 + $0xa8] sm:$0xf] %vm2721_vm10, %v2572_v34  ;;  %v3016_v40 = vsel %vm11969_vm3, %v3008_v28, %v3015_v54  ;;  %v3072_v10 = vshrl.u32 %v2812_v30, 16  ;;  %v3043_v32 = vrot.slane %v3041_v45, 7 }
 0x19f   : > { %v3059_v31 = vshrl.u32 %v2810_v13, 16  ;;  %v2811_v38 = vld [vmem:[#allocation2 + $0xac] sm:$0x8]  ;;  %v2814_v42 = vld [vmem:[#allocation2 + $0xb8] sm:$0xf]  ;;  %v3007_v19 = vsel %vm11969_vm3, %v2999_v49, %v3006_v7  ;;  %v3017_v14 = vrot.slane %v13353_v47, 4  ;;  %v3024_v23 = vor.u32 %v3022_v61, %v3021_v0  ;;  %v2574_v63 = vpop.permute.xlu0 %2573 }
 0x1a0   : > { %v3044_v35 = vshll.u32 %v2808_v17, 16  ;;  %v2576_v58 = vpop.permute.xlu1 %2575  ;;  %v3038_v9 = vsel %vm11969_vm3, %v10994_v16, %v3037_v18  ;;  %v3048_v37 = vrot.slane %v3043_v32, 4  ;;  %v3055_v5 = vor.u32 %v3053_v62, %v13373_v24  ;;  %v2813_v27 = vld [vmem:[#allocation2 + $0xb4] sm:$0xf]  ;;  %2744 = vst.msk [vmem:[#allocation3 + $0xb0] sm:$0xf] %vm2721_vm10, %v2574_v63 }
 0x1a1   : > { %3524 = vrot.lane.b32.xlu1 %v2967_v26, %s11676_s8  ;;  %2745 = vst.msk [vmem:[#allocation3 + $0xb8] sm:$0xf] %vm2721_vm10, %v2576_v58  ;;  %v13389_v56 = vrot.slane %v3072_v10, 7  ;;  %v3067_v15 = vshrl.u32 %v2811_v38, 16  ;;  %v3075_v4 = vshll.u32 %v2812_v30, 16  ;;  %v3090_v50 = vshrl.u32 %v2814_v42, 16 }
 0x1a2   : > { %3530 = vrot.lane.b32.xlu0 %v2998_v2, %s11676_s8  ;;  %v2817_v33 = vld [vmem:[#allocation2 + $0xcc] sm:$0xf]  ;;  %v3061_v11 = vrot.slane %v3059_v31, 7  ;;  %v3062_v52 = vshll.u32 %v2810_v13, 16  ;;  %v3039_v39 = vrot.slane %v13360_v3, 4  ;;  %v3046_v43 = vor.u32 %v3044_v35, %v3043_v32 }
 0x1a3   : > { %v3081_v36 = vshrl.u32 %v2813_v27, 16  ;;  %v3025_v20 = vsel %vm11969_vm3, %v3017_v14, %v3024_v23  ;;  %v2578_v47 = vpop.permute.xlu0 %2577  ;;  %v3056_v6 = vsel %vm11969_vm3, %v3048_v37, %v3055_v5  ;;  %v2815_v12 = vld [vmem:[#allocation2 + $0xbc] sm:$0xf]  ;;  %v3112_v8 = vshrl.u32 %v2817_v33, 16  ;;  %v2816_v26 = vld [vmem:[#allocation2 + $0xc8] sm:$0x8] }
 0x1a4   : > { %v2580_v22 = vpop.permute.xlu1 %2579  ;;  %2746 = vst.msk [vmem:[#allocation3 + $0xc0] sm:$0xf] %vm2721_vm10, %v2578_v47  ;;  %v10995_v57 = vrot.slane %v3067_v15, 11  ;;  %v3077_v59 = vor.u32 %v3075_v4, %v13389_v56  ;;  %v13401_v21 = vrot.slane %v3090_v50, 7  ;;  %v3093_v17 = vshll.u32 %v2814_v42, 16 }
 0x1a5   : > { %3528 = vrot.lane.b32.xlu1 %v2985_v25, %s11676_s8  ;;  %2747 = vst.msk [vmem:[#allocation3 + $0xc8] sm:$0xf] %vm2721_vm10, %v2580_v22  ;;  %v2819_v48 = vld [vmem:[#allocation2 + $0xd4] sm:$0xf]  ;;  %v3057_v46 = vrot.slane %v13373_v24, 4  ;;  %v3064_v3 = vor.u32 %v3062_v52, %v3061_v11  ;;  %v3047_v53 = vsel %vm11969_vm3, %v3039_v39, %v3046_v43  ;;  %v3083_v51 = vrot.slane %v3081_v36, 7 }
 0x1a6   : > { %3534 = vrot.lane.b32.xlu0 %v3016_v40, %s11676_s8  ;;  %v3084_v60 = vshll.u32 %v2813_v27, 16  ;;  %v3099_v2 = vshrl.u32 %v2815_v12, 16  ;;  %v2818_v28 = vld [vmem:[#allocation2 + $0xd0] sm:$0xf]  ;;  %v13408_v45 = vrot.slane %v3112_v8, 7  ;;  %v3107_v30 = vshrl.u32 %v2816_v26, 16 }
 0x1a7   : > { %v2582_v54 = vpop.permute.xlu0 %2581  ;;  %v3115_v49 = vshll.u32 %v2817_v33, 16  ;;  %v3130_v7 = vshrl.u32 %v2819_v48, 16  ;;  %v3078_v0 = vsel %vm11969_vm3, %v10995_v57, %v3077_v59  ;;  %v3088_v61 = vrot.slane %v3083_v51, 4  ;;  %v2822_v16 = vld [vmem:[#allocation2 + $0xe8] sm:$0xf] }
 0x1a8   : > { %v2584_v25 = vpop.permute.xlu1 %2583  ;;  %2748 = vst.msk [vmem:[#allocation3 + $0xd0] sm:$0xf] %vm2721_vm10, %v2582_v54  ;;  %v3095_v13 = vor.u32 %v3093_v17, %v13401_v21  ;;  %v3065_v55 = vsel %vm11969_vm3, %v3057_v46, %v3064_v3  ;;  %v3121_v34 = vshrl.u32 %v2818_v28, 16  ;;  %v3079_v18 = vrot.slane %v13389_v56, 4  ;;  %v2820_v10 = vld [vmem:[#allocation2 + $0xd8] sm:$0xf] }
 0x1a9   : > { %3532 = vrot.lane.b32.xlu1 %v3007_v19, %s11676_s8  ;;  %2749 = vst.msk [vmem:[#allocation3 + $0xd8] sm:$0xf] %vm2721_vm10, %v2584_v25  ;;  %v3086_v24 = vor.u32 %v3084_v60, %v3083_v51  ;;  %v3101_v62 = vrot.slane %v3099_v2, 7  ;;  %v3102_v40 = vshll.u32 %v2815_v12, 16  ;;  %v10996_v38 = vrot.slane %v3107_v30, 11 }
 0x1aa   : > { %3538 = vrot.lane.b32.xlu0 %v3038_v9, %s11676_s8  ;;  %v3117_v42 = vor.u32 %v3115_v49, %v13408_v45  ;;  %v13421_v19 = vrot.slane %v3130_v7, 7  ;;  %v3133_v14 = vshll.u32 %v2819_v48, 16  ;;  %v3096_v35 = vsel %vm11969_vm3, %v3088_v61, %v3095_v13  ;;  %v2821_v9 = vld [vmem:[#allocation2 + $0xe4] sm:$0x8]  ;;  %v2824_v37 = vld [vmem:[#allocation2 + $0xf0] sm:$0xf] }
 0x1ab   : > { %v2586_v32 = vpop.permute.xlu0 %2585  ;;  %v3152_v23 = vshrl.u32 %v2822_v16, 16  ;;  %v3123_v63 = vrot.slane %v3121_v34, 7  ;;  %v3139_v58 = vshrl.u32 %v2820_v10, 16  ;;  %v3087_v5 = vsel %vm11969_vm3, %v3079_v18, %v3086_v24  ;;  %v2823_v39 = vld [vmem:[#allocation2 + $0xec] sm:$0xf] }
 0x1ac   : > { %v2588_v31 = vpop.permute.xlu1 %2587  ;;  %2750 = vst.msk [vmem:[#allocation3 + $0xe0] sm:$0xf] %vm2721_vm10, %v2586_v32  ;;  %v3097_v27 = vrot.slane %v13401_v21, 4  ;;  %v3124_v56 = vshll.u32 %v2818_v28, 16  ;;  %v3104_v15 = vor.u32 %v3102_v40, %v3101_v62  ;;  %v3118_v33 = vsel %vm11969_vm3, %v10996_v38, %v3117_v42  ;;  %v2827_v22 = vld [vmem:[#allocation2 + $0x104] sm:$0xf] }
 0x1ad   : > { %3536 = vrot.lane.b32.xlu1 %v3025_v20, %s11676_s8  ;;  %2751 = vst.msk [vmem:[#allocation3 + $0xe8] sm:$0xf] %vm2721_vm10, %v2588_v31  ;;  %v3128_v11 = vrot.slane %v3123_v63, 4  ;;  %v3135_v52 = vor.u32 %v3133_v14, %v13421_v19  ;;  %v13437_v43 = vrot.slane %v3152_v23, 7  ;;  %v3147_v36 = vshrl.u32 %v2821_v9, 16 }
 0x1ae   : > { %3542 = vrot.lane.b32.xlu0 %v3056_v6, %s11676_s8  ;;  %v3155_v20 = vshll.u32 %v2822_v16, 16  ;;  %v3170_v47 = vshrl.u32 %v2824_v37, 16  ;;  %v3141_v6 = vrot.slane %v3139_v58, 7  ;;  %v3142_v12 = vshll.u32 %v2820_v10, 16  ;;  %v2825_v46 = vld [vmem:[#allocation2 + $0xf4] sm:$0xf] }
 0x1af   : > { %v2590_v4 = vpop.permute.xlu0 %2589  ;;  %v3119_v8 = vrot.slane %v13408_v45, 4  ;;  %v3126_v26 = vor.u32 %v3124_v56, %v3123_v63  ;;  %v3161_v57 = vshrl.u32 %v2823_v39, 16  ;;  %v3105_v59 = vsel %vm11969_vm3, %v3097_v27, %v3104_v15  ;;  %v2829_v54 = vld [vmem:[#allocation2 + $0x10c] sm:$0xf]  ;;  %v2828_v61 = vld [vmem:[#allocation2 + $0x108] sm:$0xf] }
 0x1b0   : > { %v2592_v50 = vpop.permute.xlu1 %2591  ;;  %2752 = vst.msk [vmem:[#allocation3 + $0xf0] sm:$0xf] %vm2721_vm10, %v2590_v4  ;;  %v3136_v48 = vsel %vm11969_vm3, %v3128_v11, %v3135_v52  ;;  %v3192_v3 = vshrl.u32 %v2827_v22, 16  ;;  %v10997_v51 = vrot.slane %v3147_v36, 11  ;;  %v3157_v60 = vor.u32 %v3155_v20, %v13437_v43  ;;  %v2832_v38 = vld [vmem:[#allocation2 + $0x120] sm:$0xf] }
 0x1b1   : > { %3540 = vrot.lane.b32.xlu1 %v3047_v53, %s11676_s8  ;;  %2753 = vst.msk [vmem:[#allocation3 + $0xf8] sm:$0xf] %vm2721_vm10, %v2592_v50  ;;  %v2826_v53 = vld [vmem:[#allocation2 + $0x100] sm:$0x8]  ;;  %v13449_v2 = vrot.slane %v3170_v47, 7  ;;  %v3173_v28 = vshll.u32 %v2824_v37, 16  ;;  %v3144_v45 = vor.u32 %v3142_v12, %v3141_v6  ;;  %v3127_v30 = vsel %vm11969_vm3, %v3119_v8, %v3126_v26 }
 0x1b2   : > { %3546 = vrot.lane.b32.xlu0 %v3078_v0, %s11676_s8  ;;  %v3137_v25 = vrot.slane %v13421_v19, 4  ;;  %v3163_v49 = vrot.slane %v3161_v57, 7  ;;  %v3164_v7 = vshll.u32 %v2823_v39, 16  ;;  %v3179_v0 = vshrl.u32 %v2825_v46, 16  ;;  %v2830_v23 = vld [vmem:[#allocation2 + $0x110] sm:$0xf] }
 0x1b3   : > { %v2594_v21 = vpop.permute.xlu0 %2593  ;;  %v13456_v34 = vrot.slane %v3192_v3, 7  ;;  %v3187_v16 = vshrl.u32 %v2826_v53, 16  ;;  %v3195_v18 = vshll.u32 %v2827_v22, 16  ;;  %v3210_v24 = vshrl.u32 %v2829_v54, 16  ;;  %v2834_v11 = vld [vmem:[#allocation2 + $0x128] sm:$0xf] }
 0x1b4   : > { %v2596_v17 = vpop.permute.xlu1 %2595  ;;  %2754 = vst.msk [vmem:[#allocation3 + $0x100] sm:$0xf] %vm2721_vm10, %v2594_v21  ;;  %v3158_v62 = vsel %vm11969_vm3, %v10997_v51, %v3157_v60  ;;  %v3168_v40 = vrot.slane %v3163_v49, 4  ;;  %v3175_v10 = vor.u32 %v3173_v28, %v13449_v2  ;;  %v3145_v32 = vsel %vm11969_vm3, %v3137_v25, %v3144_v45  ;;  %v2833_v8 = vld [vmem:[#allocation2 + $0x124] sm:$0xf] }
 0x1b5   : > { %3544 = vrot.lane.b32.xlu1 %v3065_v55, %s11676_s8  ;;  %2755 = vst.msk [vmem:[#allocation3 + $0x108] sm:$0xf] %vm2721_vm10, %v2596_v17  ;;  %v3201_v31 = vshrl.u32 %v2828_v61, 16  ;;  %v3159_v42 = vrot.slane %v13437_v43, 4  ;;  %v3166_v19 = vor.u32 %v3164_v7, %v3163_v49  ;;  %v3181_v14 = vrot.slane %v3179_v0, 7 }
 0x1b6   : > { %3550 = vrot.lane.b32.xlu0 %v3096_v35, %s11676_s8  ;;  %v3182_v35 = vshll.u32 %v2825_v46, 16  ;;  %v10998_v9 = vrot.slane %v3187_v16, 11  ;;  %v3197_v37 = vor.u32 %v3195_v18, %v13456_v34  ;;  %v3213_v27 = vshll.u32 %v2829_v54, 16  ;;  %v2837_v17 = vld [vmem:[#allocation2 + $0x13c] sm:$0xf] }
 0x1b7   : > { %v2598_v13 = vpop.permute.xlu0 %2597  ;;  %v3176_v56 = vsel %vm11969_vm3, %v3168_v40, %v3175_v10  ;;  %v3232_v15 = vshrl.u32 %v2832_v38, 16  ;;  %v3203_v4 = vrot.slane %v3201_v31, 7  ;;  %v3219_v50 = vshrl.u32 %v2830_v23, 16  ;;  %v2835_v25 = vld [vmem:[#allocation2 + $0x12c] sm:$0xf] }
 0x1b8   : > { %v2600_v55 = vpop.permute.xlu1 %2599  ;;  %2756 = vst.msk [vmem:[#allocation3 + $0x110] sm:$0xf] %vm2721_vm10, %v2598_v13  ;;  %v3167_v52 = vsel %vm11969_vm3, %v3159_v42, %v3166_v19  ;;  %v3177_v39 = vrot.slane %v13449_v2, 4  ;;  %v3204_v43 = vshll.u32 %v2828_v61, 16  ;;  %v3184_v36 = vor.u32 %v3182_v35, %v3181_v14  ;;  %v2839_v13 = vld [vmem:[#allocation2 + $0x144] sm:$0xf] }
 0x1b9   : > { %3548 = vrot.lane.b32.xlu1 %v3087_v5, %s11676_s8  ;;  %2757 = vst.msk [vmem:[#allocation3 + $0x118] sm:$0xf] %vm2721_vm10, %v2600_v55  ;;  %v13469_v5 = vrot.slane %v3210_v24, 7  ;;  %v3198_v22 = vsel %vm11969_vm3, %v10998_v9, %v3197_v37  ;;  %v3208_v6 = vrot.slane %v3203_v4, 4  ;;  %v13485_v26 = vrot.slane %v3232_v15, 7 }
 0x1ba   : > { %3554 = vrot.lane.b32.xlu0 %v3118_v33, %s11676_s8  ;;  %v2831_v33 = vld [vmem:[#allocation2 + $0x11c] sm:$0x8]  ;;  %v3250_v21 = vshrl.u32 %v2834_v11, 16  ;;  %v3222_v46 = vshll.u32 %v2830_v23, 16  ;;  %v3199_v3 = vrot.slane %v13456_v34, 4  ;;  %v3206_v53 = vor.u32 %v3204_v43, %v3203_v4 }
 0x1bb   : > { %v2602_v63 = vpop.permute.xlu0 %2601  ;;  %v3215_v12 = vor.u32 %v3213_v27, %v13469_v5  ;;  %v3227_v57 = vshrl.u32 %v2831_v33, 16  ;;  %v3241_v51 = vshrl.u32 %v2833_v8, 16  ;;  %v3185_v60 = vsel %vm11969_vm3, %v3177_v39, %v3184_v36  ;;  %v2838_v40 = vld [vmem:[#allocation2 + $0x140] sm:$0xf]  ;;  %v2842_v9 = vld [vmem:[#allocation2 + $0x158] sm:$0xf] }
 0x1bc   : > { %2758 = vst.msk [vmem:[#allocation3 + $0x120] sm:$0xf] %vm2721_vm10, %v2602_v63  ;;  %v3272_v45 = vshrl.u32 %v2837_v17, 16  ;;  %v13497_v0 = vrot.slane %v3250_v21, 7  ;;  %v3253_v61 = vshll.u32 %v2834_v11, 16  ;;  %v3217_v55 = vrot.slane %v13469_v5, 4 }
 0x1bd   : > { %3552 = vrot.lane.b32.xlu1 %v3105_v59, %s11676_s8  ;;  %v2604_v58 = vpop.permute.xlu1 %2603  ;;  %v3235_v59 = vshll.u32 %v2832_v38, 16  ;;  %v3216_v54 = vsel %vm11969_vm3, %v3208_v6, %v3215_v12  ;;  %v10999_v49 = vrot.slane %v3227_v57, 11  ;;  %v3207_v16 = vsel %vm11969_vm3, %v3199_v3, %v3206_v53  ;;  %v2840_v15 = vld [vmem:[#allocation2 + $0x148] sm:$0xf]  ;;  %v2844_v6 = vld [vmem:[#allocation2 + $0x160] sm:$0xf] }
 0x1be   : > { %3558 = vrot.lane.b32.xlu0 %v3136_v48, %s11676_s8  ;;  %2759 = vst.msk [vmem:[#allocation3 + $0x128] sm:$0xf] %vm2721_vm10, %v2604_v58  ;;  %v3221_v48 = vrot.slane %v3219_v50, 7  ;;  %v3243_v18 = vrot.slane %v3241_v51, 7  ;;  %v3244_v24 = vshll.u32 %v2833_v8, 16  ;;  %v13504_v31 = vrot.slane %v3272_v45, 7 }
 0x1bf   : > { %v2606_v20 = vpop.permute.xlu0 %2605  ;;  %v3237_v7 = vor.u32 %v3235_v59, %v13485_v26  ;;  %v3275_v42 = vshll.u32 %v2837_v17, 16  ;;  %v3290_v19 = vshrl.u32 %v2839_v13, 16  ;;  %v3255_v23 = vor.u32 %v3253_v61, %v13497_v0  ;;  %v2843_v3 = vld [vmem:[#allocation2 + $0x15c] sm:$0xf] }
 0x1c0   : > { %2760 = vst.msk [vmem:[#allocation3 + $0x130] sm:$0xf] %vm2721_vm10, %v2606_v20  ;;  %v3224_v34 = vor.u32 %v3222_v46, %v3221_v48  ;;  %v3248_v35 = vrot.slane %v3243_v18, 4  ;;  %v3281_v58 = vshrl.u32 %v2838_v40, 16  ;;  %v3239_v37 = vrot.slane %v13485_v26, 4 }
 0x1c1   : > { %3556 = vrot.lane.b32.xlu1 %v3127_v30, %s11676_s8  ;;  %v2608_v47 = vpop.permute.xlu1 %2607  ;;  %v2836_v30 = vld [vmem:[#allocation2 + $0x138] sm:$0x8]  ;;  %v3238_v14 = vsel %vm11969_vm3, %v10999_v49, %v3237_v7  ;;  %v3246_v5 = vor.u32 %v3244_v24, %v3243_v18  ;;  %v3277_v11 = vor.u32 %v3275_v42, %v13504_v31  ;;  %v3293_v39 = vshll.u32 %v2839_v13, 16 }
 0x1c2   : > { %3562 = vrot.lane.b32.xlu0 %v3158_v62, %s11676_s8  ;;  %2761 = vst.msk [vmem:[#allocation3 + $0x138] sm:$0xf] %vm2721_vm10, %v2608_v47  ;;  %v3259_v62 = vshrl.u32 %v2835_v25, 16  ;;  %v3267_v38 = vshrl.u32 %v2836_v30, 16  ;;  %v3225_v63 = vsel %vm11969_vm3, %v3217_v55, %v3224_v34  ;;  %v3256_v43 = vsel %vm11969_vm3, %v3248_v35, %v3255_v23  ;;  %v2845_v55 = vld [vmem:[#allocation2 + $0x164] sm:$0xf] }
 0x1c3   : > { %v2610_v2 = vpop.permute.xlu0 %2609  ;;  %v3312_v36 = vshrl.u32 %v2842_v9, 16  ;;  %v3283_v20 = vrot.slane %v3281_v58, 7  ;;  %v3299_v47 = vshrl.u32 %v2840_v15, 16  ;;  %v3247_v12 = vsel %vm11969_vm3, %v3239_v37, %v3246_v5  ;;  %v2848_v35 = vld [vmem:[#allocation2 + $0x178] sm:$0xf] }
 0x1c4   : > { %2762 = vst.msk [vmem:[#allocation3 + $0x140] sm:$0xf] %vm2721_vm10, %v2610_v2  ;;  %v3261_v27 = vrot.slane %v3259_v62, 7  ;;  %v11000_v33 = vrot.slane %v3267_v38, 11  ;;  %v3257_v8 = vrot.slane %v13497_v0, 4  ;;  %v3284_v26 = vshll.u32 %v2838_v40, 16 }
 0x1c5   : > { %3560 = vrot.lane.b32.xlu1 %v3145_v32, %s11676_s8  ;;  %v2612_v28 = vpop.permute.xlu1 %2611  ;;  %v3288_v48 = vrot.slane %v3283_v20, 4  ;;  %v13533_v53 = vrot.slane %v3312_v36, 7  ;;  %v3330_v2 = vshrl.u32 %v2844_v6, 16  ;;  %v3279_v45 = vrot.slane %v13504_v31, 4 }
 0x1c6   : > { %3566 = vrot.lane.b32.xlu0 %v3176_v56, %s11676_s8  ;;  %2763 = vst.msk [vmem:[#allocation3 + $0x148] sm:$0xf] %vm2721_vm10, %v2612_v28  ;;  %v3262_v56 = vshll.u32 %v2835_v25, 16  ;;  %v3278_v17 = vsel %vm11969_vm3, %v11000_v33, %v3277_v11  ;;  %v2847_v28 = vld [vmem:[#allocation2 + $0x174] sm:$0xf]  ;;  %v3302_v25 = vshll.u32 %v2840_v15, 16  ;;  %v3286_v30 = vor.u32 %v3284_v26, %v3283_v20 }
 0x1c7   : > { %v2614_v10 = vpop.permute.xlu0 %2613  ;;  %v3321_v49 = vshrl.u32 %v2843_v3, 16  ;;  %v3352_v34 = vshrl.u32 %v2847_v28, 16  ;;  %v13545_v62 = vrot.slane %v3330_v2, 7  ;;  %v3333_v40 = vshll.u32 %v2844_v6, 16  ;;  %v2850_v20 = vld [vmem:[#allocation2 + $0x180] sm:$0xf] }
 0x1c8   : > { %2764 = vst.msk [vmem:[#allocation3 + $0x150] sm:$0xf] %vm2721_vm10, %v2614_v10  ;;  %v3264_v57 = vor.u32 %v3262_v56, %v3261_v27  ;;  %v2849_v10 = vld [vmem:[#allocation2 + $0x17c] sm:$0xf]  ;;  %v3287_v38 = vsel %vm11969_vm3, %v3279_v45, %v3286_v30  ;;  %v3355_v37 = vshll.u32 %v2847_v28, 16  ;;  %v3319_v33 = vrot.slane %v13533_v53, 4 }
 0x1c9   : > { %3564 = vrot.lane.b32.xlu1 %v3167_v52, %s11676_s8  ;;  %v2616_v32 = vpop.permute.xlu1 %2615  ;;  %v13517_v52 = vrot.slane %v3290_v19, 7  ;;  %v3323_v42 = vrot.slane %v3321_v49, 7  ;;  %v3324_v19 = vshll.u32 %v2843_v3, 16  ;;  %v13552_v58 = vrot.slane %v3352_v34, 7  ;;  %v444_v27 = vld [vmem:[#allocation2 + $0x1c4] sm:$0x8] }
 0x1ca   : > { %3570 = vrot.lane.b32.xlu0 %v3198_v22, %s11676_s8  ;;  %2765 = vst.msk [vmem:[#allocation3 + $0x158] sm:$0xf] %vm2721_vm10, %v2616_v32  ;;  %v2841_v22 = vld [vmem:[#allocation2 + $0x154] sm:$0x8]  ;;  %v3265_v7 = vsel %vm11969_vm3, %v3257_v8, %v3264_v57  ;;  %v3370_v5 = vshrl.u32 %v2849_v10, 16  ;;  %v3361_v11 = vshrl.u32 %v2848_v35, 16 }
 0x1cb   : > { %v2618_v4 = vpop.permute.xlu0 %2617  ;;  %v3295_v46 = vor.u32 %v3293_v39, %v13517_v52  ;;  %v3307_v51 = vshrl.u32 %v2841_v22, 16  ;;  %v3297_v32 = vrot.slane %v13517_v52, 4  ;;  %v3328_v15 = vrot.slane %v3323_v42, 4  ;;  %v2852_v52 = vld [vmem:[#allocation2 + $0x190] sm:$0xf] }
 0x1cc   : > { %2766 = vst.msk [vmem:[#allocation3 + $0x160] sm:$0xf] %vm2721_vm10, %v2618_v4  ;;  %v3335_v4 = vor.u32 %v3333_v40, %v13545_v62  ;;  %v3326_v39 = vor.u32 %v3324_v19, %v3323_v42  ;;  %v3342_v36 = vshll.u32 %v2845_v55, 16  ;;  %v3357_v8 = vor.u32 %v3355_v37, %v13552_v58  ;;  %v2854_v3 = vld [vmem:[#allocation2 + $0x198] sm:$0xf] }
 0x1cd   : > { %3568 = vrot.lane.b32.xlu1 %v3185_v60, %s11676_s8  ;;  %v2620_v50 = vpop.permute.xlu1 %2619  ;;  %v3315_v60 = vshll.u32 %v2842_v9, 16  ;;  %v3296_v13 = vsel %vm11969_vm3, %v3288_v48, %v3295_v46  ;;  %v11001_v18 = vrot.slane %v3307_v51, 11  ;;  %v13567_v26 = vrot.slane %v3370_v5, 7  ;;  %v2851_v46 = vld [vmem:[#allocation2 + $0x18c] sm:$0x8] }
 0x1ce   : > { %3574 = vrot.lane.b32.xlu0 %v3216_v54, %s11676_s8  ;;  %2767 = vst.msk [vmem:[#allocation3 + $0x168] sm:$0xf] %vm2721_vm10, %v2620_v50  ;;  %v3301_v54 = vrot.slane %v3299_v47, 7  ;;  %v445_v47 = vsel %vm11963_vm2, 0, %v444_v27  ;;  %v3373_v57 = vshll.u32 %v2849_v10, 16  ;;  %v3379_v48 = vshrl.u32 %v2850_v20, 16 }
 0x1cf   : > { %v2622_v59 = vpop.permute.xlu0 %2621  ;;  %v3317_v24 = vor.u32 %v3315_v60, %v13533_v53  ;;  %446 = vst [vmem:[#allocation2 + $0x1c4] sm:$0x8] %v445_v47  ;;  %v3327_v53 = vsel %vm11969_vm3, %v3319_v33, %v3326_v39  ;;  %v3337_v51 = vrot.slane %v13545_v62, 4  ;;  %v3364_v60 = vshll.u32 %v2848_v35, 16  ;;  %v2853_v30 = vld [vmem:[#allocation2 + $0x194] sm:$0xf] }
 0x1d0   : > { %2768 = vst.msk [vmem:[#allocation3 + $0x170] sm:$0xf] %vm2721_vm10, %v2622_v59  ;;  %v3304_v31 = vor.u32 %v3302_v25, %v3301_v54  ;;  %v3336_v59 = vsel %vm11969_vm3, %v3328_v15, %v3335_v4  ;;  %v3375_v45 = vor.u32 %v3373_v57, %v13567_v26  ;;  %v3382_v34 = vshll.u32 %v2850_v20, 16  ;;  %v2855_v10 = vld [vmem:[#allocation2 + $0x19c] sm:$0xf] }
 0x1d1   : > { %3572 = vrot.lane.b32.xlu1 %v3207_v16, %s11676_s8  ;;  %v2624_v21 = vpop.permute.xlu1 %2623  ;;  %v2846_v16 = vld [vmem:[#allocation2 + $0x170] sm:$0x8]  ;;  %v3318_v56 = vsel %vm11969_vm3, %v11001_v18, %v3317_v24  ;;  %v3401_v24 = vshrl.u32 %v2853_v30, 16  ;;  %v3413_v35 = vshll.u32 %v2854_v3, 16  ;;  %v3404_v27 = vshll.u32 %v2853_v30, 16 }
 0x1d2   : > { %3578 = vrot.lane.b32.xlu0 %v3238_v14, %s11676_s8  ;;  %2769 = vst.msk [vmem:[#allocation3 + $0x178] sm:$0xf] %vm2721_vm10, %v2624_v21  ;;  %v3339_v14 = vshrl.u32 %v2845_v55, 16  ;;  %v3347_v9 = vshrl.u32 %v2846_v16, 16  ;;  %v3305_v50 = vsel %vm11969_vm3, %v3297_v32, %v3304_v31  ;;  %v3392_v21 = vshrl.u32 %v2852_v52, 16 }
 0x1d3   : > { %v2626_v0 = vpop.permute.xlu0 %2625  ;;  %v3381_v55 = vrot.slane %v3379_v48, 7  ;;  %v3359_v16 = vrot.slane %v13552_v58, 4  ;;  %v2856_v31 = vld [vmem:[#allocation2 + $0x1a8] sm:$0x8]  ;;  %v3377_v58 = vrot.slane %v13567_v26, 4  ;;  %v3403_v5 = vrot.slane %v3401_v24, 7 }
 0x1d4   : > { %2770 = vst.msk [vmem:[#allocation3 + $0x180] sm:$0xf] %vm2721_vm10, %v2626_v0  ;;  %v13582_v49 = vrot.slane %v3392_v21, 7  ;;  %v3395_v0 = vshll.u32 %v2852_v52, 16  ;;  %v2858_v15 = vld [vmem:[#allocation2 + $0x1b0] sm:$0xf] }
 0x1d5   : > { %3576 = vrot.lane.b32.xlu1 %v3225_v63, %s11676_s8  ;;  %v2628_v61 = vpop.permute.xlu1 %2627  ;;  %v3422_v57 = vshll.u32 %v2855_v10, 16  ;;  %vm10686_vm5 = vcmask 1043459   ;;  %vm10688_vm7 = vcmask 1044484   ;;  %vm10690_vm9 = vcmask 1045509  }
 0x1d6   : > { %3582 = vrot.lane.b32.xlu0 %v3256_v43, %s11676_s8  ;;  %2771 = vst.msk [vmem:[#allocation3 + $0x188] sm:$0xf] %vm2721_vm10, %v2628_v61  ;;  %v3341_v43 = vrot.slane %v3339_v14, 7  ;;  %v3410_v61 = vshrl.u32 %v2854_v3, 16  ;;  %v3397_v19 = vor.u32 %v3395_v0, %v13582_v49 }
 0x1d7   : > { %v2630_v23 = vpop.permute.xlu0 %2629 }
 0x1d8   : > { %2772 = vst.msk [vmem:[#allocation3 + $0x190] sm:$0xf] %vm2721_vm10, %v2630_v23  ;;  %v3344_v2 = vor.u32 %v3342_v36, %v3341_v43  ;;  %v13592_v14 = vrot.slane %v3410_v61, 7  ;;  %v2859_v23 = vld [vmem:[#allocation2 + $0x1b4] sm:$0xf]  ;;  %v3408_v43 = vrot.slane %v3403_v5, 4 }
 0x1d9   : > { %3580 = vrot.lane.b32.xlu1 %v3247_v12, %s11676_s8  ;;  %v11002_v12 = vrot.slane %v3347_v9, 11  ;;  %v3384_v9 = vor.u32 %v3382_v34, %v3381_v55 }
 0x1da   : > { %3586 = vrot.lane.b32.xlu0 %v3278_v17, %s11676_s8  ;;  %v3363_v17 = vrot.slane %v3361_v11, 7  ;;  %v3345_v62 = vsel %vm11969_vm3, %v3337_v51, %v3344_v2  ;;  %v3450_v11 = vshrl.u32 %v2859_v23, 16  ;;  %v3415_v36 = vor.u32 %v3413_v35, %v13592_v14  ;;  %v2861_v2 = vld [vmem:[#allocation2 + $0x1c4] sm:$0x8] }
 0x1db   : > { %v2634_v22 = vpop.permute.xlu0 %2633  ;;  %v3358_v54 = vsel %vm11969_vm3, %v11002_v12, %v3357_v8  ;;  %v3385_v47 = vsel %vm11969_vm3, %v3377_v58, %v3384_v9  ;;  %v3399_v12 = vrot.slane %v13582_v49, 4  ;;  %v3406_v8 = vor.u32 %v3404_v27, %v3403_v5 }
 0x1dc   : > { %v2632_v63 = vpop.permute.xlu1 %2631  ;;  %2774 = vst.msk [vmem:[#allocation3 + $0x1a0] sm:$0xf] %vm2721_vm10, %v2634_v22  ;;  %v3368_v25 = vrot.slane %v3363_v17, 4  ;;  %v3366_v18 = vor.u32 %v3364_v60, %v3363_v17  ;;  %v3441_v22 = vshrl.u32 %v2858_v15, 16  ;;  %v2860_v17 = vld [vmem:[#allocation2 + $0x1b8] sm:$0xf]  ;;  %v3416_v3 = vsel %vm11969_vm3, %v3408_v43, %v3415_v36 }
 0x1dd   : > { %3584 = vrot.lane.b32.xlu1 %v3265_v7, %s11676_s8  ;;  %2773 = vst.msk [vmem:[#allocation3 + $0x198] sm:$0xf] %vm2721_vm10, %v2632_v63  ;;  %v3387_v7 = vshrl.u32 %v2851_v46, 16  ;;  %v13614_v48 = vrot.slane %v3450_v11, 7  ;;  %v3453_v46 = vshll.u32 %v2859_v23, 16  ;;  %v3459_v30 = vshrl.u32 %v2860_v17, 16 }
 0x1de   : > { %3590 = vrot.lane.b32.xlu0 %v3296_v13, %s11676_s8  ;;  %v2857_v13 = vld [vmem:[#allocation2 + $0x1ac] sm:$0xf]  ;;  %v3376_v40 = vsel %vm11969_vm3, %v3368_v25, %v3375_v45  ;;  %v3367_v37 = vsel %vm11969_vm3, %v3359_v16, %v3366_v18  ;;  %v3443_v60 = vrot.slane %v3441_v22, 7  ;;  %v3417_v25 = vrot.slane %v13592_v14, 4 }
 0x1df   : > { %v3432_v32 = vshrl.u32 %v2857_v13, 16  ;;  %v11003_v42 = vrot.slane %v3387_v7, 11  ;;  %v3435_v33 = vshll.u32 %v2857_v13, 16  ;;  %v3444_v49 = vshll.u32 %v2858_v15, 16  ;;  %v2863_v13 = vld [vmem:[#allocation2 + $0x1cc] sm:$0xf] }
 0x1e0   : > { %v2636_v6 = vpop.permute.xlu1 %2635  ;;  %v3448_v0 = vrot.slane %v3443_v60, 4  ;;  %v3455_v61 = vor.u32 %v3453_v46, %v13614_v48  ;;  %v3467_v16 = vshrl.u32 %v2861_v2, 16  ;;  %v3457_v5 = vrot.slane %v13614_v48, 4  ;;  %v3763_v48 = vld [vmem:[#allocation2 + $0x24] sm:$0xf] }
 0x1e1   : > { %3588 = vrot.lane.b32.xlu1 %v3287_v38, %s11676_s8  ;;  %2775 = vst.msk [vmem:[#allocation3 + $0x1a8] sm:$0xf] %vm2721_vm10, %v2636_v6  ;;  %v2638_v28 = vpop.permute.xlu0 %2637  ;;  %v13601_v4 = vrot.slane %v3432_v32, 7  ;;  %v3398_v39 = vsel %vm11969_vm3, %v11003_v42, %v3397_v19  ;;  %v2862_v6 = vld [vmem:[#allocation2 + $0x1c8] sm:$0xf]  ;;  %v3481_v32 = vshrl.u32 %v2863_v13, 16  ;;  %v3446_v42 = vor.u32 %v3444_v49, %v3443_v60 }
 0x1e2   : > { %3594 = vrot.lane.b32.xlu0 %v3318_v56, %s11676_s8  ;;  %2776 = vst.msk [vmem:[#allocation3 + $0x1b0] sm:$0xf] %vm2721_vm10, %v2638_v28  ;;  %v3419_v56 = vshrl.u32 %v2855_v10, 16  ;;  %v2864_v28 = vld [vmem:[#allocation2 + $0x1d0] sm:$0xf]  ;;  %v3475_v18 = vshll.u32 %v2862_v6, 16  ;;  %v3456_v19 = vsel %vm11969_vm3, %v3448_v0, %v3455_v61 }
 0x1e3   : > { %v3437_v21 = vor.u32 %v3435_v33, %v13601_v4  ;;  %v3490_v24 = vshrl.u32 %v2864_v28, 16  ;;  %v3462_v10 = vshll.u32 %v2860_v17, 16  ;;  %v11005_v35 = vrot.slane %v3467_v16, 11  ;;  %v3764_v2 = vld [vmem:[#allocation2 + $0x28] sm:$0xf] }
 0x1e4   : > { %v3421_v26 = vrot.slane %v3419_v56, 7  ;;  %v3493_v9 = vshll.u32 %v2864_v28, 16  ;;  %v3483_v56 = vrot.slane %v3481_v32, 7  ;;  %v3769_v49 = vld [vmem:[#allocation2 + $0x48] sm:$0xf] }
 0x1e5   : > { %3592 = vrot.lane.b32.xlu1 %v3305_v50, %s11676_s8  ;;  %v3427_v50 = vshrl.u32 %v2856_v31, 16  ;;  %v3492_v58 = vrot.slane %v3490_v24, 7  ;;  %v3768_v0 = vld [vmem:[#allocation2 + $0x44] sm:$0xf] }
 0x1e6   : > { %3598 = vrot.lane.b32.xlu0 %v3336_v59, %s11676_s8  ;;  %v3424_v45 = vor.u32 %v3422_v57, %v3421_v26 }
 0x1e7   : > { %v11004_v59 = vrot.slane %v3427_v50, 11 }
 0x1e8   : > { %v3425_v31 = vsel %vm11969_vm3, %v3417_v25, %v3424_v45  ;;  %v3766_v45 = vld [vmem:[#allocation2 + $0x30] sm:$0xf] }
 0x1e9   : > { %3596 = vrot.lane.b32.xlu1 %v3327_v53, %s11676_s8  ;;  %v3472_v53 = vshrl.u32 %v2862_v6, 16  ;;  %v3438_v7 = vsel %vm11969_vm3, %v11004_v59, %v3437_v21  ;;  %v3497_v59 = vrot.slane %v3492_v58, 4 }
 0x1ea   : > { %3602 = vrot.lane.b32.xlu0 %v3358_v54, %s11676_s8  ;;  %v2642_v38 = vpop.permute.xlu0 %2641  ;;  %v3407_v54 = vsel %vm11969_vm3, %v3399_v12, %v3406_v8 }
 0x1eb   : > { %v2640_v63 = vpop.permute.xlu1 %2639  ;;  %2778 = vst.msk [vmem:[#allocation3 + $0x1c0] sm:$0xf] %vm2721_vm10, %v2642_v38  ;;  %v3474_v34 = vrot.slane %v3472_v53, 7  ;;  %v3439_v38 = vrot.slane %v13601_v4, 4  ;;  %v3484_v4 = vshll.u32 %v2863_v13, 16 }
 0x1ec   : > { %2777 = vst.msk [vmem:[#allocation3 + $0x1b8] sm:$0xf] %vm2721_vm10, %v2640_v63  ;;  %v2865_v63 = vld [vmem:[#allocation2 + $0x1d4] sm:$0xf]  ;;  %v3771_v13 = vld [vmem:[#allocation2 + $0x5c] sm:$0xf] }
 0x1ed   : > { %3600 = vrot.lane.b32.xlu1 %v3345_v62, %s11676_s8  ;;  %v3477_v23 = vor.u32 %v3475_v18, %v3474_v34  ;;  %v3447_v15 = vsel %vm11969_vm3, %v3439_v38, %v3446_v42  ;;  %v3499_v50 = vshrl.u32 %v2865_v63, 16  ;;  %v3502_v6 = vshll.u32 %v2865_v63, 16  ;;  %v3773_v18 = vld [vmem:[#allocation2 + $0x64] sm:$0xf]  ;;  %v3777_v42 = vld [vmem:[#allocation2 + $0x80] sm:$0xf] }
 0x1ee   : > { %3606 = vrot.lane.b32.xlu0 %v3376_v40, %s11676_s8  ;;  %v2646_v52 = vpop.permute.xlu0 %2645  ;;  %v3461_v40 = vrot.slane %v3459_v30, 7 }
 0x1ef   : > { %v2644_v20 = vpop.permute.xlu1 %2643  ;;  %2780 = vst.msk [vmem:[#allocation3 + $0x1d0] sm:$0xf] %vm2721_vm10, %v2646_v52  ;;  %v3478_v11 = vsel %vm11969_vm3, %v11005_v35, %v3477_v23  ;;  %v3488_v52 = vrot.slane %v3483_v56, 4  ;;  %v3501_v22 = vrot.slane %v3499_v50, 7  ;;  %v3779_v23 = vld [vmem:[#allocation2 + $0x94] sm:$0xf] }
 0x1f0   : > { %2779 = vst.msk [vmem:[#allocation3 + $0x1c8] sm:$0xf] %vm2721_vm10, %v2644_v20  ;;  %v3464_v27 = vor.u32 %v3462_v10, %v3461_v40  ;;  %v3479_v20 = vrot.slane %v3474_v34, 4  ;;  %v3770_v34 = vld [vmem:[#allocation2 + $0x4c] sm:$0xf] }
 0x1f1   : > { %3604 = vrot.lane.b32.xlu1 %v3367_v37, %s11676_s8  ;;  %v3504_v21 = vor.u32 %v3502_v6, %v3501_v22  ;;  %v3775_v10 = vld [vmem:[#allocation2 + $0x78] sm:$0xf]  ;;  %v3782_v50 = vld [vmem:[#allocation2 + $0xa0] sm:$0xf]  ;;  %v3789_v6 = vld [vmem:[#allocation2 + $0xd4] sm:$0xf] }
 0x1f2   : > { %3610 = vrot.lane.b32.xlu0 %v3398_v39, %s11676_s8  ;;  %v3495_v39 = vor.u32 %v3493_v9, %v3492_v58  ;;  %v3465_v36 = vsel %vm11969_vm3, %v3457_v5, %v3464_v27  ;;  %v3778_v58 = vld [vmem:[#allocation2 + $0x84] sm:$0xf]  ;;  %v3780_v27 = vld [vmem:[#allocation2 + $0x98] sm:$0xf] }
 0x1f4   : > { %v2650_v51 = vpop.permute.xlu0 %2649  ;;  %v3496_v8 = vsel %vm11969_vm3, %v3488_v52, %v3495_v39  ;;  %v3784_v39 = vld [vmem:[#allocation2 + $0xb4] sm:$0xf] }
 0x1f5   : > { %3608 = vrot.lane.b32.xlu1 %v3385_v47, %s11676_s8  ;;  %2782 = vst.msk [vmem:[#allocation3 + $0x1e0] sm:$0xf] %vm2721_vm10, %v2650_v51  ;;  %v3486_v47 = vor.u32 %v3484_v4, %v3483_v56  ;;  %v3765_v51 = vld [vmem:[#allocation2 + $0x2c] sm:$0xf] }
 0x1f6   : > { %3614 = vrot.lane.b32.xlu0 %v3416_v3, %s11676_s8  ;;  %v3505_v3 = vsel %vm11969_vm3, %v3497_v59, %v3504_v21  ;;  %v3790_v21 = vld [vmem:[#allocation2 + $0xd8] sm:$0xf] }
 0x1f7   : > { %v2648_v55 = vpop.permute.xlu1 %2647  ;;  %v3487_v57 = vsel %vm11969_vm3, %v3479_v20, %v3486_v47  ;;  %v3786_v47 = vld [vmem:[#allocation2 + $0xbc] sm:$0xf] }
 0x1f8   : > { %2781 = vst.msk [vmem:[#allocation3 + $0x1d8] sm:$0xf] %vm2721_vm10, %v2648_v55  ;;  %v2654_v62 = vpop.permute.xlu0 %2653 }
 0x1f9   : > { %3612 = vrot.lane.b32.xlu1 %v3407_v54, %s11676_s8  ;;  %2784 = vst.msk [vmem:[#allocation3 + $0x1f0] sm:$0xf] %vm2721_vm10, %v2654_v62  ;;  %v3767_v54 = vld [vmem:[#allocation2 + $0x40] sm:$0xf] }
 0x1fa   : > { %3618 = vrot.lane.b32.xlu0 %v3438_v7, %s11676_s8  ;;  %v3772_v62 = vld [vmem:[#allocation2 + $0x60] sm:$0xf] }
 0x1fb   : > { %v2652_v14 = vpop.permute.xlu1 %2651 }
 0x1fc   : > { %2783 = vst.msk [vmem:[#allocation3 + $0x1e8] sm:$0xf] %vm2721_vm10, %v2652_v14  ;;  %v3507_v37 = vpop.permute.xlu0 %3506  ;;  %v3776_v14 = vld [vmem:[#allocation2 + $0x7c] sm:$0xf] }
 0x1fd   : > { %3616 = vrot.lane.b32.xlu1 %v3425_v31, %s11676_s8  ;;  %3699 = vst.msk [vmem:[#allocation3] sm:$0xf] %vm3698_vm11, %v3507_v37  ;;  %v3774_v31 = vld [vmem:[#allocation2 + $0x68] sm:$0xf]  ;;  %v3781_v37 = vld [vmem:[#allocation2 + $0x9c] sm:$0xf] }
 0x1fe   : > { %3622 = vrot.lane.b32.xlu0 %v3456_v19, %s11676_s8 }
 0x1ff   : > { %v2656_v33 = vpop.permute.xlu1 %2655 }
 0x200   : > { %2785 = vst.msk [vmem:[#allocation3 + $0x1f8] sm:$0xf] %vm2721_vm10, %v2656_v33  ;;  %v3511_v43 = vpop.permute.xlu0 %3510  ;;  %vm10692_vm10 = vcmask 1046534  }
 0x201   : > { %3620 = vrot.lane.b32.xlu1 %v3447_v15, %s11676_s8  ;;  %3701 = vst.msk [vmem:[#allocation3 + $0x10] sm:$0xf] %vm3698_vm11, %v3511_v43  ;;  %v3783_v15 = vld [vmem:[#allocation2 + $0xb0] sm:$0xf] }
 0x202   : > { %3626 = vrot.lane.b32.xlu0 %v3478_v11, %s11676_s8  ;;  %v3785_v11 = vld [vmem:[#allocation2 + $0xb8] sm:$0xf] }
 0x203   : > { %v3509_v12 = vpop.permute.xlu1 %3508 }
 0x204   : > { %3700 = vst.msk [vmem:[#allocation3 + $0x8] sm:$0xf] %vm3698_vm11, %v3509_v12  ;;  %v3515_v26 = vpop.permute.xlu0 %3514 }
 0x205   : > { %3624 = vrot.lane.b32.xlu1 %v3465_v36, %s11676_s8  ;;  %3703 = vst.msk [vmem:[#allocation3 + $0x20] sm:$0xf] %vm3698_vm11, %v3515_v26  ;;  %v3787_v36 = vld [vmem:[#allocation2 + $0xcc] sm:$0xf] }
 0x206   : > { %3630 = vrot.lane.b32.xlu0 %v3496_v8, %s11676_s8  ;;  %v3788_v8 = vld [vmem:[#allocation2 + $0xd0] sm:$0xf] }
 0x207   : > { %v3513_v17 = vpop.permute.xlu1 %3512 }
 0x208   : > { %3702 = vst.msk [vmem:[#allocation3 + $0x18] sm:$0xf] %vm3698_vm11, %v3513_v17  ;;  %v3519_v46 = vpop.permute.xlu0 %3518 }
 0x209   : > { %3628 = vrot.lane.b32.xlu1 %v3487_v57, %s11676_s8  ;;  %3705 = vst.msk [vmem:[#allocation3 + $0x30] sm:$0xf] %vm3698_vm11, %v3519_v46  ;;  %v3791_v57 = vld [vmem:[#allocation2 + $0xe8] sm:$0xf] }
 0x20a   : > { %3891 = vrot.lane.b32.xlu0 %v3763_v48, %s11677_s9  ;;  %v3793_v48 = vld [vmem:[#allocation2 + $0xf0] sm:$0xf] }
 0x20b   : > { %v3517_v53 = vpop.permute.xlu1 %3516 }
 0x20c   : > { %3704 = vst.msk [vmem:[#allocation3 + $0x28] sm:$0xf] %vm3698_vm11, %v3517_v53  ;;  %v3523_v60 = vpop.permute.xlu0 %3522 }
 0x20d   : > { %3632 = vrot.lane.b32.xlu1 %v3505_v3, %s11676_s8  ;;  %3707 = vst.msk [vmem:[#allocation3 + $0x40] sm:$0xf] %vm3698_vm11, %v3523_v60  ;;  %v3792_v3 = vld [vmem:[#allocation2 + $0xec] sm:$0xf]  ;;  %s11259_s8 = sshll.u32 %s11658_s16, 5 }
 0x20e   : > { %3895 = vrot.lane.b32.xlu0 %v3765_v51, %s11677_s9  ;;  %v3795_v51 = vld [vmem:[#allocation2 + $0x104] sm:$0xf] }
 0x20f   : > { %v3521_v28 = vpop.permute.xlu1 %3520 }
 0x210   : > { %3706 = vst.msk [vmem:[#allocation3 + $0x38] sm:$0xf] %vm3698_vm11, %v3521_v28  ;;  %v3527_v25 = vpop.permute.xlu0 %3526 }
 0x211   : > { %3893 = vrot.lane.b32.xlu1 %v3764_v2, %s11677_s9  ;;  %3709 = vst.msk [vmem:[#allocation3 + $0x50] sm:$0xf] %vm3698_vm11, %v3527_v25  ;;  %v3794_v2 = vld [vmem:[#allocation2 + $0xf4] sm:$0xf] }
 0x212   : > { %3899 = vrot.lane.b32.xlu0 %v3767_v54, %s11677_s9  ;;  %v3797_v54 = vld [vmem:[#allocation2 + $0x10c] sm:$0xf] }
 0x213   : > { %v3525_v30 = vpop.permute.xlu1 %3524 }
 0x214   : > { %3708 = vst.msk [vmem:[#allocation3 + $0x48] sm:$0xf] %vm3698_vm11, %v3525_v30  ;;  %v3531_v7 = vpop.permute.xlu0 %3530 }
 0x215   : > { %3897 = vrot.lane.b32.xlu1 %v3766_v45, %s11677_s9  ;;  %3711 = vst.msk [vmem:[#allocation3 + $0x60] sm:$0xf] %vm3698_vm11, %v3531_v7  ;;  %v3796_v45 = vld [vmem:[#allocation2 + $0x108] sm:$0xf] }
 0x216   : > { %3903 = vrot.lane.b32.xlu0 %v3769_v49, %s11677_s9  ;;  %v3799_v49 = vld [vmem:[#allocation2 + $0x120] sm:$0xf]  ;;  %v4149_v7 = vld [vmem:[#allocation2 + $0x28] sm:$0xf] }
 0x217   : > { %v3529_v61 = vpop.permute.xlu1 %3528 }
 0x218   : > { %3710 = vst.msk [vmem:[#allocation3 + $0x58] sm:$0xf] %vm3698_vm11, %v3529_v61  ;;  %v3535_v55 = vpop.permute.xlu0 %3534  ;;  %v4148_v61 = vld [vmem:[#allocation2 + $0x24] sm:$0xf] }
 0x219   : > { %3901 = vrot.lane.b32.xlu1 %v3768_v0, %s11677_s9  ;;  %3713 = vst.msk [vmem:[#allocation3 + $0x70] sm:$0xf] %vm3698_vm11, %v3535_v55  ;;  %v4238_v55 = vshll.u32 %v4149_v7, 16 }
 0x21a   : > { %3907 = vrot.lane.b32.xlu0 %v3771_v13, %s11677_s9  ;;  %v3798_v13 = vld [vmem:[#allocation2 + $0x110] sm:$0xf] }
 0x21b   : > { %v3533_v16 = vpop.permute.xlu1 %3532 }
 0x21c   : > { %3712 = vst.msk [vmem:[#allocation3 + $0x68] sm:$0xf] %vm3698_vm11, %v3533_v16  ;;  %v3539_v24 = vpop.permute.xlu0 %3538 }
 0x21d   : > { %3905 = vrot.lane.b32.xlu1 %v3770_v34, %s11677_s9  ;;  %3715 = vst.msk [vmem:[#allocation3 + $0x80] sm:$0xf] %vm3698_vm11, %v3539_v24  ;;  %v4242_v34 = vshrl.u32 %v4149_v7, 16  ;;  %v4189_v24 = vld [vmem:[#allocation2 + $0x108] sm:$0xf] }
 0x21e   : > { %3911 = vrot.lane.b32.xlu0 %v3773_v18, %s11677_s9  ;;  %v3801_v18 = vld [vmem:[#allocation2 + $0x128] sm:$0xf] }
 0x21f   : > { %v3537_v40 = vpop.permute.xlu1 %3536 }
 0x220   : > { %3714 = vst.msk [vmem:[#allocation3 + $0x78] sm:$0xf] %vm3698_vm11, %v3537_v40  ;;  %v3543_v32 = vpop.permute.xlu0 %3542  ;;  %v4229_v40 = vshrl.u32 %v4148_v61, 16 }
 0x221   : > { %3909 = vrot.lane.b32.xlu1 %v3772_v62, %s11677_s9  ;;  %3717 = vst.msk [vmem:[#allocation3 + $0x90] sm:$0xf] %vm3698_vm11, %v3543_v32  ;;  %v3800_v32 = vld [vmem:[#allocation2 + $0x124] sm:$0xf] }
 0x222   : > { %3915 = vrot.lane.b32.xlu0 %v3775_v10, %s11677_s9  ;;  %v4232_v10 = vshll.u32 %v4148_v61, 16 }
 0x223   : > { %v3541_v38 = vpop.permute.xlu1 %3540 }
 0x224   : > { %3716 = vst.msk [vmem:[#allocation3 + $0x88] sm:$0xf] %vm3698_vm11, %v3541_v38  ;;  %v3547_v19 = vpop.permute.xlu0 %3546  ;;  %v13744_v38 = vrot.slane %v4238_v55, 5  ;;  %v11501_v55 = vld [vmem:[%s16662_s1 + $0x20] sm:$0xff]  }
 0x225   : > { %3913 = vrot.lane.b32.xlu1 %v3774_v31, %s11677_s9  ;;  %3719 = vst.msk [vmem:[#allocation3 + $0xa0] sm:$0xf] %vm3698_vm11, %v3547_v19  ;;  %v11498_v31 = vld [vmem:[%s16662_s1 + $0x38] sm:$0xff]   ;;  %v4590_v19 = vshll.u32 %v4189_v24, 16 }
 0x226   : > { %3919 = vrot.lane.b32.xlu0 %v3777_v42, %s11677_s9  ;;  %v4188_v42 = vld [vmem:[#allocation2 + $0x104] sm:$0xf] }
 0x227   : > { %v3545_v35 = vpop.permute.xlu1 %3544 }
 0x228   : > { %3718 = vst.msk [vmem:[#allocation3 + $0x98] sm:$0xf] %vm3698_vm11, %v3545_v35  ;;  %v3551_v63 = vpop.permute.xlu0 %3550  ;;  %v4244_v35 = vrot.slane %v4242_v34, 4 }
 0x229   : > { %3917 = vrot.lane.b32.xlu1 %v3776_v14, %s11677_s9  ;;  %3721 = vst.msk [vmem:[#allocation3 + $0xb0] sm:$0xf] %vm3698_vm11, %v3551_v63  ;;  %v4594_v14 = vshrl.u32 %v4189_v24, 16 }
 0x22a   : > { %3923 = vrot.lane.b32.xlu0 %v3779_v23, %s11677_s9  ;;  %v11678_v23 = vmov 0  }
 0x22b   : > { %v3549_v9 = vpop.permute.xlu1 %3548  ;;  %7992 = vmatprep.subr.bf16.mxu0 %v11678_v23  ;;  %11397 = vmatprep.subr.bf16.mxu1 %v11678_v23 }
 0x22c   : > { %3720 = vst.msk [vmem:[#allocation3 + $0xa8] sm:$0xf] %vm3698_vm11, %v3549_v9  ;;  %v3555_v5 = vpop.permute.xlu0 %3554  ;;  %v13747_v9 = vld [vmem:[#allocation2 + $0x2c] sm:$0xf]  ;;  %7993 = vmatpush1.bf16.msra.mxu0 %v11498_v31  ;;  %11406 = vmatpush1.bf16.msra.mxu1 %v11498_v31 }
 0x22d   : > { %3921 = vrot.lane.b32.xlu1 %v3778_v58, %s11677_s9  ;;  %3723 = vst.msk [vmem:[#allocation3 + $0xc0] sm:$0xf] %vm3698_vm11, %v3555_v5  ;;  %v3803_v58 = vld [vmem:[#allocation2 + $0x13c] sm:$0xf]  ;;  %v4231_v5 = vrot.slane %v4229_v40, 4  ;;  %7994 = vmatprep.subr.bf16.mxu0 %v11678_v23 }
 0x22e   : > { %3927 = vrot.lane.b32.xlu0 %v3781_v37, %s11677_s9  ;;  %11398 = vmatprep.subr.bf16.mxu1 %v11678_v23 }
 0x22f   : > { %v3553_v56 = vpop.permute.xlu1 %3552 }
 0x230   : > { %3722 = vst.msk [vmem:[#allocation3 + $0xb8] sm:$0xf] %vm3698_vm11, %v3553_v56  ;;  %v3559_v4 = vpop.permute.xlu0 %3558  ;;  %v3802_v56 = vld [vmem:[#allocation2 + $0x12c] sm:$0xf] }
 0x231   : > { %3925 = vrot.lane.b32.xlu1 %v3780_v27, %s11677_s9  ;;  %3725 = vst.msk [vmem:[#allocation3 + $0xd0] sm:$0xf] %vm3698_vm11, %v3559_v4  ;;  %v4234_v27 = vrot.slane %v4232_v10, 5  ;;  %v4584_v4 = vshll.u32 %v4188_v42, 16  ;;  %v5230_v10 = vld [vmem:[#allocation2 + $0x11c] sm:$0x8] }
 0x232   : > { %3931 = vrot.lane.b32.xlu0 %v3783_v15, %s11677_s9  ;;  %v4581_v15 = vshrl.u32 %v4188_v42, 16 }
 0x233   : > { %v3557_v33 = vpop.permute.xlu1 %3556 }
 0x234   : > { %3724 = vst.msk [vmem:[#allocation3 + $0xc8] sm:$0xf] %vm3698_vm11, %v3557_v33  ;;  %v3563_v52 = vpop.permute.xlu0 %3562  ;;  %v13759_v33 = vrot.slane %v4590_v19, 5 }
 0x235   : > { %3929 = vrot.lane.b32.xlu1 %v3782_v50, %s11677_s9  ;;  %3727 = vst.msk [vmem:[#allocation3 + $0xe0] sm:$0xf] %vm3698_vm11, %v3563_v52  ;;  %v11499_v50 = vld [vmem:[%s16662_s1 + $0x30] sm:$0xff]   ;;  %v4248_v52 = vshll.u32 %v13747_v9, 16 }
 0x236   : > { %3935 = vrot.lane.b32.xlu0 %v3785_v11, %s11677_s9  ;;  %v4245_v11 = vor.u32 %v4244_v35, %v13744_v38  ;;  %7995 = vmatpush1.bf16.msra.mxu0 %v11499_v50 }
 0x237   : > { %v3561_v43 = vpop.permute.xlu1 %3560  ;;  %7996 = vmatprep.subr.bf16.mxu0 %v11678_v23  ;;  %11407 = vmatpush1.bf16.msra.mxu1 %v11499_v50 }
 0x238   : > { %3726 = vst.msk [vmem:[#allocation3 + $0xd8] sm:$0xf] %vm3698_vm11, %v3561_v43  ;;  %v3567_v20 = vpop.permute.xlu0 %3566  ;;  %v4596_v43 = vrot.slane %v4594_v14, 4  ;;  %11399 = vmatprep.subr.bf16.mxu1 %v11678_v23 }
 0x239   : > { %3933 = vrot.lane.b32.xlu1 %v3784_v39, %s11677_s9  ;;  %3729 = vst.msk [vmem:[#allocation3 + $0xf0] sm:$0xf] %vm3698_vm11, %v3567_v20  ;;  %v13763_v39 = vld [vmem:[#allocation2 + $0x40] sm:$0xf]  ;;  %v3805_v20 = vld [vmem:[#allocation2 + $0x144] sm:$0xf] }
 0x23a   : > { %3939 = vrot.lane.b32.xlu0 %v3787_v36, %s11677_s9 }
 0x23b   : > { %v3565_v22 = vpop.permute.xlu1 %3564 }
 0x23c   : > { %3728 = vst.msk [vmem:[#allocation3 + $0xe8] sm:$0xf] %vm3698_vm11, %v3565_v22  ;;  %v3571_v12 = vpop.permute.xlu0 %3570  ;;  %v3804_v22 = vld [vmem:[#allocation2 + $0x140] sm:$0xf] }
 0x23d   : > { %3937 = vrot.lane.b32.xlu1 %v3786_v47, %s11677_s9  ;;  %3731 = vst.msk [vmem:[#allocation3 + $0x100] sm:$0xf] %vm3698_vm11, %v3571_v12  ;;  %v13765_v47 = vld [vmem:[#allocation2 + $0x10c] sm:$0xf]  ;;  %v4235_v12 = vor.u32 %v4234_v27, %v4231_v5  ;;  %v4151_v27 = vld [vmem:[#allocation2 + $0x30] sm:$0xf] }
 0x23e   : > { %3943 = vrot.lane.b32.xlu0 %v3789_v6, %s11677_s9 }
 0x23f   : > { %v3569_v26 = vpop.permute.xlu1 %3568 }
 0x240   : > { %3730 = vst.msk [vmem:[#allocation3 + $0xf8] sm:$0xf] %vm3698_vm11, %v3569_v26  ;;  %v3575_v59 = vpop.permute.xlu0 %3574  ;;  %v4583_v26 = vrot.slane %v4581_v15, 4 }
 0x241   : > { %3941 = vrot.lane.b32.xlu1 %v3788_v8, %s11677_s9  ;;  %3733 = vst.msk [vmem:[#allocation3 + $0x110] sm:$0xf] %vm3698_vm11, %v3575_v59  ;;  %v13768_v8 = vld [vmem:[#allocation2 + $0x44] sm:$0xf]  ;;  %v5276_v59 = vshrl.u32 %v13763_v39, 16 }
 0x242   : > { %3947 = vrot.lane.b32.xlu0 %v3791_v57, %s11677_s9  ;;  %v4586_v57 = vrot.slane %v4584_v4, 5  ;;  %v5288_v31 = vshll.u32 %v13768_v8, 16  ;;  %v5591_v4 = vshrl.u32 %v5230_v10, 16 }
 0x243   : > { %v3573_v17 = vpop.permute.xlu1 %3572  ;;  %v13793_v61 = vrot.slane %v5276_v59, 7  ;;  %v4262_v59 = vshrl.u32 %v4151_v27, 16 }
 0x244   : > { %3732 = vst.msk [vmem:[#allocation3 + $0x108] sm:$0xf] %vm3698_vm11, %v3573_v17  ;;  %v3579_v46 = vpop.permute.xlu0 %3578  ;;  %v11500_v17 = vld [vmem:[%s16662_s1 + $0x28] sm:$0xff]   ;;  %v4587_v7 = vor.u32 %v4586_v57, %v4583_v26  ;;  %v6553_v26 = vld [vmem:[#allocation2 + $0x44] sm:$0xf]  ;;  %v4252_v57 = vshrl.u32 %v13747_v9, 16 }
 0x245   : > { %3945 = vrot.lane.b32.xlu1 %v3790_v21, %s11677_s9  ;;  %3735 = vst.msk [vmem:[#allocation3 + $0x120] sm:$0xf] %vm3698_vm11, %v3579_v46  ;;  %v13774_v21 = vld [vmem:[#allocation2 + $0x124] sm:$0xf]  ;;  %v13781_v46 = vrot.slane %v4248_v52, 5  ;;  %7997 = vmatpush1.bf16.msra.mxu0 %v11500_v17  ;;  %v5283_v50 = vrot.slane %v13793_v61, 4 }
 0x246   : > { %3951 = vrot.lane.b32.xlu0 %v3793_v48, %s11677_s9  ;;  %v4246_v48 = vrot.slane %v4245_v11, 4  ;;  %7998 = vmatprep.subr.bf16.mxu0 %v11678_v23  ;;  %v4604_v9 = vshrl.u32 %v13765_v47, 16 }
 0x247   : > { %v3577_v53 = vpop.permute.xlu1 %3576  ;;  %11408 = vmatpush1.bf16.msra.mxu1 %v11500_v17 }
 0x248   : > { %3734 = vst.msk [vmem:[#allocation3 + $0x118] sm:$0xf] %vm3698_vm11, %v3577_v53  ;;  %v3583_v60 = vpop.permute.xlu0 %3582  ;;  %v4597_v53 = vor.u32 %v4596_v43, %v13759_v33  ;;  %11400 = vmatprep.subr.bf16.mxu1 %v11678_v23  ;;  %v4251_v34 = vsel %vm12019_vm6, %v4246_v48, %v13781_v46 }
 0x249   : > { %3949 = vrot.lane.b32.xlu1 %v3792_v3, %s11677_s9  ;;  %3737 = vst.msk [vmem:[#allocation3 + $0x130] sm:$0xf] %vm3698_vm11, %v3583_v60  ;;  %v5190_v3 = vld [vmem:[#allocation2 + $0x3c] sm:$0x8]  ;;  %7999 = vmatpush1.bf16.msra.mxu0 %v11501_v55 }
 0x24a   : > { %3955 = vrot.lane.b32.xlu0 %v3795_v51, %s11677_s9  ;;  %v4600_v51 = vshll.u32 %v13765_v47, 16  ;;  %8000 = vmatprep.subr.bf16.mxu0 %v11678_v23 }
 0x24b   : > { %v3581_v28 = vpop.permute.xlu1 %3580  ;;  %11409 = vmatpush1.bf16.msra.mxu1 %v11501_v55  ;;  %v11504_v55 = vld [vmem:[%s16662_s1 + $0x8] sm:$0xff]  }
 0x24c   : > { %3736 = vst.msk [vmem:[#allocation3 + $0x128] sm:$0xf] %vm3698_vm11, %v3581_v28  ;;  %v3587_v25 = vpop.permute.xlu0 %3586  ;;  %v13785_v28 = vld [vmem:[#allocation2 + $0x120] sm:$0xf]  ;;  %11401 = vmatprep.subr.bf16.mxu1 %v11678_v23 }
 0x24d   : > { %3953 = vrot.lane.b32.xlu1 %v3794_v2, %s11677_s9  ;;  %3739 = vst.msk [vmem:[#allocation3 + $0x140] sm:$0xf] %vm3698_vm11, %v3587_v25  ;;  %v3807_v2 = vld [vmem:[#allocation2 + $0x158] sm:$0xf]  ;;  %v5596_v24 = vshrl.u32 %v13785_v28, 16 }
 0x24e   : > { %3959 = vrot.lane.b32.xlu0 %v3797_v54, %s11677_s9  ;;  %v5285_v54 = vshrl.u32 %v13768_v8, 16  ;;  %v4258_v8 = vshll.u32 %v4151_v27, 16 }
 0x24f   : > { %v3585_v30 = vpop.permute.xlu1 %3584 }
 0x250   : > { %3738 = vst.msk [vmem:[#allocation3 + $0x138] sm:$0xf] %vm3698_vm11, %v3585_v30  ;;  %v3591_v0 = vpop.permute.xlu0 %3590  ;;  %v5605_v30 = vshrl.u32 %v13774_v21, 16 }
 0x251   : > { %3957 = vrot.lane.b32.xlu1 %v3796_v45, %s11677_s9  ;;  %3741 = vst.msk [vmem:[#allocation3 + $0x150] sm:$0xf] %vm3698_vm11, %v3591_v0  ;;  %v4236_v45 = vrot.slane %v4235_v12, 4  ;;  %v5271_v0 = vshrl.u32 %v5190_v3, 16 }
 0x252   : > { %3963 = vrot.lane.b32.xlu0 %v3799_v49, %s11677_s9  ;;  %v3806_v49 = vld [vmem:[#allocation2 + $0x148] sm:$0xf]  ;;  %v13811_v35 = vrot.slane %v5605_v30, 7 }
 0x253   : > { %v3589_v16 = vpop.permute.xlu1 %3588  ;;  %v13820_v5 = vrot.slane %v5271_v0, 11 }
 0x254   : > { %3740 = vst.msk [vmem:[#allocation3 + $0x148] sm:$0xf] %vm3698_vm11, %v3589_v16  ;;  %v3595_v62 = vpop.permute.xlu0 %3594  ;;  %v4598_v16 = vrot.slane %v4597_v53, 4  ;;  %v13855_v53 = vrot.slane %v5591_v4, 11 }
 0x255   : > { %3961 = vrot.lane.b32.xlu1 %v3798_v13, %s11677_s9  ;;  %3743 = vst.msk [vmem:[#allocation3 + $0x160] sm:$0xf] %vm3698_vm11, %v3595_v62  ;;  %v5279_v13 = vshll.u32 %v13763_v39, 16  ;;  %v6552_v62 = vld [vmem:[#allocation2 + $0x40] sm:$0xf] }
 0x256   : > { %3967 = vrot.lane.b32.xlu0 %v3801_v18, %s11677_s9  ;;  %v13804_v18 = vrot.slane %v4600_v51, 5  ;;  %v6633_v42 = vshrl.u32 %v6552_v62, 16  ;;  %v6636_v19 = vshll.u32 %v6552_v62, 16  ;;  %v13857_v51 = vld [vmem:[#allocation2 + $0x48] sm:$0xf] }
 0x257   : > { %v3593_v63 = vpop.permute.xlu1 %3592  ;;  %v13828_v15 = vor.u32 %v5279_v13, %v13793_v61  ;;  %v6652_v0 = vshll.u32 %v13857_v51, 16  ;;  %v6593_v61 = vld [vmem:[#allocation2 + $0x124] sm:$0xf]  ;;  %v13872_v13 = vrot.slane %v4262_v59, 4  ;;  %v4192_v59 = vld [vmem:[#allocation2 + $0x114] sm:$0x1] }
 0x258   : > { %3742 = vst.msk [vmem:[#allocation3 + $0x158] sm:$0xf] %vm3698_vm11, %v3593_v63  ;;  %v3599_v37 = vpop.permute.xlu0 %3598  ;;  %v5608_v63 = vshll.u32 %v13774_v21, 16  ;;  %v4603_v52 = vsel %vm12019_vm6, %v4598_v16, %v13804_v18  ;;  %v6635_v43 = vrot.slane %v6633_v42, 4  ;;  %v11503_v21 = vld [vmem:[%s16662_s1 + $0x10] sm:$0xff]   ;;  %v6998_v4 = vshrl.u32 %v6593_v61, 16 }
 0x259   : > { %3965 = vrot.lane.b32.xlu1 %v3800_v32, %s11677_s9  ;;  %3745 = vst.msk [vmem:[#allocation3 + $0x170] sm:$0xf] %vm3698_vm11, %v3599_v37  ;;  %v13807_v32 = vrot.slane %v5285_v54, 7  ;;  %v4588_v37 = vrot.slane %v4587_v7, 4  ;;  %v5282_v3 = vsel %vm11969_vm3, %v13820_v5, %v13828_v15  ;;  %v4191_v54 = vld [vmem:[#allocation2 + $0x110] sm:$0xf] }
 0x25a   : > { %3971 = vrot.lane.b32.xlu0 %v3803_v58, %s11677_s9  ;;  %v4241_v58 = vsel %vm12019_vm6, %v4236_v45, %v13744_v38  ;;  %v5598_v38 = vrot.slane %v5596_v24, 7  ;;  %v5610_v12 = vor.u32 %v5608_v63, %v13811_v35  ;;  %v6646_v45 = vshrl.u32 %v6553_v26, 16 }
 0x25b   : > { %v3597_v36 = vpop.permute.xlu1 %3596  ;;  %v5290_v39 = vor.u32 %v5288_v31, %v13807_v32  ;;  %v4593_v48 = vsel %vm12019_vm6, %v4588_v37, %v13759_v33  ;;  %v13866_v7 = vrot.slane %v4258_v8, 5  ;;  %v4610_v62 = vshll.u32 %v4191_v54, 16  ;;  %v13881_v31 = vld [vmem:[#allocation2 + $0x128] sm:$0xf]  ;;  %v6168_v8 = vld [vmem:[#allocation2 + $0x44] sm:$0xf] }
 0x25c   : > { %3744 = vst.msk [vmem:[#allocation3 + $0x168] sm:$0xf] %vm3698_vm11, %v3597_v36  ;;  %v3603_v6 = vpop.permute.xlu0 %3602  ;;  %v6638_v36 = vrot.slane %v6636_v19, 5  ;;  %v6648_v16 = vrot.slane %v6646_v45, 4  ;;  %v13879_v10 = vrot.slane %v6652_v0, 5  ;;  %v6994_v37 = vshll.u32 %v6593_v61, 16 }
 0x25d   : > { %3969 = vrot.lane.b32.xlu1 %v3802_v56, %s11677_s9  ;;  %3747 = vst.msk [vmem:[#allocation3 + $0x180] sm:$0xf] %vm3698_vm11, %v3603_v6  ;;  %v11502_v56 = vld [vmem:[%s16662_s1 + $0x18] sm:$0xff]   ;;  %v5603_v6 = vrot.slane %v5598_v38, 4 }
 0x25e   : > { %3975 = vrot.lane.b32.xlu0 %v3805_v20, %s11677_s9  ;;  %8001 = vmatpush1.bf16.msra.mxu0 %v11502_v56  ;;  %v6639_v17 = vor.u32 %v6638_v36, %v6635_v43  ;;  %v6996_v43 = vrot.slane %v6994_v37, 5  ;;  %v13902_v36 = vrot.slane %v4610_v62, 5 }
 0x25f   : > { %v3601_v60 = vpop.permute.xlu1 %3600  ;;  %8002 = vmatprep.subr.bf16.mxu0 %v11678_v23  ;;  %11410 = vmatpush1.bf16.msra.mxu1 %v11502_v56  ;;  %v4152_v56 = vld [vmem:[#allocation2 + $0x34] sm:$0x1] }
 0x260   : > { %3746 = vst.msk [vmem:[#allocation3 + $0x178] sm:$0xf] %vm3698_vm11, %v3601_v60  ;;  %v3607_v25 = vpop.permute.xlu0 %3606  ;;  %11402 = vmatprep.subr.bf16.mxu1 %v11678_v23  ;;  %v6592_v60 = vld [vmem:[#allocation2 + $0x120] sm:$0xf]  ;;  %v6640_v33 = vrot.slane %v6639_v17, 4 }
 0x261   : > { %3973 = vrot.lane.b32.xlu1 %v3804_v22, %s11677_s9  ;;  %3749 = vst.msk [vmem:[#allocation3 + $0x190] sm:$0xf] %vm3698_vm11, %v3607_v25  ;;  %v5599_v22 = vshll.u32 %v13785_v28, 16  ;;  %v5291_v28 = vsel %vm11969_vm3, %v5283_v50, %v5290_v39  ;;  %v6642_v25 = vshll.u32 %v6553_v26, 16  ;;  %v6985_v24 = vshrl.u32 %v6592_v60, 16 }
 0x262   : > { %3979 = vrot.lane.b32.xlu0 %v3807_v2, %s11677_s9  ;;  %8003 = vmatpush1.bf16.msra.mxu0 %v11503_v21  ;;  %v6988_v42 = vshll.u32 %v6592_v60, 16  ;;  %v4254_v50 = vrot.slane %v4252_v57, 4  ;;  %v4265_v26 = vor.u32 %v13872_v13, %v13866_v7  ;;  %v4268_v57 = vshll.u32 %v4152_v56, 16  ;;  %v6167_v17 = vld [vmem:[#allocation2 + $0x40] sm:$0xf] }
 0x263   : > { %v3605_v40 = vpop.permute.xlu1 %3604  ;;  %v13862_v47 = vor.u32 %v5599_v22, %v5598_v38  ;;  %8004 = vmatprep.subr.bf16.mxu0 %v11678_v23  ;;  %11411 = vmatpush1.bf16.msra.mxu1 %v11503_v21  ;;  %v7004_v38 = vshll.u32 %v13881_v31, 16 }
 0x264   : > { %3748 = vst.msk [vmem:[#allocation3 + $0x188] sm:$0xf] %vm3698_vm11, %v3605_v40  ;;  %v3611_v14 = vpop.permute.xlu0 %3610  ;;  %11403 = vmatprep.subr.bf16.mxu1 %v11678_v23  ;;  %v4614_v40 = vshrl.u32 %v4191_v54, 16  ;;  %v6990_v15 = vrot.slane %v6988_v42, 5  ;;  %v4255_v60 = vor.u32 %v4254_v50, %v13781_v46  ;;  %v13929_v46 = vld [vmem:[#allocation2 + $0x128] sm:$0xf] }
 0x265   : > { %3977 = vrot.lane.b32.xlu1 %v3806_v49, %s11677_s9  ;;  %3751 = vst.msk [vmem:[#allocation3 + $0x1a0] sm:$0xf] %vm3698_vm11, %v3611_v14  ;;  %v5611_v49 = vsel %vm11969_vm3, %v5603_v6, %v5610_v12  ;;  %v5602_v5 = vsel %vm11969_vm3, %v13855_v53, %v13862_v47  ;;  %v7000_v6 = vrot.slane %v6998_v4, 4  ;;  %v13914_v53 = vrot.slane %v7004_v38, 5  ;;  %v6199_v42 = vld [vmem:[#allocation2 + $0x120] sm:$0xf] }
 0x266   : > { %4934 = vrot.lane.b32.xlu0 %v4251_v34, %s11679_s10  ;;  %v6644_v34 = vrot.slane %v6642_v25, 5  ;;  %8005 = vmatpush1.bf16.msra.mxu0 %v11504_v55  ;;  %v4266_v0 = vrot.slane %v4265_v26, 4  ;;  %v4270_v61 = vrot.slane %v4268_v57, 5  ;;  %v5614_v62 = vshrl.u32 %v13929_v46, 16  ;;  %v4153_v38 = vld [vmem:[#allocation2 + $0x40] sm:$0xf] }
 0x267   : > { %v3609_v11 = vpop.permute.xlu1 %3608  ;;  %8006 = vmatprep.subr.bf16.mxu0 %v11678_v23  ;;  %11412 = vmatpush1.bf16.msra.mxu1 %v11504_v55 }
 0x268   : > { %3750 = vst.msk [vmem:[#allocation3 + $0x198] sm:$0xf] %vm3698_vm11, %v3609_v11  ;;  %v3615_v20 = vpop.permute.xlu0 %3614  ;;  %v6645_v14 = vsel %vm12019_vm6, %v6640_v33, %v6644_v34  ;;  %v6649_v63 = vor.u32 %v6648_v16, %v6644_v34  ;;  %v13895_v11 = vrot.slane %v4604_v9, 4  ;;  %11404 = vmatprep.subr.bf16.mxu1 %v11678_v23  ;;  %v7001_v9 = vor.u32 %v7000_v6, %v6996_v43  ;;  %v6200_v33 = vld [vmem:[#allocation2 + $0x124] sm:$0xf] }
 0x269   : > { %4932 = vrot.lane.b32.xlu1 %v4241_v58, %s11679_s10  ;;  %3753 = vst.msk [vmem:[#allocation3 + $0x1b0] sm:$0xf] %vm3698_vm11, %v3615_v20  ;;  %v6987_v58 = vrot.slane %v6985_v24, 4  ;;  %v4616_v20 = vrot.slane %v4614_v40, 4  ;;  %v4256_v24 = vrot.slane %v4255_v60, 4  ;;  %v6656_v40 = vshrl.u32 %v13857_v51, 16 }
 0x26a   : > { %4998 = vrot.lane.b32.xlu0 %v4603_v52, %s11679_s10  ;;  %7400 = vst.msk [vmem:[#allocation3 + $0x4] sm:$0xf] %vm254_vm0, %v6645_v14  ;;  %v11505_v52 = vld [vmem:[%s16662_s1] sm:$0xff]   ;;  %v6650_v39 = vrot.slane %v6649_v63, 4  ;;  %v4607_v25 = vor.u32 %v13895_v11, %v13804_v18  ;;  %v7002_v47 = vrot.slane %v7001_v9, 4  ;;  %v4276_v9 = vshll.u32 %v4153_v38, 16 }
 0x26b   : > { %v3613_v2 = vpop.permute.xlu1 %3612  ;;  %v6991_v22 = vor.u32 %v6990_v15, %v6987_v58  ;;  %8007 = vmatpush1.bf16.msra.mxu0 %v11505_v52  ;;  %11413 = vmatpush1.bf16.msra.mxu1 %v11505_v52  ;;  %v4617_v45 = vor.u32 %v4616_v20, %v13902_v36  ;;  %v6658_v50 = vrot.slane %v6656_v40, 4  ;;  %v4261_v11 = vsel %vm12019_vm6, %v4256_v24, %v13866_v7  ;;  %v4154_v7 = vld [vmem:[#allocation2 + $0x44] sm:$0xf]  ;;  %v6595_v24 = vld [vmem:[#allocation2 + $0x12c] sm:$0xf] }
 0x26c   : > { %3752 = vst.msk [vmem:[#allocation3 + $0x1a8] sm:$0xf] %vm3698_vm11, %v3613_v2  ;;  %v3619_v30 = vpop.permute.xlu0 %3618  ;;  %v6655_v21 = vsel %vm12019_vm6, %v6650_v39, %v13879_v10  ;;  %8022 = vmatprep.subr.bf16.mxu0 %v11678_v23  ;;  %v13919_v2 = vld [vmem:[#allocation2 + $0x48] sm:$0xf]  ;;  %11405 = vmatprep.subr.bf16.mxu1 %v11678_v23  ;;  %v13932_v23 = vld [vmem:[#allocation2 + $0x12c] sm:$0xf]  ;;  %v7007_v16 = vsel %vm12019_vm6, %v7002_v47, %v13914_v53 }
 0x26d   : > { %4996 = vrot.lane.b32.xlu1 %v4593_v48, %s11679_s10  ;;  %3755 = vst.msk [vmem:[#allocation3 + $0x1c0] sm:$0xf] %vm3698_vm11, %v3619_v30  ;;  %v6992_v54 = vrot.slane %v6991_v22, 4  ;;  %v4620_v30 = vshll.u32 %v4192_v59, 16  ;;  %v5294_v34 = vshrl.u32 %v13919_v2, 16  ;;  %v4618_v14 = vrot.slane %v4617_v45, 4 }
 0x26e   : > { %5912 = vrot.lane.b32.xlu0 %v5291_v28, %s11680_s28  ;;  %7401 = vst.msk [vmem:[#allocation3 + $0xc] sm:$0xf] %vm254_vm0, %v6655_v21  ;;  %v11506_v28 = vld [vmem:[%s16662_s1 + $0x40] sm:$0xff]   ;;  %7433 = vst.msk [vmem:[#allocation3 + $0x10c] sm:$0xf] %vm254_vm0, %v7007_v16  ;;  %v5623_v58 = vshrl.u32 %v13932_v23, 16  ;;  %v6659_v60 = vor.u32 %v6658_v50, %v13879_v10 }
 0x26f   : > { %v3617_v19 = vpop.permute.xlu1 %3616  ;;  %8023 = vmatpush2.bf16.msra.mxu0 %v11506_v28  ;;  %v6997_v55 = vsel %vm12019_vm6, %v6992_v54, %v6996_v43  ;;  %11414 = vmatpush2.bf16.msra.mxu1 %v11506_v28  ;;  %v4622_v63 = vrot.slane %v4620_v30, 5  ;;  %v5296_v15 = vrot.slane %v5294_v34, 7  ;;  %v5297_v4 = vshll.u32 %v13919_v2, 16 }
 0x270   : > { %3754 = vst.msk [vmem:[#allocation3 + $0x1b8] sm:$0xf] %vm3698_vm11, %v3617_v19  ;;  %v3623_v27 = vpop.permute.xlu0 %3622  ;;  %v4608_v19 = vrot.slane %v4607_v25, 4  ;;  %v5616_v52 = vrot.slane %v5614_v62, 7  ;;  %v5617_v39 = vshll.u32 %v13929_v46, 16  ;;  %v7008_v43 = vshrl.u32 %v13881_v31, 16 }
 0x271   : > { %5910 = vrot.lane.b32.xlu1 %v5282_v3, %s11680_s28  ;;  %3757 = vst.msk [vmem:[#allocation3 + $0x1d0] sm:$0xf] %vm3698_vm11, %v3623_v27  ;;  %v13910_v3 = vld [vmem:[#allocation2 + $0x4c] sm:$0xf]  ;;  %v4623_v22 = vsel %vm12019_vm6, %v4618_v14, %v4622_v63  ;;  %v5625_v6 = vrot.slane %v5623_v58, 7  ;;  %v5301_v57 = vrot.slane %v5296_v15, 4 }
 0x272   : > { %5976 = vrot.lane.b32.xlu0 %v5611_v49, %s11680_s28  ;;  %v5303_v13 = vshrl.u32 %v13910_v3, 16  ;;  %7432 = vst.msk [vmem:[#allocation3 + $0x104] sm:$0xf] %vm254_vm0, %v6997_v55  ;;  %v5306_v56 = vshll.u32 %v13910_v3, 16  ;;  %v4613_v20 = vsel %vm12019_vm6, %v4608_v19, %v13902_v36  ;;  %v4273_v21 = vshrl.u32 %v4153_v38, 16 }
 0x273   : > { %v3621_v12 = vpop.permute.xlu1 %3620  ;;  %v6555_v31 = vld [vmem:[#allocation2 + $0x4c] sm:$0xf]  ;;  %v5292_v36 = vrot.slane %v13807_v32, 4  ;;  %v5299_v3 = vor.u32 %v5297_v4, %v5296_v15  ;;  %v5612_v2 = vrot.slane %v13811_v35, 4  ;;  %v4282_v28 = vshll.u32 %v4154_v7, 16 }
 0x274   : > { %3756 = vst.msk [vmem:[#allocation3 + $0x1c8] sm:$0xf] %vm3698_vm11, %v3621_v12  ;;  %v3627_v48 = vpop.permute.xlu0 %3626  ;;  %v5305_v27 = vrot.slane %v5303_v13, 7  ;;  %v5626_v12 = vshll.u32 %v13932_v23, 16  ;;  %v4286_v54 = vshrl.u32 %v4154_v7, 16  ;;  %v5619_v25 = vor.u32 %v5617_v39, %v5616_v52 }
 0x275   : > { %5974 = vrot.lane.b32.xlu1 %v5602_v5, %s11680_s28  ;;  %3759 = vst.msk [vmem:[#allocation3 + $0x1e0] sm:$0xf] %vm3698_vm11, %v3627_v48  ;;  %v4271_v5 = vsel %vm12019_vm6, %v4266_v0, %v4270_v61  ;;  %v5621_v45 = vrot.slane %v5616_v52, 4  ;;  %v6662_v46 = vshll.u32 %v6555_v31, 16  ;;  %v13977_v10 = vrot.slane %v4273_v21, 4 }
 0x276   : > { %6297 = vrot.lane.b32.xlu0 %v6168_v8, %s11681_s11  ;;  %v4193_v8 = vld [vmem:[#allocation2 + $0x120] sm:$0xf]  ;;  %v5308_v59 = vor.u32 %v5306_v56, %v5305_v27  ;;  %v5628_v30 = vor.u32 %v5626_v12, %v5625_v6  ;;  %v5300_v35 = vsel %vm11969_vm3, %v5292_v36, %v5299_v3  ;;  %v13983_v61 = vrot.slane %v4276_v9, 5  ;;  %v4194_v13 = vld [vmem:[#allocation2 + $0x124] sm:$0xf] }
 0x277   : > { %v3625_v49 = vpop.permute.xlu1 %3624  ;;  %v6660_v23 = vrot.slane %v6659_v60, 4  ;;  %v6556_v55 = vld [vmem:[#allocation2 + $0x50] sm:$0x1]  ;;  %v4288_v16 = vrot.slane %v4286_v54, 4  ;;  %v5620_v62 = vsel %vm11969_vm3, %v5612_v2, %v5619_v25  ;;  %v6664_v19 = vrot.slane %v6662_v46, 5 }
 0x278   : > { %3758 = vst.msk [vmem:[#allocation3 + $0x1d8] sm:$0xf] %vm3698_vm11, %v3625_v49  ;;  %v3631_v18 = vpop.permute.xlu0 %3630  ;;  %v5309_v47 = vsel %vm11969_vm3, %v5301_v57, %v5308_v59  ;;  %v5629_v40 = vsel %vm11969_vm3, %v5621_v45, %v5628_v30  ;;  %v6666_v14 = vshrl.u32 %v6555_v31, 16  ;;  %v6596_v63 = vld [vmem:[#allocation2 + $0x130] sm:$0x1]  ;;  %v6672_v56 = vshll.u32 %v6556_v55, 16 }
 0x279   : > { %6295 = vrot.lane.b32.xlu1 %v6167_v17, %s11681_s11  ;;  %3761 = vst.msk [vmem:[#allocation3 + $0x1f0] sm:$0xf] %vm3698_vm11, %v3631_v18  ;;  %v7010_v17 = vrot.slane %v7008_v43, 4  ;;  %v13987_v18 = vrot.slane %v4282_v28, 5  ;;  %v6665_v15 = vsel %vm12019_vm6, %v6660_v23, %v6664_v19  ;;  %v7014_v38 = vshll.u32 %v6595_v24, 16 }
 0x27a   : > { %6361 = vrot.lane.b32.xlu0 %v6200_v33, %s11681_s11  ;;  %v4625_v33 = vshrl.u32 %v4193_v8, 16  ;;  %v6668_v4 = vrot.slane %v6666_v14, 4  ;;  %v7018_v50 = vshrl.u32 %v6595_v24, 16  ;;  %7402 = vst.msk [vmem:[#allocation3 + $0x14] sm:$0xf] %vm254_vm0, %v6665_v15  ;;  %v7024_v43 = vshll.u32 %v6596_v63, 16 }
 0x27b   : > { %v3629_v37 = vpop.permute.xlu1 %3628  ;;  %v7011_v49 = vor.u32 %v7010_v17, %v13914_v53  ;;  %v4628_v53 = vshll.u32 %v4193_v8, 16  ;;  %v4289_v52 = vor.u32 %v4288_v16, %v13987_v18  ;;  %v7016_v6 = vrot.slane %v7014_v38, 5  ;;  %v6170_v8 = vld [vmem:[#allocation2 + $0x4c] sm:$0xf]  ;;  %v14011_v21 = vld [vmem:[#allocation2 + $0x60] sm:$0xf] }
 0x27c   : > { %3760 = vst.msk [vmem:[#allocation3 + $0x1e8] sm:$0xf] %vm3698_vm11, %v3629_v37  ;;  %v3892_v51 = vpop.permute.xlu0 %3891  ;;  %v13989_v34 = vrot.slane %v4625_v33, 4  ;;  %v4634_v37 = vshll.u32 %v4194_v13, 16  ;;  %v7020_v12 = vrot.slane %v7018_v50, 4  ;;  %v7026_v9 = vrot.slane %v7024_v43, 5 }
 0x27d   : > { %6359 = vrot.lane.b32.xlu1 %v6199_v42, %s11681_s11  ;;  %4084 = vst.msk [vmem:[#allocation3] sm:$0xf] %vm4083_vm12, %v3892_v51  ;;  %v13996_v42 = vld [vmem:[#allocation2 + $0x48] sm:$0xf]  ;;  %v7012_v27 = vrot.slane %v7011_v49, 4  ;;  %v4290_v2 = vrot.slane %v4289_v52, 4 }
 0x27e   : > { %4938 = vrot.lane.b32.xlu0 %v4271_v5, %s11679_s10  ;;  %v4638_v5 = vshrl.u32 %v4194_v13, 16  ;;  %v4292_v39 = vshll.u32 %v13996_v42, 16  ;;  %v14009_v57 = vrot.slane %v4634_v37, 5  ;;  %v14014_v31 = vld [vmem:[#allocation2 + $0x128] sm:$0xf]  ;;  %v7021_v3 = vor.u32 %v7020_v12, %v7016_v6 }
 0x27f   : > { %v3633_v26 = vpop.permute.xlu1 %3632  ;;  %v7017_v36 = vsel %vm12019_vm6, %v7012_v27, %v7016_v6  ;;  %v14021_v28 = vld [vmem:[#allocation2 + $0x5c] sm:$0xf]  ;;  %v6169_v54 = vld [vmem:[#allocation2 + $0x48] sm:$0xf]  ;;  %v5325_v25 = vshrl.u32 %v14011_v21, 16 }
 0x280   : > { %3762 = vst.msk [vmem:[#allocation3 + $0x1f8] sm:$0xf] %vm3698_vm11, %v3633_v26  ;;  %v3896_v48 = vpop.permute.xlu0 %3895  ;;  %v4279_v26 = vor.u32 %v13983_v61, %v13977_v10  ;;  %v4640_v59 = vrot.slane %v4638_v5, 4  ;;  %v14025_v33 = vrot.slane %v4292_v39, 5  ;;  %v7022_v30 = vrot.slane %v7021_v3, 4 }
 0x281   : > { %4936 = vrot.lane.b32.xlu1 %v4261_v11, %s11679_s10  ;;  %4086 = vst.msk [vmem:[#allocation3 + $0x10] sm:$0xf] %vm4083_vm12, %v3896_v48  ;;  %v4630_v11 = vrot.slane %v4628_v53, 5  ;;  %v4644_v10 = vshll.u32 %v14014_v31, 16  ;;  %v14032_v49 = vld [vmem:[#allocation2 + $0x140] sm:$0xf] }
 0x282   : > { %5002 = vrot.lane.b32.xlu0 %v4623_v22, %s11679_s10  ;;  %v6674_v22 = vrot.slane %v6672_v56, 5  ;;  %7434 = vst.msk [vmem:[#allocation3 + $0x114] sm:$0xf] %vm254_vm0, %v7017_v36  ;;  %v4280_v61 = vrot.slane %v4279_v26, 4  ;;  %v5316_v13 = vshrl.u32 %v14021_v28, 16  ;;  %v7027_v23 = vsel %vm12019_vm6, %v7022_v30, %v7026_v9 }
 0x283   : > { %v3894_v32 = vpop.permute.xlu1 %3893  ;;  %v4631_v60 = vor.u32 %v4630_v11, %v13989_v34  ;;  %v5195_v34 = vld [vmem:[#allocation2 + $0x58] sm:$0x8]  ;;  %v14043_v53 = vld [vmem:[#allocation2 + $0x13c] sm:$0xf]  ;;  %7435 = vst.msk [vmem:[#allocation3 + $0x11c] sm:$0xf] %vm254_vm0, %v7027_v23  ;;  %v4295_v16 = vsel %vm12019_vm6, %v4290_v2, %v14025_v33 }
 0x284   : > { %4085 = vst.msk [vmem:[#allocation3 + $0x8] sm:$0xf] %vm4083_vm12, %v3894_v32  ;;  %v3900_v0 = vpop.permute.xlu0 %3899  ;;  %v6202_v32 = vld [vmem:[#allocation2 + $0x12c] sm:$0xf]  ;;  %v14050_v24 = vrot.slane %v5325_v25, 7  ;;  %v4285_v27 = vsel %vm12019_vm6, %v4280_v61, %v13987_v18  ;;  %v5318_v15 = vrot.slane %v5316_v13, 7 }
 0x285   : > { %5000 = vrot.lane.b32.xlu1 %v4613_v20, %s11679_s10  ;;  %4088 = vst.msk [vmem:[#allocation3 + $0x20] sm:$0xf] %vm4083_vm12, %v3900_v0  ;;  %v6669_v20 = vor.u32 %v6668_v4, %v6664_v19  ;;  %v14041_v55 = vrot.slane %v4631_v60, 4  ;;  %v6557_v19 = vld [vmem:[#allocation2 + $0x5c] sm:$0xf]  ;;  %v5636_v4 = vshrl.u32 %v14043_v53, 16 }
 0x286   : > { %5916 = vrot.lane.b32.xlu0 %v5309_v47, %s11680_s28  ;;  %v4641_v47 = vor.u32 %v4640_v59, %v14009_v57  ;;  %v6677_v37 = vshrl.u32 %v6557_v19, 16  ;;  %v6680_v5 = vshll.u32 %v6557_v19, 16  ;;  %v5319_v50 = vshll.u32 %v14021_v28, 16  ;;  %v5235_v11 = vld [vmem:[#allocation2 + $0x138] sm:$0x8] }
 0x287   : > { %v3898_v58 = vpop.permute.xlu1 %3897  ;;  %v6670_v48 = vrot.slane %v6669_v20, 4  ;;  %v4637_v38 = vsel %vm12019_vm6, %v14041_v55, %v14009_v57  ;;  %v5323_v18 = vrot.slane %v5318_v15, 4  ;;  %v6558_v6 = vld [vmem:[#allocation2 + $0x60] sm:$0xf]  ;;  %v4156_v36 = vld [vmem:[#allocation2 + $0x4c] sm:$0xf] }
 0x288   : > { %4087 = vst.msk [vmem:[#allocation3 + $0x18] sm:$0xf] %vm4083_vm12, %v3898_v58  ;;  %v3904_v51 = vpop.permute.xlu0 %3903  ;;  %v4642_v63 = vrot.slane %v4641_v47, 4  ;;  %v14054_v58 = vrot.slane %v4644_v10, 5  ;;  %v6679_v52 = vrot.slane %v6677_v37, 4  ;;  %v6682_v39 = vrot.slane %v6680_v5, 5 }
 0x289   : > { %5914 = vrot.lane.b32.xlu1 %v5300_v35, %s11680_s28  ;;  %4090 = vst.msk [vmem:[#allocation3 + $0x30] sm:$0xf] %vm4083_vm12, %v3904_v51  ;;  %v6675_v45 = vsel %vm12019_vm6, %v6670_v48, %v6674_v22  ;;  %v6201_v35 = vld [vmem:[#allocation2 + $0x128] sm:$0xf]  ;;  %v5311_v51 = vshrl.u32 %v5195_v34, 16  ;;  %v5648_v22 = vshll.u32 %v14032_v49, 16  ;;  %v5321_v9 = vor.u32 %v5319_v50, %v5318_v15 }
 0x28a   : > { %5980 = vrot.lane.b32.xlu0 %v5629_v40, %s11680_s28  ;;  %7403 = vst.msk [vmem:[#allocation3 + $0x1c] sm:$0xf] %vm254_vm0, %v6675_v45  ;;  %v5645_v40 = vshrl.u32 %v14032_v49, 16  ;;  %v6683_v26 = vor.u32 %v6682_v39, %v6679_v52  ;;  %v6686_v57 = vshll.u32 %v6558_v6, 16  ;;  %v5638_v48 = vrot.slane %v5636_v4, 7 }
 0x28b   : > { %v3902_v7 = vpop.permute.xlu1 %3901  ;;  %v6690_v3 = vshrl.u32 %v6558_v6, 16  ;;  %v4196_v60 = vld [vmem:[#allocation2 + $0x12c] sm:$0xf]  ;;  %v14085_v30 = vld [vmem:[#allocation2 + $0x64] sm:$0xf]  ;;  %v4302_v47 = vshll.u32 %v4156_v36, 16 }
 0x28c   : > { %4089 = vst.msk [vmem:[#allocation3 + $0x28] sm:$0xf] %vm4083_vm12, %v3902_v7  ;;  %v3908_v17 = vpop.permute.xlu0 %3907  ;;  %v14070_v20 = vrot.slane %v5645_v40, 7  ;;  %v4296_v7 = vshrl.u32 %v13996_v42, 16  ;;  %v5639_v42 = vshll.u32 %v14043_v53, 16  ;;  %v6684_v2 = vrot.slane %v6683_v26, 4 }
 0x28d   : > { %5978 = vrot.lane.b32.xlu1 %v5620_v62, %s11680_s28  ;;  %4092 = vst.msk [vmem:[#allocation3 + $0x40] sm:$0xf] %vm4083_vm12, %v3908_v17  ;;  %v5328_v62 = vshll.u32 %v14011_v21, 16  ;;  %v11007_v21 = vrot.slane %v5311_v51, 11  ;;  %v5631_v17 = vshrl.u32 %v5235_v11, 16  ;;  %v6688_v28 = vrot.slane %v6686_v57, 5 }
 0x28e   : > { %6301 = vrot.lane.b32.xlu0 %v6170_v8, %s11681_s11  ;;  %v4647_v8 = vsel %vm12019_vm6, %v4642_v63, %v14054_v58  ;;  %v5643_v25 = vrot.slane %v5638_v48, 4  ;;  %v5650_v45 = vor.u32 %v5648_v22, %v14070_v20  ;;  %v4306_v10 = vshrl.u32 %v4156_v36, 16  ;;  %v6597_v55 = vld [vmem:[#allocation2 + $0x13c] sm:$0xf]  ;;  %v6172_v52 = vld [vmem:[#allocation2 + $0x60] sm:$0xf] }
 0x28f   : > { %v3906_v46 = vpop.permute.xlu1 %3905  ;;  %v5330_v43 = vor.u32 %v5328_v62, %v14050_v24  ;;  %v6689_v49 = vsel %vm12019_vm6, %v6684_v2, %v6688_v28  ;;  %v11015_v61 = vrot.slane %v5631_v17, 11  ;;  %v4654_v13 = vshll.u32 %v4196_v60, 16 }
 0x290   : > { %4091 = vst.msk [vmem:[#allocation3 + $0x38] sm:$0xf] %vm4083_vm12, %v3906_v46  ;;  %v3912_v0 = vpop.permute.xlu0 %3911  ;;  %v6692_v46 = vrot.slane %v6690_v3, 4  ;;  %v4658_v23 = vshrl.u32 %v4196_v60, 16  ;;  %v5641_v34 = vor.u32 %v5639_v42, %v5638_v48  ;;  %v4298_v53 = vrot.slane %v4296_v7, 4 }
 0x291   : > { %6299 = vrot.lane.b32.xlu1 %v6169_v54, %s11681_s11  ;;  %4094 = vst.msk [vmem:[#allocation3 + $0x50] sm:$0xf] %vm4083_vm12, %v3912_v0  ;;  %v5331_v54 = vsel %vm11969_vm3, %v5323_v18, %v5330_v43  ;;  %v5322_v40 = vsel %vm11969_vm3, %v11007_v21, %v5321_v9  ;;  %v4648_v19 = vshrl.u32 %v14014_v31, 16  ;;  %v14102_v37 = vrot.slane %v4302_v47, 5  ;;  %v14107_v31 = vld [vmem:[#allocation2 + $0x144] sm:$0xf] }
 0x292   : > { %6365 = vrot.lane.b32.xlu0 %v6202_v32, %s11681_s11  ;;  %7404 = vst.msk [vmem:[#allocation3 + $0x24] sm:$0xf] %vm254_vm0, %v6689_v49  ;;  %v4308_v5 = vrot.slane %v4306_v10, 4  ;;  %v7029_v51 = vshrl.u32 %v6597_v55, 16  ;;  %v14105_v4 = vrot.slane %v4654_v13, 5  ;;  %v4660_v50 = vrot.slane %v4658_v23, 4 }
 0x293   : > { %v3910_v14 = vpop.permute.xlu1 %3909  ;;  %v5642_v11 = vsel %vm11969_vm3, %v11015_v61, %v5641_v34  ;;  %v4299_v39 = vor.u32 %v4298_v53, %v14025_v33  ;;  %v4197_v43 = vld [vmem:[#allocation2 + $0x130] sm:$0x1]  ;;  %v7032_v6 = vshll.u32 %v6597_v55, 16  ;;  %v4650_v26 = vrot.slane %v4648_v19, 4  ;;  %v14120_v21 = vld [vmem:[#allocation2 + $0x68] sm:$0xf] }
 0x294   : > { %4093 = vst.msk [vmem:[#allocation3 + $0x48] sm:$0xf] %vm4083_vm12, %v3910_v14  ;;  %v3916_v56 = vpop.permute.xlu0 %3915  ;;  %v5651_v14 = vsel %vm11969_vm3, %v5643_v25, %v5650_v45  ;;  %v7031_v22 = vrot.slane %v7029_v51, 4  ;;  %v4309_v57 = vor.u32 %v4308_v5, %v14102_v37  ;;  %v7048_v33 = vshll.u32 %v14107_v31, 16  ;;  %v14129_v60 = vld [vmem:[#allocation2 + $0x64] sm:$0xf] }
 0x295   : > { %6363 = vrot.lane.b32.xlu1 %v6201_v35, %s11681_s11  ;;  %4096 = vst.msk [vmem:[#allocation3 + $0x60] sm:$0xf] %vm4083_vm12, %v3916_v56  ;;  %v6696_v35 = vshll.u32 %v14085_v30, 16  ;;  %v6598_v56 = vld [vmem:[#allocation2 + $0x140] sm:$0xf]  ;;  %v4661_v48 = vor.u32 %v4660_v50, %v14105_v4  ;;  %v7034_v36 = vrot.slane %v7032_v6, 5  ;;  %v4651_v49 = vor.u32 %v4650_v26, %v14054_v58 }
 0x296   : > { %4942 = vrot.lane.b32.xlu0 %v4295_v16, %s11679_s10  ;;  %v6693_v16 = vor.u32 %v6692_v46, %v6688_v28  ;;  %v7042_v7 = vshrl.u32 %v6598_v56, 16  ;;  %v14127_v42 = vrot.slane %v4299_v39, 4  ;;  %v4664_v2 = vshll.u32 %v4197_v43, 16  ;;  %v6171_v28 = vld [vmem:[#allocation2 + $0x5c] sm:$0xf] }
 0x297   : > { %v3914_v12 = vpop.permute.xlu1 %3913  ;;  %v14094_v62 = vrot.slane %v6696_v35, 5  ;;  %v5343_v25 = vshrl.u32 %v14120_v21, 16  ;;  %v7035_v45 = vor.u32 %v7034_v36, %v7031_v22  ;;  %v6204_v10 = vld [vmem:[#allocation2 + $0x140] sm:$0xf]  ;;  %v4310_v35 = vrot.slane %v4309_v57, 4 }
 0x298   : > { %4095 = vst.msk [vmem:[#allocation3 + $0x58] sm:$0xf] %vm4083_vm12, %v3914_v12  ;;  %v3920_v59 = vpop.permute.xlu0 %3919  ;;  %v7038_v12 = vshll.u32 %v6598_v56, 16  ;;  %v7044_v9 = vrot.slane %v7042_v7, 4  ;;  %v14138_v61 = vld [vmem:[#allocation2 + $0x148] sm:$0xf] }
 0x299   : > { %4940 = vrot.lane.b32.xlu1 %v4285_v27, %s11679_s10  ;;  %4098 = vst.msk [vmem:[#allocation3 + $0x70] sm:$0xf] %vm4083_vm12, %v3920_v59  ;;  %v6694_v27 = vrot.slane %v6693_v16, 4  ;;  %v5334_v23 = vshrl.u32 %v14129_v60, 16  ;;  %v4662_v55 = vrot.slane %v4661_v48, 4  ;;  %v7036_v34 = vrot.slane %v7035_v45, 4 }
 0x29a   : > { %5006 = vrot.lane.b32.xlu0 %v4647_v8, %s11679_s10  ;;  %v7040_v3 = vrot.slane %v7038_v12, 5  ;;  %v4666_v16 = vrot.slane %v4664_v2, 5  ;;  %v5346_v58 = vshll.u32 %v14120_v21, 16  ;;  %v4158_v19 = vld [vmem:[#allocation2 + $0x5c] sm:$0xf]  ;;  %v5345_v5 = vrot.slane %v5343_v25, 7 }
 0x29b   : > { %v3918_v32 = vpop.permute.xlu1 %3917  ;;  %v6699_v18 = vsel %vm12019_vm6, %v6694_v27, %v14094_v62  ;;  %v5663_v27 = vshrl.u32 %v14138_v61, 16  ;;  %v4320_v39 = vshll.u32 %v4158_v19, 16  ;;  %v4652_v43 = vrot.slane %v4651_v49, 4  ;;  %v4159_v12 = vld [vmem:[#allocation2 + $0x60] sm:$0xf] }
 0x29c   : > { %4097 = vst.msk [vmem:[#allocation3 + $0x68] sm:$0xf] %vm4083_vm12, %v3918_v32  ;;  %v3924_v0 = vpop.permute.xlu0 %3923  ;;  %v7045_v46 = vor.u32 %v7044_v9, %v7040_v3  ;;  %v14135_v32 = vrot.slane %v7048_v33, 5  ;;  %v7041_v56 = vsel %vm12019_vm6, %v7036_v34, %v7040_v3  ;;  %v5337_v22 = vshll.u32 %v14129_v60, 16 }
 0x29d   : > { %5004 = vrot.lane.b32.xlu1 %v4637_v38, %s11679_s10  ;;  %4100 = vst.msk [vmem:[#allocation3 + $0x80] sm:$0xf] %vm4083_vm12, %v3924_v0  ;;  %v4157_v38 = vld [vmem:[#allocation2 + $0x50] sm:$0x1]  ;;  %v5348_v26 = vor.u32 %v5346_v58, %v5345_v5  ;;  %v5665_v57 = vrot.slane %v5663_v27, 7  ;;  %v5666_v33 = vshll.u32 %v14138_v61, 16 }
 0x29e   : > { %5920 = vrot.lane.b32.xlu0 %v5331_v54, %s11680_s28  ;;  %7405 = vst.msk [vmem:[#allocation3 + $0x2c] sm:$0xf] %vm254_vm0, %v6699_v18  ;;  %v4312_v59 = vshll.u32 %v4157_v38, 16  ;;  %v14132_v54 = vld [vmem:[#allocation2 + $0x144] sm:$0xf]  ;;  %v7046_v53 = vrot.slane %v7045_v46, 4 }
 0x29f   : > { %v3922_v63 = vpop.permute.xlu1 %3921  ;;  %7436 = vst.msk [vmem:[#allocation3 + $0x124] sm:$0xf] %vm254_vm0, %v7041_v56  ;;  %v4198_v18 = vld [vmem:[#allocation2 + $0x13c] sm:$0xf]  ;;  %v4326_v60 = vshll.u32 %v4159_v12, 16  ;;  %v4330_v2 = vshrl.u32 %v4159_v12, 16  ;;  %v5668_v61 = vor.u32 %v5666_v33, %v5665_v57 }
 0x2a0   : > { %4099 = vst.msk [vmem:[#allocation3 + $0x78] sm:$0xf] %vm4083_vm12, %v3922_v63  ;;  %v3928_v15 = vpop.permute.xlu0 %3927  ;;  %v4314_v0 = vrot.slane %v4312_v59, 5  ;;  %v6203_v63 = vld [vmem:[#allocation2 + $0x13c] sm:$0xf]  ;;  %v7051_v51 = vsel %vm12019_vm6, %v7046_v53, %v14135_v32  ;;  %v4672_v48 = vshll.u32 %v4198_v18, 16 }
 0x2a1   : > { %5918 = vrot.lane.b32.xlu1 %v5322_v40, %s11680_s28  ;;  %4102 = vst.msk [vmem:[#allocation3 + $0x90] sm:$0xf] %vm4083_vm12, %v3928_v15  ;;  %v5654_v40 = vshrl.u32 %v14132_v54, 16  ;;  %v14169_v59 = vld [vmem:[#allocation2 + $0x68] sm:$0xf]  ;;  %v5657_v25 = vshll.u32 %v14132_v54, 16 }
 0x2a2   : > { %5984 = vrot.lane.b32.xlu0 %v5651_v14, %s11680_s28  ;;  %v6700_v14 = vshrl.u32 %v14085_v30, 16  ;;  %v4315_v38 = vsel %vm12019_vm6, %v4310_v35, %v4314_v0  ;;  %7437 = vst.msk [vmem:[#allocation3 + $0x12c] sm:$0xf] %vm254_vm0, %v7051_v51  ;;  %v4305_v30 = vsel %vm12019_vm6, %v14127_v42, %v14102_v37  ;;  %v4667_v37 = vsel %vm12019_vm6, %v4662_v55, %v4666_v16  ;;  %v4199_v35 = vld [vmem:[#allocation2 + $0x140] sm:$0xf] }
 0x2a3   : > { %v3926_v8 = vpop.permute.xlu1 %3925  ;;  %v5656_v6 = vrot.slane %v5654_v40, 7  ;;  %v4322_v42 = vrot.slane %v4320_v39, 5  ;;  %v5332_v46 = vrot.slane %v14050_v24, 4  ;;  %v14188_v34 = vrot.slane %v4326_v60, 5  ;;  %v14193_v58 = vld [vmem:[#allocation2 + $0x64] sm:$0xf] }
 0x2a4   : > { %4101 = vst.msk [vmem:[#allocation3 + $0x88] sm:$0xf] %vm4083_vm12, %v3926_v8  ;;  %v3932_v17 = vpop.permute.xlu0 %3931  ;;  %v6702_v7 = vrot.slane %v6700_v14, 4  ;;  %v4332_v24 = vrot.slane %v4330_v2, 4  ;;  %v5652_v53 = vrot.slane %v14070_v20, 4  ;;  %v4678_v40 = vshll.u32 %v4199_v35, 16 }
 0x2a5   : > { %5982 = vrot.lane.b32.xlu1 %v5642_v11, %s11680_s28  ;;  %4104 = vst.msk [vmem:[#allocation3 + $0xa0] sm:$0xf] %vm4083_vm12, %v3932_v17  ;;  %v5336_v11 = vrot.slane %v5334_v23, 7  ;;  %v4669_v17 = vshrl.u32 %v4198_v18, 16  ;;  %v5661_v49 = vrot.slane %v5656_v6, 4  ;;  %v5659_v16 = vor.u32 %v5657_v25, %v5656_v6 }
 0x2a6   : > { %6305 = vrot.lane.b32.xlu0 %v6172_v52, %s11681_s11  ;;  %v4317_v52 = vshrl.u32 %v4158_v19, 16  ;;  %v6703_v36 = vor.u32 %v6702_v7, %v14094_v62  ;;  %v6706_v62 = vshll.u32 %v14169_v59, 16  ;;  %v14201_v5 = vld [vmem:[#allocation2 + $0x78] sm:$0xf]  ;;  %v7052_v27 = vshrl.u32 %v14107_v31, 16 }
 0x2a7   : > { %v3930_v47 = vpop.permute.xlu1 %3929  ;;  %v5341_v8 = vrot.slane %v5336_v11, 4  ;;  %v6710_v20 = vshrl.u32 %v14169_v59, 16  ;;  %v5669_v51 = vsel %vm11969_vm3, %v5661_v49, %v5668_v61  ;;  %v14213_v31 = vld [vmem:[#allocation2 + $0x7c] sm:$0xf]  ;;  %v5660_v39 = vsel %vm11969_vm3, %v5652_v53, %v5659_v16  ;;  %v14225_v59 = vld [vmem:[#allocation2 + $0x144] sm:$0xf] }
 0x2a8   : > { %4103 = vst.msk [vmem:[#allocation3 + $0x98] sm:$0xf] %vm4083_vm12, %v3930_v47  ;;  %v3936_v13 = vpop.permute.xlu0 %3935  ;;  %v4319_v9 = vrot.slane %v4317_v52, 4  ;;  %v6704_v45 = vrot.slane %v6703_v36, 4  ;;  %v5339_v47 = vor.u32 %v5337_v22, %v5336_v11  ;;  %v14185_v23 = vrot.slane %v6706_v62, 5 }
 0x2a9   : > { %6303 = vrot.lane.b32.xlu1 %v6171_v28, %s11681_s11  ;;  %4106 = vst.msk [vmem:[#allocation3 + $0xb0] sm:$0xf] %vm4083_vm12, %v3936_v13  ;;  %v4657_v28 = vsel %vm12019_vm6, %v4652_v43, %v14105_v4  ;;  %v4671_v4 = vrot.slane %v4669_v17, 4  ;;  %v4674_v13 = vrot.slane %v4672_v48, 5  ;;  %v4333_v11 = vor.u32 %v4332_v24, %v14188_v34  ;;  %v5200_v22 = vld [vmem:[#allocation2 + $0x74] sm:$0x8] }
 0x2aa   : > { %6369 = vrot.lane.b32.xlu0 %v6204_v10, %s11681_s11  ;;  %v5349_v10 = vsel %vm11969_vm3, %v5341_v8, %v5348_v26  ;;  %v4323_v55 = vor.u32 %v4322_v42, %v4319_v9  ;;  %v6709_v19 = vsel %vm12019_vm6, %v6704_v45, %v14185_v23  ;;  %v5340_v14 = vsel %vm11969_vm3, %v5332_v46, %v5339_v47  ;;  %v6174_v26 = vld [vmem:[#allocation2 + $0x68] sm:$0xf]  ;;  %v6173_v33 = vld [vmem:[#allocation2 + $0x64] sm:$0xf]  ;;  %v6601_v25 = vld [vmem:[#allocation2 + $0x14c] sm:$0x1] }
 0x2ab   : > { %v3934_v15 = vpop.permute.xlu1 %3933  ;;  %7406 = vst.msk [vmem:[#allocation3 + $0x34] sm:$0xf] %vm254_vm0, %v6709_v19  ;;  %v4336_v52 = vshll.u32 %v14193_v58, 16  ;;  %v14219_v18 = vrot.slane %v4678_v40, 5  ;;  %v5356_v43 = vshrl.u32 %v14201_v5, 16  ;;  %v6712_v12 = vrot.slane %v6710_v20, 4 }
 0x2ac   : > { %4105 = vst.msk [vmem:[#allocation3 + $0xa8] sm:$0xf] %vm4083_vm12, %v3934_v15  ;;  %v3940_v50 = vpop.permute.xlu0 %3939  ;;  %v4675_v15 = vor.u32 %v4674_v13, %v4671_v4  ;;  %v4334_v36 = vrot.slane %v4333_v11, 4  ;;  %v6600_v9 = vld [vmem:[#allocation2 + $0x148] sm:$0xf]  ;;  %v5351_v42 = vshrl.u32 %v5200_v22, 16 }
 0x2ad   : > { %6367 = vrot.lane.b32.xlu1 %v6203_v63, %s11681_s11  ;;  %4108 = vst.msk [vmem:[#allocation3 + $0xc0] sm:$0xf] %vm4083_vm12, %v3940_v50  ;;  %v4682_v63 = vshrl.u32 %v4199_v35, 16  ;;  %v14209_v50 = vrot.slane %v4323_v55, 4  ;;  %v14237_v60 = vrot.slane %v5356_v43, 7  ;;  %v5359_v2 = vshll.u32 %v14201_v5, 16 }
 0x2ae   : > { %4946 = vrot.lane.b32.xlu0 %v4315_v38, %s11679_s10  ;;  %v6561_v38 = vld [vmem:[#allocation2 + $0x6c] sm:$0x1]  ;;  %v14223_v57 = vrot.slane %v4675_v15, 4  ;;  %v4688_v62 = vshll.u32 %v14225_v59, 16  ;;  %v14244_v46 = vld [vmem:[#allocation2 + $0x158] sm:$0xf] }
 0x2af   : > { %v3938_v21 = vpop.permute.xlu1 %3937  ;;  %v4684_v6 = vrot.slane %v4682_v63, 4  ;;  %v6716_v7 = vshll.u32 %v6561_v38, 16  ;;  %v4329_v48 = vsel %vm12019_vm6, %v14209_v50, %v14188_v34  ;;  %v14246_v47 = vld [vmem:[#allocation2 + $0x15c] sm:$0xf]  ;;  %v5368_v55 = vshll.u32 %v14213_v31, 16 }
 0x2b0   : > { %4107 = vst.msk [vmem:[#allocation3 + $0xb8] sm:$0xf] %vm4083_vm12, %v3938_v21  ;;  %v3944_v3 = vpop.permute.xlu0 %3943  ;;  %v5365_v21 = vshrl.u32 %v14213_v31, 16  ;;  %v4681_v61 = vsel %vm12019_vm6, %v14223_v57, %v14219_v18  ;;  %v7062_v53 = vshrl.u32 %v6600_v9, 16  ;;  %v7068_v16 = vshll.u32 %v6601_v25, 16 }
 0x2b1   : > { %4944 = vrot.lane.b32.xlu1 %v4305_v30, %s11679_s10  ;;  %4110 = vst.msk [vmem:[#allocation3 + $0xd0] sm:$0xf] %vm4083_vm12, %v3944_v3  ;;  %v14233_v3 = vrot.slane %v4336_v52, 5  ;;  %v4685_v45 = vor.u32 %v4684_v6, %v14219_v18  ;;  %v5676_v40 = vshrl.u32 %v14244_v46, 16  ;;  %v5685_v19 = vshrl.u32 %v14246_v47, 16 }
 0x2b2   : > { %5010 = vrot.lane.b32.xlu0 %v4667_v37, %s11679_s10  ;;  %v7054_v37 = vrot.slane %v7052_v27, 4  ;;  %v14253_v4 = vrot.slane %v5365_v21, 7  ;;  %v14267_v20 = vrot.slane %v4688_v62, 5  ;;  %v14270_v38 = vrot.slane %v5351_v42, 11  ;;  %v6602_v42 = vld [vmem:[#allocation2 + $0x158] sm:$0xf] }
 0x2b3   : > { %v3942_v0 = vpop.permute.xlu1 %3941  ;;  %v4339_v5 = vsel %vm12019_vm6, %v4334_v36, %v14233_v3  ;;  %v4686_v27 = vrot.slane %v4685_v45, 4  ;;  %v7070_v6 = vrot.slane %v7068_v16, 5  ;;  %v14284_v21 = vor.u32 %v5359_v2, %v14237_v60  ;;  %v4161_v25 = vld [vmem:[#allocation2 + $0x68] sm:$0xf]  ;;  %v14306_v16 = vld [vmem:[#allocation2 + $0x80] sm:$0xf] }
 0x2b4   : > { %4109 = vst.msk [vmem:[#allocation3 + $0xc8] sm:$0xf] %vm4083_vm12, %v3942_v0  ;;  %v3948_v54 = vpop.permute.xlu0 %3947  ;;  %v7055_v49 = vor.u32 %v7054_v37, %v14135_v32  ;;  %v6206_v0 = vld [vmem:[#allocation2 + $0x148] sm:$0xf]  ;;  %v6205_v32 = vld [vmem:[#allocation2 + $0x144] sm:$0xf]  ;;  %v5370_v43 = vor.u32 %v5368_v55, %v14253_v4 }
 0x2b5   : > { %5008 = vrot.lane.b32.xlu1 %v4657_v28, %s11679_s10  ;;  %4112 = vst.msk [vmem:[#allocation3 + $0xe0] sm:$0xf] %vm4083_vm12, %v3948_v54  ;;  %v6713_v28 = vor.u32 %v6712_v12, %v14185_v23  ;;  %v7058_v23 = vshll.u32 %v6600_v9, 16  ;;  %v5240_v12 = vld [vmem:[#allocation2 + $0x154] sm:$0x8]  ;;  %v14280_v37 = vrot.slane %v5685_v19, 7 }
 0x2b6   : > { %5924 = vrot.lane.b32.xlu0 %v5349_v10, %s11680_s28  ;;  %v6718_v10 = vrot.slane %v6716_v7, 5  ;;  %v7056_v24 = vrot.slane %v7055_v49, 4  ;;  %v5678_v7 = vrot.slane %v5676_v40, 7  ;;  %v6563_v9 = vld [vmem:[#allocation2 + $0x7c] sm:$0xf]  ;;  %v7073_v49 = vshrl.u32 %v6602_v42, 16 }
 0x2b7   : > { %v3946_v56 = vpop.permute.xlu1 %3945  ;;  %v6714_v13 = vrot.slane %v6713_v28, 4  ;;  %v7060_v63 = vrot.slane %v7058_v23, 5  ;;  %v6730_v62 = vshll.u32 %v6563_v9, 16  ;;  %v5679_v2 = vshll.u32 %v14244_v46, 16 }
 0x2b8   : > { %4111 = vst.msk [vmem:[#allocation3 + $0xd8] sm:$0xf] %vm4083_vm12, %v3946_v56  ;;  %v3952_v30 = vpop.permute.xlu0 %3951  ;;  %v7064_v56 = vrot.slane %v7062_v53, 4  ;;  %v4350_v53 = vshrl.u32 %v4161_v25, 16  ;;  %v7075_v19 = vrot.slane %v7073_v49, 4  ;;  %vm10694_vm11 = vcmask 1047559  }
 0x2b9   : > { %5922 = vrot.lane.b32.xlu1 %v5340_v14, %s11680_s28  ;;  %4114 = vst.msk [vmem:[#allocation3 + $0xf0] sm:$0xf] %vm4083_vm12, %v3952_v30  ;;  %v6719_v14 = vsel %vm12019_vm6, %v6714_v13, %v6718_v10  ;;  %v7061_v30 = vsel %vm12019_vm6, %v7056_v24, %v7060_v63  ;;  %v6734_v10 = vshrl.u32 %v6563_v9, 16  ;;  %v5683_v13 = vrot.slane %v5678_v7, 4 }
 0x2ba   : > { %5988 = vrot.lane.b32.xlu0 %v5669_v51, %s11680_s28  ;;  %7407 = vst.msk [vmem:[#allocation3 + $0x3c] sm:$0xf] %vm254_vm0, %v6719_v14  ;;  %v6562_v51 = vld [vmem:[#allocation2 + $0x78] sm:$0xf]  ;;  %v7065_v22 = vor.u32 %v7064_v56, %v7060_v63  ;;  %7438 = vst.msk [vmem:[#allocation3 + $0x134] sm:$0xf] %vm254_vm0, %v7061_v30  ;;  %v5362_v63 = vsel %vm11969_vm3, %v14270_v38, %v14284_v21 }
 0x2bb   : > { %v3950_v8 = vpop.permute.xlu1 %3949  ;;  %v6721_v11 = vshrl.u32 %v6562_v51, 16  ;;  %v6724_v52 = vshll.u32 %v6562_v51, 16  ;;  %v6732_v46 = vrot.slane %v6730_v62, 5  ;;  %v4346_v24 = vshll.u32 %v4161_v25, 16  ;;  %v4201_v56 = vld [vmem:[#allocation2 + $0x148] sm:$0xf] }
 0x2bc   : > { %4113 = vst.msk [vmem:[#allocation3 + $0xe8] sm:$0xf] %vm4083_vm12, %v3950_v8  ;;  %v3956_v17 = vpop.permute.xlu0 %3955  ;;  %v7066_v36 = vrot.slane %v7065_v22, 4  ;;  %v4340_v14 = vshrl.u32 %v14193_v58, 16  ;;  %v5681_v58 = vor.u32 %v5679_v2, %v5678_v7  ;;  %v6603_v30 = vld [vmem:[#allocation2 + $0x15c] sm:$0xf] }
 0x2bd   : > { %5986 = vrot.lane.b32.xlu1 %v5660_v39, %s11680_s28  ;;  %4116 = vst.msk [vmem:[#allocation3 + $0x100] sm:$0xf] %vm4083_vm12, %v3956_v17  ;;  %v5363_v39 = vrot.slane %v14237_v60, 4  ;;  %v6723_v8 = vrot.slane %v6721_v11, 4  ;;  %v5688_v17 = vshll.u32 %v14246_v47, 16  ;;  %v5671_v60 = vshrl.u32 %v5240_v12, 16 }
 0x2be   : > { %6309 = vrot.lane.b32.xlu0 %v6174_v26, %s11681_s11  ;;  %v6726_v26 = vrot.slane %v6724_v52, 5  ;;  %v7071_v47 = vsel %vm12019_vm6, %v7066_v36, %v7070_v6  ;;  %v4692_v11 = vshrl.u32 %v14225_v59, 16  ;;  %v4698_v57 = vshll.u32 %v4201_v56, 16  ;;  %v14338_v12 = vld [vmem:[#allocation2 + $0x160] sm:$0xf] }
 0x2bf   : > { %v3954_v35 = vpop.permute.xlu1 %3953  ;;  %7439 = vst.msk [vmem:[#allocation3 + $0x13c] sm:$0xf] %vm254_vm0, %v7071_v47  ;;  %v5690_v55 = vor.u32 %v5688_v17, %v14280_v37  ;;  %v7082_v7 = vshll.u32 %v6603_v30, 16  ;;  %v14344_v21 = vld [vmem:[#allocation2 + $0x84] sm:$0xf]  ;;  %v7086_v17 = vshrl.u32 %v6603_v30, 16 }
 0x2c0   : > { %4115 = vst.msk [vmem:[#allocation3 + $0xf8] sm:$0xf] %vm4083_vm12, %v3954_v35  ;;  %v3960_v54 = vpop.permute.xlu0 %3959  ;;  %v6727_v45 = vor.u32 %v6726_v26, %v6723_v8  ;;  %v4342_v26 = vrot.slane %v4340_v14, 4  ;;  %v6176_v36 = vld [vmem:[#allocation2 + $0x7c] sm:$0xf]  ;;  %v4694_v9 = vrot.slane %v4692_v11, 4 }
 0x2c1   : > { %6307 = vrot.lane.b32.xlu1 %v6173_v33, %s11681_s11  ;;  %4118 = vst.msk [vmem:[#allocation3 + $0x110] sm:$0xf] %vm4083_vm12, %v3960_v54  ;;  %v4691_v33 = vsel %vm12019_vm6, %v4686_v27, %v14267_v20  ;;  %v6736_v54 = vrot.slane %v6734_v10, 4  ;;  %v11016_v27 = vrot.slane %v5671_v60, 11  ;;  %v5691_v52 = vsel %vm11969_vm3, %v5683_v13, %v5690_v55  ;;  %v14350_v10 = vld [vmem:[#allocation2 + $0x80] sm:$0xf] }
 0x2c2   : > { %6373 = vrot.lane.b32.xlu0 %v6206_v0, %s11681_s11  ;;  %v5371_v0 = vsel %vm11969_vm3, %v5363_v39, %v5370_v43  ;;  %v6728_v23 = vrot.slane %v6727_v45, 4  ;;  %v4352_v39 = vrot.slane %v4350_v53, 4  ;;  %v4162_v43 = vld [vmem:[#allocation2 + $0x6c] sm:$0x1]  ;;  %v7084_v25 = vrot.slane %v7082_v7, 5 }
 0x2c3   : > { %v3958_v15 = vpop.permute.xlu1 %3957  ;;  %v6737_v50 = vor.u32 %v6736_v54, %v6732_v46  ;;  %v5682_v8 = vsel %vm11969_vm3, %v11016_v27, %v5681_v58  ;;  %v14348_v62 = vrot.slane %v4698_v57, 5  ;;  %v7092_v60 = vshll.u32 %v14338_v12, 16  ;;  %v6175_v13 = vld [vmem:[#allocation2 + $0x78] sm:$0xf]  ;;  %v6208_v55 = vld [vmem:[#allocation2 + $0x15c] sm:$0xf] }
 0x2c4   : > { %4117 = vst.msk [vmem:[#allocation3 + $0x108] sm:$0xf] %vm4083_vm12, %v3958_v15  ;;  %v3964_v31 = vpop.permute.xlu0 %3963  ;;  %v6733_v34 = vsel %vm12019_vm6, %v6728_v23, %v6732_v46  ;;  %v5383_v47 = vshrl.u32 %v14344_v21, 16  ;;  %v4343_v23 = vor.u32 %v4342_v26, %v14233_v3  ;;  %v14365_v3 = vld [vmem:[#allocation2 + $0x164] sm:$0xf]  ;;  %v6744_v58 = vshrl.u32 %v14306_v16, 16 }
 0x2c5   : > { %6371 = vrot.lane.b32.xlu1 %v6205_v32, %s11681_s11  ;;  %4120 = vst.msk [vmem:[#allocation3 + $0x120] sm:$0xf] %vm4083_vm12, %v3964_v31  ;;  %v7076_v32 = vshll.u32 %v6602_v42, 16  ;;  %v6738_v51 = vrot.slane %v6737_v50, 4  ;;  %v14331_v31 = vrot.slane %v4346_v24, 5  ;;  %v4695_v24 = vor.u32 %v4694_v9, %v14267_v20 }
 0x2c6   : > { %4950 = vrot.lane.b32.xlu0 %v4339_v5, %s11679_s10  ;;  %7408 = vst.msk [vmem:[#allocation3 + $0x44] sm:$0xf] %vm254_vm0, %v6733_v34  ;;  %v14367_v14 = vrot.slane %v7092_v60, 5  ;;  %v5385_v20 = vrot.slane %v5383_v47, 7  ;;  %v4344_v27 = vrot.slane %v4343_v23, 4  ;;  %v6746_v26 = vrot.slane %v6744_v58, 4 }
 0x2c7   : > { %v3962_v28 = vpop.permute.xlu1 %3961  ;;  %v7078_v38 = vrot.slane %v7076_v32, 5  ;;  %v4353_v42 = vor.u32 %v4352_v39, %v14331_v31  ;;  %v6207_v30 = vld [vmem:[#allocation2 + $0x158] sm:$0xf]  ;;  %v6565_v9 = vld [vmem:[#allocation2 + $0x84] sm:$0xf] }
 0x2c8   : > { %4119 = vst.msk [vmem:[#allocation3 + $0x118] sm:$0xf] %vm4083_vm12, %v3962_v28  ;;  %v3968_v35 = vpop.permute.xlu0 %3967  ;;  %v4356_v28 = vshll.u32 %v4162_v43, 16  ;;  %v5377_v43 = vshll.u32 %v14350_v10, 16  ;;  %v4349_v7 = vsel %vm12019_vm6, %v4344_v27, %v14331_v31  ;;  %v4164_v60 = vld [vmem:[#allocation2 + $0x7c] sm:$0xf] }
 0x2c9   : > { %4948 = vrot.lane.b32.xlu1 %v4329_v48, %s11679_s10  ;;  %4122 = vst.msk [vmem:[#allocation3 + $0x130] sm:$0xf] %vm4083_vm12, %v3968_v35  ;;  %v6740_v48 = vshll.u32 %v14306_v16, 16  ;;  %v7079_v6 = vor.u32 %v7078_v38, %v7075_v19  ;;  %v7088_v35 = vrot.slane %v7086_v17, 4  ;;  %v4354_v53 = vrot.slane %v4353_v42, 4 }
 0x2ca   : > { %5014 = vrot.lane.b32.xlu0 %v4691_v33, %s11679_s10  ;;  %v4358_v32 = vrot.slane %v4356_v28, 5  ;;  %v14380_v38 = vrot.slane %v4695_v24, 4  ;;  %v4163_v28 = vld [vmem:[#allocation2 + $0x78] sm:$0xf] }
 0x2cb   : > { %v3966_v40 = vpop.permute.xlu1 %3965  ;;  %v14325_v15 = vrot.slane %v6740_v48, 5  ;;  %v7080_v33 = vrot.slane %v7079_v6, 4  ;;  %v7089_v54 = vor.u32 %v7088_v35, %v7084_v25 }
 0x2cc   : > { %4121 = vst.msk [vmem:[#allocation3 + $0x128] sm:$0xf] %vm4083_vm12, %v3966_v40  ;;  %v3972_v5 = vpop.permute.xlu0 %3971  ;;  %v5374_v40 = vshrl.u32 %v14350_v10, 16 }
 0x2cd   : > { %5012 = vrot.lane.b32.xlu1 %v4681_v61, %s11679_s10  ;;  %4124 = vst.msk [vmem:[#allocation3 + $0x140] sm:$0xf] %vm4083_vm12, %v3972_v5  ;;  %v4702_v61 = vshrl.u32 %v4201_v56, 16  ;;  %v6743_v22 = vsel %vm12019_vm6, %v6738_v51, %v14325_v15  ;;  %v7085_v46 = vsel %vm12019_vm6, %v7080_v33, %v7084_v25  ;;  %v7090_v19 = vrot.slane %v7089_v54, 4  ;;  %v14373_v56 = vld [vmem:[#allocation2 + $0x160] sm:$0xf] }
 0x2ce   : > { %5928 = vrot.lane.b32.xlu0 %v5371_v0, %s11680_s28  ;;  %7409 = vst.msk [vmem:[#allocation3 + $0x4c] sm:$0xf] %vm254_vm0, %v6743_v22  ;;  %v4202_v0 = vld [vmem:[#allocation2 + $0x14c] sm:$0x1]  ;;  %7440 = vst.msk [vmem:[#allocation3 + $0x144] sm:$0xf] %vm254_vm0, %v7085_v46 }
 0x2cf   : > { %v3970_v18 = vpop.permute.xlu1 %3969  ;;  %v4704_v49 = vrot.slane %v4702_v61, 4  ;;  %v4708_v48 = vshll.u32 %v4202_v0, 16  ;;  %v5386_v5 = vshll.u32 %v14344_v21, 16  ;;  %v7095_v51 = vsel %vm12019_vm6, %v7090_v19, %v14367_v14 }
 0x2d0   : > { %4123 = vst.msk [vmem:[#allocation3 + $0x138] sm:$0xf] %vm4083_vm12, %v3970_v18  ;;  %v3976_v59 = vpop.permute.xlu0 %3975  ;;  %v5376_v11 = vrot.slane %v5374_v40, 7  ;;  %v4359_v18 = vsel %vm12019_vm6, %v4354_v53, %v4358_v32  ;;  %v5694_v22 = vshrl.u32 %v14373_v56, 16  ;;  %v4701_v21 = vsel %vm12019_vm6, %v14380_v38, %v14348_v62 }
 0x2d1   : > { %5926 = vrot.lane.b32.xlu1 %v5362_v63, %s11680_s28  ;;  %4126 = vst.msk [vmem:[#allocation3 + $0x150] sm:$0xf] %vm4083_vm12, %v3976_v59  ;;  %v4705_v50 = vor.u32 %v4704_v49, %v14348_v62  ;;  %v4710_v16 = vrot.slane %v4708_v48, 5  ;;  %v5388_v59 = vor.u32 %v5386_v5, %v5385_v20  ;;  %v5372_v33 = vrot.slane %v14253_v4, 4  ;;  %v4203_v20 = vld [vmem:[#allocation2 + $0x158] sm:$0xf] }
 0x2d2   : > { %5992 = vrot.lane.b32.xlu0 %v5691_v52, %s11680_s28  ;;  %v5703_v52 = vshrl.u32 %v14365_v3, 16  ;;  %7441 = vst.msk [vmem:[#allocation3 + $0x14c] sm:$0xf] %vm254_vm0, %v7095_v51  ;;  %v5381_v6 = vrot.slane %v5376_v11, 4  ;;  %v6750_v25 = vshll.u32 %v6565_v9, 16  ;;  %v5379_v10 = vor.u32 %v5377_v43, %v5376_v11 }
 0x2d3   : > { %v3974_v45 = vpop.permute.xlu1 %3973  ;;  %v4706_v57 = vrot.slane %v4705_v50, 4  ;;  %v5696_v49 = vrot.slane %v5694_v22, 7  ;;  %v5697_v4 = vshll.u32 %v14373_v56, 16  ;;  %v4361_v46 = vshrl.u32 %v4163_v28, 16 }
 0x2d4   : > { %4125 = vst.msk [vmem:[#allocation3 + $0x148] sm:$0xf] %vm4083_vm12, %v3974_v45  ;;  %v3980_v2 = vpop.permute.xlu0 %3979  ;;  %v5705_v17 = vrot.slane %v5703_v52, 7  ;;  %v6754_v45 = vshrl.u32 %v6565_v9, 16  ;;  %v5389_v35 = vsel %vm11969_vm3, %v5381_v6, %v5388_v59  ;;  %v6752_v0 = vrot.slane %v6750_v25, 5 }
 0x2d5   : > { %5990 = vrot.lane.b32.xlu1 %v5682_v8, %s11680_s28  ;;  %4128 = vst.msk [vmem:[#allocation3 + $0x160] sm:$0xf] %vm4083_vm12, %v3980_v2  ;;  %v7096_v8 = vshrl.u32 %v14338_v12, 16  ;;  %v4711_v42 = vsel %vm12019_vm6, %v4706_v57, %v4710_v16  ;;  %v6747_v12 = vor.u32 %v6746_v26, %v14325_v15  ;;  %v4364_v54 = vshll.u32 %v4163_v28, 16  ;;  %v6178_v26 = vld [vmem:[#allocation2 + $0x84] sm:$0xf] }
 0x2d6   : > { %6313 = vrot.lane.b32.xlu0 %v6176_v36, %s11681_s11  ;;  %v5706_v36 = vshll.u32 %v14365_v3, 16  ;;  %v6756_v15 = vrot.slane %v6754_v45, 4  ;;  %v5380_v48 = vsel %vm11969_vm3, %v5372_v33, %v5379_v10  ;;  %v4370_v19 = vshll.u32 %v4164_v60, 16 }
 0x2d7   : > { %v3978_v34 = vpop.permute.xlu1 %3977  ;;  %v6748_v2 = vrot.slane %v6747_v12, 4  ;;  %v7098_v47 = vrot.slane %v7096_v8, 4  ;;  %v5692_v5 = vrot.slane %v14280_v37, 4  ;;  %v5699_v27 = vor.u32 %v5697_v4, %v5696_v49  ;;  %v6177_v12 = vld [vmem:[#allocation2 + $0x80] sm:$0xf] }
 0x2d8   : > { %4127 = vst.msk [vmem:[#allocation3 + $0x158] sm:$0xf] %vm4083_vm12, %v3978_v34  ;;  %v4935_v63 = vpop.permute.xlu0 %4934  ;;  %v5708_v23 = vor.u32 %v5706_v36, %v5705_v17  ;;  %v6757_v32 = vor.u32 %v6756_v15, %v6752_v0  ;;  %v6605_v34 = vld [vmem:[#allocation2 + $0x164] sm:$0xf]  ;;  %v4366_v38 = vrot.slane %v4364_v54, 5 }
 0x2d9   : > { %6311 = vrot.lane.b32.xlu1 %v6175_v13, %s11681_s11  ;;  %5126 = vst.msk [vmem:[#allocation3 + $0x8] sm:$0xf] %vm5124_vm13, %v4935_v63  ;;  %v5701_v13 = vrot.slane %v5696_v49, 4  ;;  %v6753_v53 = vsel %vm12019_vm6, %v6748_v2, %v6752_v0  ;;  %v7099_v50 = vor.u32 %v7098_v47, %v14367_v14  ;;  %v4374_v63 = vshrl.u32 %v4164_v60, 16  ;;  %v4204_v14 = vld [vmem:[#allocation2 + $0x15c] sm:$0xf] }
 0x2da   : > { %6377 = vrot.lane.b32.xlu0 %v6208_v55, %s11681_s11  ;;  %v6566_v55 = vld [vmem:[#allocation2 + $0x88] sm:$0x1]  ;;  %7410 = vst.msk [vmem:[#allocation3 + $0x54] sm:$0xf] %vm254_vm0, %v6753_v53  ;;  %v6758_v56 = vrot.slane %v6757_v32, 4  ;;  %v7102_v11 = vshll.u32 %v6605_v34, 16  ;;  %v5700_v8 = vsel %vm11969_vm3, %v5692_v5, %v5699_v27 }
 0x2db   : > { %v4933_v39 = vpop.permute.xlu1 %4932  ;;  %v6760_v40 = vshll.u32 %v6566_v55, 16  ;;  %v5709_v51 = vsel %vm11969_vm3, %v5701_v13, %v5708_v23  ;;  %v7100_v16 = vrot.slane %v7099_v50, 4  ;;  %v4376_v43 = vrot.slane %v4374_v63, 4  ;;  %v14450_v4 = vld [vmem:[#allocation2 + $0x160] sm:$0xf] }
 0x2dc   : > { %5125 = vst.msk [vmem:[#allocation3] sm:$0xf] %vm5124_vm13, %v4933_v39  ;;  %v4999_v61 = vpop.permute.xlu0 %4998  ;;  %v4713_v39 = vshrl.u32 %v4203_v20, 16  ;;  %v4722_v22 = vshll.u32 %v4204_v14, 16  ;;  %v4726_v6 = vshrl.u32 %v4204_v14, 16  ;;  %v7104_v59 = vrot.slane %v7102_v11, 5 }
 0x2dd   : > { %6375 = vrot.lane.b32.xlu1 %v6207_v30, %s11681_s11  ;;  %5158 = vst.msk [vmem:[#allocation3 + $0x108] sm:$0xf] %vm5124_vm13, %v4999_v61  ;;  %v6762_v58 = vrot.slane %v6760_v40, 5  ;;  %v4363_v30 = vrot.slane %v4361_v46, 4  ;;  %v14428_v61 = vrot.slane %v4370_v19, 5  ;;  %v4732_v40 = vshll.u32 %v14450_v4, 16 }
 0x2de   : > { %4954 = vrot.lane.b32.xlu0 %v4359_v18, %s11679_s10  ;;  %v4716_v18 = vshll.u32 %v4203_v20, 16  ;;  %v4715_v36 = vrot.slane %v4713_v39, 4  ;;  %v7105_v28 = vsel %vm12019_vm6, %v7100_v16, %v7104_v59  ;;  %v4728_v10 = vrot.slane %v4726_v6, 4  ;;  %v5205_v0 = vld [vmem:[#allocation2 + $0x90] sm:$0x8] }
 0x2df   : > { %v4997_v31 = vpop.permute.xlu1 %4996  ;;  %v6763_v57 = vsel %vm12019_vm6, %v6758_v56, %v6762_v58  ;;  %v4367_v17 = vor.u32 %v4366_v38, %v4363_v30  ;;  %v4377_v45 = vor.u32 %v4376_v43, %v14428_v61  ;;  %7442 = vst.msk [vmem:[#allocation3 + $0x154] sm:$0xf] %vm254_vm0, %v7105_v28  ;;  %v14456_v15 = vld [vmem:[#allocation2 + $0x174] sm:$0xf]  ;;  %v6210_v23 = vld [vmem:[#allocation2 + $0x164] sm:$0xf] }
 0x2e0   : > { %5157 = vst.msk [vmem:[#allocation3 + $0x100] sm:$0xf] %vm5124_vm13, %v4997_v31  ;;  %v5913_v62 = vpop.permute.xlu0 %5912  ;;  %v4718_v9 = vrot.slane %v4716_v18, 5  ;;  %v14438_v31 = vld [vmem:[#allocation2 + $0x94] sm:$0xf]  ;;  %v5716_v19 = vshrl.u32 %v14456_v15, 16 }
 0x2e1   : > { %4952 = vrot.lane.b32.xlu1 %v4349_v7, %s11679_s10  ;;  %6104 = vst.msk [vmem:[#allocation3 + $0x8] sm:$0xf] %vm6102_vm14, %v5913_v62  ;;  %v7106_v7 = vshrl.u32 %v6605_v34, 16  ;;  %v14444_v62 = vrot.slane %v4722_v22, 5  ;;  %v5396_v2 = vshrl.u32 %v14438_v31, 16  ;;  %v4368_v46 = vrot.slane %v4367_v17, 4 }
 0x2e2   : > { %5018 = vrot.lane.b32.xlu0 %v4711_v42, %s11679_s10  ;;  %7411 = vst.msk [vmem:[#allocation3 + $0x5c] sm:$0xf] %vm254_vm0, %v6763_v57  ;;  %v6606_v42 = vld [vmem:[#allocation2 + $0x168] sm:$0x1]  ;;  %v4719_v54 = vor.u32 %v4718_v9, %v4715_v36  ;;  %v14459_v53 = vrot.slane %v4377_v45, 4  ;;  %v5399_v20 = vshll.u32 %v14438_v31, 16 }
 0x2e3   : > { %v5911_v24 = vpop.permute.xlu1 %5910  ;;  %v7108_v60 = vrot.slane %v7106_v7, 4  ;;  %v7112_v47 = vshll.u32 %v6606_v42, 16  ;;  %v4729_v32 = vor.u32 %v4728_v10, %v14444_v62  ;;  %v6209_v34 = vld [vmem:[#allocation2 + $0x160] sm:$0xf]  ;;  %v14470_v63 = vrot.slane %v5396_v2, 7 }
 0x2e4   : > { %6103 = vst.msk [vmem:[#allocation3] sm:$0xf] %vm6102_vm14, %v5911_v24  ;;  %v5977_v3 = vpop.permute.xlu0 %5976  ;;  %v5245_v5 = vld [vmem:[#allocation2 + $0x170] sm:$0x8]  ;;  %v4373_v30 = vsel %vm12019_vm6, %v4368_v46, %v14428_v61  ;;  %v4720_v38 = vrot.slane %v4719_v54, 4  ;;  %v14479_v18 = vrot.slane %v4732_v40, 5 }
 0x2e5   : > { %5016 = vrot.lane.b32.xlu1 %v4701_v21, %s11679_s10  ;;  %6136 = vst.msk [vmem:[#allocation3 + $0x108] sm:$0xf] %vm6102_vm14, %v5977_v3  ;;  %v14436_v21 = vld [vmem:[#allocation2 + $0x80] sm:$0xf]  ;;  %v7109_v55 = vor.u32 %v7108_v60, %v7104_v59  ;;  %v5391_v3 = vshrl.u32 %v5205_v0, 16  ;;  %v7114_v14 = vrot.slane %v7112_v47, 5  ;;  %v5401_v6 = vor.u32 %v5399_v20, %v14470_v63 }
 0x2e6   : > { %5932 = vrot.lane.b32.xlu0 %v5389_v35, %s11680_s28  ;;  %v4380_v49 = vshll.u32 %v14436_v21, 16  ;;  %v14452_v35 = vld [vmem:[#allocation2 + $0x98] sm:$0xf]  ;;  %v3808_v11 = vld [vmem:[#allocation2 + $0x15c] sm:$0xf]  ;;  %v14477_v39 = vrot.slane %v4729_v32, 4  ;;  %v4725_v42 = vsel %vm12019_vm6, %v4720_v38, %v14444_v62 }
 0x2e7   : > { %v5975_v52 = vpop.permute.xlu1 %5974  ;;  %v7110_v27 = vrot.slane %v7109_v55, 4  ;;  %v11009_v61 = vrot.slane %v5391_v3, 11  ;;  %v14489_v43 = vld [vmem:[#allocation2 + $0x178] sm:$0xf]  ;;  %v14491_v22 = vrot.slane %v5716_v19, 7  ;;  %v5711_v59 = vshrl.u32 %v5245_v5, 16 }
 0x2e8   : > { %6135 = vst.msk [vmem:[#allocation3 + $0x100] sm:$0xf] %vm6102_vm14, %v5975_v52  ;;  %v6298_v37 = vpop.permute.xlu0 %6297  ;;  %v14465_v50 = vrot.slane %v4380_v49, 5  ;;  %v5719_v7 = vshll.u32 %v14456_v15, 16  ;;  %v4384_v36 = vshrl.u32 %v14436_v21, 16  ;;  %v5725_v45 = vshrl.u32 %v14489_v43, 16 }
 0x2e9   : > { %5930 = vrot.lane.b32.xlu1 %v5380_v48, %s11680_s28  ;;  %6489 = vst.msk [vmem:[#allocation3 + $0x8] sm:$0xf] %vm6487_vm15, %v6298_v37  ;;  %v5405_v48 = vshrl.u32 %v14452_v35, 16  ;;  %v7115_v57 = vsel %vm12019_vm6, %v7110_v27, %v7114_v14  ;;  %v5408_v37 = vshll.u32 %v14452_v35, 16  ;;  %v11512_v31 = vld [vmem:[#allocation3 + $0x104] ss:$8 sps:$4 sm:$0xff]   ;;  %v5402_v2 = vsel %vm11969_vm3, %v11009_v61, %v5401_v6 }
 0x2ea   : > { %5996 = vrot.lane.b32.xlu0 %v5709_v51, %s11680_s28  ;;  %v11509_v51 = vld [vmem:[#allocation3 + $0x4] ss:$8 sps:$4 sm:$0xff]   ;;  %7443 = vst.msk [vmem:[#allocation3 + $0x15c] sm:$0xf] %vm254_vm0, %v7115_v57  ;;  %v4383_v17 = vsel %vm12019_vm6, %v14459_v53, %v14465_v50  ;;  %11112 = vmatprep.mubr.msk.bf16.mxu1 %vm7895_vm1, %v11512_v31  ;;  %v11017_v0 = vrot.slane %v5711_v59, 11  ;;  %v5721_v15 = vor.u32 %v5719_v7, %v14491_v22  ;;  %v4736_v61 = vshrl.u32 %v14450_v4, 16 }
 0x2eb   : > { %v6296_v33 = vpop.permute.xlu1 %6295  ;;  %11096 = vmatprep.mubr.msk.bf16.mxu0 %vm7895_vm1, %v11509_v51  ;;  %v14486_v16 = vrot.slane %v5405_v48, 7  ;;  %v14520_v47 = vld [vmem:[#allocation2 + $0x9c] sm:$0xf]  ;;  %v6608_v32 = vld [vmem:[#allocation2 + $0x178] sm:$0xf]  ;;  %v5728_v48 = vshll.u32 %v14489_v43, 16 }
 0x2ec   : > { %6488 = vst.msk [vmem:[#allocation3] sm:$0xf] %vm6487_vm15, %v6296_v33  ;;  %v6362_v25 = vpop.permute.xlu0 %6361  ;;  %v6784_v53 = vshll.u32 %v14520_v47, 16  ;;  %v7126_v27 = vshll.u32 %v6608_v32, 16  ;;  %v5722_v14 = vsel %vm11969_vm3, %v11017_v0, %v5721_v15  ;;  %v4206_v7 = vld [vmem:[#allocation2 + $0x164] sm:$0xf] }
 0x2ed   : > { %5994 = vrot.lane.b32.xlu1 %v5700_v8, %s11680_s28  ;;  %6521 = vst.msk [vmem:[#allocation3 + $0x108] sm:$0xf] %vm6487_vm15, %v6362_v25  ;;  %v6567_v8 = vld [vmem:[#allocation2 + $0x94] sm:$0xf]  ;;  %v5403_v25 = vrot.slane %v14470_v63, 4  ;;  %v5410_v62 = vor.u32 %v5408_v37, %v14486_v16  ;;  %v5723_v4 = vrot.slane %v14491_v22, 4 }
 0x2ee   : > { %6317 = vrot.lane.b32.xlu0 %v6178_v26, %s11681_s11  ;;  %v6568_v26 = vld [vmem:[#allocation2 + $0x98] sm:$0xf]  ;;  %v6765_v10 = vshrl.u32 %v6567_v8, 16  ;;  %v6768_v49 = vshll.u32 %v6567_v8, 16  ;;  %v14529_v5 = vrot.slane %v6784_v53, 5  ;;  %v7128_v57 = vrot.slane %v7126_v27, 5 }
 0x2ef   : > { %v6360_v13 = vpop.permute.xlu1 %6359  ;;  %v6774_v35 = vshll.u32 %v6568_v26, 16  ;;  %v6778_v60 = vshrl.u32 %v6568_v26, 16  ;;  %v5411_v59 = vsel %vm11969_vm3, %v5403_v25, %v5410_v62  ;;  %v4386_v25 = vrot.slane %v4384_v36, 4  ;;  %v6211_v36 = vld [vmem:[#allocation2 + $0x174] sm:$0xf] }
 0x2f0   : > { %6520 = vst.msk [vmem:[#allocation3 + $0x100] sm:$0xf] %vm6487_vm15, %v6360_v13  ;;  %v4939_v24 = vpop.permute.xlu0 %4938  ;;  %v6767_v13 = vrot.slane %v6765_v10, 4  ;;  %v6770_v54 = vrot.slane %v6768_v49, 5  ;;  %v4742_v62 = vshll.u32 %v4206_v7, 16  ;;  %v4746_v49 = vshrl.u32 %v4206_v7, 16 }
 0x2f1   : > { %6315 = vrot.lane.b32.xlu1 %v6177_v12, %s11681_s11  ;;  %5128 = vst.msk [vmem:[#allocation3 + $0x18] sm:$0xf] %vm5124_vm13, %v4939_v24  ;;  %v4735_v12 = vsel %vm12019_vm6, %v14477_v39, %v14479_v18  ;;  %v6776_v55 = vrot.slane %v6774_v35, 5  ;;  %v6780_v24 = vrot.slane %v6778_v60, 4  ;;  %v4167_v15 = vld [vmem:[#allocation2 + $0x88] sm:$0x1] }
 0x2f2   : > { %6381 = vrot.lane.b32.xlu0 %v6210_v23, %s11681_s11  ;;  %v6607_v23 = vld [vmem:[#allocation2 + $0x174] sm:$0xf]  ;;  %v6771_v63 = vor.u32 %v6770_v54, %v6767_v13  ;;  %v5208_v54 = vld [vmem:[#allocation2 + $0x9c] sm:$0xf]  ;;  %v14573_v53 = vrot.slane %v4742_v62, 5  ;;  %v6788_v62 = vshrl.u32 %v14520_v47, 16 }
 0x2f3   : > { %v4937_v56 = vpop.permute.xlu1 %4936  ;;  %v11507_v58 = vld [vmem:[#allocation3] ss:$8 sps:$4 sm:$0xff]   ;;  %v7117_v3 = vshrl.u32 %v6607_v23, 16  ;;  %v7120_v19 = vshll.u32 %v6607_v23, 16  ;;  %v6781_v20 = vor.u32 %v6780_v24, %v6776_v55  ;;  %v4387_v23 = vor.u32 %v4386_v25, %v14465_v50  ;;  %v4207_v50 = vld [vmem:[#allocation2 + $0x168] sm:$0x1] }
 0x2f4   : > { %5127 = vst.msk [vmem:[#allocation3 + $0x10] sm:$0xf] %vm5124_vm13, %v4937_v56  ;;  %v5003_v52 = vpop.permute.xlu0 %5002  ;;  %8025 = vmatmul.mubr.bf16.vlgmr.msra.gmra.mxu0 %v11507_v58  ;;  %v14534_v56 = vld [vmem:[#allocation2 + $0x17c] sm:$0xf] }
 0x2f5   : > { %6379 = vrot.lane.b32.xlu1 %v6209_v34, %s11681_s11  ;;  %5160 = vst.msk [vmem:[#allocation3 + $0x118] sm:$0xf] %vm5124_vm13, %v5003_v52  ;;  %v14524_v34 = vrot.slane %v5725_v45, 7  ;;  %v7119_v58 = vrot.slane %v7117_v3, 4  ;;  %v7122_v51 = vrot.slane %v7120_v19, 5  ;;  %v6772_v52 = vrot.slane %v6771_v63, 4 }
 0x2f6   : > { %4956 = vrot.lane.b32.xlu0 %v4373_v30, %s11679_s10  ;;  %v7130_v30 = vshrl.u32 %v6608_v32, 16  ;;  %v6782_v39 = vrot.slane %v6781_v20, 4  ;;  %v7136_v37 = vshll.u32 %v14534_v56, 16  ;;  %v4748_v32 = vrot.slane %v4746_v49, 4  ;;  %v3809_v3 = vld [vmem:[#allocation2 + $0x160] sm:$0xf] }
 0x2f7   : > { %v5001_v33 = vpop.permute.xlu1 %5000  ;;  %v11510_v9 = vld [vmem:[#allocation3 + $0x100] ss:$8 sps:$4 sm:$0xff]   ;;  %v7123_v6 = vor.u32 %v7122_v51, %v7119_v58  ;;  %v6777_v8 = vsel %vm12019_vm6, %v6772_v52, %v6776_v55  ;;  %v4400_v19 = vshll.u32 %v4167_v15, 16  ;;  %v5414_v63 = vshrl.u32 %v5208_v54, 16 }
 0x2f8   : > { %5159 = vst.msk [vmem:[#allocation3 + $0x110] sm:$0xf] %vm5124_vm13, %v5001_v33  ;;  %v5917_v28 = vpop.permute.xlu0 %5916  ;;  %8153 = vmatmul.mubr.bf16.vlgmr.msra.gmra.mxu1 %v11510_v9  ;;  %v6787_v26 = vsel %vm12019_vm6, %v6782_v39, %v14529_v5  ;;  %v7132_v33 = vrot.slane %v7130_v30, 4  ;;  %v14555_v10 = vrot.slane %v7136_v37, 5  ;;  %v4388_v51 = vrot.slane %v4387_v23, 4 }
 0x2f9   : > { %3981 = vrot.lane.b32.xlu1 %v3808_v11, %s11677_s9  ;;  %6106 = vst.msk [vmem:[#allocation3 + $0x18] sm:$0xf] %vm6102_vm14, %v5917_v28  ;;  %v4166_v11 = vld [vmem:[#allocation2 + $0x84] sm:$0xf]  ;;  %v7124_v31 = vrot.slane %v7123_v6, 4  ;;  %v4749_v39 = vor.u32 %v4748_v32, %v14573_v53  ;;  %v5417_v6 = vshll.u32 %v5208_v54, 16 }
 0x2fa   : > { %5020 = vrot.lane.b32.xlu0 %v4725_v42, %s11679_s10  ;;  %v4390_v9 = vshll.u32 %v4166_v11, 16  ;;  %7412 = vst.msk [vmem:[#allocation3 + $0x64] sm:$0xf] %vm254_vm0, %v6777_v8  ;;  %7413 = vst.msk [vmem:[#allocation3 + $0x6c] sm:$0xf] %vm254_vm0, %v6787_v26  ;;  %v7133_v45 = vor.u32 %v7132_v33, %v7128_v57  ;;  %v5412_v49 = vrot.slane %v14486_v16, 4 }
 0x2fb   : > { %v5915_v46 = vpop.permute.xlu1 %5914  ;;  %v6179_v28 = vld [vmem:[#allocation2 + $0x94] sm:$0xf]  ;;  %v7129_v35 = vsel %vm12019_vm6, %v7124_v31, %v7128_v57  ;;  %v4752_v57 = vshll.u32 %v4207_v50, 16  ;;  %v6790_v32 = vrot.slane %v6788_v62, 4  ;;  %v4209_v62 = vld [vmem:[#allocation2 + $0x178] sm:$0xf] }
 0x2fc   : > { %6105 = vst.msk [vmem:[#allocation3 + $0x10] sm:$0xf] %vm6102_vm14, %v5915_v46  ;;  %v5981_v40 = vpop.permute.xlu0 %5980  ;;  %v7134_v60 = vrot.slane %v7133_v45, 4  ;;  %v4738_v46 = vrot.slane %v4736_v61, 4  ;;  %v14588_v61 = vld [vmem:[#allocation2 + $0xa0] sm:$0xf] }
 0x2fd   : > { %4958 = vrot.lane.b32.xlu1 %v4383_v17, %s11679_s10  ;;  %6138 = vst.msk [vmem:[#allocation3 + $0x118] sm:$0xf] %vm6102_vm14, %v5981_v40  ;;  %v5730_v17 = vor.u32 %v5728_v48, %v14524_v34  ;;  %v6180_v48 = vld [vmem:[#allocation2 + $0x98] sm:$0xf]  ;;  %v11515_v26 = vld [vmem:[#allocation3 + $0x114] ss:$8 sps:$4 sm:$0xff]  }
 0x2fe   : > { %5934 = vrot.lane.b32.xlu0 %v5402_v2, %s11680_s28  ;;  %v14565_v2 = vrot.slane %v4390_v9, 5  ;;  %7444 = vst.msk [vmem:[#allocation3 + $0x164] sm:$0xf] %vm254_vm0, %v7129_v35  ;;  %v7139_v55 = vsel %vm12019_vm6, %v7134_v60, %v14555_v10  ;;  %v4739_v30 = vor.u32 %v4738_v46, %v14479_v18  ;;  %v14591_v18 = vrot.slane %v5414_v63, 7  ;;  %v3810_v45 = vld [vmem:[#allocation2 + $0x164] sm:$0xf]  ;;  %11113 = vmatprep.mubr.msk.bf16.mxu1 %vm7895_vm1, %v11515_v26 }
 0x2ff   : > { %v5979_v38 = vpop.permute.xlu1 %5978  ;;  %v5731_v21 = vsel %vm11969_vm3, %v5723_v4, %v5730_v17  ;;  %7445 = vst.msk [vmem:[#allocation3 + $0x16c] sm:$0xf] %vm254_vm0, %v7139_v55  ;;  %v4402_v4 = vrot.slane %v4400_v19, 5  ;;  %v5423_v25 = vshrl.u32 %v14588_v61, 16  ;;  %v5426_v54 = vshll.u32 %v14588_v61, 16 }
 0x300   : > { %6137 = vst.msk [vmem:[#allocation3 + $0x110] sm:$0xf] %vm6102_vm14, %v5979_v38  ;;  %v6302_v43 = vpop.permute.xlu0 %6301  ;;  %v14581_v38 = vld [vmem:[#allocation2 + $0x17c] sm:$0xf]  ;;  %v4393_v17 = vsel %vm12019_vm6, %v4388_v51, %v14565_v2  ;;  %v4740_v9 = vrot.slane %v4739_v30, 4  ;;  %v5419_v35 = vor.u32 %v5417_v6, %v14591_v18 }
 0x301   : > { %5022 = vrot.lane.b32.xlu1 %v4735_v12, %s11679_s10  ;;  %6491 = vst.msk [vmem:[#allocation3 + $0x18] sm:$0xf] %vm6487_vm15, %v6302_v43  ;;  %v4394_v12 = vshrl.u32 %v4166_v11, 16  ;;  %v6212_v43 = vld [vmem:[#allocation2 + $0x178] sm:$0xf]  ;;  %v5425_v46 = vrot.slane %v5423_v25, 7 }
 0x302   : > { %5998 = vrot.lane.b32.xlu0 %v5722_v14, %s11680_s28  ;;  %v11513_v14 = vld [vmem:[#allocation3 + $0x14] ss:$8 sps:$4 sm:$0xff]   ;;  %v4745_v47 = vsel %vm12019_vm6, %v4740_v9, %v14573_v53  ;;  %v7140_v53 = vshrl.u32 %v14534_v56, 16  ;;  %v5420_v50 = vsel %vm11969_vm3, %v5412_v49, %v5419_v35  ;;  %v6571_v19 = vld [vmem:[#allocation2 + $0xa4] sm:$0x1] }
 0x303   : > { %v6300_v42 = vpop.permute.xlu1 %6299  ;;  %v4396_v13 = vrot.slane %v4394_v12, 4  ;;  %11097 = vmatprep.mubr.msk.bf16.mxu0 %vm7895_vm1, %v11513_v14  ;;  %v14600_v12 = vrot.slane %v4752_v57, 5  ;;  %v4168_v14 = vld [vmem:[#allocation2 + $0x94] sm:$0xf]  ;;  %v6804_v51 = vshll.u32 %v6571_v19, 16 }
 0x304   : > { %6490 = vst.msk [vmem:[#allocation3 + $0x10] sm:$0xf] %vm6487_vm15, %v6300_v42  ;;  %v6366_v22 = vpop.permute.xlu0 %6365  ;;  %v4169_v57 = vld [vmem:[#allocation2 + $0x98] sm:$0xf]  ;;  %v4405_v6 = vshrl.u32 %v4168_v14, 16 }
 0x305   : > { %5936 = vrot.lane.b32.xlu1 %v5411_v59, %s11680_s28  ;;  %6523 = vst.msk [vmem:[#allocation3 + $0x118] sm:$0xf] %vm6487_vm15, %v6366_v22  ;;  %v4397_v58 = vor.u32 %v4396_v13, %v14565_v2  ;;  %v5734_v59 = vshrl.u32 %v14581_v38, 16  ;;  %v14606_v22 = vld [vmem:[#allocation2 + $0x180] sm:$0xf]  ;;  %v6806_v61 = vrot.slane %v6804_v51, 5 }
 0x306   : > { %6319 = vrot.lane.b32.xlu0 %v6179_v28, %s11681_s11  ;;  %v14598_v28 = vrot.slane %v4749_v39, 4  ;;  %v5743_v55 = vshrl.u32 %v14606_v22, 16  ;;  %v5746_v39 = vshll.u32 %v14606_v22, 16  ;;  %v4418_v22 = vshrl.u32 %v4169_v57, 16 }
 0x307   : > { %v6364_v0 = vpop.permute.xlu1 %6363  ;;  %v4398_v33 = vrot.slane %v4397_v58, 4  ;;  %v14612_v60 = vrot.slane %v5734_v59, 7  ;;  %v6791_v58 = vor.u32 %v6790_v32, %v14529_v5 }
 0x308   : > { %6522 = vst.msk [vmem:[#allocation3 + $0x110] sm:$0xf] %vm6487_vm15, %v6364_v0  ;;  %v4943_v24 = vpop.permute.xlu0 %4942  ;;  %v7467_v40 = vld [vmem:[#allocation3 + $0x18] sm:$0xff]  ;;  %v4755_v23 = vsel %vm12019_vm6, %v14598_v28, %v14600_v12  ;;  %v4420_v32 = vrot.slane %v4418_v22, 4 }
 0x309   : > { %6000 = vrot.lane.b32.xlu1 %v5731_v21, %s11680_s28  ;;  %5130 = vst.msk [vmem:[#allocation3 + $0x28] sm:$0xf] %vm5124_vm13, %v4943_v24  ;;  %v5737_v21 = vshll.u32 %v14581_v38, 16  ;;  %v4403_v0 = vsel %vm12019_vm6, %v4398_v33, %v4402_v4  ;;  %v5421_v24 = vrot.slane %v14591_v18, 4  ;;  %v4408_v33 = vshll.u32 %v4168_v14, 16 }
 0x30a   : > { %6383 = vrot.lane.b32.xlu0 %v6211_v36, %s11681_s11  ;;  %v6570_v36 = vld [vmem:[#allocation2 + $0xa0] sm:$0xf]  ;;  %v4208_v4 = vld [vmem:[#allocation2 + $0x174] sm:$0xf]  ;;  %v5741_v12 = vrot.slane %v14612_v60, 4 }
 0x30b   : > { %v4941_v20 = vpop.permute.xlu1 %4940  ;;  %v7466_v27 = vld [vmem:[#allocation3 + $0x10] sm:$0xff]  ;;  %v6794_v15 = vshll.u32 %v6570_v36, 16  ;;  %v6798_v13 = vshrl.u32 %v6570_v36, 16  ;;  %v4760_v36 = vshll.u32 %v4208_v4, 16 }
 0x30c   : > { %5129 = vst.msk [vmem:[#allocation3 + $0x20] sm:$0xf] %vm5124_vm13, %v4941_v20  ;;  %v5007_v11 = vpop.permute.xlu0 %5006  ;;  %v11025_v52 = vcombine.low %v7466_v27, %v7467_v40  ;;  %v7499_v37 = vld [vmem:[#allocation3 + $0x118] sm:$0xff]  ;;  %v6610_v20 = vld [vmem:[#allocation2 + $0x180] sm:$0xf] }
 0x30d   : > { %6321 = vrot.lane.b32.xlu1 %v6180_v48, %s11681_s11  ;;  %5162 = vst.msk [vmem:[#allocation3 + $0x128] sm:$0xf] %vm5124_vm13, %v5007_v11  ;;  %v6796_v40 = vrot.slane %v6794_v15, 5  ;;  %v5732_v48 = vrot.slane %v14524_v34, 4  ;;  %v6800_v63 = vrot.slane %v6798_v13, 4  ;;  %v7146_v56 = vshll.u32 %v6610_v20, 16 }
 0x30e   : > { %8033 = vmatmul.mubr.bf16.gmra.mxu0 %v11025_v52  ;;  %3983 = vrot.lane.b32.xlu0 %v3809_v3, %s11677_s9  ;;  %v5739_v3 = vor.u32 %v5737_v21, %v14612_v60  ;;  %v7150_v30 = vshrl.u32 %v6610_v20, 16  ;;  %v5428_v11 = vor.u32 %v5426_v54, %v5425_v46  ;;  %v5745_v52 = vrot.slane %v5743_v55, 7 }
 0x30f   : > { %v5005_v7 = vpop.permute.xlu1 %5004  ;;  %v7498_v8 = vld [vmem:[#allocation3 + $0x110] sm:$0xff]  ;;  %v6801_v34 = vor.u32 %v6800_v63, %v6796_v40  ;;  %v7148_v5 = vrot.slane %v7146_v56, 5  ;;  %v4757_v60 = vshrl.u32 %v4208_v4, 16  ;;  %v4407_v15 = vrot.slane %v4405_v6, 4 }
 0x310   : > { %5161 = vst.msk [vmem:[#allocation3 + $0x120] sm:$0xf] %vm5124_vm13, %v5005_v7  ;;  %v11057_v31 = vcombine.low %v7498_v8, %v7499_v37  ;;  %v5921_v42 = vpop.permute.xlu0 %5920  ;;  %v6792_v37 = vrot.slane %v6791_v58, 4  ;;  %v5740_v18 = vsel %vm11969_vm3, %v5732_v48, %v5739_v3  ;;  %v6611_v7 = vld [vmem:[#allocation2 + $0x184] sm:$0x1]  ;;  %v7152_v8 = vrot.slane %v7150_v30, 4 }
 0x311   : > { %6385 = vrot.lane.b32.xlu1 %v6212_v43, %s11681_s11  ;;  %6108 = vst.msk [vmem:[#allocation3 + $0x28] sm:$0xf] %vm6102_vm14, %v5921_v42  ;;  %v7142_v43 = vrot.slane %v7140_v53, 4  ;;  %v6802_v59 = vrot.slane %v6801_v34, 4  ;;  %v5429_v42 = vsel %vm11969_vm3, %v5421_v24, %v5428_v11  ;;  %v5748_v21 = vor.u32 %v5746_v39, %v5745_v52  ;;  %v14672_v48 = vld [vmem:[#allocation2 + $0x9c] sm:$0xf] }
 0x312   : > { %8161 = vmatmul.mubr.bf16.gmra.mxu1 %v11057_v31  ;;  %4960 = vrot.lane.b32.xlu0 %v4393_v17, %s11679_s10  ;;  %v6797_v17 = vsel %vm12019_vm6, %v6792_v37, %v6796_v40  ;;  %v7156_v31 = vshll.u32 %v6611_v7, 16  ;;  %v4410_v13 = vrot.slane %v4408_v33, 5  ;;  %v4766_v46 = vshll.u32 %v4209_v62, 16  ;;  %v14674_v58 = vld [vmem:[#allocation2 + $0xb0] sm:$0xf] }
 0x313   : > { %v5919_v2 = vpop.permute.xlu1 %5918  ;;  %v7143_v9 = vor.u32 %v7142_v43, %v14555_v10  ;;  %v6807_v25 = vsel %vm12019_vm6, %v6802_v59, %v6806_v61  ;;  %7414 = vst.msk [vmem:[#allocation3 + $0x74] sm:$0xf] %vm254_vm0, %v6797_v17  ;;  %v4414_v10 = vshll.u32 %v4169_v57, 16  ;;  %v4770_v54 = vshrl.u32 %v4209_v62, 16  ;;  %v6182_v11 = vld [vmem:[#allocation2 + $0xa0] sm:$0xf] }
 0x314   : > { %6107 = vst.msk [vmem:[#allocation3 + $0x20] sm:$0xf] %vm6102_vm14, %v5919_v2  ;;  %v5985_v16 = vpop.permute.xlu0 %5984  ;;  %v7158_v35 = vrot.slane %v7156_v31, 5  ;;  %v5749_v40 = vsel %vm11969_vm3, %v5741_v12, %v5748_v21  ;;  %v4759_v3 = vrot.slane %v4757_v60, 4  ;;  %v4762_v19 = vrot.slane %v4760_v36, 5 }
 0x315   : > { %3985 = vrot.lane.b32.xlu1 %v3810_v45, %s11677_s9  ;;  %6140 = vst.msk [vmem:[#allocation3 + $0x128] sm:$0xf] %vm6102_vm14, %v5985_v16  ;;  %v7153_v45 = vor.u32 %v7152_v8, %v7148_v5  ;;  %v7144_v49 = vrot.slane %v7143_v9, 4  ;;  %v14666_v53 = vrot.slane %v4414_v10, 5  ;;  %v4411_v14 = vor.u32 %v4410_v13, %v4407_v15  ;;  %v14684_v57 = vld [vmem:[#allocation2 + $0x17c] sm:$0xf] }
 0x316   : > { %5024 = vrot.lane.b32.xlu0 %v4745_v47, %s11679_s10  ;;  %7415 = vst.msk [vmem:[#allocation3 + $0x7c] sm:$0xf] %vm254_vm0, %v6807_v25  ;;  %v6181_v47 = vld [vmem:[#allocation2 + $0x9c] sm:$0xf]  ;;  %v14677_v30 = vrot.slane %v4766_v46, 5  ;;  %v4424_v34 = vshll.u32 %v14672_v48, 16  ;;  %v4763_v61 = vor.u32 %v4762_v19, %v4759_v3 }
 0x317   : > { %v5983_v27 = vpop.permute.xlu1 %5982  ;;  %v7154_v2 = vrot.slane %v7153_v45, 4  ;;  %v7149_v16 = vsel %vm12019_vm6, %v7144_v49, %v7148_v5  ;;  %v4421_v39 = vor.u32 %v4420_v32, %v14666_v53  ;;  %v3811_v37 = vld [vmem:[#allocation2 + $0x174] sm:$0xf]  ;;  %v5436_v5 = vshrl.u32 %v14674_v58, 16  ;;  %v11519_v59 = vld [vmem:[#allocation3 + $0x124] ss:$8 sps:$4 sm:$0xff]  }
 0x318   : > { %6139 = vst.msk [vmem:[#allocation3 + $0x120] sm:$0xf] %vm6102_vm14, %v5983_v27  ;;  %v6306_v38 = vpop.permute.xlu0 %6305  ;;  %v11517_v27 = vld [vmem:[#allocation3 + $0x24] ss:$8 sps:$4 sm:$0xff]   ;;  %v14687_v43 = vld [vmem:[#allocation2 + $0xb4] sm:$0xf]  ;;  %11114 = vmatprep.mubr.msk.bf16.mxu1 %vm7895_vm1, %v11519_v59 }
 0x319   : > { %4962 = vrot.lane.b32.xlu1 %v4403_v0, %s11679_s10  ;;  %6493 = vst.msk [vmem:[#allocation3 + $0x28] sm:$0xf] %vm6487_vm15, %v6306_v38  ;;  %v7159_v55 = vsel %vm12019_vm6, %v7154_v2, %v7158_v35  ;;  %v4772_v38 = vrot.slane %v4770_v54, 4  ;;  %11098 = vmatprep.mubr.msk.bf16.mxu0 %vm7895_vm1, %v11517_v27  ;;  %v4412_v7 = vrot.slane %v4411_v14, 4  ;;  %v5210_v8 = vld [vmem:[#allocation2 + $0xac] sm:$0x8] }
 0x31a   : > { %5938 = vrot.lane.b32.xlu0 %v5420_v50, %s11680_s28  ;;  %7446 = vst.msk [vmem:[#allocation3 + $0x174] sm:$0xf] %vm254_vm0, %v7149_v16  ;;  %7447 = vst.msk [vmem:[#allocation3 + $0x17c] sm:$0xf] %vm254_vm0, %v7159_v55  ;;  %v6213_v50 = vld [vmem:[#allocation2 + $0x17c] sm:$0xf] }
 0x31b   : > { %v6304_v26 = vpop.permute.xlu1 %6303  ;;  %v4773_v4 = vor.u32 %v4772_v38, %v14677_v30  ;;  %v4776_v17 = vshll.u32 %v14684_v57, 16  ;;  %v14693_v9 = vld [vmem:[#allocation2 + $0x190] sm:$0xf]  ;;  %v14698_v31 = vrot.slane %v4421_v39, 4  ;;  %v6214_v12 = vld [vmem:[#allocation2 + $0x180] sm:$0xf]  ;;  %v4417_v49 = vsel %vm12019_vm6, %v4412_v7, %v14666_v53 }
 0x31c   : > { %6492 = vst.msk [vmem:[#allocation3 + $0x20] sm:$0xf] %vm6487_vm15, %v6304_v26  ;;  %v6370_v28 = vpop.permute.xlu0 %6369  ;;  %v4764_v25 = vrot.slane %v4763_v61, 4  ;;  %v14704_v45 = vrot.slane %v5436_v5, 7  ;;  %v5431_v10 = vshrl.u32 %v5210_v8, 16  ;;  %v5439_v22 = vshll.u32 %v14674_v58, 16 }
 0x31d   : > { %5026 = vrot.lane.b32.xlu1 %v4755_v23, %s11679_s10  ;;  %6525 = vst.msk [vmem:[#allocation3 + $0x128] sm:$0xf] %vm6487_vm15, %v6370_v28  ;;  %v5445_v28 = vshrl.u32 %v14687_v43, 16  ;;  %v5756_v35 = vshrl.u32 %v14693_v9, 16  ;;  %v14712_v60 = vrot.slane %v4773_v4, 4  ;;  %v14714_v36 = vrot.slane %v4776_v17, 5 }
 0x31e   : > { %6002 = vrot.lane.b32.xlu0 %v5740_v18, %s11680_s28  ;;  %v5250_v2 = vld [vmem:[#allocation2 + $0x18c] sm:$0x8]  ;;  %v5448_v13 = vshll.u32 %v14687_v43, 16  ;;  %v14725_v16 = vld [vmem:[#allocation2 + $0x194] sm:$0xf]  ;;  %v4769_v46 = vsel %vm12019_vm6, %v4764_v25, %v14677_v30  ;;  %v11010_v54 = vrot.slane %v5431_v10, 11  ;;  %v5441_v55 = vor.u32 %v5439_v22, %v14704_v45 }
 0x31f   : > { %v6368_v0 = vpop.permute.xlu1 %6367  ;;  %v14722_v15 = vrot.slane %v5445_v28, 7  ;;  %v6573_v53 = vld [vmem:[#allocation2 + $0xb4] sm:$0xf]  ;;  %v5759_v3 = vshll.u32 %v14693_v9, 16  ;;  %v5765_v30 = vshrl.u32 %v14725_v16, 16 }
 0x320   : > { %6524 = vst.msk [vmem:[#allocation3 + $0x120] sm:$0xf] %vm6487_vm15, %v6368_v0  ;;  %v4947_v23 = vpop.permute.xlu0 %4946  ;;  %v7469_v24 = vld [vmem:[#allocation3 + $0x28] sm:$0xff]  ;;  %v3812_v0 = vld [vmem:[#allocation2 + $0x178] sm:$0xf]  ;;  %v6818_v14 = vshll.u32 %v6573_v53, 16  ;;  %v5442_v43 = vsel %vm11969_vm3, %v11010_v54, %v5441_v55 }
 0x321   : > { %5940 = vrot.lane.b32.xlu1 %v5429_v42, %s11680_s28  ;;  %5132 = vst.msk [vmem:[#allocation3 + $0x38] sm:$0xf] %vm5124_vm13, %v4947_v23  ;;  %v14700_v42 = vrot.slane %v4424_v34, 5  ;;  %v4428_v23 = vshrl.u32 %v14672_v48, 16  ;;  %v6822_v58 = vshrl.u32 %v6573_v53, 16  ;;  %v14757_v9 = vrot.slane %v5765_v30, 7 }
 0x322   : > { %6323 = vrot.lane.b32.xlu0 %v6181_v47, %s11681_s11  ;;  %v6820_v34 = vrot.slane %v6818_v14, 5  ;;  %v6612_v59 = vld [vmem:[#allocation2 + $0x190] sm:$0xf]  ;;  %v6613_v7 = vld [vmem:[#allocation2 + $0x194] sm:$0xf] }
 0x323   : > { %v4945_v63 = vpop.permute.xlu1 %4944  ;;  %v7468_v20 = vld [vmem:[#allocation3 + $0x20] sm:$0xff]  ;;  %v4427_v47 = vsel %vm12019_vm6, %v14698_v31, %v14700_v42  ;;  %v7161_v4 = vshrl.u32 %v6612_v59, 16  ;;  %v7164_v17 = vshll.u32 %v6612_v59, 16  ;;  %v7170_v28 = vshll.u32 %v6613_v7, 16  ;;  %v4211_v53 = vld [vmem:[#allocation2 + $0x180] sm:$0xf] }
 0x324   : > { %5131 = vst.msk [vmem:[#allocation3 + $0x30] sm:$0xf] %vm5124_vm13, %v4945_v63  ;;  %v5011_v51 = vpop.permute.xlu0 %5010  ;;  %v11027_v56 = vcombine.low %v7468_v20, %v7469_v24  ;;  %v7501_v52 = vld [vmem:[#allocation3 + $0x128] sm:$0xff]  ;;  %v6572_v24 = vld [vmem:[#allocation2 + $0xb0] sm:$0xf]  ;;  %v4779_v20 = vsel %vm12019_vm6, %v14712_v60, %v14714_v36 }
 0x325   : > { %6004 = vrot.lane.b32.xlu1 %v5749_v40, %s11680_s28  ;;  %5164 = vst.msk [vmem:[#allocation3 + $0x138] sm:$0xf] %vm5124_vm13, %v5011_v51  ;;  %v14733_v40 = vrot.slane %v5756_v35, 7  ;;  %v6809_v19 = vshrl.u32 %v6572_v24, 16  ;;  %v6812_v27 = vshll.u32 %v6572_v24, 16  ;;  %v5443_v51 = vrot.slane %v14704_v45, 4 }
 0x326   : > { %8041 = vmatmul.mubr.bf16.gmra.mxu0 %v11027_v56  ;;  %6387 = vrot.lane.b32.xlu0 %v6213_v50, %s11681_s11  ;;  %v5751_v50 = vshrl.u32 %v5250_v2, 16  ;;  %v5450_v56 = vor.u32 %v5448_v13, %v14722_v15  ;;  %v14762_v10 = vld [vmem:[#allocation2 + $0x198] sm:$0xf]  ;;  %v7163_v22 = vrot.slane %v7161_v4, 4  ;;  %v7172_v60 = vrot.slane %v7170_v28, 5 }
 0x327   : > { %v5009_v18 = vpop.permute.xlu1 %5008  ;;  %v7500_v6 = vld [vmem:[#allocation3 + $0x120] sm:$0xff]  ;;  %v6811_v38 = vrot.slane %v6809_v19, 4  ;;  %v6814_v39 = vrot.slane %v6812_v27, 5  ;;  %v5763_v55 = vrot.slane %v14733_v40, 4  ;;  %v4780_v27 = vshrl.u32 %v14684_v57, 16 }
 0x328   : > { %5163 = vst.msk [vmem:[#allocation3 + $0x130] sm:$0xf] %vm5124_vm13, %v5009_v18  ;;  %v11059_v26 = vcombine.low %v7500_v6, %v7501_v52  ;;  %v5925_v33 = vpop.permute.xlu0 %5924  ;;  %v14748_v52 = vld [vmem:[#allocation2 + $0xb8] sm:$0xf]  ;;  %v11018_v5 = vrot.slane %v5751_v50, 11  ;;  %v5761_v18 = vor.u32 %v5759_v3, %v14733_v40  ;;  %v5451_v54 = vsel %vm11969_vm3, %v5443_v51, %v5450_v56 }
 0x329   : > { %6325 = vrot.lane.b32.xlu1 %v6182_v11, %s11681_s11  ;;  %6110 = vst.msk [vmem:[#allocation3 + $0x38] sm:$0xf] %vm6102_vm14, %v5925_v33  ;;  %v5768_v11 = vshll.u32 %v14725_v16, 16  ;;  %v6828_v6 = vshll.u32 %v14748_v52, 16  ;;  %v6183_v3 = vld [vmem:[#allocation2 + $0xb0] sm:$0xf] }
 0x32a   : > { %8169 = vmatmul.mubr.bf16.gmra.mxu1 %v11059_v26  ;;  %3987 = vrot.lane.b32.xlu0 %v3811_v37, %s11677_s9  ;;  %v6824_v37 = vrot.slane %v6822_v58, 4  ;;  %v6815_v26 = vor.u32 %v6814_v39, %v6811_v38  ;;  %v5762_v35 = vsel %vm11969_vm3, %v11018_v5, %v5761_v18  ;;  %v11521_v40 = vld [vmem:[#allocation3 + $0x34] ss:$8 sps:$4 sm:$0xff]   ;;  %v4430_v51 = vrot.slane %v4428_v23, 4 }
 0x32b   : > { %v5923_v62 = vpop.permute.xlu1 %5922  ;;  %v14759_v31 = vrot.slane %v6828_v6, 5  ;;  %v5770_v50 = vor.u32 %v5768_v11, %v14757_v9  ;;  %v4786_v11 = vshll.u32 %v4211_v53, 16  ;;  %v4790_v39 = vshrl.u32 %v4211_v53, 16  ;;  %11099 = vmatprep.mubr.msk.bf16.mxu0 %vm7895_vm1, %v11521_v40  ;;  %v11523_v6 = vld [vmem:[#allocation3 + $0x134] ss:$8 sps:$4 sm:$0xff]  }
 0x32c   : > { %6109 = vst.msk [vmem:[#allocation3 + $0x30] sm:$0xf] %vm6102_vm14, %v5923_v62  ;;  %v5989_v21 = vpop.permute.xlu0 %5988  ;;  %v6825_v33 = vor.u32 %v6824_v37, %v6820_v34  ;;  %v6816_v25 = vrot.slane %v6815_v26, 4  ;;  %v7166_v62 = vrot.slane %v7164_v17, 5  ;;  %v6215_v37 = vld [vmem:[#allocation2 + $0x190] sm:$0xf]  ;;  %v4431_v59 = vor.u32 %v4430_v51, %v14700_v42  ;;  %11115 = vmatprep.mubr.msk.bf16.mxu1 %vm7895_vm1, %v11523_v6 }
 0x32d   : > { %6389 = vrot.lane.b32.xlu1 %v6214_v12, %s11681_s11  ;;  %6142 = vst.msk [vmem:[#allocation3 + $0x138] sm:$0xf] %vm6102_vm14, %v5989_v21  ;;  %v7174_v12 = vshrl.u32 %v6613_v7, 16  ;;  %v4171_v21 = vld [vmem:[#allocation2 + $0xa0] sm:$0xf]  ;;  %v5771_v23 = vsel %vm11969_vm3, %v5763_v55, %v5770_v50  ;;  %v4782_v7 = vrot.slane %v4780_v27, 4 }
 0x32e   : > { %4964 = vrot.lane.b32.xlu0 %v4417_v49, %s11679_s10  ;;  %v6826_v45 = vrot.slane %v6825_v33, 4  ;;  %v6821_v13 = vsel %vm12019_vm6, %v6816_v25, %v6820_v34  ;;  %v4434_v19 = vshll.u32 %v4171_v21, 16  ;;  %v4172_v17 = vld [vmem:[#allocation2 + $0xa4] sm:$0x1]  ;;  %v14802_v28 = vrot.slane %v4786_v11, 5 }
 0x32f   : > { %v5987_v32 = vpop.permute.xlu1 %5986  ;;  %v7176_v2 = vrot.slane %v7174_v12, 4  ;;  %7416 = vst.msk [vmem:[#allocation3 + $0x84] sm:$0xf] %vm254_vm0, %v6821_v13  ;;  %v4792_v12 = vrot.slane %v4790_v39, 4  ;;  %v4212_v42 = vld [vmem:[#allocation2 + $0x184] sm:$0x1] }
 0x330   : > { %6141 = vst.msk [vmem:[#allocation3 + $0x130] sm:$0xf] %vm6102_vm14, %v5987_v32  ;;  %v6310_v63 = vpop.permute.xlu0 %6309  ;;  %v6831_v16 = vsel %vm12019_vm6, %v6826_v45, %v14759_v31  ;;  %v6184_v25 = vld [vmem:[#allocation2 + $0xb4] sm:$0xf]  ;;  %v4796_v13 = vshll.u32 %v4212_v42, 16  ;;  %v6832_v40 = vshrl.u32 %v14748_v52, 16 }
 0x331   : > { %3989 = vrot.lane.b32.xlu1 %v3812_v0, %s11677_s9  ;;  %6495 = vst.msk [vmem:[#allocation3 + $0x38] sm:$0xf] %vm6487_vm15, %v6310_v63  ;;  %v7180_v0 = vshll.u32 %v14762_v10, 16  ;;  %v7177_v32 = vor.u32 %v7176_v2, %v7172_v60  ;;  %v4438_v63 = vshrl.u32 %v4171_v21, 16  ;;  %v4432_v21 = vrot.slane %v4431_v59, 4 }
 0x332   : > { %5028 = vrot.lane.b32.xlu0 %v4769_v46, %s11679_s10  ;;  %v7167_v46 = vor.u32 %v7166_v62, %v7163_v22  ;;  %7417 = vst.msk [vmem:[#allocation3 + $0x8c] sm:$0xf] %vm254_vm0, %v6831_v16  ;;  %v5253_v2 = vld [vmem:[#allocation2 + $0x198] sm:$0xf]  ;;  %v5214_v16 = vld [vmem:[#allocation2 + $0xbc] sm:$0xf] }
 0x333   : > { %v6308_v61 = vpop.permute.xlu1 %6307  ;;  %v14785_v56 = vrot.slane %v7180_v0, 5  ;;  %v7178_v48 = vrot.slane %v7177_v32, 4  ;;  %v14822_v27 = vrot.slane %v4796_v13, 5  ;;  %v5452_v51 = vrot.slane %v14722_v15, 4  ;;  %v6575_v39 = vld [vmem:[#allocation2 + $0xbc] sm:$0xf] }
 0x334   : > { %6494 = vst.msk [vmem:[#allocation3 + $0x30] sm:$0xf] %vm6487_vm15, %v6308_v61  ;;  %v6374_v8 = vpop.permute.xlu0 %6373  ;;  %v4436_v61 = vrot.slane %v4434_v19, 5  ;;  %v5463_v19 = vshrl.u32 %v5214_v16, 16  ;;  %v5777_v11 = vshll.u32 %v5253_v2, 16  ;;  %v6838_v52 = vshll.u32 %v6575_v39, 16 }
 0x335   : > { %4966 = vrot.lane.b32.xlu1 %v4427_v47, %s11679_s10  ;;  %6527 = vst.msk [vmem:[#allocation3 + $0x138] sm:$0xf] %vm6487_vm15, %v6374_v8  ;;  %v5213_v8 = vld [vmem:[#allocation2 + $0xb8] sm:$0xf]  ;;  %v7183_v26 = vsel %vm12019_vm6, %v7178_v48, %v14785_v56  ;;  %v7184_v6 = vshrl.u32 %v14762_v10, 16  ;;  %v6834_v59 = vrot.slane %v6832_v40, 4 }
 0x336   : > { %5942 = vrot.lane.b32.xlu0 %v5442_v43, %s11680_s28  ;;  %v4440_v43 = vrot.slane %v4438_v63, 4  ;;  %7449 = vst.msk [vmem:[#allocation3 + $0x18c] sm:$0xf] %vm254_vm0, %v7183_v26  ;;  %v5454_v22 = vshrl.u32 %v5213_v8, 16  ;;  %v4437_v50 = vsel %vm12019_vm6, %v4432_v21, %v4436_v61  ;;  %v5772_v26 = vrot.slane %v14757_v9, 4 }
 0x337   : > { %v6372_v49 = vpop.permute.xlu1 %6371  ;;  %v4173_v42 = vld [vmem:[#allocation2 + $0xb0] sm:$0xf] }
 0x338   : > { %6526 = vst.msk [vmem:[#allocation3 + $0x130] sm:$0xf] %vm6487_vm15, %v6372_v49  ;;  %v4951_v47 = vpop.permute.xlu0 %4950  ;;  %v7471_v24 = vld [vmem:[#allocation3 + $0x38] sm:$0xff]  ;;  %v4441_v45 = vor.u32 %v4440_v43, %v4436_v61  ;;  %v3813_v49 = vld [vmem:[#allocation2 + $0x17c] sm:$0xf]  ;;  %v14815_v55 = vrot.slane %v5454_v22, 7 }
 0x339   : > { %5030 = vrot.lane.b32.xlu1 %v4779_v20, %s11679_s10  ;;  %5134 = vst.msk [vmem:[#allocation3 + $0x48] sm:$0xf] %vm5124_vm13, %v4951_v47  ;;  %v7168_v20 = vrot.slane %v7167_v46, 4  ;;  %v4793_v47 = vor.u32 %v4792_v12, %v14802_v28  ;;  %v6216_v46 = vld [vmem:[#allocation2 + $0x194] sm:$0xf]  ;;  %v5466_v61 = vshll.u32 %v5214_v16, 16 }
 0x33a   : > { %6006 = vrot.lane.b32.xlu0 %v5762_v35, %s11680_s28  ;;  %v4444_v35 = vshll.u32 %v4172_v17, 16  ;;  %v4449_v16 = vshrl.u32 %v4173_v42, 16 }
 0x33b   : > { %v4949_v14 = vpop.permute.xlu1 %4948  ;;  %v7470_v58 = vld [vmem:[#allocation3 + $0x30] sm:$0xff]  ;;  %v7173_v34 = vsel %vm12019_vm6, %v7168_v20, %v7172_v60  ;;  %v4783_v60 = vor.u32 %v4782_v7, %v14714_v36  ;;  %v5774_v36 = vshrl.u32 %v5253_v2, 16  ;;  %v14820_v20 = vrot.slane %v4793_v47, 4 }
 0x33c   : > { %5133 = vst.msk [vmem:[#allocation3 + $0x40] sm:$0xf] %vm5124_vm13, %v4949_v14  ;;  %v5015_v30 = vpop.permute.xlu0 %5014  ;;  %v11029_v38 = vcombine.low %v7470_v58, %v7471_v24  ;;  %v7503_v57 = vld [vmem:[#allocation3 + $0x138] sm:$0xff]  ;;  %v5457_v24 = vshll.u32 %v5213_v8, 16  ;;  %v4446_v32 = vrot.slane %v4444_v35, 5  ;;  %v6840_v7 = vrot.slane %v6838_v52, 5 }
 0x33d   : > { %5944 = vrot.lane.b32.xlu1 %v5451_v54, %s11680_s28  ;;  %5166 = vst.msk [vmem:[#allocation3 + $0x148] sm:$0xf] %vm5124_vm13, %v5015_v30  ;;  %v4442_v54 = vrot.slane %v4441_v45, 4  ;;  %v3814_v14 = vld [vmem:[#allocation2 + $0x180] sm:$0xf]  ;;  %v4799_v15 = vsel %vm12019_vm6, %v14820_v20, %v14822_v27  ;;  %v7186_v47 = vrot.slane %v7184_v6, 4 }
 0x33e   : > { %7448 = vst.msk [vmem:[#allocation3 + $0x184] sm:$0xf] %vm254_vm0, %v7173_v34  ;;  %8049 = vmatmul.mubr.bf16.gmra.mxu0 %v11029_v38  ;;  %6327 = vrot.lane.b32.xlu0 %v6183_v3, %s11681_s11  ;;  %v4784_v3 = vrot.slane %v4783_v60, 4  ;;  %v14826_v58 = vld [vmem:[#allocation2 + $0x19c] sm:$0xf]  ;;  %v5459_v30 = vor.u32 %v5457_v24, %v14815_v55  ;;  %v14832_v38 = vrot.slane %v5774_v36, 7 }
 0x33f   : > { %v5013_v5 = vpop.permute.xlu1 %5012  ;;  %v7502_v18 = vld [vmem:[#allocation3 + $0x130] sm:$0xff]  ;;  %v5783_v43 = vshrl.u32 %v14826_v58, 16  ;;  %v5786_v21 = vshll.u32 %v14826_v58, 16  ;;  %v4213_v27 = vld [vmem:[#allocation2 + $0x190] sm:$0xf] }
 0x340   : > { %5165 = vst.msk [vmem:[#allocation3 + $0x140] sm:$0xf] %vm5124_vm13, %v5013_v5  ;;  %v11061_v33 = vcombine.low %v7502_v18, %v7503_v57  ;;  %v5929_v4 = vpop.permute.xlu0 %5928  ;;  %v4447_v57 = vsel %vm12019_vm6, %v4442_v54, %v4446_v32  ;;  %v4789_v48 = vsel %vm12019_vm6, %v4784_v3, %v14802_v28  ;;  %v6842_v5 = vshrl.u32 %v6575_v39, 16  ;;  %v6615_v28 = vld [vmem:[#allocation2 + $0x19c] sm:$0xf] }
 0x341   : > { %6008 = vrot.lane.b32.xlu1 %v5771_v23, %s11680_s28  ;;  %6112 = vst.msk [vmem:[#allocation3 + $0x48] sm:$0xf] %vm6102_vm14, %v5929_v4  ;;  %v5465_v23 = vrot.slane %v5463_v19, 7  ;;  %v5461_v18 = vrot.slane %v14815_v55, 4  ;;  %v5460_v8 = vsel %vm11969_vm3, %v5452_v51, %v5459_v30  ;;  %v6576_v4 = vld [vmem:[#allocation2 + $0xc0] sm:$0x1]  ;;  %v7187_v3 = vor.u32 %v7186_v47, %v14785_v56 }
 0x342   : > { %8177 = vmatmul.mubr.bf16.gmra.mxu1 %v11061_v33  ;;  %6391 = vrot.lane.b32.xlu0 %v6215_v37, %s11681_s11  ;;  %v5779_v33 = vor.u32 %v5777_v11, %v14832_v38  ;;  %v6844_v17 = vrot.slane %v6842_v5, 4  ;;  %v6848_v45 = vshll.u32 %v6576_v4, 16  ;;  %v7190_v10 = vshll.u32 %v6615_v28, 16  ;;  %v6616_v54 = vld [vmem:[#allocation2 + $0x1a0] sm:$0x1] }
 0x343   : > { %v5927_v62 = vpop.permute.xlu1 %5926  ;;  %v7194_v22 = vshrl.u32 %v6615_v28, 16  ;;  %v5785_v35 = vrot.slane %v5783_v43, 7  ;;  %v4452_v32 = vshll.u32 %v4173_v42, 16  ;;  %v7200_v19 = vshll.u32 %v6616_v54, 16  ;;  %v4214_v4 = vld [vmem:[#allocation2 + $0x194] sm:$0xf] }
 0x344   : > { %6111 = vst.msk [vmem:[#allocation3 + $0x40] sm:$0xf] %vm6102_vm14, %v5927_v62  ;;  %v5993_v0 = vpop.permute.xlu0 %5992  ;;  %v6845_v9 = vor.u32 %v6844_v17, %v6840_v7  ;;  %v5780_v13 = vsel %vm11969_vm3, %v5772_v26, %v5779_v33  ;;  %v5781_v56 = vrot.slane %v14832_v38, 4  ;;  %v7188_v51 = vrot.slane %v7187_v3, 4  ;;  %v6217_v33 = vld [vmem:[#allocation2 + $0x198] sm:$0xf] }
 0x345   : > { %6329 = vrot.lane.b32.xlu1 %v6184_v25, %s11681_s11  ;;  %6144 = vst.msk [vmem:[#allocation3 + $0x148] sm:$0xf] %vm6102_vm14, %v5993_v0  ;;  %v6835_v25 = vor.u32 %v6834_v59, %v14759_v31  ;;  %v6850_v0 = vrot.slane %v6848_v45, 5  ;;  %v7192_v31 = vrot.slane %v7190_v10, 5  ;;  %v7196_v55 = vrot.slane %v7194_v22, 4 }
 0x346   : > { %3991 = vrot.lane.b32.xlu0 %v3813_v49, %s11677_s9  ;;  %v5468_v49 = vor.u32 %v5466_v61, %v5465_v23  ;;  %v7202_v30 = vrot.slane %v7200_v19, 5  ;;  %v5788_v39 = vor.u32 %v5786_v21, %v5785_v35  ;;  %v4454_v38 = vrot.slane %v4452_v32, 5  ;;  %v447_v17 = vld [vmem:[#allocation2 + $0x1e0] sm:$0x8]  ;;  %v5216_v45 = vld [vmem:[#allocation2 + $0xcc] sm:$0xf] }
 0x347   : > { %v5991_v53 = vpop.permute.xlu1 %5990  ;;  %v6836_v2 = vrot.slane %v6835_v25, 4  ;;  %v7197_v58 = vor.u32 %v7196_v55, %v7192_v31  ;;  %v4801_v61 = vshrl.u32 %v4213_v27, 16  ;;  %v4804_v43 = vshll.u32 %v4213_v27, 16  ;;  %v6218_v54 = vld [vmem:[#allocation2 + $0x19c] sm:$0xf] }
 0x348   : > { %6143 = vst.msk [vmem:[#allocation3 + $0x140] sm:$0xf] %vm6102_vm14, %v5991_v53  ;;  %v6314_v63 = vpop.permute.xlu0 %6313  ;;  %v11525_v53 = vld [vmem:[#allocation3 + $0x44] ss:$8 sps:$4 sm:$0xff]   ;;  %v5469_v11 = vsel %vm11969_vm3, %v5461_v18, %v5468_v49  ;;  %v7193_v5 = vsel %vm12019_vm6, %v7188_v51, %v7192_v31  ;;  %v5789_v26 = vsel %vm11969_vm3, %v5781_v56, %v5788_v39  ;;  %v448_v10 = vsel %vm11963_vm2, 0, %v447_v17 }
 0x349   : > { %6393 = vrot.lane.b32.xlu1 %v6216_v46, %s11681_s11  ;;  %6497 = vst.msk [vmem:[#allocation3 + $0x48] sm:$0xf] %vm6487_vm15, %v6314_v63  ;;  %v6846_v46 = vrot.slane %v6845_v9, 4  ;;  %11100 = vmatprep.mubr.msk.bf16.mxu0 %vm7895_vm1, %v11525_v53  ;;  %v7198_v23 = vrot.slane %v7197_v58, 4  ;;  %v4803_v42 = vrot.slane %v4801_v61, 4  ;;  %v4806_v25 = vrot.slane %v4804_v43, 5 }
 0x34a   : > { %4968 = vrot.lane.b32.xlu0 %v4437_v50, %s11679_s10  ;;  %v6841_v50 = vsel %vm12019_vm6, %v6836_v2, %v6840_v7  ;;  %7450 = vst.msk [vmem:[#allocation3 + $0x194] sm:$0xf] %vm254_vm0, %v7193_v5  ;;  %449 = vst [vmem:[#allocation2 + $0x1e0] sm:$0x8] %v448_v10  ;;  %v4810_v35 = vshll.u32 %v4214_v4, 16  ;;  %v4814_v21 = vshrl.u32 %v4214_v4, 16 }
 0x34b   : > { %v6312_v34 = vpop.permute.xlu1 %6311  ;;  %7418 = vst.msk [vmem:[#allocation3 + $0x94] sm:$0xf] %vm254_vm0, %v6841_v50  ;;  %v7203_v59 = vsel %vm12019_vm6, %v7198_v23, %v7202_v30  ;;  %v6186_v9 = vld [vmem:[#allocation2 + $0xbc] sm:$0xf]  ;;  %v5476_v2 = vshrl.u32 %v5216_v45, 16  ;;  %v4807_v31 = vor.u32 %v4806_v25, %v4803_v42  ;;  %v5479_v19 = vshll.u32 %v5216_v45, 16 }
 0x34c   : > { %6496 = vst.msk [vmem:[#allocation3 + $0x40] sm:$0xf] %vm6487_vm15, %v6312_v34  ;;  %v6378_v37 = vpop.permute.xlu0 %6377  ;;  %v6185_v34 = vld [vmem:[#allocation2 + $0xb8] sm:$0xf]  ;;  %v4816_v53 = vrot.slane %v4814_v21, 4  ;;  %vm9145_vm2 = vcmask 123904  }
 0x34d   : > { %3993 = vrot.lane.b32.xlu1 %v3814_v14, %s11677_s9  ;;  %6529 = vst.msk [vmem:[#allocation3 + $0x148] sm:$0xf] %vm6487_vm15, %v6378_v37  ;;  %v6851_v14 = vsel %vm12019_vm6, %v6846_v46, %v6850_v0  ;;  %v3815_v0 = vld [vmem:[#allocation2 + $0x190] sm:$0xf]  ;;  %v5256_v46 = vld [vmem:[#allocation2 + $0x1ac] sm:$0xf] }
 0x34e   : > { %5032 = vrot.lane.b32.xlu0 %v4789_v48, %s11679_s10  ;;  %7419 = vst.msk [vmem:[#allocation3 + $0x9c] sm:$0xf] %vm254_vm0, %v6851_v14  ;;  %v4451_v48 = vrot.slane %v4449_v16, 4  ;;  %7451 = vst.msk [vmem:[#allocation3 + $0x19c] sm:$0xf] %vm254_vm0, %v7203_v59  ;;  %v14905_v50 = vrot.slane %v5476_v2, 7 }
 0x34f   : > { %v6376_v12 = vpop.permute.xlu1 %6375  ;;  %v14903_v32 = vld [vmem:[#allocation2 + $0x198] sm:$0xf]  ;;  %v4808_v27 = vrot.slane %v4807_v31, 4  ;;  %v5217_v14 = vld [vmem:[#allocation2 + $0xd0] sm:$0xf]  ;;  %v5796_v58 = vshrl.u32 %v5256_v46, 16 }
 0x350   : > { %6528 = vst.msk [vmem:[#allocation3 + $0x140] sm:$0xf] %vm6487_vm15, %v6376_v12  ;;  %v4955_v62 = vpop.permute.xlu0 %4954  ;;  %v7473_v60 = vld [vmem:[#allocation3 + $0x48] sm:$0xff]  ;;  %v4455_v12 = vor.u32 %v4454_v38, %v4451_v48  ;;  %v4820_v39 = vshll.u32 %v14903_v32, 16  ;;  %v5481_v23 = vor.u32 %v5479_v19, %v14905_v50  ;;  %v5799_v43 = vshll.u32 %v5256_v46, 16 }
 0x351   : > { %4970 = vrot.lane.b32.xlu1 %v4447_v57, %s11679_s10  ;;  %5136 = vst.msk [vmem:[#allocation3 + $0x58] sm:$0xf] %vm5124_vm13, %v4955_v62  ;;  %v4174_v57 = vld [vmem:[#allocation2 + $0xb4] sm:$0xf]  ;;  %v14919_v38 = vrot.slane %v5796_v58, 7  ;;  %v5483_v2 = vrot.slane %v14905_v50, 4 }
 0x352   : > { %5946 = vrot.lane.b32.xlu0 %v5460_v8, %s11680_s28  ;;  %v4458_v7 = vshll.u32 %v4174_v57, 16  ;;  %v4462_v8 = vshrl.u32 %v4174_v57, 16  ;;  %v4456_v47 = vrot.slane %v4455_v12, 4  ;;  %v5485_v57 = vshrl.u32 %v5217_v14, 16  ;;  %v11529_v42 = vld [vmem:[#allocation3 + $0x54] ss:$8 sps:$4 sm:$0xff]  }
 0x353   : > { %v4953_v24 = vpop.permute.xlu1 %4952  ;;  %v7472_v36 = vld [vmem:[#allocation3 + $0x40] sm:$0xff]  ;;  %v5801_v45 = vor.u32 %v5799_v43, %v14919_v38  ;;  %v4177_v50 = vld [vmem:[#allocation2 + $0xc0] sm:$0x1]  ;;  %v5803_v19 = vrot.slane %v14919_v38, 4 }
 0x354   : > { %5135 = vst.msk [vmem:[#allocation3 + $0x50] sm:$0xf] %vm5124_vm13, %v4953_v24  ;;  %v5019_v63 = vpop.permute.xlu0 %5018  ;;  %v11031_v20 = vcombine.low %v7472_v36, %v7473_v60  ;;  %v7505_v40 = vld [vmem:[#allocation3 + $0x148] sm:$0xff]  ;;  %v4460_v62 = vrot.slane %v4458_v7, 5  ;;  %v4464_v49 = vrot.slane %v4462_v8, 4  ;;  %v4812_v36 = vrot.slane %v4810_v35, 5 }
 0x355   : > { %5034 = vrot.lane.b32.xlu1 %v4799_v15, %s11679_s10  ;;  %5168 = vst.msk [vmem:[#allocation3 + $0x158] sm:$0xf] %vm5124_vm13, %v5019_v63  ;;  %v11527_v15 = vld [vmem:[#allocation3 + $0x144] ss:$8 sps:$4 sm:$0xff]   ;;  %v14896_v60 = vld [vmem:[#allocation2 + $0xb8] sm:$0xf] }
 0x356   : > { %8057 = vmatmul.mubr.bf16.gmra.mxu0 %v11031_v20  ;;  %6010 = vrot.lane.b32.xlu0 %v5780_v13, %s11680_s28  ;;  %v5215_v13 = vld [vmem:[#allocation2 + $0xc8] sm:$0x8]  ;;  %v4465_v55 = vor.u32 %v4464_v49, %v4460_v62  ;;  %v4468_v24 = vshll.u32 %v14896_v60, 16  ;;  %v4461_v20 = vsel %vm12019_vm6, %v4456_v47, %v4460_v62  ;;  %v14927_v7 = vrot.slane %v4820_v39, 5 }
 0x357   : > { %v5017_v52 = vpop.permute.xlu1 %5016  ;;  %v7504_v37 = vld [vmem:[#allocation3 + $0x140] sm:$0xff]  ;;  %11116 = vmatprep.mubr.msk.bf16.mxu1 %vm7895_vm1, %v11527_v15  ;;  %v5471_v3 = vshrl.u32 %v5215_v13, 16  ;;  %v5257_v15 = vld [vmem:[#allocation2 + $0x1b0] sm:$0xf]  ;;  %v4472_v62 = vshrl.u32 %v14896_v60, 16  ;;  %11101 = vmatprep.mubr.msk.bf16.mxu0 %vm7895_vm1, %v11529_v42 }
 0x358   : > { %5167 = vst.msk [vmem:[#allocation3 + $0x150] sm:$0xf] %vm5124_vm13, %v5017_v52  ;;  %v11063_v18 = vcombine.low %v7504_v37, %v7505_v40  ;;  %v5933_v6 = vpop.permute.xlu0 %5932  ;;  %v5255_v40 = vld [vmem:[#allocation2 + $0x1a8] sm:$0x8]  ;;  %v4466_v51 = vrot.slane %v4465_v55, 4  ;;  %v14912_v30 = vrot.slane %v4468_v24, 5  ;;  %v4813_v37 = vsel %vm12019_vm6, %v4808_v27, %v4812_v36 }
 0x359   : > { %5948 = vrot.lane.b32.xlu1 %v5469_v11, %s11680_s28  ;;  %6114 = vst.msk [vmem:[#allocation3 + $0x58] sm:$0xf] %vm6102_vm14, %v5933_v6  ;;  %v4817_v11 = vor.u32 %v4816_v53, %v4812_v36  ;;  %v11011_v48 = vrot.slane %v5471_v3, 11  ;;  %v5791_v61 = vshrl.u32 %v5255_v40, 16  ;;  %v5805_v17 = vshrl.u32 %v5257_v15, 16 }
 0x35a   : > { %8185 = vmatmul.mubr.bf16.gmra.mxu1 %v11063_v18  ;;  %6331 = vrot.lane.b32.xlu0 %v6185_v34, %s11681_s11  ;;  %v3816_v34 = vld [vmem:[#allocation2 + $0x194] sm:$0xf]  ;;  %v4176_v18 = vld [vmem:[#allocation2 + $0xbc] sm:$0xf]  ;;  %v4471_v6 = vsel %vm12019_vm6, %v4466_v51, %v14912_v30  ;;  %v4824_v55 = vshrl.u32 %v14903_v32, 16  ;;  %v4474_v53 = vrot.slane %v4472_v62, 4 }
 0x35b   : > { %v5931_v28 = vpop.permute.xlu1 %5930  ;;  %v4818_v59 = vrot.slane %v4817_v11, 4  ;;  %v5482_v4 = vsel %vm11969_vm3, %v11011_v48, %v5481_v23  ;;  %v11019_v25 = vrot.slane %v5791_v61, 11  ;;  %v4478_v10 = vshll.u32 %v4176_v18, 16  ;;  %v11531_v13 = vld [vmem:[#allocation3 + $0x154] ss:$8 sps:$4 sm:$0xff]  }
 0x35c   : > { %6113 = vst.msk [vmem:[#allocation3 + $0x50] sm:$0xf] %vm6102_vm14, %v5931_v28  ;;  %v5997_v22 = vpop.permute.xlu0 %5996  ;;  %v14946_v60 = vrot.slane %v5805_v17, 7  ;;  %11117 = vmatprep.mubr.msk.bf16.mxu1 %vm7895_vm1, %v11531_v13  ;;  %v4216_v32 = vld [vmem:[#allocation2 + $0x19c] sm:$0xf]  ;;  %v4475_v40 = vor.u32 %v4474_v53, %v14912_v30  ;;  %v4826_v51 = vrot.slane %v4824_v55, 4 }
 0x35d   : > { %6012 = vrot.lane.b32.xlu1 %v5789_v26, %s11680_s28  ;;  %6146 = vst.msk [vmem:[#allocation3 + $0x158] sm:$0xf] %vm6102_vm14, %v5997_v22  ;;  %v14930_v26 = vrot.slane %v5485_v57, 7  ;;  %v4482_v22 = vshrl.u32 %v4176_v18, 16  ;;  %v4823_v21 = vsel %vm12019_vm6, %v4818_v59, %v14927_v7  ;;  %v14950_v46 = vrot.slane %v4478_v10, 5 }
 0x35e   : > { %6395 = vrot.lane.b32.xlu0 %v6217_v33, %s11681_s11  ;;  %v5488_v33 = vshll.u32 %v5217_v14, 16  ;;  %v6187_v27 = vld [vmem:[#allocation2 + $0xcc] sm:$0xf]  ;;  %v4830_v11 = vshll.u32 %v4216_v32, 16  ;;  %v4834_v39 = vshrl.u32 %v4216_v32, 16  ;;  %v4476_v38 = vrot.slane %v4475_v40, 4 }
 0x35f   : > { %v5995_v41 = vpop.permute.xlu1 %5994  ;;  %v6219_v23 = vld [vmem:[#allocation2 + $0x1ac] sm:$0xf]  ;;  %v6188_v30 = vld [vmem:[#allocation2 + $0xd0] sm:$0xf]  ;;  %v4827_v61 = vor.u32 %v4826_v51, %v14927_v7  ;;  %v14987_v59 = vld [vmem:[#allocation2 + $0xd8] sm:$0xf] }
 0x360   : > { %6145 = vst.msk [vmem:[#allocation3 + $0x150] sm:$0xf] %vm6102_vm14, %v5995_v41  ;;  %v6318_v16 = vpop.permute.xlu0 %6317  ;;  %v5490_v41 = vor.u32 %v5488_v33, %v14930_v26  ;;  %v14983_v18 = vrot.slane %v4830_v11, 5  ;;  %v6577_v33 = vld [vmem:[#allocation2 + $0xcc] sm:$0xf] }
 0x361   : > { %6333 = vrot.lane.b32.xlu1 %v6186_v9, %s11681_s11  ;;  %6499 = vst.msk [vmem:[#allocation3 + $0x58] sm:$0xf] %vm6487_vm15, %v6318_v16  ;;  %v5802_v16 = vsel %vm11969_vm3, %v11019_v25, %v5801_v45  ;;  %v6578_v7 = vld [vmem:[#allocation2 + $0xd0] sm:$0xf]  ;;  %v3817_v17 = vld [vmem:[#allocation2 + $0x198] sm:$0xf] }
 0x362   : > { %3995 = vrot.lane.b32.xlu0 %v3815_v0, %s11677_s9  ;;  %v5808_v0 = vshll.u32 %v5257_v15, 16  ;;  %v5491_v3 = vsel %vm11969_vm3, %v5483_v2, %v5490_v41  ;;  %v6862_v42 = vshll.u32 %v6578_v7, 16  ;;  %v6866_v25 = vshrl.u32 %v6578_v7, 16  ;;  %v6618_v53 = vld [vmem:[#allocation2 + $0x1b0] sm:$0xf] }
 0x363   : > { %v6316_v63 = vpop.permute.xlu1 %6315 }
 0x364   : > { %6498 = vst.msk [vmem:[#allocation3 + $0x50] sm:$0xf] %vm6487_vm15, %v6316_v63  ;;  %v6382_v56 = vpop.permute.xlu0 %6381  ;;  %v5810_v63 = vor.u32 %v5808_v0, %v14946_v60  ;;  %v4481_v0 = vsel %vm12019_vm6, %v4476_v38, %v14950_v46  ;;  %v6864_v13 = vrot.slane %v6862_v42, 5 }
 0x365   : > { %6397 = vrot.lane.b32.xlu1 %v6218_v54, %s11681_s11  ;;  %6531 = vst.msk [vmem:[#allocation3 + $0x158] sm:$0xf] %vm6487_vm15, %v6382_v56  ;;  %v4484_v54 = vrot.slane %v4482_v22, 4  ;;  %v4488_v56 = vshll.u32 %v4177_v50, 16  ;;  %v14994_v22 = vrot.slane %v4827_v61, 4 }
 0x366   : > { %4972 = vrot.lane.b32.xlu0 %v4461_v20, %s11679_s10  ;;  %v5811_v57 = vsel %vm11969_vm3, %v5803_v19, %v5810_v63  ;;  %v3818_v19 = vld [vmem:[#allocation2 + $0x19c] sm:$0xf] }
 0x367   : > { %v6380_v52 = vpop.permute.xlu1 %6379  ;;  %v4485_v14 = vor.u32 %v4484_v54, %v14950_v46  ;;  %v14975_v15 = vrot.slane %v4488_v56, 5  ;;  %v6617_v54 = vld [vmem:[#allocation2 + $0x1ac] sm:$0xf]  ;;  %v5492_v46 = vrot.slane %v14930_v26, 4  ;;  %v4833_v26 = vsel %vm12019_vm6, %v14994_v22, %v14983_v18 }
 0x368   : > { %6530 = vst.msk [vmem:[#allocation3 + $0x150] sm:$0xf] %vm6487_vm15, %v6380_v52  ;;  %v4957_v5 = vpop.permute.xlu0 %4956  ;;  %v7475_v8 = vld [vmem:[#allocation3 + $0x58] sm:$0xff]  ;;  %v7205_v50 = vshrl.u32 %v6617_v54, 16 }
 0x369   : > { %3997 = vrot.lane.b32.xlu1 %v3816_v34, %s11677_s9  ;;  %5137 = vst.msk [vmem:[#allocation3 + $0x60] sm:$0xf] %vm5124_vm13, %v4957_v5  ;;  %v14967_v34 = vld [vmem:[#allocation2 + $0xd4] sm:$0xf]  ;;  %v14972_v52 = vrot.slane %v4485_v14, 4 }
 0x36a   : > { %5036 = vrot.lane.b32.xlu0 %v4813_v37, %s11679_s10  ;;  %v5494_v43 = vshrl.u32 %v14967_v34, 16  ;;  %v14981_v5 = vld [vmem:[#allocation2 + $0x1a0] sm:$0x1]  ;;  %v15016_v14 = vld [vmem:[#allocation2 + $0x1b8] sm:$0xf]  ;;  %v7207_v40 = vrot.slane %v7205_v50, 4 }
 0x36b   : > { %v3982_v28 = vpop.permute.xlu1 %3981  ;;  %v7474_v12 = vld [vmem:[#allocation3 + $0x50] sm:$0xff]  ;;  %v4840_v10 = vshll.u32 %v14981_v5, 16  ;;  %v11535_v50 = vld [vmem:[#allocation3 + $0x164] ss:$8 sps:$4 sm:$0xff]  }
 0x36c   : > { %4129 = vst.msk [vmem:[#allocation3 + $0x168] sm:$0xf] %vm4083_vm12, %v3982_v28  ;;  %v5021_v49 = vpop.permute.xlu0 %5020  ;;  %v11033_v35 = vcombine.low %v7474_v12, %v7475_v8  ;;  %v7507_v9 = vld [vmem:[#allocation3 + $0x158] sm:$0xff]  ;;  %v6853_v28 = vshrl.u32 %v6577_v33, 16  ;;  %v6856_v12 = vshll.u32 %v6577_v33, 16  ;;  %v14996_v62 = vrot.slane %v5494_v43, 7 }
 0x36d   : > { %4974 = vrot.lane.b32.xlu1 %v4471_v6, %s11679_s10  ;;  %5169 = vst.msk [vmem:[#allocation3 + $0x160] sm:$0xf] %vm5124_vm13, %v5021_v49  ;;  %v14985_v6 = vrot.slane %v4834_v39, 4  ;;  %v14990_v8 = vld [vmem:[#allocation2 + $0x1b4] sm:$0xf]  ;;  %v5503_v49 = vshrl.u32 %v14987_v59, 16  ;;  %v4491_v43 = vsel %vm12019_vm6, %v14972_v52, %v14975_v15 }
 0x36e   : > { %8065 = vmatmul.mubr.bf16.gmra.mxu0 %v11033_v35  ;;  %5950 = vrot.lane.b32.xlu0 %v5482_v4, %s11680_s28  ;;  %v6220_v35 = vld [vmem:[#allocation2 + $0x1b0] sm:$0xf]  ;;  %v6855_v2 = vrot.slane %v6853_v28, 4  ;;  %v6858_v41 = vrot.slane %v6856_v12, 5  ;;  %v5506_v28 = vshll.u32 %v14987_v59, 16  ;;  %v5812_v12 = vrot.slane %v14946_v60, 4 }
 0x36f   : > { %v4959_v47 = vpop.permute.xlu1 %4958  ;;  %v7506_v31 = vld [vmem:[#allocation3 + $0x150] sm:$0xff] }
 0x370   : > { %5138 = vst.msk [vmem:[#allocation3 + $0x68] sm:$0xf] %vm5124_vm13, %v4959_v47  ;;  %v11065_v24 = vcombine.low %v7506_v31, %v7507_v9  ;;  %v5935_v36 = vpop.permute.xlu0 %5934  ;;  %v5814_v9 = vshrl.u32 %v14990_v8, 16  ;;  %v4837_v47 = vor.u32 %v14985_v6, %v14983_v18  ;;  %v15009_v31 = vld [vmem:[#allocation2 + $0xd4] sm:$0xf]  ;;  %v4842_v18 = vrot.slane %v4840_v10, 5 }
 0x371   : > { %5038 = vrot.lane.b32.xlu1 %v4823_v21, %s11679_s10  ;;  %6115 = vst.msk [vmem:[#allocation3 + $0x60] sm:$0xf] %vm6102_vm14, %v5935_v36  ;;  %v5497_v21 = vshll.u32 %v14967_v34, 16  ;;  %v6872_v36 = vshll.u32 %v15009_v31, 16  ;;  %v11533_v10 = vld [vmem:[#allocation3 + $0x64] ss:$8 sps:$4 sm:$0xff]  }
 0x372   : > { %8193 = vmatmul.mubr.bf16.gmra.mxu1 %v11065_v24  ;;  %6014 = vrot.lane.b32.xlu0 %v5802_v16, %s11680_s28  ;;  %v6868_v16 = vrot.slane %v6866_v25, 4  ;;  %v6859_v24 = vor.u32 %v6858_v41, %v6855_v2  ;;  %v15026_v39 = vrot.slane %v5814_v9, 7  ;;  %v4838_v7 = vrot.slane %v4837_v47, 4 }
 0x373   : > { %v5023_v20 = vpop.permute.xlu1 %5022  ;;  %v15018_v56 = vrot.slane %v6872_v36, 5  ;;  %v5499_v11 = vor.u32 %v5497_v21, %v14996_v62  ;;  %v4178_v21 = vld [vmem:[#allocation2 + $0xcc] sm:$0xf]  ;;  %11102 = vmatprep.mubr.msk.bf16.mxu0 %vm7895_vm1, %v11533_v10  ;;  %11118 = vmatprep.mubr.msk.bf16.mxu1 %vm7895_vm1, %v11535_v50 }
 0x374   : > { %5170 = vst.msk [vmem:[#allocation3 + $0x168] sm:$0xf] %vm5124_vm13, %v5023_v20  ;;  %v5999_v58 = vpop.permute.xlu0 %5998  ;;  %v6869_v32 = vor.u32 %v6868_v16, %v6864_v13  ;;  %v7214_v20 = vshll.u32 %v6618_v53, 16  ;;  %v4843_v16 = vsel %vm12019_vm6, %v4838_v7, %v4842_v18  ;;  %v6221_v18 = vld [vmem:[#allocation2 + $0x1b4] sm:$0xf] }
 0x375   : > { %5952 = vrot.lane.b32.xlu1 %v5491_v3, %s11680_s28  ;;  %6147 = vst.msk [vmem:[#allocation3 + $0x160] sm:$0xf] %vm6102_vm14, %v5999_v58  ;;  %v7208_v3 = vshll.u32 %v6617_v54, 16  ;;  %v6860_v58 = vrot.slane %v6859_v24, 4  ;;  %v5500_v22 = vsel %vm11969_vm3, %v5492_v46, %v5499_v11  ;;  %v5501_v54 = vrot.slane %v14996_v62, 4 }
 0x376   : > { %6335 = vrot.lane.b32.xlu0 %v6187_v27, %s11681_s11  ;;  %v7218_v27 = vshrl.u32 %v6618_v53, 16  ;;  %v6870_v34 = vrot.slane %v6869_v32, 4  ;;  %v7216_v61 = vrot.slane %v7214_v20, 5  ;;  %v4493_v24 = vshrl.u32 %v4178_v21, 16  ;;  %v4179_v11 = vld [vmem:[#allocation2 + $0xd0] sm:$0xf] }
 0x377   : > { %v5937_v48 = vpop.permute.xlu1 %5936  ;;  %v7210_v51 = vrot.slane %v7208_v3, 5  ;;  %v5821_v20 = vrot.slane %v15026_v39, 4 }
 0x378   : > { %6116 = vst.msk [vmem:[#allocation3 + $0x68] sm:$0xf] %vm6102_vm14, %v5937_v48  ;;  %v6320_v37 = vpop.permute.xlu0 %6319  ;;  %v15028_v48 = vld [vmem:[#allocation2 + $0x1b4] sm:$0xf]  ;;  %v6875_v6 = vsel %vm12019_vm6, %v6870_v34, %v15018_v56  ;;  %v7220_v52 = vrot.slane %v7218_v27, 4  ;;  %v4495_v34 = vrot.slane %v4493_v24, 4 }
 0x379   : > { %6016 = vrot.lane.b32.xlu1 %v5811_v57, %s11680_s28  ;;  %6500 = vst.msk [vmem:[#allocation3 + $0x60] sm:$0xf] %vm6487_vm15, %v6320_v37  ;;  %v501_v57 = vld [vmem:[#allocation2 + $0x1d8] sm:$0x1]  ;;  %v6865_v37 = vsel %vm12019_vm6, %v6860_v58, %v6864_v13  ;;  %v7224_v15 = vshll.u32 %v15028_v48, 16 }
 0x37a   : > { %6399 = vrot.lane.b32.xlu0 %v6219_v23, %s11681_s11  ;;  %v502_v38 = vsel %vm12054_vm8, 0, %v501_v57  ;;  %7420 = vst.msk [vmem:[#allocation3 + $0xa4] sm:$0xf] %vm254_vm0, %v6865_v37  ;;  %7421 = vst.msk [vmem:[#allocation3 + $0xac] sm:$0xf] %vm254_vm0, %v6875_v6  ;;  %v7221_v9 = vor.u32 %v7220_v52, %v7216_v61  ;;  %v4506_v37 = vshrl.u32 %v4179_v11, 16 }
 0x37b   : > { %v6001_v4 = vpop.permute.xlu1 %6000  ;;  %503 = vst [vmem:[#allocation2 + $0x1d8] sm:$0x1] %v502_v38  ;;  %v15057_v2 = vrot.slane %v7224_v15, 5  ;;  %v4219_v38 = vld [vmem:[#allocation2 + $0x1b0] sm:$0xf] }
 0x37c   : > { %6148 = vst.msk [vmem:[#allocation3 + $0x168] sm:$0xf] %vm6102_vm14, %v6001_v4  ;;  %v6384_v45 = vpop.permute.xlu0 %6383  ;;  %v5823_v4 = vshrl.u32 %v15016_v14, 16  ;;  %v7222_v13 = vrot.slane %v7221_v9, 4  ;;  %v4854_v7 = vshll.u32 %v4219_v38, 16 }
 0x37d   : > { %6337 = vrot.lane.b32.xlu1 %v6188_v30, %s11681_s11  ;;  %6532 = vst.msk [vmem:[#allocation3 + $0x160] sm:$0xf] %vm6487_vm15, %v6384_v45  ;;  %v5817_v30 = vshll.u32 %v14990_v8, 16  ;;  %v7211_v8 = vor.u32 %v7210_v51, %v7207_v40  ;;  %v6190_v52 = vld [vmem:[#allocation2 + $0xd8] sm:$0xf] }
 0x37e   : > { %3999 = vrot.lane.b32.xlu0 %v3817_v17, %s11677_s9  ;;  %v5505_v17 = vrot.slane %v5503_v49, 7  ;;  %v5825_v59 = vrot.slane %v5823_v4, 7  ;;  %v7227_v46 = vsel %vm12019_vm6, %v7222_v13, %v15057_v2  ;;  %v4858_v4 = vshrl.u32 %v4219_v38, 16  ;;  %v15095_v15 = vld [vmem:[#allocation2 + $0xd4] sm:$0xf] }
 0x37f   : > { %v6322_v55 = vpop.permute.xlu1 %6321  ;;  %v7212_v42 = vrot.slane %v7211_v8, 4  ;;  %7453 = vst.msk [vmem:[#allocation3 + $0x1ac] sm:$0xf] %vm254_vm0, %v7227_v46  ;;  %v6222_v9 = vld [vmem:[#allocation2 + $0x1b8] sm:$0xf] }
 0x380   : > { %6501 = vst.msk [vmem:[#allocation3 + $0x68] sm:$0xf] %vm6487_vm15, %v6322_v55  ;;  %v3984_v63 = vpop.permute.xlu0 %3983  ;;  %v7476_v33 = vld [vmem:[#allocation3 + $0x60] sm:$0xff]  ;;  %v5508_v55 = vor.u32 %v5506_v28, %v5505_v17  ;;  %v4508_v28 = vrot.slane %v4506_v37, 4 }
 0x381   : > { %6401 = vrot.lane.b32.xlu1 %v6220_v35, %s11681_s11  ;;  %4130 = vst.msk [vmem:[#allocation3 + $0x170] sm:$0xf] %vm4083_vm12, %v3984_v63  ;;  %v5819_v35 = vor.u32 %v5817_v30, %v15026_v39  ;;  %v7217_v47 = vsel %vm12019_vm6, %v7212_v42, %v7216_v61  ;;  %v4218_v63 = vld [vmem:[#allocation2 + $0x1ac] sm:$0xf]  ;;  %v4502_v30 = vshll.u32 %v4179_v11, 16 }
 0x382   : > { %4976 = vrot.lane.b32.xlu0 %v4481_v0, %s11679_s10  ;;  %v5826_v0 = vshll.u32 %v15016_v14, 16  ;;  %7452 = vst.msk [vmem:[#allocation3 + $0x1a4] sm:$0xf] %vm254_vm0, %v7217_v47  ;;  %v5509_v14 = vsel %vm11969_vm3, %v5501_v54, %v5508_v55  ;;  %v4845_v58 = vshrl.u32 %v4218_v63, 16  ;;  %v4848_v40 = vshll.u32 %v4218_v63, 16 }
 0x383   : > { %v6386_v23 = vpop.permute.xlu1 %6385  ;;  %v5820_v3 = vsel %vm11969_vm3, %v5812_v12, %v5819_v35  ;;  %v4504_v17 = vrot.slane %v4502_v30, 5  ;;  %v15102_v47 = vld [vmem:[#allocation2 + $0x1b4] sm:$0xf] }
 0x384   : > { %6533 = vst.msk [vmem:[#allocation3 + $0x168] sm:$0xf] %vm6487_vm15, %v6386_v23  ;;  %v4961_v5 = vpop.permute.xlu0 %4960  ;;  %v7508_v60 = vld [vmem:[#allocation3 + $0x160] sm:$0xff]  ;;  %v5828_v27 = vor.u32 %v5826_v0, %v5825_v59  ;;  %v4847_v61 = vrot.slane %v4845_v58, 4  ;;  %v4512_v0 = vshll.u32 %v15095_v15, 16  ;;  %v4864_v46 = vshll.u32 %v15102_v47, 16 }
 0x385   : > { %4001 = vrot.lane.b32.xlu1 %v3818_v19, %s11677_s9  ;;  %5139 = vst.msk [vmem:[#allocation3 + $0x70] sm:$0xf] %vm5124_vm13, %v4961_v5  ;;  %v4496_v19 = vshll.u32 %v4178_v21, 16  ;;  %v5261_v21 = vld [vmem:[#allocation2 + $0x1c8] sm:$0xf]  ;;  %v4509_v59 = vor.u32 %v4508_v28, %v4504_v17 }
 0x386   : > { %5040 = vrot.lane.b32.xlu0 %v4833_v26, %s11679_s10  ;;  %v6189_v26 = vld [vmem:[#allocation2 + $0xd4] sm:$0xf]  ;;  %v5829_v39 = vsel %vm11969_vm3, %v5821_v20, %v5828_v27  ;;  %v15112_v20 = vrot.slane %v4512_v0, 5  ;;  %v15125_v38 = vrot.slane %v4864_v46, 5 }
 0x387   : > { %v3986_v25 = vpop.permute.xlu1 %3985  ;;  %v7477_v45 = vld [vmem:[#allocation3 + $0x68] sm:$0xff]  ;;  %v4498_v57 = vrot.slane %v4496_v19, 5  ;;  %v11539_v0 = vld [vmem:[#allocation3 + $0x174] ss:$8 sps:$4 sm:$0xff]  }
 0x388   : > { %4131 = vst.msk [vmem:[#allocation3 + $0x178] sm:$0xf] %vm4083_vm12, %v3986_v25  ;;  %v11035_v49 = vcombine.low %v7476_v33, %v7477_v45  ;;  %v5025_v41 = vpop.permute.xlu0 %5024  ;;  %v5221_v33 = vld [vmem:[#allocation2 + $0xe8] sm:$0xf]  ;;  %v3819_v25 = vld [vmem:[#allocation2 + $0x1ac] sm:$0xf] }
 0x389   : > { %4978 = vrot.lane.b32.xlu1 %v4491_v43, %s11679_s10  ;;  %5171 = vst.msk [vmem:[#allocation3 + $0x170] sm:$0xf] %vm5124_vm13, %v5025_v41  ;;  %v4850_v43 = vrot.slane %v4848_v40, 5  ;;  %v4499_v6 = vor.u32 %v4498_v57, %v4495_v34  ;;  %v5516_v10 = vshrl.u32 %v5221_v33, 16  ;;  %v4860_v41 = vrot.slane %v4858_v4, 4 }
 0x38a   : > { %8073 = vmatmul.mubr.bf16.gmra.mxu0 %v11035_v49  ;;  %5954 = vrot.lane.b32.xlu0 %v5500_v22, %s11680_s28  ;;  %v5220_v22 = vld [vmem:[#allocation2 + $0xe4] sm:$0x8]  ;;  %v4856_v49 = vrot.slane %v4854_v7, 5  ;;  %v5839_v34 = vshll.u32 %v5261_v21, 16 }
 0x38b   : > { %v4963_v36 = vpop.permute.xlu1 %4962  ;;  %v7509_v53 = vld [vmem:[#allocation3 + $0x168] sm:$0xff]  ;;  %v4851_v12 = vor.u32 %v4850_v43, %v4847_v61  ;;  %v4500_v45 = vrot.slane %v4499_v6, 4  ;;  %v15106_v24 = vrot.slane %v5516_v10, 7  ;;  %v4868_v10 = vshrl.u32 %v15102_v47, 16 }
 0x38c   : > { %5140 = vst.msk [vmem:[#allocation3 + $0x78] sm:$0xf] %vm5124_vm13, %v4963_v36  ;;  %v11067_v62 = vcombine.low %v7508_v60, %v7509_v53  ;;  %v5939_v32 = vpop.permute.xlu0 %5938  ;;  %v5222_v60 = vld [vmem:[#allocation2 + $0xec] sm:$0xf]  ;;  %v5519_v36 = vshll.u32 %v5221_v33, 16  ;;  %v5836_v53 = vshrl.u32 %v5261_v21, 16  ;;  %v4861_v63 = vor.u32 %v4860_v41, %v4856_v49 }
 0x38d   : > { %5042 = vrot.lane.b32.xlu1 %v4843_v16, %s11679_s10  ;;  %6117 = vst.msk [vmem:[#allocation3 + $0x70] sm:$0xf] %vm6102_vm14, %v5939_v32  ;;  %v4852_v13 = vrot.slane %v4851_v12, 4  ;;  %v5511_v16 = vshrl.u32 %v5220_v22, 16  ;;  %v4505_v55 = vsel %vm12019_vm6, %v4500_v45, %v4504_v17  ;;  %v5260_v19 = vld [vmem:[#allocation2 + $0x1c4] sm:$0x8] }
 0x38e   : > { %8201 = vmatmul.mubr.bf16.gmra.mxu1 %v11067_v62  ;;  %6018 = vrot.lane.b32.xlu0 %v5820_v3, %s11680_s28  ;;  %v5525_v3 = vshrl.u32 %v5222_v60, 16  ;;  %v3820_v62 = vld [vmem:[#allocation2 + $0x1b0] sm:$0xf]  ;;  %v4510_v32 = vrot.slane %v4509_v59, 4  ;;  %v5521_v40 = vor.u32 %v5519_v36, %v15106_v24  ;;  %v5831_v11 = vshrl.u32 %v5260_v19, 16 }
 0x38f   : > { %v5027_v51 = vpop.permute.xlu1 %5026  ;;  %v4857_v27 = vsel %vm12019_vm6, %v4852_v13, %v4856_v49  ;;  %v4862_v37 = vrot.slane %v4861_v63, 4  ;;  %v4516_v17 = vshrl.u32 %v15095_v15, 16  ;;  %11119 = vmatprep.mubr.msk.bf16.mxu1 %vm7895_vm1, %v11539_v0  ;;  %v4182_v19 = vld [vmem:[#allocation2 + $0xdc] sm:$0x1] }
 0x390   : > { %5172 = vst.msk [vmem:[#allocation3 + $0x178] sm:$0xf] %vm5124_vm13, %v5027_v51  ;;  %v6003_v23 = vpop.permute.xlu0 %6002  ;;  %v5262_v51 = vld [vmem:[#allocation2 + $0x1cc] sm:$0xf]  ;;  %v4515_v61 = vsel %vm12019_vm6, %v4510_v32, %v15112_v20  ;;  %v11020_v7 = vrot.slane %v5831_v11, 11  ;;  %v4532_v11 = vshll.u32 %v4182_v19, 16 }
 0x391   : > { %5956 = vrot.lane.b32.xlu1 %v5509_v14, %s11680_s28  ;;  %6149 = vst.msk [vmem:[#allocation3 + $0x170] sm:$0xf] %vm6102_vm14, %v6003_v23  ;;  %v11012_v14 = vrot.slane %v5511_v16, 11  ;;  %v15121_v23 = vrot.slane %v5525_v3, 7  ;;  %v5845_v43 = vshrl.u32 %v5262_v51, 16  ;;  %v4867_v45 = vsel %vm12019_vm6, %v4862_v37, %v15125_v38 }
 0x392   : > { %6339 = vrot.lane.b32.xlu0 %v6189_v26, %s11681_s11  ;;  %v15118_v26 = vrot.slane %v5836_v53, 7  ;;  %v4518_v53 = vrot.slane %v4516_v17, 4  ;;  %v6876_v17 = vshrl.u32 %v15009_v31, 16  ;;  %v6224_v31 = vld [vmem:[#allocation2 + $0x1cc] sm:$0xf]  ;;  %v7228_v19 = vshrl.u32 %v15028_v48, 16 }
 0x393   : > { %v5941_v5 = vpop.permute.xlu1 %5940  ;;  %v5522_v33 = vsel %vm11969_vm3, %v11012_v14, %v5521_v40  ;;  %v15146_v21 = vrot.slane %v5845_v43, 7  ;;  %v4222_v14 = vld [vmem:[#allocation2 + $0x1bc] sm:$0x1]  ;;  %v15164_v40 = vld [vmem:[#allocation2 + $0xf4] sm:$0xf] }
 0x394   : > { %6118 = vst.msk [vmem:[#allocation3 + $0x78] sm:$0xf] %vm6102_vm14, %v5941_v5  ;;  %v6324_v8 = vpop.permute.xlu0 %6323  ;;  %v4181_v5 = vld [vmem:[#allocation2 + $0xd8] sm:$0xf]  ;;  %v5841_v4 = vor.u32 %v5839_v34, %v15118_v26  ;;  %v4519_v34 = vor.u32 %v4518_v53, %v15112_v20  ;;  %v6223_v43 = vld [vmem:[#allocation2 + $0x1c8] sm:$0xf] }
 0x395   : > { %6020 = vrot.lane.b32.xlu1 %v5829_v39, %s11680_s28  ;;  %6502 = vst.msk [vmem:[#allocation3 + $0x70] sm:$0xf] %vm6487_vm15, %v6324_v8  ;;  %v5528_v39 = vshll.u32 %v5222_v60, 16  ;;  %v11537_v8 = vld [vmem:[#allocation3 + $0x74] ss:$8 sps:$4 sm:$0xff]   ;;  %v4522_v15 = vshll.u32 %v4181_v5, 16 }
 0x396   : > { %6403 = vrot.lane.b32.xlu0 %v6221_v18, %s11681_s11  ;;  %11103 = vmatprep.mubr.msk.bf16.mxu0 %vm7895_vm1, %v11537_v8  ;;  %v5842_v13 = vsel %vm11969_vm3, %v11020_v7, %v5841_v4  ;;  %v4520_v4 = vrot.slane %v4519_v34, 4 }
 0x397   : > { %v6005_v42 = vpop.permute.xlu1 %6004 }
 0x398   : > { %6150 = vst.msk [vmem:[#allocation3 + $0x178] sm:$0xf] %vm6102_vm14, %v6005_v42  ;;  %v6388_v35 = vpop.permute.xlu0 %6387  ;;  %v5523_v42 = vrot.slane %v15106_v24, 4  ;;  %v15157_v24 = vrot.slane %v4522_v15, 5 }
 0x399   : > { %6341 = vrot.lane.b32.xlu1 %v6190_v52, %s11681_s11  ;;  %6534 = vst.msk [vmem:[#allocation3 + $0x170] sm:$0xf] %vm6487_vm15, %v6388_v35  ;;  %v4221_v52 = vld [vmem:[#allocation2 + $0x1b8] sm:$0xf]  ;;  %v4526_v35 = vshrl.u32 %v4181_v5, 16  ;;  %v5543_v5 = vshrl.u32 %v15164_v40, 16 }
 0x39a   : > { %4003 = vrot.lane.b32.xlu0 %v3819_v25, %s11677_s9  ;;  %v5530_v25 = vor.u32 %v5528_v39, %v15121_v23  ;;  %v4874_v49 = vshll.u32 %v4221_v52, 16  ;;  %v4878_v41 = vshrl.u32 %v4221_v52, 16  ;;  %v15187_v52 = vld [vmem:[#allocation2 + $0x1d4] sm:$0xf] }
 0x39b   : > { %v6326_v54 = vpop.permute.xlu1 %6325  ;;  %v4528_v36 = vrot.slane %v4526_v35, 4  ;;  %v15198_v15 = vrot.slane %v5543_v5, 7 }
 0x39c   : > { %6503 = vst.msk [vmem:[#allocation3 + $0x78] sm:$0xf] %vm6487_vm15, %v6326_v54  ;;  %v3988_v50 = vpop.permute.xlu0 %3987  ;;  %v7478_v30 = vld [vmem:[#allocation3 + $0x70] sm:$0xff]  ;;  %v5531_v16 = vsel %vm11969_vm3, %v5523_v42, %v5530_v25  ;;  %v15161_v63 = vrot.slane %v4874_v49, 5  ;;  %v4880_v46 = vrot.slane %v4878_v41, 4  ;;  %v5546_v25 = vshll.u32 %v15164_v40, 16 }
 0x39d   : > { %6405 = vrot.lane.b32.xlu1 %v6222_v9, %s11681_s11  ;;  %4132 = vst.msk [vmem:[#allocation3 + $0x180] sm:$0xf] %vm4083_vm12, %v3988_v50  ;;  %v5848_v9 = vshll.u32 %v5262_v51, 16  ;;  %v5223_v50 = vld [vmem:[#allocation2 + $0xf0] sm:$0xf] }
 0x39e   : > { %4980 = vrot.lane.b32.xlu0 %v4505_v55, %s11679_s10  ;;  %v5843_v55 = vrot.slane %v15118_v26, 4  ;;  %v5534_v51 = vshrl.u32 %v5223_v50, 16  ;;  %v4529_v26 = vor.u32 %v4528_v36, %v15157_v24  ;;  %v4881_v39 = vor.u32 %v4880_v46, %v15161_v63  ;;  %v6581_v46 = vld [vmem:[#allocation2 + $0xdc] sm:$0x1] }
 0x39f   : > { %v6390_v58 = vpop.permute.xlu1 %6389  ;;  %v5850_v3 = vor.u32 %v5848_v9, %v15146_v21  ;;  %v5537_v20 = vshll.u32 %v5223_v50, 16  ;;  %v4525_v50 = vsel %vm12019_vm6, %v4520_v4, %v15157_v24  ;;  %v6621_v4 = vld [vmem:[#allocation2 + $0x1bc] sm:$0x1] }
 0x3a0   : > { %6535 = vst.msk [vmem:[#allocation3 + $0x178] sm:$0xf] %vm6487_vm15, %v6390_v58  ;;  %v4965_v57 = vpop.permute.xlu0 %4964  ;;  %v7510_v22 = vld [vmem:[#allocation3 + $0x170] sm:$0xff]  ;;  %v15177_v8 = vrot.slane %v5534_v51, 7  ;;  %v15183_v7 = vrot.slane %v4529_v26, 4  ;;  %v6892_v51 = vshll.u32 %v6581_v46, 16 }
 0x3a1   : > { %4005 = vrot.lane.b32.xlu1 %v3820_v62, %s11677_s9  ;;  %5141 = vst.msk [vmem:[#allocation3 + $0x80] sm:$0xf] %vm5124_vm13, %v4965_v57  ;;  %v4870_v62 = vrot.slane %v4868_v10, 4  ;;  %v5851_v57 = vsel %vm11969_vm3, %v5843_v55, %v5850_v3  ;;  %v3822_v26 = vld [vmem:[#allocation2 + $0x1b8] sm:$0xf] }
 0x3a2   : > { %5044 = vrot.lane.b32.xlu0 %v4857_v27, %s11679_s10  ;;  %v6191_v27 = vld [vmem:[#allocation2 + $0xe8] sm:$0xf]  ;;  %v5539_v0 = vor.u32 %v5537_v20, %v15177_v8  ;;  %v5852_v20 = vrot.slane %v15146_v21, 4 }
 0x3a3   : > { %v3990_v18 = vpop.permute.xlu1 %3989  ;;  %v7479_v6 = vld [vmem:[#allocation3 + $0x78] sm:$0xff]  ;;  %v4871_v37 = vor.u32 %v4870_v62, %v15125_v38  ;;  %v15185_v38 = vrot.slane %v4532_v11, 5  ;;  %v6620_v62 = vld [vmem:[#allocation2 + $0x1b8] sm:$0xf] }
 0x3a4   : > { %4133 = vst.msk [vmem:[#allocation3 + $0x188] sm:$0xf] %vm4083_vm12, %v3990_v18  ;;  %v11037_v28 = vcombine.low %v7478_v30, %v7479_v6  ;;  %v5029_v12 = vpop.permute.xlu0 %5028  ;;  %v4884_v30 = vshll.u32 %v4222_v14, 16  ;;  %v6192_v18 = vld [vmem:[#allocation2 + $0xec] sm:$0xf] }
 0x3a5   : > { %4982 = vrot.lane.b32.xlu1 %v4515_v61, %s11679_s10  ;;  %5173 = vst.msk [vmem:[#allocation3 + $0x180] sm:$0xf] %vm5124_vm13, %v5029_v12  ;;  %v15195_v42 = vrot.slane %v4871_v37, 4 }
 0x3a6   : > { %8081 = vmatmul.mubr.bf16.gmra.mxu0 %v11037_v28  ;;  %5958 = vrot.lane.b32.xlu0 %v5522_v33, %s11680_s28  ;;  %v15179_v33 = vld [vmem:[#allocation2 + $0x1d0] sm:$0xf]  ;;  %v15191_v28 = vrot.slane %v4881_v39, 4  ;;  %v15193_v12 = vrot.slane %v4884_v30, 5  ;;  %v15235_v39 = vld [vmem:[#allocation2 + $0x1cc] sm:$0xf] }
 0x3a7   : > { %v4967_v60 = vpop.permute.xlu1 %4966  ;;  %v7511_v59 = vld [vmem:[#allocation3 + $0x178] sm:$0xff]  ;;  %v5854_v35 = vshrl.u32 %v15179_v33, 16  ;;  %v5857_v3 = vshll.u32 %v15179_v33, 16  ;;  %v4877_v24 = vsel %vm12019_vm6, %v15195_v42, %v15161_v63  ;;  %v7238_v30 = vshrl.u32 %v6620_v62, 16 }
 0x3a8   : > { %5142 = vst.msk [vmem:[#allocation3 + $0x88] sm:$0xf] %vm5124_vm13, %v4967_v60  ;;  %v11069_v47 = vcombine.low %v7510_v22, %v7511_v59  ;;  %v5943_v54 = vpop.permute.xlu0 %5942  ;;  %v3821_v22 = vld [vmem:[#allocation2 + $0x1b4] sm:$0xf]  ;;  %v5541_v60 = vrot.slane %v15177_v8, 4  ;;  %v5532_v59 = vrot.slane %v15121_v23, 4  ;;  %v4535_v23 = vsel %vm12019_vm6, %v15183_v7, %v15185_v38 }
 0x3a9   : > { %5046 = vrot.lane.b32.xlu1 %v4867_v45, %s11679_s10  ;;  %6119 = vst.msk [vmem:[#allocation3 + $0x80] sm:$0xf] %vm6102_vm14, %v5943_v54  ;;  %v6580_v45 = vld [vmem:[#allocation2 + $0xd8] sm:$0xf]  ;;  %v6878_v54 = vrot.slane %v6876_v17, 4  ;;  %v6894_v63 = vrot.slane %v6892_v51, 5  ;;  %v4887_v7 = vsel %vm12019_vm6, %v15191_v28, %v15193_v12  ;;  %v5548_v38 = vor.u32 %v5546_v25, %v15198_v15 }
 0x3aa   : > { %8209 = vmatmul.mubr.bf16.gmra.mxu1 %v11069_v47  ;;  %6022 = vrot.lane.b32.xlu0 %v5842_v13, %s11680_s28  ;;  %v6882_v9 = vshll.u32 %v6580_v45, 16  ;;  %v6886_v49 = vshrl.u32 %v6580_v45, 16  ;;  %v5863_v13 = vshrl.u32 %v15187_v52, 16  ;;  %v5866_v47 = vshll.u32 %v15187_v52, 16  ;;  %v15316_v15 = vld [vmem:[#allocation2 + $0x1e8] sm:$0xf] }
 0x3ab   : > { %v5031_v32 = vpop.permute.xlu1 %5030  ;;  %v6879_v14 = vor.u32 %v6878_v54, %v15018_v56  ;;  %v15233_v48 = vsel %vm11969_vm3, %v5532_v59, %v5539_v0  ;;  %v7234_v56 = vshll.u32 %v6620_v62, 16  ;;  %v7230_v17 = vrot.slane %v7228_v19, 4  ;;  %v5265_v8 = vld [vmem:[#allocation2 + $0x1e0] sm:$0x8] }
 0x3ac   : > { %5174 = vst.msk [vmem:[#allocation3 + $0x188] sm:$0xf] %vm5124_vm13, %v5031_v32  ;;  %v6007_v58 = vpop.permute.xlu0 %6006  ;;  %v6884_v55 = vrot.slane %v6882_v9, 5  ;;  %v6888_v36 = vrot.slane %v6886_v49, 4  ;;  %v7240_v45 = vrot.slane %v7238_v30, 4  ;;  %v4902_v46 = vshrl.u32 %v15235_v39, 16 }
 0x3ad   : > { %5960 = vrot.lane.b32.xlu1 %v5531_v16, %s11680_s28  ;;  %6151 = vst.msk [vmem:[#allocation3 + $0x180] sm:$0xf] %vm6102_vm14, %v6007_v58  ;;  %v15209_v16 = vld [vmem:[#allocation2 + $0xec] sm:$0xf]  ;;  %v7236_v42 = vrot.slane %v7234_v56, 5  ;;  %v7231_v0 = vor.u32 %v7230_v17, %v15057_v2 }
 0x3ae   : > { %6343 = vrot.lane.b32.xlu0 %v6191_v27, %s11681_s11  ;;  %v15223_v27 = vrot.slane %v5854_v35, 7  ;;  %v6889_v58 = vor.u32 %v6888_v36, %v6884_v55  ;;  %v4546_v37 = vshll.u32 %v15209_v16, 16  ;;  %v7244_v36 = vshll.u32 %v6621_v4, 16  ;;  %v15267_v2 = vld [vmem:[#allocation2 + $0xf0] sm:$0xf] }
 0x3af   : > { %v5945_v61 = vpop.permute.xlu1 %5944  ;;  %v7241_v54 = vor.u32 %v7240_v45, %v7236_v42  ;;  %v4904_v45 = vrot.slane %v4902_v46, 4 }
 0x3b0   : > { %6120 = vst.msk [vmem:[#allocation3 + $0x88] sm:$0xf] %vm6102_vm14, %v5945_v61  ;;  %v6328_v6 = vpop.permute.xlu0 %6327  ;;  %v15240_v61 = vld [vmem:[#allocation2 + $0x1c8] sm:$0xf]  ;;  %v6890_v5 = vrot.slane %v6889_v58, 4  ;;  %v15257_v19 = vrot.slane %v4546_v37, 5 }
 0x3b1   : > { %6024 = vrot.lane.b32.xlu1 %v5851_v57, %s11680_s28  ;;  %6504 = vst.msk [vmem:[#allocation3 + $0x80] sm:$0xf] %vm6487_vm15, %v6328_v6  ;;  %v4183_v57 = vld [vmem:[#allocation2 + $0xe8] sm:$0xf]  ;;  %v4889_v62 = vshrl.u32 %v15240_v61, 16  ;;  %v7232_v58 = vrot.slane %v7231_v0, 4 }
 0x3b2   : > { %6407 = vrot.lane.b32.xlu0 %v6223_v43, %s11681_s11  ;;  %v6880_v43 = vrot.slane %v6879_v14, 4  ;;  %v4537_v35 = vshrl.u32 %v4183_v57, 16  ;;  %v4540_v9 = vshll.u32 %v4183_v57, 16  ;;  %v6895_v59 = vsel %vm12019_vm6, %v6890_v5, %v6894_v63  ;;  %v11541_v57 = vld [vmem:[#allocation3 + $0x84] ss:$8 sps:$4 sm:$0xff]  }
 0x3b3   : > { %v6009_v10 = vpop.permute.xlu1 %6008  ;;  %7423 = vst.msk [vmem:[#allocation3 + $0xbc] sm:$0xf] %vm254_vm0, %v6895_v59  ;;  %v4892_v14 = vshll.u32 %v15240_v61, 16  ;;  %v7242_v51 = vrot.slane %v7241_v54, 4  ;;  %v5865_v61 = vrot.slane %v5863_v13, 7  ;;  %v7237_v63 = vsel %vm12019_vm6, %v7232_v58, %v7236_v42  ;;  %11104 = vmatprep.mubr.msk.bf16.mxu0 %vm7895_vm1, %v11541_v57 }
 0x3b4   : > { %6152 = vst.msk [vmem:[#allocation3 + $0x188] sm:$0xf] %vm6102_vm14, %v6009_v10  ;;  %v6392_v41 = vpop.permute.xlu0 %6391  ;;  %v15211_v53 = vpop.f32.mrf.mxu0  ;;  %v6885_v49 = vsel %vm12019_vm6, %v6880_v43, %v6884_v55  ;;  %v4898_v55 = vshll.u32 %v15235_v39, 16  ;;  %v5859_v39 = vor.u32 %v5857_v3, %v15223_v27  ;;  %v4539_v30 = vrot.slane %v4537_v35, 4  ;;  %v15276_v5 = vld [vmem:[#allocation2 + $0x104] sm:$0xf] }
 0x3b5   : > { %6345 = vrot.lane.b32.xlu1 %v6192_v18, %s11681_s11  ;;  %6536 = vst.msk [vmem:[#allocation3 + $0x180] sm:$0xf] %vm6487_vm15, %v6392_v41  ;;  %v4542_v37 = vrot.slane %v4540_v9, 5  ;;  %v4556_v13 = vshll.u32 %v15267_v2, 16  ;;  %v15292_v42 = vld [vmem:[#allocation2 + $0x108] sm:$0xf] }
 0x3b6   : > { %4007 = vrot.lane.b32.xlu0 %v3821_v22, %s11677_s9  ;;  %v8028_v11 = vpop.f32.mrf.mxu0  ;;  %v4550_v22 = vshrl.u32 %v15209_v16, 16  ;;  %7422 = vst.msk [vmem:[#allocation3 + $0xb4] sm:$0xf] %vm254_vm0, %v6885_v49  ;;  %v15290_v17 = vrot.slane %v4898_v55, 5  ;;  %7454 = vst.msk [vmem:[#allocation3 + $0x1b4] sm:$0xf] %vm254_vm0, %v7237_v63  ;;  %v5860_v28 = vsel %vm11969_vm3, %v5852_v20, %v5859_v39  ;;  %v5868_v20 = vor.u32 %v5866_v47, %v5865_v61 }
 0x3b7   : > { %v6330_v32 = vpop.permute.xlu1 %6329  ;;  %v15308_v35 = vld [vmem:[#allocation2 + $0x1e4] sm:$0xf]  ;;  %v4543_v12 = vor.u32 %v4542_v37, %v4539_v30  ;;  %v5556_v25 = vshrl.u32 %v15276_v5, 16  ;;  %v5565_v59 = vshrl.u32 %v15292_v42, 16  ;;  %v15334_v52 = vrot.slane %v4556_v13, 5 }
 0x3b8   : > { %6505 = vst.msk [vmem:[#allocation3 + $0x88] sm:$0xf] %vm6487_vm15, %v6330_v32  ;;  %v3992_v34 = vpop.permute.xlu0 %3991  ;;  %v15242_v18 = vpop.f32.mrf.mxu1  ;;  %v7480_v16 = vld [vmem:[#allocation3 + $0x80] sm:$0xff]  ;;  %v4552_v56 = vrot.slane %v4550_v22, 4  ;;  %v4894_v22 = vrot.slane %v4892_v14, 5  ;;  %v4905_v0 = vor.u32 %v4904_v45, %v15290_v17  ;;  %v5885_v47 = vshrl.u32 %v15316_v15, 16 }
 0x3b9   : > { %6409 = vrot.lane.b32.xlu1 %v6224_v31, %s11681_s11  ;;  %4134 = vst.msk [vmem:[#allocation3 + $0x190] sm:$0xf] %vm4083_vm12, %v3992_v34  ;;  %v15244_v6 = vpop.f32.mrf.mxu0  ;;  %v5558_v58 = vrot.slane %v5556_v25, 7  ;;  %v5879_v61 = vshll.u32 %v15308_v35, 16 }
 0x3ba   : > { %4984 = vrot.lane.b32.xlu0 %v4525_v50, %s11679_s10  ;;  %v8156_v31 = vpop.f32.mrf.mxu1  ;;  %v4553_v40 = vor.u32 %v4552_v56, %v15257_v19  ;;  %v15349_v39 = vrot.slane %v4905_v0, 4  ;;  %v15355_v37 = vrot.slane %v5885_v47, 7  ;;  %v4226_v47 = vld [vmem:[#allocation2 + $0x1d4] sm:$0xf] }
 0x3bb   : > { %v6394_v10 = vpop.permute.xlu1 %6393  ;;  %v8031_v41 = vpop.f32.mrf.mxu0  ;;  %v11543_v31 = vld [vmem:[#allocation3 + $0x184] ss:$8 sps:$4 sm:$0xff]  }
 0x3bc   : > { %6537 = vst.msk [vmem:[#allocation3 + $0x188] sm:$0xf] %vm6487_vm15, %v6394_v10  ;;  %v4969_v50 = vpop.permute.xlu0 %4968  ;;  %v15263_v32 = vpop.f32.mrf.mxu1  ;;  %v7512_v33 = vld [vmem:[#allocation3 + $0x180] sm:$0xff]  ;;  %v4891_v10 = vrot.slane %v4889_v62, 4  ;;  %v5861_v41 = vrot.slane %v15223_v27, 4  ;;  %11120 = vmatprep.mubr.msk.bf16.mxu1 %vm7895_vm1, %v11543_v31  ;;  %v5549_v27 = vsel %vm11969_vm3, %v5541_v60, %v5548_v38  ;;  %v15337_v46 = vrot.slane %v4553_v40, 4 }
 0x3bd   : > { %4009 = vrot.lane.b32.xlu1 %v3822_v26, %s11677_s9  ;;  %5143 = vst.msk [vmem:[#allocation3 + $0x90] sm:$0xf] %vm5124_vm13, %v4969_v50  ;;  %v7246_v26 = vrot.slane %v7244_v36, 5  ;;  %v5225_v36 = vld [vmem:[#allocation2 + $0x100] sm:$0x8]  ;;  %v15339_v62 = vrot.slane %v4543_v12, 4 }
 0x3be   : > { %5048 = vrot.lane.b32.xlu0 %v4877_v24, %s11679_s10  ;;  %v8159_v43 = vpop.f32.mrf.mxu1  ;;  %v6193_v50 = vld [vmem:[#allocation2 + $0xf0] sm:$0xf]  ;;  %v4895_v14 = vor.u32 %v4894_v22, %v4891_v10  ;;  %v15342_v60 = vrot.slane %v5565_v59, 7  ;;  %v6194_v22 = vld [vmem:[#allocation2 + $0xf4] sm:$0xf] }
 0x3bf   : > { %v3994_v11 = vpop.permute.xlu1 %3993  ;;  %v7481_v34 = vld [vmem:[#allocation3 + $0x88] sm:$0xff]  ;;  %v7247_v4 = vsel %vm12019_vm6, %v7242_v51, %v7246_v26  ;;  %v5568_v51 = vshll.u32 %v15292_v42, 16  ;;  %v5551_v26 = vshrl.u32 %v5225_v36, 16  ;;  %v5871_v43 = vshrl.u32 %v5265_v8, 16 }
 0x3c0   : > { %4135 = vst.msk [vmem:[#allocation3 + $0x198] sm:$0xf] %vm4083_vm12, %v3994_v11  ;;  %v11039_v24 = vcombine.low %v7480_v16, %v7481_v34  ;;  %v5033_v3 = vpop.permute.xlu0 %5032  ;;  %v5876_v16 = vshrl.u32 %v15308_v35, 16  ;;  %v5559_v11 = vshll.u32 %v15276_v5, 16  ;;  %v5869_v34 = vsel %vm11969_vm3, %v5861_v41, %v5868_v20  ;;  %v4186_v5 = vld [vmem:[#allocation2 + $0xf4] sm:$0xf] }
 0x3c1   : > { %4986 = vrot.lane.b32.xlu1 %v4535_v23, %s11679_s10  ;;  %7455 = vst.msk [vmem:[#allocation3 + $0x1bc] sm:$0xf] %vm254_vm0, %v7247_v4  ;;  %v15306_v23 = vld [vmem:[#allocation2 + $0x1d0] sm:$0xf]  ;;  %v4549_v13 = vsel %vm12019_vm6, %v15339_v62, %v15257_v19  ;;  %v15368_v45 = vrot.slane %v4895_v14, 4  ;;  %v5563_v42 = vrot.slane %v5558_v58, 4 }
 0x3c2   : > { %8089 = vmatmul.mubr.bf16.gmra.mxu0 %v11039_v24  ;;  %5175 = vst.msk [vmem:[#allocation3 + $0x190] sm:$0xf] %vm5124_vm13, %v5033_v3  ;;  %5962 = vrot.lane.b32.xlu0 %v15233_v48, %s11680_s28  ;;  %v4908_v54 = vshll.u32 %v15306_v23, 16  ;;  %v5878_v30 = vrot.slane %v5876_v16, 7  ;;  %v5888_v24 = vshll.u32 %v15316_v15, 16  ;;  %v4560_v3 = vshrl.u32 %v15267_v2, 16 }
 0x3c3   : > { %v4971_v9 = vpop.permute.xlu1 %4970  ;;  %v7513_v49 = vld [vmem:[#allocation3 + $0x188] sm:$0xff]  ;;  %v6225_v4 = vld [vmem:[#allocation2 + $0x1d0] sm:$0xf]  ;;  %v15372_v38 = vrot.slane %v5551_v26, 11  ;;  %v15374_v10 = vor.u32 %v5559_v11, %v5558_v58  ;;  %v4566_v31 = vshll.u32 %v4186_v5, 16  ;;  %v15387_v12 = vrot.slane %v5871_v43, 11 }
 0x3c4   : > { %5144 = vst.msk [vmem:[#allocation3 + $0x98] sm:$0xf] %vm5124_vm13, %v4971_v9  ;;  %v11071_v48 = vcombine.low %v7512_v33, %v7513_v49  ;;  %v5947_v21 = vpop.permute.xlu0 %5946  ;;  %v15351_v56 = vrot.slane %v4908_v54, 5  ;;  %v4559_v33 = vsel %vm12019_vm6, %v15337_v46, %v15334_v52  ;;  %v4912_v9 = vshrl.u32 %v15306_v23, 16  ;;  %v6583_v41 = vld [vmem:[#allocation2 + $0xec] sm:$0xf] }
 0x3c5   : > { %5050 = vrot.lane.b32.xlu1 %v4887_v7, %s11679_s10  ;;  %6121 = vst.msk [vmem:[#allocation3 + $0x90] sm:$0xf] %vm6102_vm14, %v5947_v21  ;;  %v5570_v7 = vor.u32 %v5568_v51, %v15342_v60  ;;  %v5883_v49 = vrot.slane %v5878_v30, 4  ;;  %v5890_v40 = vor.u32 %v5888_v24, %v15355_v37  ;;  %v15389_v25 = vor.u32 %v5879_v61, %v5878_v30  ;;  %v3823_v21 = vld [vmem:[#allocation2 + $0x1c8] sm:$0xf] }
 0x3c6   : > { %8217 = vmatmul.mubr.bf16.gmra.mxu1 %v11071_v48  ;;  %6026 = vrot.lane.b32.xlu0 %v5860_v28, %s11680_s28  ;;  %v4911_v35 = vsel %vm12019_vm6, %v15349_v39, %v15351_v56  ;;  %v4570_v15 = vshrl.u32 %v4186_v5, 16  ;;  %v6582_v48 = vld [vmem:[#allocation2 + $0xe8] sm:$0xf]  ;;  %v4901_v20 = vsel %vm12019_vm6, %v15368_v45, %v15290_v17  ;;  %v6906_v36 = vshll.u32 %v6583_v41, 16  ;;  %v6226_v14 = vld [vmem:[#allocation2 + $0x1d4] sm:$0xf] }
 0x3c7   : > { %v5035_v55 = vpop.permute.xlu1 %5034  ;;  %v6897_v0 = vshrl.u32 %v6582_v48, 16  ;;  %v6900_v54 = vshll.u32 %v6582_v48, 16  ;;  %v15405_v8 = vrot.slane %v4566_v31, 5  ;;  %v15415_v30 = vsel %vm11969_vm3, %v5883_v49, %v5890_v40  ;;  %v15423_v61 = vld [vmem:[#allocation2 + $0xf0] sm:$0xf] }
 0x3c8   : > { %5176 = vst.msk [vmem:[#allocation3 + $0x198] sm:$0xf] %vm5124_vm13, %v5035_v55  ;;  %v6011_v57 = vpop.permute.xlu0 %6010  ;;  %v6910_v55 = vshrl.u32 %v6583_v41, 16  ;;  %v6908_v11 = vrot.slane %v6906_v36, 5  ;;  %v5882_v24 = vsel %vm11969_vm3, %v15387_v12, %v15389_v25  ;;  %v15421_v43 = vrot.slane %v4570_v15, 4 }
 0x3c9   : > { %5964 = vrot.lane.b32.xlu1 %v5549_v27, %s11680_s28  ;;  %6153 = vst.msk [vmem:[#allocation3 + $0x190] sm:$0xf] %vm6102_vm14, %v6011_v57  ;;  %v15398_v27 = vsel %vm11969_vm3, %v5563_v42, %v5570_v7  ;;  %v6899_v51 = vrot.slane %v6897_v0, 4  ;;  %v6902_v26 = vrot.slane %v6900_v54, 5  ;;  %v15425_v42 = vrot.slane %v4560_v3, 4 }
 0x3ca   : > { %6347 = vrot.lane.b32.xlu0 %v6193_v50, %s11681_s11  ;;  %v5562_v50 = vsel %vm11969_vm3, %v15372_v38, %v15374_v10  ;;  %v6912_v5 = vrot.slane %v6910_v55, 4  ;;  %v4918_v7 = vshll.u32 %v4226_v47, 16  ;;  %v6623_v31 = vld [vmem:[#allocation2 + $0x1cc] sm:$0xf]  ;;  %v6916_v15 = vshll.u32 %v15423_v61, 16 }
 0x3cb   : > { %v5949_v63 = vpop.permute.xlu1 %5948  ;;  %v3824_v49 = vld [vmem:[#allocation2 + $0x1cc] sm:$0xf]  ;;  %v11682_v54 = vmov 1983009808   ;;  %v8477_v36 = vlaneseq  ;;  %v4563_v23 = vor.u32 %v15425_v42, %v15334_v52  ;;  %v5572_v12 = vrot.slane %v15342_v60, 4 }
 0x3cc   : > { %6122 = vst.msk [vmem:[#allocation3 + $0x98] sm:$0xf] %vm6102_vm14, %v5949_v63  ;;  %v6332_v2 = vpop.permute.xlu0 %6331  ;;  %v6622_v63 = vld [vmem:[#allocation2 + $0x1c8] sm:$0xf]  ;;  %v6913_v41 = vor.u32 %v6912_v5, %v6908_v11  ;;  %v15430_v3 = vunpack.c.l.s4 %v11682_v54  ;;  %v15445_v5 = vld [vmem:[#allocation2 + $0x1d0] sm:$0xf] }
 0x3cd   : > { %6028 = vrot.lane.b32.xlu1 %v5869_v34, %s11680_s28  ;;  %6506 = vst.msk [vmem:[#allocation3 + $0x90] sm:$0xf] %vm6487_vm15, %v6332_v2  ;;  %v6903_v2 = vor.u32 %v6902_v26, %v6899_v51  ;;  %v15443_v26 = vrot.slane %v6916_v15, 5  ;;  %v15454_v62 = vld [vmem:[#allocation2 + $0x10c] sm:$0xf]  ;;  %v7262_v15 = vshrl.u32 %v6623_v31, 16 }
 0x3ce   : > { %v15383_v28 = vpop.f32.mrf.mxu0  ;;  %6411 = vrot.lane.b32.xlu0 %v6225_v4, %s11681_s11  ;;  %v5574_v17 = vshrl.u32 %v15454_v62, 16  ;;  %v15518_v52 = vrot.slane %v4563_v23, 4 }
 0x3cf   : > { %v6013_v59 = vpop.permute.xlu1 %6012  ;;  %v6904_v55 = vrot.slane %v6903_v2, 4 }
 0x3d0   : > { %6154 = vst.msk [vmem:[#allocation3 + $0x198] sm:$0xf] %vm6102_vm14, %v6013_v59  ;;  %v8036_v16 = vpop.f32.mrf.mxu0  ;;  %v6396_v58 = vpop.permute.xlu0 %6395  ;;  %v7249_v59 = vshrl.u32 %v6622_v63, 16  ;;  %v4569_v39 = vsel %vm12019_vm6, %v15518_v52, %v15405_v8 }
 0x3d1   : > { %6349 = vrot.lane.b32.xlu1 %v6194_v22, %s11681_s11  ;;  %6538 = vst.msk [vmem:[#allocation3 + $0x190] sm:$0xf] %vm6487_vm15, %v6396_v58  ;;  %v4922_v22 = vshrl.u32 %v4226_v47, 16  ;;  %v4187_v16 = vld [vmem:[#allocation2 + $0xf8] sm:$0x1]  ;;  %v7258_v58 = vshll.u32 %v6623_v31, 16  ;;  %v6909_v54 = vsel %vm12019_vm6, %v6904_v55, %v6908_v11  ;;  %v8476_v31 = vunpack.c.0.s8 %v15430_v3 }
 0x3d2   : > { %v15407_v34 = vpop.f32.mrf.mxu1  ;;  %v15410_v57 = vpop.f32.mrf.mxu0  ;;  %4011 = vrot.lane.b32.xlu0 %v3823_v21, %s11677_s9  ;;  %v7252_v21 = vshll.u32 %v6622_v63, 16  ;;  %v15432_v47 = vld [vmem:[#allocation2 + $0x1d8] sm:$0x1]  ;;  %v7251_v63 = vrot.slane %v7249_v59, 4  ;;  %7424 = vst.msk [vmem:[#allocation3 + $0xc4] sm:$0xf] %vm254_vm0, %v6909_v54 }
 0x3d3   : > { %v6334_v4 = vpop.permute.xlu1 %6333  ;;  %v4576_v59 = vshll.u32 %v4187_v16, 16  ;;  %v15466_v55 = vrot.slane %v4912_v9, 4  ;;  %v15480_v9 = vld [vmem:[#allocation2 + $0x1ec] sm:$0xf] }
 0x3d4   : > { %6507 = vst.msk [vmem:[#allocation3 + $0x98] sm:$0xf] %vm6487_vm15, %v6334_v4  ;;  %v8164_v40 = vpop.f32.mrf.mxu1  ;;  %v8039_v48 = vpop.f32.mrf.mxu0  ;;  %v7254_v4 = vrot.slane %v7252_v21, 5  ;;  %v4928_v21 = vshll.u32 %v15432_v47, 16  ;;  %v7264_v47 = vrot.slane %v7262_v15, 4  ;;  %v5894_v15 = vshrl.u32 %v15480_v9, 16 }
 0x3d5   : > { %6413 = vrot.lane.b32.xlu1 %v6226_v14, %s11681_s11  ;;  %v3996_v0 = vpop.permute.xlu0 %3995  ;;  %v6914_v14 = vrot.slane %v6913_v41, 4  ;;  %v4573_v40 = vor.u32 %v15421_v43, %v15405_v8  ;;  %v15449_v48 = vrot.slane %v4918_v7, 5  ;;  %v7260_v7 = vrot.slane %v7258_v58, 5 }
 0x3d6   : > { %v15434_v51 = vpop.f32.mrf.mxu1  ;;  %4136 = vst.msk [vmem:[#allocation3 + $0x1a0] sm:$0xf] %vm4083_vm12, %v3996_v0  ;;  %4988 = vrot.lane.b32.xlu0 %v4549_v13, %s11679_s10  ;;  %v4924_v0 = vrot.slane %v4922_v22, 4  ;;  %v15456_v13 = vld [vmem:[#allocation2 + $0x110] sm:$0xf]  ;;  %v7255_v43 = vor.u32 %v7254_v4, %v7251_v63  ;;  %v7482_v22 = vld [vmem:[#allocation3 + $0x90] sm:$0xff] }
 0x3d7   : > { %v6398_v2 = vpop.permute.xlu1 %6397  ;;  %v6919_v41 = vsel %vm12019_vm6, %v6914_v14, %v15443_v26  ;;  %v7268_v14 = vshll.u32 %v15445_v5, 16  ;;  %v11545_v4 = vld [vmem:[#allocation3 + $0x94] ss:$8 sps:$4 sm:$0xff]   ;;  %v5583_v45 = vshrl.u32 %v15456_v13, 16  ;;  %v7265_v3 = vor.u32 %v7264_v47, %v7260_v7 }
 0x3d8   : > { %6539 = vst.msk [vmem:[#allocation3 + $0x198] sm:$0xf] %vm6487_vm15, %v6398_v2  ;;  %v8167_v19 = vpop.f32.mrf.mxu1  ;;  %v7256_v16 = vrot.slane %v7255_v43, 4  ;;  %v8478_v2 = vshrl.u32 %v8477_v36, 7  ;;  %v4925_v54 = vor.u32 %v4924_v0, %v15449_v48  ;;  %11105 = vmatprep.mubr.msk.bf16.mxu0 %vm7895_vm1, %v11545_v4  ;;  %v7514_v36 = vld [vmem:[#allocation3 + $0x190] sm:$0xff]  ;;  %v15501_v43 = vrot.slane %v4576_v59, 5 }
 0x3d9   : > { %4013 = vrot.lane.b32.xlu1 %v3824_v49, %s11677_s9  ;;  %v4973_v11 = vpop.permute.xlu0 %4972  ;;  %7425 = vst.msk [vmem:[#allocation3 + $0xcc] sm:$0xf] %vm254_vm0, %v6919_v41  ;;  %v15482_v49 = vld [vmem:[#allocation2 + $0x1f0] sm:$0xf]  ;;  %v15490_v19 = vrot.slane %v7268_v14, 5  ;;  %v15499_v41 = vrot.slane %v4573_v40, 4 }
 0x3da   : > { %5145 = vst.msk [vmem:[#allocation3 + $0xa0] sm:$0xf] %vm5124_vm13, %v4973_v11  ;;  %5052 = vrot.lane.b32.xlu0 %v4901_v20, %s11679_s10  ;;  %v7261_v42 = vsel %vm12019_vm6, %v7256_v16, %v7260_v7  ;;  %v5903_v7 = vshrl.u32 %v15482_v49, 16  ;;  %v15520_v46 = vrot.slane %v4928_v21, 5  ;;  %v7266_v40 = vrot.slane %v7265_v3, 4 }
 0x3db   : > { %v3998_v58 = vpop.permute.xlu1 %3997  ;;  %v7483_v63 = vld [vmem:[#allocation3 + $0x98] sm:$0xff]  ;;  %7456 = vst.msk [vmem:[#allocation3 + $0x1c4] sm:$0xf] %vm254_vm0, %v7261_v42  ;;  %v15524_v16 = vsub.s32 %v8476_v31, %v8478_v2  ;;  %v15526_v47 = vrot.slane %v4925_v54, 4  ;;  %v5585_v10 = vrot.slane %v5583_v45, 7  ;;  %v5906_v23 = vshll.u32 %v15482_v49, 16 }
 0x3dc   : > { %4137 = vst.msk [vmem:[#allocation3 + $0x1a8] sm:$0xf] %vm4083_vm12, %v3998_v58  ;;  %v11041_v20 = vcombine.low %v7482_v22, %v7483_v63  ;;  %v15509_v22 = vld [vmem:[%s16663_s2] ss:$0 sm:$0xff]  ;;  %v11547_v14 = vld [vmem:[#allocation3 + $0x194] ss:$8 sps:$4 sm:$0xff]   ;;  %v7271_v21 = vsel %vm12019_vm6, %v7266_v40, %v15490_v19 }
 0x3dd   : > { %4990 = vrot.lane.b32.xlu1 %v4559_v33, %s11679_s10  ;;  %v5037_v0 = vpop.permute.xlu0 %5036  ;;  %v4915_v33 = vor.u32 %v15466_v55, %v15351_v56  ;;  %v5576_v58 = vrot.slane %v5574_v17, 7  ;;  %v5577_v63 = vshll.u32 %v15454_v62, 16  ;;  %11121 = vmatprep.mubr.msk.bf16.mxu1 %vm7895_vm1, %v11547_v14  ;;  %v4579_v55 = vsel %vm12019_vm6, %v15499_v41, %v15501_v43  ;;  %7457 = vst.msk [vmem:[#allocation3 + $0x1cc] sm:$0xf] %vm254_vm0, %v7271_v21  ;;  %v6195_v49 = vld [vmem:[#allocation2 + $0x104] sm:$0xf] }
 0x3de   : > { %8097 = vmatmul.mubr.bf16.gmra.mxu0 %v11041_v20  ;;  %5177 = vst.msk [vmem:[#allocation3 + $0x1a0] sm:$0xf] %vm5124_vm13, %v5037_v0  ;;  %5966 = vrot.lane.b32.xlu0 %v5562_v50, %s11680_s28  ;;  %v5586_v50 = vshll.u32 %v15456_v13, 16  ;;  %v5896_v13 = vrot.slane %v5894_v15, 7  ;;  %v5905_v31 = vrot.slane %v5903_v7, 7  ;;  %v8027_v4 = vadd.f32 %v15509_v22, %v15211_v53 }
 0x3df   : > { %v4975_v11 = vpop.permute.xlu1 %4974  ;;  %v7515_v59 = vld [vmem:[#allocation3 + $0x198] sm:$0xff]  ;;  %v15560_v56 = vrot.slane %v4915_v33, 4  ;;  %v4931_v2 = vsel %vm12019_vm6, %v15526_v47, %v15520_v46  ;;  %v5581_v54 = vrot.slane %v5576_v58, 4  ;;  %v5579_v25 = vor.u32 %v5577_v63, %v5576_v58  ;;  %v11551_v41 = vld [vmem:[#allocation3 + $0x1a4] ss:$8 sps:$4 sm:$0xff]  }
 0x3e0   : > { %5146 = vst.msk [vmem:[#allocation3 + $0xa8] sm:$0xf] %vm5124_vm13, %v4975_v11  ;;  %v11073_v38 = vcombine.low %v7514_v36, %v7515_v59  ;;  %v8030_v17 = vadd.f32 %v15509_v22, %v15244_v6  ;;  %v5588_v45 = vor.u32 %v5586_v50, %v5585_v10  ;;  %v8035_v20 = vadd.f32 %v15509_v22, %v15383_v28  ;;  %v6197_v47 = vld [vmem:[#allocation2 + $0x10c] sm:$0xf] }
 0x3e1   : > { %5054 = vrot.lane.b32.xlu1 %v4911_v35, %s11679_s10  ;;  %v5951_v62 = vpop.permute.xlu0 %5950  ;;  %v5897_v35 = vshll.u32 %v15480_v9, 16  ;;  %v8158_v9 = vadd.f32 %v15509_v22, %v15263_v32  ;;  %v5901_v42 = vrot.slane %v5896_v13, 4  ;;  %v5908_v3 = vor.u32 %v5906_v23, %v5905_v31 }
 0x3e2   : > { %8225 = vmatmul.mubr.bf16.gmra.mxu1 %v11073_v38  ;;  %6123 = vst.msk [vmem:[#allocation3 + $0xa0] sm:$0xf] %vm6102_vm14, %v5951_v62  ;;  %6030 = vrot.lane.b32.xlu0 %v5882_v24, %s11680_s28  ;;  %v8155_v24 = vadd.f32 %v15509_v22, %v15242_v18  ;;  %v5892_v18 = vrot.slane %v15355_v37, 4  ;;  %v8281_v36 = vmax.f32 %v8027_v4, 0.0  ;;  %v8163_v6 = vadd.f32 %v15509_v22, %v15407_v34  ;;  %v6227_v37 = vld [vmem:[#allocation2 + $0x1e4] sm:$0xf] }
 0x3e3   : > { %v5039_v53 = vpop.permute.xlu1 %5038  ;;  %v8038_v32 = vadd.f32 %v15509_v22, %v15410_v57  ;;  %v5899_v28 = vor.u32 %v5897_v35, %v5896_v13  ;;  %v4921_v34 = vsel %vm12019_vm6, %v15560_v56, %v15449_v48  ;;  %v15595_v57 = vsel %vm11969_vm3, %v5572_v12, %v5579_v25  ;;  %v6196_v13 = vld [vmem:[#allocation2 + $0x108] sm:$0xf]  ;;  %11122 = vmatprep.mubr.msk.bf16.mxu1 %vm7895_vm1, %v11551_v41 }
 0x3e4   : > { %5178 = vst.msk [vmem:[#allocation3 + $0x1a8] sm:$0xf] %vm5124_vm13, %v5039_v53  ;;  %v8313_v33 = vmax.f32 %v8155_v24, 0.0  ;;  %v8282_v40 = vmax.f32 %v8030_v17, 0.0  ;;  %v8314_v11 = vmax.f32 %v8158_v9, 0.0  ;;  %v8283_v14 = vmax.f32 %v8035_v20, 0.0 }
 0x3e5   : > { %5968 = vrot.lane.b32.xlu1 %v15398_v27, %s11680_s28  ;;  %v6015_v60 = vpop.permute.xlu0 %6014  ;;  %v8166_v27 = vadd.f32 %v15509_v22, %v15434_v51  ;;  %v15600_v51 = vsel %vm11969_vm3, %v5581_v54, %v5588_v45  ;;  %v15606_v38 = vsel %vm11969_vm3, %v5901_v42, %v5908_v3  ;;  %v6920_v10 = vshrl.u32 %v15423_v61, 16  ;;  %v3825_v54 = vld [vmem:[#allocation2 + $0x1d0] sm:$0xf] }
 0x3e6   : > { %6155 = vst.msk [vmem:[#allocation3 + $0x1a0] sm:$0xf] %vm6102_vm14, %v6015_v60  ;;  %v8042_v0 = vpop.f32.mrf.mxu0  ;;  %6351 = vrot.lane.b32.xlu0 %v6195_v49, %s11681_s11  ;;  %v8345_v50 = vsel %vm7895_vm1, %v8281_v36, -inf  ;;  %v8315_v21 = vmax.f32 %v8163_v6, 0.0  ;;  %v8284_v62 = vmax.f32 %v8038_v32, 0.0  ;;  %v8393_v12 = vsel %vm7895_vm1, %v8313_v33, -inf }
 0x3e7   : > { %v5953_v15 = vpop.permute.xlu1 %5952  ;;  %v8043_v7 = vadd.f32 %v15509_v22, %v8042_v0  ;;  %v8316_v4 = vmax.f32 %v8166_v27, 0.0  ;;  %v8348_v25 = vsel %vm7895_vm1, %v8282_v40, -inf  ;;  %v15622_v24 = vsel %vm7895_vm1, %v8314_v11, -inf  ;;  %v6228_v0 = vld [vmem:[#allocation2 + $0x1e8] sm:$0xf] }
 0x3e8   : > { %6124 = vst.msk [vmem:[#allocation3 + $0xa8] sm:$0xf] %vm6102_vm14, %v5953_v15  ;;  %v8044_v59 = vpop.f32.mrf.mxu0  ;;  %v15626_v45 = vsel %vm7895_vm1, %v8283_v14, -inf  ;;  %v15629_v3 = vrot.slane %v6920_v10, 4  ;;  %v15635_v36 = vsel %vm7895_vm1, %v8284_v62, -inf  ;;  %v7272_v62 = vshrl.u32 %v15445_v5, 16 }
 0x3e9   : > { %6032 = vrot.lane.b32.xlu1 %v15415_v30, %s11680_s28  ;;  %v8285_v58 = vmax.f32 %v8043_v7, 0.0  ;;  %v6336_v63 = vpop.permute.xlu0 %6335  ;;  %v15614_v30 = vsel %vm11969_vm3, %v5892_v18, %v5899_v28  ;;  %v15632_v18 = vsel %vm7895_vm1, %v8315_v21, -inf  ;;  %v15641_v27 = vsel %vm7895_vm1, %v8316_v4, -inf }
 0x3ea   : > { %v8170_v31 = vpop.f32.mrf.mxu1  ;;  %6508 = vst.msk [vmem:[#allocation3 + $0xa0] sm:$0xf] %vm6487_vm15, %v6336_v63  ;;  %v8045_v23 = vpop.f32.mrf.mxu0  ;;  %6415 = vrot.lane.b32.xlu0 %v6227_v37, %s11681_s11  ;;  %v6923_v33 = vor.u32 %v15629_v3, %v15443_v26  ;;  %vm10682_vm3 = vcmask 1041409  }
 0x3eb   : > { %v6017_v35 = vpop.permute.xlu1 %6016  ;;  %v8346_v53 = vsel %vm7895_vm1, %v8285_v58, -inf  ;;  %v8171_v61 = vadd.f32 %v15509_v22, %v8170_v31  ;;  %v8046_v49 = vadd.f32 %v15509_v22, %v8045_v23 }
 0x3ec   : > { %6156 = vst.msk [vmem:[#allocation3 + $0x1a8] sm:$0xf] %vm6102_vm14, %v6017_v35  ;;  %v8347_v44 = vmax.f32 %v8345_v50, %v8346_v53  ;;  %v8172_v17 = vpop.f32.mrf.mxu1  ;;  %v8047_v9 = vpop.f32.mrf.mxu0  ;;  %v3826_v35 = vld [vmem:[#allocation2 + $0x1d4] sm:$0xf] }
 0x3ed   : > { %6353 = vrot.lane.b32.xlu1 %v6196_v13, %s11681_s11  ;;  %v8317_v20 = vmax.f32 %v8171_v61, 0.0  ;;  %v8286_v60 = vmax.f32 %v8046_v49, 0.0  ;;  %v6400_v42 = vpop.permute.xlu0 %6399 }
 0x3ee   : > { %v8473_v6 = vcombine.high %v8347_v44, %v8347_v44  ;;  %v8480_v32 = vrot.slane %v8347_v44, %v15524_v16  ;;  %v8173_v28 = vpop.f32.mrf.mxu1  ;;  %6540 = vst.msk [vmem:[#allocation3 + $0x1a0] sm:$0xf] %vm6487_vm15, %v6400_v42  ;;  %4015 = vrot.lane.b32.xlu0 %v3825_v54, %s11677_s9 }
 0x3ef   : > { %v6338_v15 = vpop.permute.xlu1 %6337  ;;  %v8394_v7 = vsel %vm7895_vm1, %v8317_v20, -inf  ;;  %v8349_v37 = vsel %vm7895_vm1, %v8286_v60, -inf  ;;  %v15654_v50 = vadd.f32 %v15509_v22, %v8173_v28 }
 0x3f0   : > { %v8487_v40 = vrot.slane %v8473_v6, %v15524_v16  ;;  %v8488_v11 = vcombine.high %v8480_v32, %v8480_v32  ;;  %v9146_v59 = vsel %vm9145_vm2, %v8480_v32, -inf  ;;  %6509 = vst.msk [vmem:[#allocation3 + $0xa8] sm:$0xf] %vm6487_vm15, %v6338_v15  ;;  %v8395_v14 = vmax.f32 %v8393_v12, %v8394_v7  ;;  %v8175_v58 = vpop.f32.mrf.mxu1 }
 0x3f1   : > { %v9147_v63 = vrot.slane %v9146_v59, 4  ;;  %v15650_v10 = vmax.f32 %v8348_v25, %v8349_v37  ;;  %6417 = vrot.lane.b32.xlu1 %v6228_v0, %s11681_s11  ;;  %v4000_v21 = vpop.permute.xlu0 %3999 }
 0x3f2   : > { %v8489_v13 = vcombine.high %v8487_v40, %v8487_v40  ;;  %v9153_v31 = vsel %vm9145_vm2, %v8488_v11, -inf  ;;  %v9160_v23 = vsel %vm9145_vm2, %v8487_v40, -inf  ;;  %v8745_v4 = vcombine.high %v8395_v14, %v8395_v14  ;;  %4138 = vst.msk [vmem:[#allocation3 + $0x1b0] sm:$0xf] %vm4083_vm12, %v4000_v21  ;;  %4992 = vrot.lane.b32.xlu0 %v4569_v39, %s11679_s10  ;;  %v11549_v11 = vld [vmem:[#allocation3 + $0xa4] ss:$8 sps:$4 sm:$0xff]  }
 0x3f3   : > { %v9148_v53 = vmax.f32 %v9146_v59, %v9147_v63  ;;  %v9154_v61 = vrot.slane %v9153_v31, 4  ;;  %v9161_v49 = vrot.slane %v9160_v23, 4  ;;  %v8752_v54 = vrot.slane %v8395_v14, %v15524_v16  ;;  %v6402_v12 = vpop.permute.xlu1 %6401  ;;  %11106 = vmatprep.mubr.msk.bf16.mxu0 %vm7895_vm1, %v11549_v11 }
 0x3f4   : > { %v9167_v25 = vsel %vm9145_vm2, %v8489_v13, -inf  ;;  %v8759_v44 = vrot.slane %v8745_v4, %v15524_v16  ;;  %v8490_v17 = vcombine.high %v15650_v10, %v15650_v10  ;;  %v15673_v9 = vrot.slane %v15650_v10, %v15524_v16  ;;  %6541 = vst.msk [vmem:[#allocation3 + $0x1a8] sm:$0xf] %vm6487_vm15, %v6402_v12 }
 0x3f5   : > { %v9149_v8 = vrot.slane %v9148_v53, 2  ;;  %v9155_v52 = vmax.f32 %v9153_v31, %v9154_v61  ;;  %v9162_v39 = vmax.f32 %v9160_v23, %v9161_v49  ;;  %v9168_v20 = vrot.slane %v9167_v25, 4  ;;  %4017 = vrot.lane.b32.xlu1 %v3826_v35, %s11677_s9  ;;  %v4977_v60 = vpop.permute.xlu0 %4976 }
 0x3f6   : > { %v8760_v42 = vcombine.high %v8752_v54, %v8752_v54  ;;  %v8761_v6 = vcombine.high %v8759_v44, %v8759_v44  ;;  %v9594_v32 = vsel %vm9145_vm2, %v8752_v54, -inf  ;;  %v9608_v0 = vsel %vm9145_vm2, %v8759_v44, -inf  ;;  %5147 = vst.msk [vmem:[#allocation3 + $0xb0] sm:$0xf] %vm5124_vm13, %v4977_v60  ;;  %5056 = vrot.lane.b32.xlu0 %v4921_v34, %s11679_s10 }
 0x3f7   : > { %v9150_v28 = vmax.f32 %v9148_v53, %v9149_v8  ;;  %v9156_v15 = vrot.slane %v9155_v52, 2  ;;  %v9163_v7 = vrot.slane %v9162_v39, 2  ;;  %v9169_v37 = vmax.f32 %v9167_v25, %v9168_v20  ;;  %v4002_v40 = vpop.permute.xlu1 %4001 }
 0x3f8   : > { %v9595_v59 = vrot.slane %v9594_v32, 4  ;;  %v9601_v14 = vsel %vm9145_vm2, %v8760_v42, -inf  ;;  %v9609_v58 = vrot.slane %v9608_v0, 4  ;;  %v9615_v63 = vsel %vm9145_vm2, %v8761_v6, -inf  ;;  %4139 = vst.msk [vmem:[#allocation3 + $0x1b8] sm:$0xf] %vm4083_vm12, %v4002_v40 }
 0x3f9   : > { %v9151_v21 = vrot.slane %v9150_v28, 1  ;;  %v9157_v13 = vmax.f32 %v9155_v52, %v9156_v15  ;;  %v9164_v31 = vmax.f32 %v9162_v39, %v9163_v7  ;;  %v9170_v48 = vrot.slane %v9169_v37, 2  ;;  %4994 = vrot.lane.b32.xlu1 %v4579_v55, %s11679_s10  ;;  %v5041_v56 = vpop.permute.xlu0 %5040 }
 0x3fa   : > { %v9596_v34 = vmax.f32 %v9594_v32, %v9595_v59  ;;  %v9602_v23 = vrot.slane %v9601_v14, 4  ;;  %v9610_v4 = vmax.f32 %v9608_v0, %v9609_v58  ;;  %v9616_v35 = vrot.slane %v9615_v63, 4  ;;  %5179 = vst.msk [vmem:[#allocation3 + $0x1b0] sm:$0xf] %vm5124_vm13, %v5041_v56  ;;  %5970 = vrot.lane.b32.xlu0 %v15595_v57, %s11680_s28 }
 0x3fb   : > { %v9152_v53 = vmax.f32 %v9150_v28, %v9151_v21  ;;  %v9158_v61 = vrot.slane %v9157_v13, 1  ;;  %v9165_v49 = vrot.slane %v9164_v31, 1  ;;  %v9171_v54 = vmax.f32 %v9169_v37, %v9170_v48  ;;  %v4979_v12 = vpop.permute.xlu1 %4978 }
 0x3fc   : > { %v9597_v43 = vrot.slane %v9596_v34, 2  ;;  %v9603_v55 = vmax.f32 %v9601_v14, %v9602_v23  ;;  %v9611_v25 = vrot.slane %v9610_v4, 2  ;;  %v9617_v44 = vmax.f32 %v9615_v63, %v9616_v35  ;;  %5148 = vst.msk [vmem:[#allocation3 + $0xb8] sm:$0xf] %vm5124_vm13, %v4979_v12 }
 0x3fd   : > { %v9159_v8 = vmax.f32 %v9157_v13, %v9158_v61  ;;  %v9166_v52 = vmax.f32 %v9164_v31, %v9165_v49  ;;  %v9172_v39 = vrot.slane %v9171_v54, 1  ;;  %v11268_v20 = vpack.c.bf16 %v9152_v53, %v9152_v53  ;;  %5058 = vrot.lane.b32.xlu1 %v4931_v2, %s11679_s10  ;;  %v5955_v57 = vpop.permute.xlu0 %5954  ;;  %v6229_v61 = vld [vmem:[#allocation2 + $0x1ec] sm:$0xf] }
 0x3fe   : > { %v9598_v60 = vmax.f32 %v9596_v34, %v9597_v43  ;;  %v9604_v42 = vrot.slane %v9603_v55, 2  ;;  %v9612_v6 = vmax.f32 %v9610_v4, %v9611_v25  ;;  %v9618_v32 = vrot.slane %v9617_v44, 2  ;;  %6125 = vst.msk [vmem:[#allocation3 + $0xb0] sm:$0xf] %vm6102_vm14, %v5955_v57  ;;  %v15708_v0 = vpop.f32.mrf.mxu0  ;;  %6034 = vrot.lane.b32.xlu0 %v15614_v30, %s11680_s28 }
 0x3ff   : > { %v9173_v28 = vmax.f32 %v9171_v54, %v9172_v39  ;;  %v11269_v15 = vpack.c.bf16 %v9159_v8, %v9159_v8  ;;  %v11270_v7 = vpack.c.bf16 %v9166_v52, %v9166_v52  ;;  %v10554_v37 = vunpack.c.l.b16 %v11268_v20  ;;  %v5043_v46 = vpop.permute.xlu1 %5042 }
 0x400   : > { %v9599_v2 = vrot.slane %v9598_v60, 1  ;;  %v9605_v40 = vmax.f32 %v9603_v55, %v9604_v42  ;;  %v9613_v11 = vrot.slane %v9612_v6, 1  ;;  %v9619_v59 = vmax.f32 %v9617_v44, %v9618_v32  ;;  %5180 = vst.msk [vmem:[#allocation3 + $0x1b8] sm:$0xf] %vm5124_vm13, %v5043_v46  ;;  %v8052_v14 = vpop.f32.mrf.mxu0  ;;  %v6198_v42 = vld [vmem:[#allocation2 + $0x110] sm:$0xf] }
 0x401   : > { %v11271_v58 = vpack.c.bf16 %v9173_v28, %v9173_v28  ;;  %v10555_v63 = vunpack.c.l.b16 %v11269_v15  ;;  %v10556_v21 = vunpack.c.l.b16 %v11270_v7  ;;  %v8504_v30 = vrot.slane %v8490_v17, %v15524_v16  ;;  %5972 = vrot.lane.b32.xlu1 %v15600_v51, %s11680_s28  ;;  %v6019_v13 = vpop.permute.xlu0 %6018 }
 0x402   : > { %v9600_v31 = vmax.f32 %v9598_v60, %v9599_v2  ;;  %v9606_v48 = vrot.slane %v9605_v40, 1  ;;  %v9614_v56 = vmax.f32 %v9612_v6, %v9613_v11  ;;  %v9620_v34 = vrot.slane %v9619_v59, 1  ;;  %v15719_v23 = vpop.f32.mrf.mxu1  ;;  %6157 = vst.msk [vmem:[#allocation3 + $0x1b0] sm:$0xf] %vm6102_vm14, %v6019_v13  ;;  %v15722_v4 = vpop.f32.mrf.mxu0  ;;  %6355 = vrot.lane.b32.xlu0 %v6197_v47, %s11681_s11  ;;  %v7484_v2 = vld [vmem:[#allocation3 + $0xa0] sm:$0xff] }
 0x403   : > { %v10683_v35 = vsel %vm10682_vm3, %v10555_v63, %v10554_v37  ;;  %v8505_v10 = vcombine.high %v15673_v9, %v15673_v9  ;;  %v8506_v17 = vcombine.high %v8504_v30, %v8504_v30  ;;  %v8318_v51 = vmax.f32 %v15654_v50, 0.0  ;;  %v5957_v53 = vpop.permute.xlu1 %5956 }
 0x404   : > { %v10557_v49 = vunpack.c.l.b16 %v11271_v58  ;;  %v9607_v54 = vmax.f32 %v9605_v40, %v9606_v48  ;;  %v9621_v12 = vmax.f32 %v9619_v59, %v9620_v34  ;;  %v11332_v41 = vpack.c.bf16 %v9600_v31, %v9600_v31  ;;  %6126 = vst.msk [vmem:[#allocation3 + $0xb8] sm:$0xf] %vm6102_vm14, %v5957_v53  ;;  %v8180_v43 = vpop.f32.mrf.mxu1  ;;  %v8055_v55 = vpop.f32.mrf.mxu0  ;;  %v7485_v40 = vld [vmem:[#allocation3 + $0xa8] sm:$0xff] }
 0x405   : > { %v11334_v25 = vpack.c.bf16 %v9614_v56, %v9614_v56  ;;  %v9174_v44 = vsel %vm9145_vm2, %v15673_v9, -inf  ;;  %v9181_v8 = vsel %vm9145_vm2, %v8505_v10, -inf  ;;  %v9188_v52 = vsel %vm9145_vm2, %v8504_v30, -inf  ;;  %6036 = vrot.lane.b32.xlu1 %v15606_v38, %s11680_s28  ;;  %v6340_v50 = vpop.permute.xlu0 %6339  ;;  %v7516_v56 = vld [vmem:[#allocation3 + $0x1a0] sm:$0xff]  ;;  %v7517_v34 = vld [vmem:[#allocation3 + $0x1a8] sm:$0xff]  ;;  %s11683_s28 = smov [#allocation4]  }
 0x406   : > { %v10685_v39 = vsel %vm10684_vm4, %v10556_v21, %v10683_v35  ;;  %v11333_v20 = vpack.c.bf16 %v9607_v54, %v9607_v54  ;;  %v11335_v57 = vpack.c.bf16 %v9621_v12, %v9621_v12  ;;  %v9175_v60 = vrot.slane %v9174_v44, 4  ;;  %v15737_v6 = vpop.f32.mrf.mxu1  ;;  %6510 = vst.msk [vmem:[#allocation3 + $0xb0] sm:$0xf] %vm6487_vm15, %v6340_v50  ;;  %6419 = vrot.lane.b32.xlu0 %v6229_v61, %s11681_s11  ;;  %v6230_v61 = vld [vmem:[#allocation2 + $0x1f0] sm:$0xf]  ;;  %s11582_s29 = sshll.u32 %s11683_s28, 4  ;;  %s11583_s29 = int_to_ptr.vmem [resolvable:$false] %s11582_s29 }
 0x407   : > { %v10618_v9 = vunpack.c.l.b16 %v11332_v41  ;;  %v9182_v32 = vrot.slane %v9181_v8, 4  ;;  %v9189_v28 = vrot.slane %v9188_v52, 4  ;;  %v9195_v15 = vsel %vm9145_vm2, %v8506_v17, -inf  ;;  %v6021_v7 = vpop.permute.xlu1 %6020  ;;  %s11584_s5 = scalar_lea.vmem %s11583_s29, 2048  ;;  %p11585_p7 = scmp.lt.s32.totalorder %s16602_s20, %s11583_s29 }
 0x408   : > { %v10619_v38 = vunpack.c.l.b16 %v11333_v20  ;;  %v10620_v37 = vunpack.c.l.b16 %v11334_v25  ;;  %v9176_v46 = vmax.f32 %v9174_v44, %v9175_v60  ;;  %v9196_v47 = vrot.slane %v9195_v15, 4  ;;  %6158 = vst.msk [vmem:[#allocation3 + $0x1b8] sm:$0xf] %vm6102_vm14, %v6021_v7  ;;  %v8183_v11 = vpop.f32.mrf.mxu1 }
 0x409   : > { %v15743_v59 = vunpack.c.l.b16 %v11335_v57  ;;  %v9183_v14 = vmax.f32 %v9181_v8, %v9182_v32  ;;  %v9190_v58 = vmax.f32 %v9188_v52, %v9189_v28  ;;  %v8397_v63 = vsel %vm7895_vm1, %v8318_v51, -inf  ;;  %6357 = vrot.lane.b32.xlu1 %v6198_v42, %s11681_s11  ;;  %v6404_v21 = vpop.permute.xlu0 %6403 }
 0x40a   : > { %v10745_v30 = vsel %vm10682_vm3, %v10619_v38, %v10618_v9  ;;  %v9177_v13 = vrot.slane %v9176_v46, 2  ;;  %v9197_v31 = vmax.f32 %v9195_v15, %v9196_v47  ;;  %v8398_v48 = vmax.f32 %v15622_v24, %v8397_v63  ;;  %6542 = vst.msk [vmem:[#allocation3 + $0x1b0] sm:$0xf] %vm6487_vm15, %v6404_v21 }
 0x40b   : > { %v9184_v35 = vrot.slane %v9183_v14, 2  ;;  %v9191_v10 = vrot.slane %v9190_v58, 2  ;;  %v15751_v17 = vsel %vm10686_vm5, %v10557_v49, %v10685_v39  ;;  %v11043_v51 = vcombine.low %v7484_v2, %v7485_v40  ;;  %v6342_v53 = vpop.permute.xlu1 %6341 }
 0x40c   : > { %v9178_v54 = vmax.f32 %v9176_v46, %v9177_v13  ;;  %v9198_v12 = vrot.slane %v9197_v31, 2  ;;  %v8762_v41 = vcombine.high %v8398_v48, %v8398_v48  ;;  %v8769_v43 = vrot.slane %v8398_v48, %v15524_v16  ;;  %6511 = vst.msk [vmem:[#allocation3 + $0xb8] sm:$0xf] %vm6487_vm15, %v6342_v53 }
 0x40d   : > { %v15756_v24 = vsel %vm10684_vm4, %v10620_v37, %v10745_v30  ;;  %v9185_v55 = vmax.f32 %v9183_v14, %v9184_v35  ;;  %v9192_v25 = vmax.f32 %v9190_v58, %v9191_v10  ;;  %8105 = vmatmul.mubr.bf16.gmra.mxu0 %v11043_v51  ;;  %v11075_v49 = vcombine.low %v7516_v56, %v7517_v34  ;;  %v4004_v44 = vpop.permute.xlu0 %4003 }
 0x40e   : > { %v9179_v8 = vrot.slane %v9178_v54, 1  ;;  %v9199_v52 = vmax.f32 %v9197_v31, %v9198_v12  ;;  %v8776_v50 = vrot.slane %v8762_v41, %v15524_v16  ;;  %v8777_v39 = vcombine.high %v8769_v43, %v8769_v43  ;;  %6421 = vrot.lane.b32.xlu1 %v6230_v61, %s11681_s11  ;;  %4140 = vst.msk [vmem:[#allocation3 + $0x1c0] sm:$0xf] %vm4083_vm12, %v4004_v44  ;;  %v11553_v31 = vld [vmem:[#allocation3 + $0xb4] ss:$8 sps:$4 sm:$0xff]   ;;  %s10863_s11 = sadd.s32 %s11259_s8, %s10958_s6  ;;  %s11578_s6 = scalar_lea.vmem %s16602_s20, 1024 }
 0x40f   : > { %v9186_v20 = vrot.slane %v9185_v55, 1  ;;  %v9193_v57 = vrot.slane %v9192_v25, 1  ;;  %v9622_v60 = vsel %vm9145_vm2, %v8769_v43, -inf  ;;  %8233 = vmatmul.mubr.bf16.gmra.mxu1 %v11075_v49  ;;  %v8051_v42 = vadd.f32 %v15509_v22, %v15708_v0  ;;  %v6406_v9 = vpop.permute.xlu1 %6405  ;;  %11107 = vmatprep.mubr.msk.bf16.mxu0 %vm7895_vm1, %v11553_v31  ;;  %s11260_s16 = sshll.u32 %s10863_s11, 6  ;;  %p11579_p4 = scmp.ne.s32.totalorder %s16602_s20, %s11578_s6 }
 0x410   : > { %v9180_v32 = vmax.f32 %v9178_v54, %v9179_v8  ;;  %v9200_v28 = vrot.slane %v9199_v52, 1  ;;  %v8778_v15 = vcombine.high %v8776_v50, %v8776_v50  ;;  %v9623_v7 = vrot.slane %v9622_v60, 4  ;;  %6543 = vst.msk [vmem:[#allocation3 + $0x1b8] sm:$0xf] %vm6487_vm15, %v6406_v9  ;;  %s16600_s27 = scalar_lea.hbm %s16664_s3, %s11260_s16  ;;  %p11586_p9 = scmp.lt.s32.totalorder %s11584_s5, %s11578_s6 }
 0x411   : > { %v9187_v38 = vmax.f32 %v9185_v55, %v9186_v20  ;;  %v9194_v37 = vmax.f32 %v9192_v25, %v9193_v57  ;;  %v9629_v46 = vsel %vm9145_vm2, %v8777_v39, -inf  ;;  %v9636_v47 = vsel %vm9145_vm2, %v8776_v50, -inf  ;;  %v4981_v2 = vpop.permute.xlu0 %4980  ;;  %v11555_v39 = vld [vmem:[#allocation3 + $0x1b4] ss:$8 sps:$4 sm:$0xff]   ;;  %p11580_p5 = pnand %p11579_p4, %p11756_p3 }
 0x412   : > { %v9201_v40 = vmax.f32 %v9199_v52, %v9200_v28  ;;  %v11272_v11 = vpack.c.bf16 %v9180_v32, %v9180_v32  ;;  %v9624_v14 = vmax.f32 %v9622_v60, %v9623_v7  ;;  %v9630_v58 = vrot.slane %v9629_v46, 4  ;;  %5149 = vst.msk [vmem:[#allocation3 + $0xc0] sm:$0xf] %vm5124_vm13, %v4981_v2  ;;  %11123 = vmatprep.mubr.msk.bf16.mxu1 %vm7895_vm1, %v11555_v39  ;;  %p11587_p10 = por %p11586_p9, %p11585_p7 }
 0x413   : > { %v11273_v0 = vpack.c.bf16 %v9187_v38, %v9187_v38  ;;  %v11274_v63 = vpack.c.bf16 %v9194_v37, %v9194_v37  ;;  %v9637_v21 = vrot.slane %v9636_v47, 4  ;;  %v9643_v30 = vsel %vm9145_vm2, %v8778_v15, -inf  ;;  %v4006_v13 = vpop.permute.xlu1 %4005  ;;  %p11581_p6 = pneg %p11580_p5 }
 0x414   : > { %v11275_v48 = vpack.c.bf16 %v9201_v40, %v9201_v40  ;;  %v10558_v56 = vunpack.c.l.b16 %v11272_v11  ;;  %v9625_v34 = vrot.slane %v9624_v14, 2  ;;  %v9631_v35 = vmax.f32 %v9629_v46, %v9630_v58  ;;  %4141 = vst.msk [vmem:[#allocation3 + $0x1c8] sm:$0xf] %vm4083_vm12, %v4006_v13 }
 0x415   : > { %v10559_v10 = vunpack.c.l.b16 %v11273_v0  ;;  %v10560_v51 = vunpack.c.l.b16 %v11274_v63  ;;  %v9638_v53 = vmax.f32 %v9636_v47, %v9637_v21  ;;  %v9644_v61 = vrot.slane %v9643_v30, 4  ;;  %v5045_v54 = vpop.permute.xlu0 %5044  ;;  %p11588_p11 = pnand %p11587_p10, %p11581_p6 }
 0x416   : > { %v10561_v12 = vunpack.c.l.b16 %v11275_v48  ;;  %v10689_v41 = vsel %vm10688_vm7, %v10558_v56, %v15751_v17  ;;  %v9626_v43 = vmax.f32 %v9624_v14, %v9625_v34  ;;  %v9632_v55 = vrot.slane %v9631_v35, 2  ;;  %5181 = vst.msk [vmem:[#allocation3 + $0x1c0] sm:$0xf] %vm5124_vm13, %v5045_v54  ;;  %v15774_v25 = vpop.f32.mrf.mxu0 }
 0x417   : > { %v10691_v49 = vsel %vm10690_vm9, %v10559_v10, %v10689_v41  ;;  %v9639_v44 = vrot.slane %v9638_v53, 2  ;;  %v9645_v8 = vmax.f32 %v9643_v30, %v9644_v61  ;;  %v8287_v52 = vmax.f32 %v8051_v42, 0.0  ;;  %v4983_v50 = vpop.permute.xlu1 %4982 }
 0x418   : > { %v10693_v20 = vsel %vm10692_vm10, %v10560_v51, %v10691_v49  ;;  %v9627_v57 = vrot.slane %v9626_v43, 1  ;;  %v9633_v60 = vmax.f32 %v9631_v35, %v9632_v55  ;;  %v8179_v17 = vadd.f32 %v15509_v22, %v15719_v23  ;;  %5150 = vst.msk [vmem:[#allocation3 + $0xc8] sm:$0xf] %vm5124_vm13, %v4983_v50  ;;  %v8060_v9 = vpop.f32.mrf.mxu0 }
 0x419   : > { %v10695_v32 = vsel %vm10694_vm11, %v10561_v12, %v10693_v20  ;;  %v9640_v28 = vmax.f32 %v9638_v53, %v9639_v44  ;;  %v9646_v15 = vrot.slane %v9645_v8, 2  ;;  %v8352_v7 = vsel %vm7895_vm1, %v8287_v52, -inf  ;;  %v5959_v42 = vpop.permute.xlu0 %5958 }
 0x41a   : > { %v10801_v38 = vpack.c.b16 %v10695_v32, %v10695_v32  ;;  %v9628_v37 = vmax.f32 %v9626_v43, %v9627_v57  ;;  %v9634_v46 = vrot.slane %v9633_v60, 1  ;;  %v8353_v47 = vmax.f32 %v15626_v45, %v8352_v7  ;;  %v15785_v2 = vpop.f32.mrf.mxu1  ;;  %6127 = vst.msk [vmem:[#allocation3 + $0xc0] sm:$0xf] %vm6102_vm14, %v5959_v42  ;;  %v15788_v23 = vpop.f32.mrf.mxu0 }
 0x41b   : > { %v9641_v40 = vrot.slane %v9640_v28, 1  ;;  %v9647_v11 = vmax.f32 %v9645_v8, %v9646_v15  ;;  %v10747_v14 = vsel %vm10686_vm5, %v15743_v59, %v15756_v24  ;;  %v8319_v58 = vmax.f32 %v8179_v17, 0.0  ;;  %v5047_v0 = vpop.permute.xlu1 %5046 }
 0x41c   : > { %10833 = vst.msk [vmem:[%s11922_s24] sm:$0xf] %vm254_vm0, %v10801_v38  ;;  %v9635_v63 = vmax.f32 %v9633_v60, %v9634_v46  ;;  %v11336_v21 = vpack.c.bf16 %v9628_v37, %v9628_v37  ;;  %v8507_v30 = vcombine.high %v8353_v47, %v8353_v47  ;;  %v8514_v45 = vrot.slane %v8353_v47, %v15524_v16  ;;  %v8063_v13 = vpop.f32.mrf.mxu0  ;;  %v8188_v31 = vpop.f32.mrf.mxu1 }
 0x41d   : > { %5182 = vst.msk [vmem:[#allocation3 + $0x1c8] sm:$0xf] %vm5124_vm13, %v5047_v0  ;;  %v9642_v48 = vmax.f32 %v9640_v28, %v9641_v40  ;;  %v9648_v56 = vrot.slane %v9647_v11, 1  ;;  %v8400_v34 = vsel %vm7895_vm1, %v8319_v58, -inf  ;;  %v15800_v59 = vadd.f32 %v15509_v22, %v15722_v4  ;;  %v6023_v24 = vpop.permute.xlu0 %6022 }
 0x41e   : > { %v11337_v35 = vpack.c.bf16 %v9635_v63, %v9635_v63  ;;  %v10622_v10 = vunpack.c.l.b16 %v11336_v21  ;;  %v8521_v51 = vrot.slane %v8507_v30, %v15524_v16  ;;  %v8522_v53 = vcombine.high %v8514_v45, %v8514_v45  ;;  %v15803_v61 = vpop.f32.mrf.mxu1  ;;  %6159 = vst.msk [vmem:[#allocation3 + $0x1c0] sm:$0xf] %vm6102_vm14, %v6023_v24 }
 0x41f   : > { %v9649_v54 = vmax.f32 %v9647_v11, %v9648_v56  ;;  %v11338_v12 = vpack.c.bf16 %v9642_v48, %v9642_v48  ;;  %v9202_v41 = vsel %vm9145_vm2, %v8514_v45, -inf  ;;  %v8401_v43 = vmax.f32 %v15632_v18, %v8400_v34  ;;  %v5961_v55 = vpop.permute.xlu1 %5960 }
 0x420   : > { %v10623_v49 = vunpack.c.l.b16 %v11337_v35  ;;  %v10748_v22 = vsel %vm10688_vm7, %v10622_v10, %v10747_v14  ;;  %v8523_v4 = vcombine.high %v8521_v51, %v8521_v51  ;;  %v9203_v44 = vrot.slane %v9202_v41, 4  ;;  %6128 = vst.msk [vmem:[#allocation3 + $0xc8] sm:$0xf] %vm6102_vm14, %v5961_v55  ;;  %v8191_v8 = vpop.f32.mrf.mxu1 }
 0x421   : > { %v11339_v52 = vpack.c.bf16 %v9649_v54, %v9649_v54  ;;  %v10624_v50 = vunpack.c.l.b16 %v11338_v12  ;;  %v9209_v39 = vsel %vm9145_vm2, %v8522_v53, -inf  ;;  %v9216_v20 = vsel %vm9145_vm2, %v8521_v51, -inf  ;;  %v6344_v57 = vpop.permute.xlu0 %6343 }
 0x422   : > { %v10749_v60 = vsel %vm10690_vm9, %v10623_v49, %v10748_v22  ;;  %v9204_v17 = vmax.f32 %v9202_v41, %v9203_v44  ;;  %v9210_v18 = vrot.slane %v9209_v39, 4  ;;  %v9217_v9 = vrot.slane %v9216_v20, 4  ;;  %6512 = vst.msk [vmem:[#allocation3 + $0xc0] sm:$0xf] %vm6487_vm15, %v6344_v57 }
 0x423   : > { %v10625_v32 = vunpack.c.l.b16 %v11339_v52  ;;  %v10750_v28 = vsel %vm10692_vm10, %v10624_v50, %v10749_v60  ;;  %v9223_v15 = vsel %vm9145_vm2, %v8523_v4, -inf  ;;  %v8779_v7 = vcombine.high %v8401_v43, %v8401_v43  ;;  %v6025_v42 = vpop.permute.xlu1 %6024 }
 0x424   : > { %v9205_v38 = vrot.slane %v9204_v17, 2  ;;  %v9211_v37 = vmax.f32 %v9209_v39, %v9210_v18  ;;  %v9218_v46 = vmax.f32 %v9216_v20, %v9217_v9  ;;  %v9224_v47 = vrot.slane %v9223_v15, 4  ;;  %6160 = vst.msk [vmem:[#allocation3 + $0x1c8] sm:$0xf] %vm6102_vm14, %v6025_v42  ;;  %v15830_v39 = vld [vmem:[#allocation2 + $0xf4] sm:$0xf] }
 0x425   : > { %v10751_v40 = vsel %vm10694_vm11, %v10625_v32, %v10750_v28  ;;  %v8786_v11 = vrot.slane %v8401_v43, %v15524_v16  ;;  %v8793_v14 = vrot.slane %v8779_v7, %v15524_v16  ;;  %v8288_v58 = vmax.f32 %v15800_v59, 0.0  ;;  %v6408_v0 = vpop.permute.xlu0 %6407 }
 0x426   : > { %v10809_v63 = vpack.c.b16 %v10751_v40, %v10751_v40  ;;  %v9206_v21 = vmax.f32 %v9204_v17, %v9205_v38  ;;  %v9212_v30 = vrot.slane %v9211_v37, 2  ;;  %v9219_v45 = vrot.slane %v9218_v46, 2  ;;  %6544 = vst.msk [vmem:[#allocation3 + $0x1c0] sm:$0xf] %vm6487_vm15, %v6408_v0 }
 0x427   : > { %v9225_v13 = vmax.f32 %v9223_v15, %v9224_v47  ;;  %v8794_v31 = vcombine.high %v8786_v11, %v8786_v11  ;;  %v8795_v48 = vcombine.high %v8793_v14, %v8793_v14  ;;  %v9650_v56 = vsel %vm9145_vm2, %v8786_v11, -inf  ;;  %v6346_v34 = vpop.permute.xlu1 %6345 }
 0x428   : > { %10841 = vst.msk [vmem:[%s11922_s24 + $0x20] sm:$0xf] %vm254_vm0, %v10809_v63  ;;  %v9207_v24 = vrot.slane %v9206_v21, 1  ;;  %v9213_v35 = vmax.f32 %v9211_v37, %v9212_v30  ;;  %v9220_v10 = vmax.f32 %v9218_v46, %v9219_v45  ;;  %v9651_v51 = vrot.slane %v9650_v56, 4 }
 0x429   : > { %6513 = vst.msk [vmem:[#allocation3 + $0xc8] sm:$0xf] %vm6487_vm15, %v6346_v34  ;;  %v9226_v59 = vrot.slane %v9225_v13, 2  ;;  %v9657_v53 = vsel %vm9145_vm2, %v8794_v31, -inf  ;;  %v9664_v54 = vsel %vm9145_vm2, %v8793_v14, -inf  ;;  %v9671_v12 = vsel %vm9145_vm2, %v8795_v48, -inf  ;;  %v4008_v41 = vpop.permute.xlu0 %4007 }
 0x42a   : > { %v9208_v43 = vmax.f32 %v9206_v21, %v9207_v24  ;;  %v9214_v55 = vrot.slane %v9213_v35, 1  ;;  %v9221_v49 = vrot.slane %v9220_v10, 1  ;;  %v9652_v22 = vmax.f32 %v9650_v56, %v9651_v51  ;;  %4142 = vst.msk [vmem:[#allocation3 + $0x1d0] sm:$0xf] %vm4083_vm12, %v4008_v41 }
 0x42b   : > { %v9227_v4 = vmax.f32 %v9225_v13, %v9226_v59  ;;  %v9658_v44 = vrot.slane %v9657_v53, 4  ;;  %v9665_v8 = vrot.slane %v9664_v54, 4  ;;  %v9672_v52 = vrot.slane %v9671_v12, 4  ;;  %v6410_v50 = vpop.permute.xlu1 %6409 }
 0x42c   : > { %v9215_v20 = vmax.f32 %v9213_v35, %v9214_v55  ;;  %v9222_v57 = vmax.f32 %v9220_v10, %v9221_v49  ;;  %v9653_v60 = vrot.slane %v9652_v22, 2  ;;  %v8355_v17 = vsel %vm7895_vm1, %v8288_v58, -inf  ;;  %6545 = vst.msk [vmem:[#allocation3 + $0x1c8] sm:$0xf] %vm6487_vm15, %v6410_v50 }
 0x42d   : > { %v9228_v18 = vrot.slane %v9227_v4, 1  ;;  %v9659_v9 = vmax.f32 %v9657_v53, %v9658_v44  ;;  %v9666_v32 = vmax.f32 %v9664_v54, %v9665_v8  ;;  %v9673_v28 = vmax.f32 %v9671_v12, %v9672_v52  ;;  %v4985_v15 = vpop.permute.xlu0 %4984 }
 0x42e   : > { %v11276_v7 = vpack.c.bf16 %v9208_v43, %v9208_v43  ;;  %v11277_v42 = vpack.c.bf16 %v9215_v20, %v9215_v20  ;;  %v9654_v38 = vmax.f32 %v9652_v22, %v9653_v60  ;;  %5151 = vst.msk [vmem:[#allocation3 + $0xd0] sm:$0xf] %vm5124_vm13, %v4985_v15  ;;  %v15835_v37 = vpop.f32.mrf.mxu0  ;;  %v6926_v46 = vshll.u32 %v15830_v39, 16 }
 0x42f   : > { %v9229_v47 = vmax.f32 %v9227_v4, %v9228_v18  ;;  %v9660_v40 = vrot.slane %v9659_v9, 2  ;;  %v9667_v11 = vrot.slane %v9666_v32, 2  ;;  %v9674_v14 = vrot.slane %v9673_v28, 2  ;;  %v4010_v58 = vpop.permute.xlu1 %4009 }
 0x430   : > { %v11278_v0 = vpack.c.bf16 %v9222_v57, %v9222_v57  ;;  %v9655_v63 = vrot.slane %v9654_v38, 1  ;;  %v8356_v21 = vmax.f32 %v15635_v36, %v8355_v17  ;;  %4143 = vst.msk [vmem:[#allocation3 + $0x1d8] sm:$0xf] %vm4083_vm12, %v4010_v58  ;;  %v8068_v30 = vpop.f32.mrf.mxu0  ;;  %v6930_v45 = vshrl.u32 %v15830_v39, 16  ;;  %v7486_v58 = vld [vmem:[#allocation3 + $0xb0] sm:$0xff] }
 0x431   : > { %v10563_v13 = vunpack.c.l.b16 %v11277_v42  ;;  %v9661_v31 = vmax.f32 %v9659_v9, %v9660_v40  ;;  %v9668_v48 = vmax.f32 %v9666_v32, %v9667_v11  ;;  %v9675_v56 = vmax.f32 %v9673_v28, %v9674_v14  ;;  %v5049_v34 = vpop.permute.xlu0 %5048 }
 0x432   : > { %v11279_v24 = vpack.c.bf16 %v9229_v47, %v9229_v47  ;;  %v9656_v35 = vmax.f32 %v9654_v38, %v9655_v63  ;;  %v8524_v10 = vcombine.high %v8356_v21, %v8356_v21  ;;  %v8531_v51 = vrot.slane %v8356_v21, %v15524_v16  ;;  %v15842_v59 = vpop.f32.mrf.mxu1  ;;  %5183 = vst.msk [vmem:[#allocation3 + $0x1d0] sm:$0xf] %vm5124_vm13, %v5049_v34  ;;  %v15845_v36 = vpop.f32.mrf.mxu0 }
 0x433   : > { %v10562_v53 = vunpack.c.l.b16 %v11276_v7  ;;  %v9662_v54 = vrot.slane %v9661_v31, 1  ;;  %v9669_v12 = vrot.slane %v9668_v48, 1  ;;  %v4987_v41 = vpop.permute.xlu1 %4986  ;;  %v15847_v43 = vrot.slane %v6926_v46, 5 }
 0x434   : > { %v10564_v55 = vunpack.c.l.b16 %v11278_v0  ;;  %v9676_v49 = vrot.slane %v9675_v56, 1  ;;  %v8538_v22 = vrot.slane %v8524_v10, %v15524_v16  ;;  %v8539_v4 = vcombine.high %v8531_v51, %v8531_v51  ;;  %5152 = vst.msk [vmem:[#allocation3 + $0xd8] sm:$0xf] %vm5124_vm13, %v4987_v41  ;;  %v8071_v44 = vpop.f32.mrf.mxu0  ;;  %v8196_v8 = vpop.f32.mrf.mxu1  ;;  %v7487_v0 = vld [vmem:[#allocation3 + $0xb8] sm:$0xff] }
 0x435   : > { %v10696_v52 = vsel %vm10682_vm3, %v10563_v13, %v10562_v53  ;;  %v9663_v50 = vmax.f32 %v9661_v31, %v9662_v54  ;;  %v9670_v20 = vmax.f32 %v9668_v48, %v9669_v12  ;;  %v9230_v57 = vsel %vm9145_vm2, %v8531_v51, -inf  ;;  %v5963_v60 = vpop.permute.xlu0 %5962  ;;  %v15864_v31 = vld [vmem:[%s16663_s2] ss:$0 sm:$0xff]  ;;  %v7518_v51 = vld [vmem:[#allocation3 + $0x1b0] sm:$0xff]  ;;  %v7519_v53 = vld [vmem:[#allocation3 + $0x1b8] sm:$0xff] }
 0x436   : > { %v10565_v17 = vunpack.c.l.b16 %v11279_v24  ;;  %v11340_v18 = vpack.c.bf16 %v9656_v35, %v9656_v35  ;;  %v8540_v9 = vcombine.high %v8538_v22, %v8538_v22  ;;  %v9231_v32 = vrot.slane %v9230_v57, 4  ;;  %v15853_v28 = vpop.f32.mrf.mxu1  ;;  %6129 = vst.msk [vmem:[#allocation3 + $0xd0] sm:$0xf] %vm6102_vm14, %v5963_v60  ;;  %v11557_v54 = vld [vmem:[#allocation3 + $0xc4] ss:$8 sps:$4 sm:$0xff]  }
 0x437   : > { %v9677_v15 = vmax.f32 %v9675_v56, %v9676_v49  ;;  %v11341_v7 = vpack.c.bf16 %v9663_v50, %v9663_v50  ;;  %v9237_v42 = vsel %vm9145_vm2, %v8539_v4, -inf  ;;  %v9244_v38 = vsel %vm9145_vm2, %v8538_v22, -inf  ;;  %v5051_v46 = vpop.permute.xlu1 %5050 }
 0x438   : > { %v11342_v47 = vpack.c.bf16 %v9670_v20, %v9670_v20  ;;  %v9232_v40 = vmax.f32 %v9230_v57, %v9231_v32  ;;  %v9238_v11 = vrot.slane %v9237_v42, 4  ;;  %v9245_v14 = vrot.slane %v9244_v38, 4  ;;  %5184 = vst.msk [vmem:[#allocation3 + $0x1d8] sm:$0xf] %vm5124_vm13, %v5051_v46  ;;  %v8199_v63 = vpop.f32.mrf.mxu1 }
 0x439   : > { %v10697_v21 = vsel %vm10684_vm4, %v10564_v55, %v10696_v52  ;;  %v10627_v30 = vunpack.c.l.b16 %v11341_v7  ;;  %v9251_v13 = vsel %vm9145_vm2, %v8540_v9, -inf  ;;  %v8182_v48 = vadd.f32 %v15864_v31, %v15737_v6  ;;  %v6027_v56 = vpop.permute.xlu0 %6026  ;;  %v11559_v6 = vld [vmem:[#allocation3 + $0x1c4] ss:$8 sps:$4 sm:$0xff]  }
 0x43a   : > { %v10626_v34 = vunpack.c.l.b16 %v11340_v18  ;;  %v9233_v24 = vrot.slane %v9232_v40, 2  ;;  %v9239_v35 = vmax.f32 %v9237_v42, %v9238_v11  ;;  %v9246_v10 = vmax.f32 %v9244_v38, %v9245_v14  ;;  %6161 = vst.msk [vmem:[#allocation3 + $0x1d0] sm:$0xf] %vm6102_vm14, %v6027_v56 }
 0x43b   : > { %v11343_v12 = vpack.c.bf16 %v9677_v15, %v9677_v15  ;;  %v9252_v41 = vrot.slane %v9251_v13, 4  ;;  %v8320_v55 = vmax.f32 %v8182_v48, 0.0  ;;  %v11045_v49 = vcombine.low %v7486_v58, %v7487_v0  ;;  %v5965_v22 = vpop.permute.xlu1 %5964 }
 0x43c   : > { %v10628_v4 = vunpack.c.l.b16 %v11342_v47  ;;  %v9234_v44 = vmax.f32 %v9232_v40, %v9233_v24  ;;  %v9240_v8 = vrot.slane %v9239_v35, 2  ;;  %v9247_v52 = vrot.slane %v9246_v10, 2  ;;  %6130 = vst.msk [vmem:[#allocation3 + $0xd8] sm:$0xf] %vm6102_vm14, %v5965_v22 }
 0x43d   : > { %v10752_v50 = vsel %vm10682_vm3, %v10627_v30, %v10626_v34  ;;  %v9253_v20 = vmax.f32 %v9251_v13, %v9252_v41  ;;  %v8403_v57 = vsel %vm7895_vm1, %v8320_v55, -inf  ;;  %8113 = vmatmul.mubr.bf16.gmra.mxu0 %v11045_v49  ;;  %v11077_v60 = vcombine.low %v7518_v51, %v7519_v53  ;;  %v6348_v18 = vpop.permute.xlu0 %6347 }
 0x43e   : > { %v9235_v9 = vrot.slane %v9234_v44, 1  ;;  %v9241_v32 = vmax.f32 %v9239_v35, %v9240_v8  ;;  %v9248_v15 = vmax.f32 %v9246_v10, %v9247_v52  ;;  %v8404_v7 = vmax.f32 %v15641_v27, %v8403_v57  ;;  %11108 = vmatprep.mubr.msk.bf16.mxu0 %vm7895_vm1, %v11557_v54  ;;  %6514 = vst.msk [vmem:[#allocation3 + $0xd0] sm:$0xf] %vm6487_vm15, %v6348_v18 }
 0x43f   : > { %v9254_v42 = vrot.slane %v9253_v20, 2  ;;  %v10698_v38 = vsel %vm10686_vm5, %v10565_v17, %v10697_v21  ;;  %8241 = vmatmul.mubr.bf16.gmra.mxu1 %v11077_v60  ;;  %v6029_v46 = vpop.permute.xlu1 %6028  ;;  %v15879_v47 = vrot.slane %v6923_v33, 4  ;;  %v15883_v40 = vrot.slane %v6930_v45, 4 }
 0x440   : > { %v9236_v11 = vmax.f32 %v9234_v44, %v9235_v9  ;;  %v9242_v27 = vrot.slane %v9241_v32, 1  ;;  %v9249_v14 = vrot.slane %v9248_v15, 1  ;;  %v8796_v58 = vcombine.high %v8404_v7, %v8404_v7  ;;  %11124 = vmatprep.mubr.msk.bf16.mxu1 %vm7895_vm1, %v11559_v6  ;;  %6162 = vst.msk [vmem:[#allocation3 + $0x1d8] sm:$0xf] %vm6102_vm14, %v6029_v46 }
 0x441   : > { %v15887_v17 = vunpack.c.l.b16 %v11343_v12  ;;  %v15890_v0 = vsel %vm10684_vm4, %v10628_v4, %v10752_v50  ;;  %v9255_v26 = vmax.f32 %v9253_v20, %v9254_v42  ;;  %v8803_v3 = vrot.slane %v8404_v7, %v15524_v16  ;;  %v6412_v33 = vpop.permute.xlu0 %6411 }
 0x442   : > { %v9243_v39 = vmax.f32 %v9241_v32, %v9242_v27  ;;  %v9250_v45 = vmax.f32 %v9248_v15, %v9249_v14  ;;  %v11280_v63 = vpack.c.bf16 %v9236_v11, %v9236_v11  ;;  %v8810_v21 = vrot.slane %v8796_v58, %v15524_v16  ;;  %6546 = vst.msk [vmem:[#allocation3 + $0x1d0] sm:$0xf] %vm6487_vm15, %v6412_v33  ;;  %v7489_v33 = vld [vmem:[#allocation3 + $0xc8] sm:$0xff] }
 0x443   : > { %v9256_v30 = vrot.slane %v9255_v26, 1  ;;  %v8811_v13 = vcombine.high %v8803_v3, %v8803_v3  ;;  %v9678_v48 = vsel %vm9145_vm2, %v8803_v3, -inf  ;;  %v15898_v56 = vadd.f32 %v15864_v31, %v15774_v25  ;;  %v6350_v34 = vpop.permute.xlu1 %6349  ;;  %v7488_v3 = vld [vmem:[#allocation3 + $0xc0] sm:$0xff] }
 0x444   : > { %v11281_v24 = vpack.c.bf16 %v9243_v39, %v9243_v39  ;;  %v11282_v35 = vpack.c.bf16 %v9250_v45, %v9250_v45  ;;  %v10566_v10 = vunpack.c.l.b16 %v11280_v63  ;;  %v8812_v51 = vcombine.high %v8810_v21, %v8810_v21  ;;  %6515 = vst.msk [vmem:[#allocation3 + $0xd8] sm:$0xf] %vm6487_vm15, %v6350_v34 }
 0x445   : > { %v9257_v53 = vmax.f32 %v9255_v26, %v9256_v30  ;;  %v9679_v54 = vrot.slane %v9678_v48, 4  ;;  %v9685_v12 = vsel %vm9145_vm2, %v8811_v13, -inf  ;;  %v9692_v41 = vsel %vm9145_vm2, %v8810_v21, -inf  ;;  %v4012_v55 = vpop.permute.xlu0 %4011 }
 0x446   : > { %v10567_v49 = vunpack.c.l.b16 %v11281_v24  ;;  %v10568_v22 = vunpack.c.l.b16 %v11282_v35  ;;  %v10699_v4 = vsel %vm10688_vm7, %v10566_v10, %v10698_v38  ;;  %v9686_v25 = vrot.slane %v9685_v12, 4  ;;  %4144 = vst.msk [vmem:[#allocation3 + $0x1e0] sm:$0xf] %vm4083_vm12, %v4012_v55  ;;  %v7520_v35 = vld [vmem:[#allocation3 + $0x1c0] sm:$0xff]  ;;  %v7521_v10 = vld [vmem:[#allocation3 + $0x1c8] sm:$0xff] }
 0x447   : > { %v11283_v44 = vpack.c.bf16 %v9257_v53, %v9257_v53  ;;  %v9680_v8 = vmax.f32 %v9678_v48, %v9679_v54  ;;  %v9693_v52 = vrot.slane %v9692_v41, 4  ;;  %v9699_v6 = vsel %vm9145_vm2, %v8812_v51, -inf  ;;  %v6414_v50 = vpop.permute.xlu1 %6413 }
 0x448   : > { %v10700_v20 = vsel %vm10690_vm9, %v10567_v49, %v10699_v4  ;;  %v9687_v57 = vmax.f32 %v9685_v12, %v9686_v25  ;;  %v9700_v60 = vrot.slane %v9699_v6, 4  ;;  %v8187_v18 = vadd.f32 %v15864_v31, %v15785_v2  ;;  %6547 = vst.msk [vmem:[#allocation3 + $0x1d8] sm:$0xf] %vm6487_vm15, %v6414_v50 }
 0x449   : > { %v10569_v9 = vunpack.c.l.b16 %v11283_v44  ;;  %v10701_v32 = vsel %vm10692_vm10, %v10568_v22, %v10700_v20  ;;  %v9681_v15 = vrot.slane %v9680_v8, 2  ;;  %v9694_v7 = vmax.f32 %v9692_v41, %v9693_v52  ;;  %v4989_v42 = vpop.permute.xlu0 %4988 }
 0x44a   : > { %v9688_v38 = vrot.slane %v9687_v57, 2  ;;  %v9701_v46 = vmax.f32 %v9699_v6, %v9700_v60  ;;  %v8062_v11 = vadd.f32 %v15864_v31, %v15788_v23  ;;  %v8190_v27 = vadd.f32 %v15864_v31, %v15803_v61  ;;  %v8074_v14 = vpop.f32.mrf.mxu0  ;;  %5153 = vst.msk [vmem:[#allocation3 + $0xe0] sm:$0xf] %vm5124_vm13, %v4989_v42 }
 0x44b   : > { %v10702_v2 = vsel %vm10694_vm11, %v10569_v9, %v10701_v32  ;;  %v9682_v58 = vmax.f32 %v9680_v8, %v9681_v15  ;;  %v9695_v26 = vrot.slane %v9694_v7, 2  ;;  %v8067_v39 = vadd.f32 %v15864_v31, %v15835_v37  ;;  %v4014_v45 = vpop.permute.xlu1 %4013 }
 0x44c   : > { %v10802_v63 = vpack.c.b16 %v10702_v2, %v10702_v2  ;;  %v9689_v21 = vmax.f32 %v9687_v57, %v9688_v38  ;;  %v9702_v23 = vrot.slane %v9701_v46, 2  ;;  %v8289_v30 = vmax.f32 %v15898_v56, 0.0  ;;  %4145 = vst.msk [vmem:[#allocation3 + $0x1e8] sm:$0xf] %vm4083_vm12, %v4014_v45  ;;  %v8076_v61 = vpop.f32.mrf.mxu0 }
 0x44d   : > { %v9683_v13 = vrot.slane %v9682_v58, 1  ;;  %v9696_v48 = vmax.f32 %v9694_v7, %v9695_v26  ;;  %v10754_v34 = vsel %vm10686_vm5, %v15887_v17, %v15890_v0  ;;  %v8321_v24 = vmax.f32 %v8187_v18, 0.0  ;;  %v5053_v51 = vpop.permute.xlu0 %5052 }
 0x44e   : > { %10834 = vst.msk [vmem:[%s11922_s24 + $0x4] sm:$0xf] %vm254_vm0, %v10802_v63  ;;  %v9690_v37 = vrot.slane %v9689_v21, 1  ;;  %v9703_v53 = vmax.f32 %v9701_v46, %v9702_v23  ;;  %v8290_v54 = vmax.f32 %v8062_v11, 0.0  ;;  %v11047_v12 = vcombine.low %v7488_v3, %v7489_v33  ;;  %v8202_v56 = vpop.f32.mrf.mxu1  ;;  %v8077_v41 = vpop.f32.mrf.mxu0  ;;  %v6586_v3 = vld [vmem:[#allocation2 + $0xf8] sm:$0x1] }
 0x44f   : > { %5185 = vst.msk [vmem:[#allocation3 + $0x1e0] sm:$0xf] %vm5124_vm13, %v5053_v51  ;;  %v9684_v55 = vmax.f32 %v9682_v58, %v9683_v13  ;;  %v9697_v49 = vrot.slane %v9696_v48, 1  ;;  %v8322_v22 = vmax.f32 %v8190_v27, 0.0  ;;  %v8291_v4 = vmax.f32 %v8067_v39, 0.0  ;;  %v4991_v25 = vpop.permute.xlu1 %4990 }
 0x450   : > { %v9691_v17 = vmax.f32 %v9689_v21, %v9690_v37  ;;  %v9704_v0 = vrot.slane %v9703_v53, 1  ;;  %v8357_v44 = vsel %vm7895_vm1, %v8289_v30, -inf  ;;  %8121 = vmatmul.mubr.bf16.gmra.mxu0 %v11047_v12  ;;  %v11079_v8 = vcombine.low %v7520_v35, %v7521_v10  ;;  %5154 = vst.msk [vmem:[#allocation3 + $0xe8] sm:$0xf] %vm5124_vm13, %v4991_v25  ;;  %v8079_v52 = vpop.f32.mrf.mxu0  ;;  %v8204_v6 = vpop.f32.mrf.mxu1  ;;  %v15968_v35 = vld [vmem:[#allocation2 + $0x1d4] sm:$0xf] }
 0x451   : > { %v9698_v50 = vmax.f32 %v9696_v48, %v9697_v49  ;;  %v11344_v20 = vpack.c.bf16 %v9684_v55, %v9684_v55  ;;  %v15930_v57 = vsel %vm7895_vm1, %v8321_v24, -inf  ;;  %v15934_v60 = vadd.f32 %v15864_v31, %v15842_v59  ;;  %v5967_v18 = vpop.permute.xlu0 %5966 }
 0x452   : > { %v9705_v9 = vmax.f32 %v9703_v53, %v9704_v0  ;;  %v11345_v32 = vpack.c.bf16 %v9691_v17, %v9691_v17  ;;  %v15937_v15 = vsel %vm7895_vm1, %v8290_v54, -inf  ;;  %8249 = vmatmul.mubr.bf16.gmra.mxu1 %v11079_v8  ;;  %v8075_v7 = vadd.f32 %v15864_v31, %v8074_v14  ;;  %v15940_v42 = vpop.f32.mrf.mxu1  ;;  %6131 = vst.msk [vmem:[#allocation3 + $0xe0] sm:$0xf] %vm6102_vm14, %v5967_v18 }
 0x453   : > { %v11346_v38 = vpack.c.bf16 %v9698_v50, %v9698_v50  ;;  %v10630_v46 = vunpack.c.l.b16 %v11344_v20  ;;  %v15944_v11 = vsel %vm7895_vm1, %v8322_v22, -inf  ;;  %v15947_v59 = vsel %vm7895_vm1, %v8291_v4, -inf  ;;  %v5055_v27 = vpop.permute.xlu1 %5054 }
 0x454   : > { %v11347_v2 = vpack.c.bf16 %v9705_v9, %v9705_v9  ;;  %v10631_v58 = vunpack.c.l.b16 %v11345_v32  ;;  %v8293_v26 = vmax.f32 %v8075_v7, 0.0  ;;  %v6929_v14 = vsel %vm12019_vm6, %v15879_v47, %v15847_v43  ;;  %5186 = vst.msk [vmem:[#allocation3 + $0x1e8] sm:$0xf] %vm5124_vm13, %v5055_v27  ;;  %v8207_v33 = vpop.f32.mrf.mxu1 }
 0x455   : > { %v10632_v39 = vunpack.c.l.b16 %v11346_v38  ;;  %v10755_v45 = vsel %vm10688_vm7, %v10630_v46, %v10754_v34  ;;  %v8323_v63 = vmax.f32 %v15934_v60, 0.0  ;;  %v15958_v21 = vadd.f32 %v15864_v31, %v15845_v36  ;;  %7426 = vst.msk [vmem:[#allocation3 + $0xd4] sm:$0xf] %vm254_vm0, %v6929_v14  ;;  %v6031_v23 = vpop.permute.xlu0 %6030 }
 0x456   : > { %v10633_v30 = vunpack.c.l.b16 %v11347_v2  ;;  %v10756_v61 = vsel %vm10690_vm9, %v10631_v58, %v10755_v45  ;;  %v8358_v47 = vsel %vm7895_vm1, %v8293_v26, -inf  ;;  %v6933_v13 = vor.u32 %v15883_v40, %v15847_v43  ;;  %6163 = vst.msk [vmem:[#allocation3 + $0x1e0] sm:$0xf] %vm6102_vm14, %v6031_v23 }
 0x457   : > { %v10757_v48 = vsel %vm10692_vm10, %v10632_v39, %v10756_v61  ;;  %v8359_v34 = vmax.f32 %v8357_v44, %v8358_v47  ;;  %v6936_v24 = vshll.u32 %v6586_v3, 16  ;;  %v8203_v36 = vadd.f32 %v15864_v31, %v8202_v56  ;;  %v5969_v10 = vpop.permute.xlu1 %5968 }
 0x458   : > { %v10758_v51 = vsel %vm10694_vm11, %v10633_v30, %v10757_v48  ;;  %v6934_v37 = vrot.slane %v6933_v13, 4  ;;  %v8078_v53 = vadd.f32 %v15864_v31, %v8077_v41  ;;  %v7274_v43 = vrot.slane %v7272_v62, 4  ;;  %6132 = vst.msk [vmem:[#allocation3 + $0xe8] sm:$0xf] %vm6102_vm14, %v5969_v10 }
 0x459   : > { %v10810_v40 = vpack.c.b16 %v10758_v51, %v10758_v51  ;;  %v8541_v54 = vcombine.high %v8359_v34, %v8359_v34  ;;  %v8548_v12 = vrot.slane %v8359_v34, %v15524_v16  ;;  %v6938_v55 = vrot.slane %v6936_v24, 5  ;;  %v6352_v56 = vpop.permute.xlu0 %6351 }
 0x45a   : > { %v8325_v49 = vmax.f32 %v8203_v36, 0.0  ;;  %v8294_v22 = vmax.f32 %v8078_v53, 0.0  ;;  %v7275_v4 = vor.u32 %v7274_v43, %v15490_v19  ;;  %v7278_v25 = vshll.u32 %v15968_v35, 16  ;;  %6516 = vst.msk [vmem:[#allocation3 + $0xe0] sm:$0xf] %vm6487_vm15, %v6352_v56 }
 0x45b   : > { %10842 = vst.msk [vmem:[%s11922_s24 + $0x24] sm:$0xf] %vm254_vm0, %v10810_v40  ;;  %v8555_v5 = vrot.slane %v8541_v54, %v15524_v16  ;;  %v8556_v62 = vcombine.high %v8548_v12, %v8548_v12  ;;  %v9258_v41 = vsel %vm9145_vm2, %v8548_v12, -inf  ;;  %v6939_v17 = vsel %vm12019_vm6, %v6934_v37, %v6938_v55  ;;  %v6033_v0 = vpop.permute.xlu1 %6032 }
 0x45c   : > { %v9259_v44 = vrot.slane %v9258_v41, 4  ;;  %7427 = vst.msk [vmem:[#allocation3 + $0xdc] sm:$0xf] %vm254_vm0, %v6939_v17  ;;  %v8406_v19 = vsel %vm7895_vm1, %v8325_v49, -inf  ;;  %v8361_v8 = vsel %vm7895_vm1, %v8294_v22, -inf  ;;  %v15988_v52 = vrot.slane %v7275_v4, 4 }
 0x45d   : > { %6164 = vst.msk [vmem:[#allocation3 + $0x1e8] sm:$0xf] %vm6102_vm14, %v6033_v0  ;;  %v8557_v6 = vcombine.high %v8555_v5, %v8555_v5  ;;  %v9265_v50 = vsel %vm9145_vm2, %v8556_v62, -inf  ;;  %v9272_v20 = vsel %vm9145_vm2, %v8555_v5, -inf  ;;  %v8407_v18 = vmax.f32 %v15930_v57, %v8406_v19  ;;  %v6416_v9 = vpop.permute.xlu0 %6415 }
 0x45e   : > { %v9260_v32 = vmax.f32 %v9258_v41, %v9259_v44  ;;  %v9266_v7 = vrot.slane %v9265_v50, 4  ;;  %v9273_v38 = vrot.slane %v9272_v20, 4  ;;  %v15995_v46 = vmax.f32 %v15937_v15, %v8361_v8  ;;  %6548 = vst.msk [vmem:[#allocation3 + $0x1e0] sm:$0xf] %vm6487_vm15, %v6416_v9 }
 0x45f   : > { %v9279_v27 = vsel %vm9145_vm2, %v8557_v6, -inf  ;;  %v8813_v2 = vcombine.high %v8407_v18, %v8407_v18  ;;  %v8820_v58 = vrot.slane %v8407_v18, %v15524_v16  ;;  %v16000_v26 = vrot.slane %v7278_v25, 5  ;;  %v6354_v3 = vpop.permute.xlu1 %6353 }
 0x460   : > { %v9261_v14 = vrot.slane %v9260_v32, 2  ;;  %v9267_v33 = vmax.f32 %v9265_v50, %v9266_v7  ;;  %v9274_v57 = vmax.f32 %v9272_v20, %v9273_v38  ;;  %v9280_v39 = vrot.slane %v9279_v27, 4  ;;  %6517 = vst.msk [vmem:[#allocation3 + $0xe8] sm:$0xf] %vm6487_vm15, %v6354_v3 }
 0x461   : > { %v8827_v45 = vrot.slane %v8813_v2, %v15524_v16  ;;  %v8828_v15 = vcombine.high %v8820_v58, %v8820_v58  ;;  %v9706_v23 = vsel %vm9145_vm2, %v8820_v58, -inf  ;;  %v8558_v30 = vcombine.high %v15995_v46, %v15995_v46  ;;  %v4016_v61 = vpop.permute.xlu0 %4015 }
 0x462   : > { %v9262_v47 = vmax.f32 %v9260_v32, %v9261_v14  ;;  %v9268_v13 = vrot.slane %v9267_v33, 2  ;;  %v9275_v48 = vrot.slane %v9274_v57, 2  ;;  %v9281_v34 = vmax.f32 %v9279_v27, %v9280_v39  ;;  %4146 = vst.msk [vmem:[#allocation3 + $0x1f0] sm:$0xf] %vm4083_vm12, %v4016_v61 }
 0x463   : > { %v11561_v24 = vld [vmem:[#allocation3 + $0xd4] ss:$8 sps:$4 sm:$0xff]   ;;  %v8829_v36 = vcombine.high %v8827_v45, %v8827_v45  ;;  %v9707_v10 = vrot.slane %v9706_v23, 4  ;;  %v9713_v51 = vsel %vm9145_vm2, %v8828_v15, -inf  ;;  %v9720_v37 = vsel %vm9145_vm2, %v8827_v45, -inf  ;;  %v6418_v53 = vpop.permute.xlu1 %6417 }
 0x464   : > { %v9263_v43 = vrot.slane %v9262_v47, 1  ;;  %v9269_v40 = vmax.f32 %v9267_v33, %v9268_v13  ;;  %v9276_v54 = vmax.f32 %v9274_v57, %v9275_v48  ;;  %v9282_v12 = vrot.slane %v9281_v34, 2  ;;  %6549 = vst.msk [vmem:[#allocation3 + $0x1e8] sm:$0xf] %vm6487_vm15, %v6418_v53  ;;  %11109 = vmatprep.mubr.msk.bf16.mxu0 %vm7895_vm1, %v11561_v24 }
 0x465   : > { %v9708_v55 = vmax.f32 %v9706_v23, %v9707_v10  ;;  %v9714_v56 = vrot.slane %v9713_v51, 4  ;;  %v9721_v49 = vrot.slane %v9720_v37, 4  ;;  %v9727_v22 = vsel %vm9145_vm2, %v8829_v36, -inf  ;;  %v4993_v4 = vpop.permute.xlu0 %4992 }
 0x466   : > { %v9264_v25 = vmax.f32 %v9262_v47, %v9263_v43  ;;  %v9270_v5 = vrot.slane %v9269_v40, 1  ;;  %v9277_v62 = vrot.slane %v9276_v54, 1  ;;  %v9283_v41 = vmax.f32 %v9281_v34, %v9282_v12  ;;  %v16013_v17 = vpop.f32.mrf.mxu0  ;;  %5155 = vst.msk [vmem:[#allocation3 + $0xf0] sm:$0xf] %vm5124_vm13, %v4993_v4 }
 0x467   : > { %v9709_v0 = vrot.slane %v9708_v55, 2  ;;  %v9715_v44 = vmax.f32 %v9713_v51, %v9714_v56  ;;  %v9722_v19 = vmax.f32 %v9720_v37, %v9721_v49  ;;  %v9728_v8 = vrot.slane %v9727_v22, 4  ;;  %v4018_v6 = vpop.permute.xlu1 %4017 }
 0x468   : > { %v9271_v50 = vmax.f32 %v9269_v40, %v9270_v5  ;;  %v9278_v20 = vmax.f32 %v9276_v54, %v9277_v62  ;;  %v9284_v18 = vrot.slane %v9283_v41, 1  ;;  %v11284_v9 = vpack.c.bf16 %v9264_v25, %v9264_v25  ;;  %4147 = vst.msk [vmem:[#allocation3 + $0x1f8] sm:$0xf] %vm4083_vm12, %v4018_v6  ;;  %v8084_v32 = vpop.f32.mrf.mxu0 }
 0x469   : > { %v9710_v7 = vmax.f32 %v9708_v55, %v9709_v0  ;;  %v9716_v38 = vrot.slane %v9715_v44, 2  ;;  %v9723_v27 = vrot.slane %v9722_v19, 2  ;;  %v9729_v2 = vmax.f32 %v9727_v22, %v9728_v8  ;;  %v5057_v58 = vpop.permute.xlu0 %5056  ;;  %v7491_v32 = vld [vmem:[#allocation3 + $0xd8] sm:$0xff] }
 0x46a   : > { %v9285_v3 = vmax.f32 %v9283_v41, %v9284_v18  ;;  %v11285_v14 = vpack.c.bf16 %v9271_v50, %v9271_v50  ;;  %v11286_v33 = vpack.c.bf16 %v9278_v20, %v9278_v20  ;;  %v10570_v57 = vunpack.c.l.b16 %v11284_v9  ;;  %v16017_v39 = vpop.f32.mrf.mxu1  ;;  %v16019_v45 = vpop.f32.mrf.mxu0  ;;  %5187 = vst.msk [vmem:[#allocation3 + $0x1f0] sm:$0xf] %vm5124_vm13, %v5057_v58  ;;  %v7490_v9 = vld [vmem:[#allocation3 + $0xd0] sm:$0xff] }
 0x46b   : > { %v9711_v15 = vrot.slane %v9710_v7, 1  ;;  %v9717_v23 = vmax.f32 %v9715_v44, %v9716_v38  ;;  %v9724_v61 = vmax.f32 %v9722_v19, %v9723_v27  ;;  %v9730_v47 = vrot.slane %v9729_v2, 2  ;;  %v4995_v13 = vpop.permute.xlu1 %4994 }
 0x46c   : > { %v11287_v48 = vpack.c.bf16 %v9285_v3, %v9285_v3  ;;  %v10571_v34 = vunpack.c.l.b16 %v11285_v14  ;;  %v10572_v24 = vunpack.c.l.b16 %v11286_v33  ;;  %v8565_v36 = vrot.slane %v15995_v46, %v15524_v16  ;;  %5156 = vst.msk [vmem:[#allocation3 + $0xf8] sm:$0xf] %vm5124_vm13, %v4995_v13  ;;  %v8087_v10 = vpop.f32.mrf.mxu0  ;;  %v8212_v51 = vpop.f32.mrf.mxu1  ;;  %v6626_v13 = vld [vmem:[#allocation2 + $0x1d8] sm:$0x1] }
 0x46d   : > { %v9712_v37 = vmax.f32 %v9710_v7, %v9711_v15  ;;  %v9718_v53 = vrot.slane %v9717_v23, 1  ;;  %v9725_v43 = vrot.slane %v9724_v61, 1  ;;  %v9731_v40 = vmax.f32 %v9729_v2, %v9730_v47  ;;  %v5971_v54 = vpop.permute.xlu0 %5970 }
 0x46e   : > { %v10573_v12 = vunpack.c.l.b16 %v11287_v48  ;;  %v10703_v55 = vsel %vm10682_vm3, %v10571_v34, %v10570_v57  ;;  %v8572_v56 = vrot.slane %v8558_v30, %v15524_v16  ;;  %v8573_v49 = vcombine.high %v8565_v36, %v8565_v36  ;;  %v16030_v22 = vpop.f32.mrf.mxu1  ;;  %6133 = vst.msk [vmem:[#allocation3 + $0xf0] sm:$0xf] %vm6102_vm14, %v5971_v54 }
 0x46f   : > { %v10704_v4 = vsel %vm10684_vm4, %v10572_v24, %v10703_v55  ;;  %v9719_v25 = vmax.f32 %v9717_v23, %v9718_v53  ;;  %v9726_v5 = vmax.f32 %v9724_v61, %v9725_v43  ;;  %v9732_v62 = vrot.slane %v9731_v40, 1  ;;  %v5059_v41 = vpop.permute.xlu1 %5058 }
 0x470   : > { %v11348_v0 = vpack.c.bf16 %v9712_v37, %v9712_v37  ;;  %v8574_v44 = vcombine.high %v8572_v56, %v8572_v56  ;;  %v9286_v19 = vsel %vm9145_vm2, %v8565_v36, -inf  ;;  %v9293_v8 = vsel %vm9145_vm2, %v8573_v49, -inf  ;;  %5188 = vst.msk [vmem:[#allocation3 + $0x1f8] sm:$0xf] %vm5124_vm13, %v5059_v41  ;;  %v8215_v46 = vpop.f32.mrf.mxu1 }
 0x471   : > { %v9733_v30 = vmax.f32 %v9731_v40, %v9732_v62  ;;  %v11349_v6 = vpack.c.bf16 %v9719_v25, %v9719_v25  ;;  %v11350_v50 = vpack.c.bf16 %v9726_v5, %v9726_v5  ;;  %v9287_v20 = vrot.slane %v9286_v19, 4  ;;  %v6035_v18 = vpop.permute.xlu0 %6034  ;;  %v16055_v62 = vld [vmem:[#allocation2 + $0x104] sm:$0xf] }
 0x472   : > { %v10634_v7 = vunpack.c.l.b16 %v11348_v0  ;;  %v9294_v38 = vrot.slane %v9293_v8, 4  ;;  %v9300_v27 = vsel %vm9145_vm2, %v8572_v56, -inf  ;;  %v9307_v2 = vsel %vm9145_vm2, %v8574_v44, -inf  ;;  %6165 = vst.msk [vmem:[#allocation3 + $0x1f0] sm:$0xf] %vm6102_vm14, %v6035_v18 }
 0x473   : > { %v11351_v58 = vpack.c.bf16 %v9733_v30, %v9733_v30  ;;  %v10635_v3 = vunpack.c.l.b16 %v11349_v6  ;;  %v10636_v14 = vunpack.c.l.b16 %v11350_v50  ;;  %v9288_v33 = vmax.f32 %v9286_v19, %v9287_v20  ;;  %v5973_v57 = vpop.permute.xlu1 %5972 }
 0x474   : > { %v9295_v15 = vmax.f32 %v9293_v8, %v9294_v38  ;;  %v9301_v23 = vrot.slane %v9300_v27, 4  ;;  %v9308_v61 = vrot.slane %v9307_v2, 4  ;;  %v16041_v47 = vsel %vm10686_vm5, %v10573_v12, %v10704_v4  ;;  %6134 = vst.msk [vmem:[#allocation3 + $0xf8] sm:$0xf] %vm6102_vm14, %v5973_v57 }
 0x475   : > { %v10637_v48 = vunpack.c.l.b16 %v11351_v58  ;;  %v10759_v34 = vsel %vm10682_vm3, %v10635_v3, %v10634_v7  ;;  %v9289_v24 = vrot.slane %v9288_v33, 2  ;;  %v11049_v36 = vcombine.low %v7490_v9, %v7491_v32  ;;  %v6356_v10 = vpop.permute.xlu0 %6355 }
 0x476   : > { %v10760_v51 = vsel %vm10684_vm4, %v10636_v14, %v10759_v34  ;;  %v9296_v37 = vrot.slane %v9295_v15, 2  ;;  %v9302_v53 = vmax.f32 %v9300_v27, %v9301_v23  ;;  %v9309_v43 = vmax.f32 %v9307_v2, %v9308_v61  ;;  %6518 = vst.msk [vmem:[#allocation3 + $0xf0] sm:$0xf] %vm6487_vm15, %v6356_v10 }
 0x477   : > { %v9290_v40 = vmax.f32 %v9288_v33, %v9289_v24  ;;  %8129 = vmatmul.mubr.bf16.gmra.mxu0 %v11049_v36  ;;  %v7281_v54 = vsel %vm12019_vm6, %v15988_v52, %v16000_v26  ;;  %v7282_v12 = vshrl.u32 %v15968_v35, 16  ;;  %v7288_v55 = vshll.u32 %v6626_v13, 16  ;;  %v6037_v56 = vpop.permute.xlu1 %6036 }
 0x478   : > { %v9297_v49 = vmax.f32 %v9295_v15, %v9296_v37  ;;  %v9303_v4 = vrot.slane %v9302_v53, 2  ;;  %v9310_v25 = vrot.slane %v9309_v43, 2  ;;  %7458 = vst.msk [vmem:[#allocation3 + $0x1d4] sm:$0xf] %vm254_vm0, %v7281_v54  ;;  %v8206_v5 = vadd.f32 %v15864_v31, %v15940_v42 }
 0x479   : > { %6166 = vst.msk [vmem:[#allocation3 + $0x1f8] sm:$0xf] %vm6102_vm14, %v6037_v56  ;;  %v9291_v41 = vrot.slane %v9290_v40, 1  ;;  %v7284_v0 = vrot.slane %v7282_v12, 4  ;;  %v7290_v44 = vrot.slane %v7288_v55, 5  ;;  %v16059_v52 = vsel %vm10686_vm5, %v10637_v48, %v10760_v51  ;;  %v6420_v35 = vpop.permute.xlu0 %6419 }
 0x47a   : > { %v9298_v19 = vrot.slane %v9297_v49, 1  ;;  %v9304_v8 = vmax.f32 %v9302_v53, %v9303_v4  ;;  %v9311_v46 = vmax.f32 %v9309_v43, %v9310_v25  ;;  %v8326_v30 = vmax.f32 %v8206_v5, 0.0  ;;  %6550 = vst.msk [vmem:[#allocation3 + $0x1f0] sm:$0xf] %vm6487_vm15, %v6420_v35 }
 0x47b   : > { %v9292_v6 = vmax.f32 %v9290_v40, %v9291_v41  ;;  %v7285_v42 = vor.u32 %v7284_v0, %v16000_v26  ;;  %v8083_v50 = vadd.f32 %v15864_v31, %v16013_v17  ;;  %v6941_v20 = vshrl.u32 %v16055_v62, 16  ;;  %v6358_v18 = vpop.permute.xlu1 %6357 }
 0x47c   : > { %v9299_v9 = vmax.f32 %v9297_v49, %v9298_v19  ;;  %v9305_v32 = vrot.slane %v9304_v8, 1  ;;  %v9312_v7 = vrot.slane %v9311_v46, 1  ;;  %v8409_v38 = vsel %vm7895_vm1, %v8326_v30, -inf  ;;  %6519 = vst.msk [vmem:[#allocation3 + $0xf8] sm:$0xf] %vm6487_vm15, %v6358_v18 }
 0x47d   : > { %v11288_v27 = vpack.c.bf16 %v9292_v6, %v9292_v6  ;;  %v7286_v2 = vrot.slane %v7285_v42, 4  ;;  %v8410_v58 = vmax.f32 %v15944_v11, %v8409_v38  ;;  %v8295_v3 = vmax.f32 %v8083_v50, 0.0 }
 0x47e   : > { %v9306_v14 = vmax.f32 %v9304_v8, %v9305_v32  ;;  %v9313_v26 = vmax.f32 %v9311_v46, %v9312_v7  ;;  %v11289_v33 = vpack.c.bf16 %v9299_v9, %v9299_v9  ;;  %v16069_v57 = vrot.slane %v6941_v20, 4 }
 0x47f   : > { %v10574_v17 = vunpack.c.l.b16 %v11288_v27  ;;  %v7291_v15 = vsel %vm12019_vm6, %v7286_v2, %v7290_v44  ;;  %v8830_v23 = vcombine.high %v8410_v58, %v8410_v58  ;;  %v8837_v61 = vrot.slane %v8410_v58, %v15524_v16  ;;  %v7522_v35 = vld [vmem:[#allocation3 + $0x1d0] sm:$0xff] }
 0x480   : > { %v11290_v13 = vpack.c.bf16 %v9306_v14, %v9306_v14  ;;  %v11291_v48 = vpack.c.bf16 %v9313_v26, %v9313_v26  ;;  %v10575_v34 = vunpack.c.l.b16 %v11289_v33  ;;  %7459 = vst.msk [vmem:[#allocation3 + $0x1dc] sm:$0xf] %vm254_vm0, %v7291_v15  ;;  %v8364_v11 = vsel %vm7895_vm1, %v8295_v3, -inf  ;;  %v6422_v24 = vpop.permute.xlu1 %6421 }
 0x481   : > { %v10706_v36 = vsel %vm10688_vm7, %v10574_v17, %v16041_v47  ;;  %v8844_v10 = vrot.slane %v8830_v23, %v15524_v16  ;;  %v8845_v51 = vcombine.high %v8837_v61, %v8837_v61  ;;  %v9734_v37 = vsel %vm9145_vm2, %v8837_v61, -inf  ;;  %6551 = vst.msk [vmem:[#allocation3 + $0x1f8] sm:$0xf] %vm6487_vm15, %v6422_v24 }
 0x482   : > { %v10576_v53 = vunpack.c.l.b16 %v11290_v13  ;;  %v10577_v43 = vunpack.c.l.b16 %v11291_v48  ;;  %v10707_v40 = vsel %vm10690_vm9, %v10575_v34, %v10706_v36  ;;  %v9735_v54 = vrot.slane %v9734_v37, 4  ;;  %v16082_v12 = vpop.f32.mrf.mxu0 }
 0x483   : > { %v8846_v55 = vcombine.high %v8844_v10, %v8844_v10  ;;  %v9741_v56 = vsel %vm9145_vm2, %v8845_v51, -inf  ;;  %v9748_v49 = vsel %vm9145_vm2, %v8844_v10, -inf  ;;  %v8365_v47 = vmax.f32 %v15947_v59, %v8364_v11 }
 0x484   : > { %v10708_v4 = vsel %vm10692_vm10, %v10576_v53, %v10707_v40  ;;  %v9736_v25 = vmax.f32 %v9734_v37, %v9735_v54  ;;  %v9742_v5 = vrot.slane %v9741_v56, 4  ;;  %v9749_v41 = vrot.slane %v9748_v49, 4  ;;  %v8092_v0 = vpop.f32.mrf.mxu0 }
 0x485   : > { %v10709_v44 = vsel %vm10694_vm11, %v10577_v43, %v10708_v4  ;;  %v9755_v19 = vsel %vm9145_vm2, %v8846_v55, -inf  ;;  %v8575_v8 = vcombine.high %v8365_v47, %v8365_v47  ;;  %v8582_v46 = vrot.slane %v8365_v47, %v15524_v16 }
 0x486   : > { %v10803_v30 = vpack.c.b16 %v10709_v44, %v10709_v44  ;;  %v9737_v6 = vrot.slane %v9736_v25, 2  ;;  %v9743_v42 = vmax.f32 %v9741_v56, %v9742_v5  ;;  %v9750_v50 = vmax.f32 %v9748_v49, %v9749_v41  ;;  %v16091_v59 = vpop.f32.mrf.mxu0  ;;  %v16093_v20 = vpop.f32.mrf.mxu1 }
 0x487   : > { %v7523_v18 = vld [vmem:[#allocation3 + $0x1d8] sm:$0xff]  ;;  %v9756_v32 = vrot.slane %v9755_v19, 4  ;;  %v8589_v7 = vrot.slane %v8575_v8, %v15524_v16  ;;  %v8590_v38 = vcombine.high %v8582_v46, %v8582_v46  ;;  %v9314_v27 = vsel %vm9145_vm2, %v8582_v46, -inf }
 0x488   : > { %v11563_v9 = vld [vmem:[#allocation3 + $0x1d4] ss:$8 sps:$4 sm:$0xff]   ;;  %10835 = vst.msk [vmem:[%s11922_s24 + $0x8] sm:$0xf] %vm254_vm0, %v10803_v30  ;;  %v9738_v2 = vmax.f32 %v9736_v25, %v9737_v6  ;;  %v9744_v58 = vrot.slane %v9743_v42, 2  ;;  %v9751_v3 = vrot.slane %v9750_v50, 2  ;;  %v11081_v14 = vcombine.low %v7522_v35, %v7523_v18  ;;  %v8095_v26 = vpop.f32.mrf.mxu0  ;;  %v8220_v33 = vpop.f32.mrf.mxu1 }
 0x489   : > { %11125 = vmatprep.mubr.msk.bf16.mxu1 %vm7895_vm1, %v11563_v9  ;;  %v9757_v17 = vmax.f32 %v9755_v19, %v9756_v32  ;;  %v8591_v15 = vcombine.high %v8589_v7, %v8589_v7  ;;  %v9315_v23 = vrot.slane %v9314_v27, 4  ;;  %v9321_v61 = vsel %vm9145_vm2, %v8590_v38, -inf }
 0x48a   : > { %v9739_v13 = vrot.slane %v9738_v2, 1  ;;  %v9745_v48 = vmax.f32 %v9743_v42, %v9744_v58  ;;  %v9752_v34 = vmax.f32 %v9750_v50, %v9751_v3  ;;  %8257 = vmatmul.mubr.bf16.gmra.mxu1 %v11081_v14  ;;  %v9322_v11 = vrot.slane %v9321_v61, 4  ;;  %v16101_v24 = vpop.f32.mrf.mxu1 }
 0x48b   : > { %v9758_v36 = vrot.slane %v9757_v17, 2  ;;  %v9316_v10 = vmax.f32 %v9314_v27, %v9315_v23  ;;  %v9328_v51 = vsel %vm9145_vm2, %v8589_v7, -inf  ;;  %v9335_v37 = vsel %vm9145_vm2, %v8591_v15, -inf  ;;  %v6588_v7 = vld [vmem:[#allocation2 + $0x108] sm:$0xf] }
 0x48c   : > { %v9740_v53 = vmax.f32 %v9738_v2, %v9739_v13  ;;  %v9746_v43 = vrot.slane %v9745_v48, 1  ;;  %v9753_v40 = vrot.slane %v9752_v34, 1  ;;  %v9323_v54 = vmax.f32 %v9321_v61, %v9322_v11  ;;  %v8223_v55 = vpop.f32.mrf.mxu1 }
 0x48d   : > { %v9759_v56 = vmax.f32 %v9757_v17, %v9758_v36  ;;  %v9317_v49 = vrot.slane %v9316_v10, 2  ;;  %v9329_v47 = vrot.slane %v9328_v51, 4  ;;  %v9336_v4 = vrot.slane %v9335_v37, 4 }
 0x48e   : > { %v9747_v25 = vmax.f32 %v9745_v48, %v9746_v43  ;;  %v9754_v5 = vmax.f32 %v9752_v34, %v9753_v40  ;;  %v11352_v41 = vpack.c.bf16 %v9740_v53, %v9740_v53  ;;  %v9324_v0 = vrot.slane %v9323_v54, 2 }
 0x48f   : > { %v9760_v44 = vrot.slane %v9759_v56, 1  ;;  %v9318_v35 = vmax.f32 %v9316_v10, %v9317_v49  ;;  %v9330_v19 = vmax.f32 %v9328_v51, %v9329_v47  ;;  %v9337_v8 = vmax.f32 %v9335_v37, %v9336_v4  ;;  %v16110_v51 = vld [vmem:[#allocation2 + $0x10c] sm:$0xf] }
 0x490   : > { %v11353_v46 = vpack.c.bf16 %v9747_v25, %v9747_v25  ;;  %v11354_v30 = vpack.c.bf16 %v9754_v5, %v9754_v5  ;;  %v10638_v6 = vunpack.c.l.b16 %v11352_v41  ;;  %v9325_v42 = vmax.f32 %v9323_v54, %v9324_v0  ;;  %v6627_v41 = vld [vmem:[#allocation2 + $0x1e4] sm:$0xf] }
 0x491   : > { %v9761_v50 = vmax.f32 %v9759_v56, %v9760_v44  ;;  %v9319_v18 = vrot.slane %v9318_v35, 1  ;;  %v9331_v9 = vrot.slane %v9330_v19, 2  ;;  %v9338_v32 = vrot.slane %v9337_v8, 2 }
 0x492   : > { %v10639_v38 = vunpack.c.l.b16 %v11353_v46  ;;  %v10640_v27 = vunpack.c.l.b16 %v11354_v30  ;;  %v10762_v2 = vsel %vm10688_vm7, %v10638_v6, %v16059_v52  ;;  %v9326_v58 = vrot.slane %v9325_v42, 1  ;;  %v6628_v30 = vld [vmem:[#allocation2 + $0x1e8] sm:$0xf] }
 0x493   : > { %v11355_v3 = vpack.c.bf16 %v9761_v50, %v9761_v50  ;;  %v9320_v14 = vmax.f32 %v9318_v35, %v9319_v18  ;;  %v9332_v26 = vmax.f32 %v9330_v19, %v9331_v9  ;;  %v9339_v33 = vmax.f32 %v9337_v8, %v9338_v32 }
 0x494   : > { %v10763_v17 = vsel %vm10690_vm9, %v10639_v38, %v10762_v2  ;;  %v9327_v15 = vmax.f32 %v9325_v42, %v9326_v58  ;;  %v6944_v23 = vshll.u32 %v16055_v62, 16  ;;  %v6950_v61 = vshll.u32 %v6588_v7, 16 }
 0x495   : > { %v10641_v13 = vunpack.c.l.b16 %v11355_v3  ;;  %v10764_v48 = vsel %vm10692_vm10, %v10640_v27, %v10763_v17  ;;  %v9333_v34 = vrot.slane %v9332_v26, 1  ;;  %v9340_v11 = vrot.slane %v9339_v33, 1 }
 0x496   : > { %v11292_v36 = vpack.c.bf16 %v9320_v14, %v9320_v14  ;;  %v11293_v10 = vpack.c.bf16 %v9327_v15, %v9327_v15  ;;  %v6946_v52 = vrot.slane %v6944_v23, 5  ;;  %v6952_v37 = vrot.slane %v6950_v61, 5  ;;  %v16146_v14 = vld [vmem:[#allocation2 + $0x1ec] sm:$0xf] }
 0x497   : > { %v10765_v53 = vsel %vm10694_vm11, %v10641_v13, %v10764_v48  ;;  %v9334_v43 = vmax.f32 %v9332_v26, %v9333_v34  ;;  %v9341_v40 = vmax.f32 %v9339_v33, %v9340_v11  ;;  %v6954_v54 = vshrl.u32 %v6588_v7, 16 }
 0x498   : > { %v8198_v62 = vadd.f32 %v15864_v31, %v15853_v28  ;;  %v10811_v55 = vpack.c.b16 %v10765_v53, %v10765_v53  ;;  %v10579_v56 = vunpack.c.l.b16 %v11293_v10  ;;  %v6947_v49 = vor.u32 %v6946_v52, %v16069_v57  ;;  %v16123_v28 = vld [vmem:[%s16663_s2] ss:$0 sm:$0xff] }
 0x499   : > { %v11294_v47 = vpack.c.bf16 %v9334_v43, %v9334_v43  ;;  %v10578_v4 = vunpack.c.l.b16 %v11292_v36  ;;  %v6956_v25 = vrot.slane %v6954_v54, 4  ;;  %v6960_v5 = vshll.u32 %v16110_v51, 16 }
 0x49a   : > { %v8292_v0 = vmax.f32 %v15958_v21, 0.0  ;;  %10843 = vst.msk [vmem:[%s11922_s24 + $0x28] sm:$0xf] %vm254_vm0, %v10811_v55  ;;  %v11295_v44 = vpack.c.bf16 %v9341_v40, %v9341_v40  ;;  %v6948_v35 = vrot.slane %v6947_v49, 4  ;;  %v8211_v31 = vadd.f32 %v16123_v28, %v16017_v39 }
 0x49b   : > { %v10580_v57 = vunpack.c.l.b16 %v11294_v47  ;;  %v10710_v19 = vsel %vm10682_vm3, %v10579_v56, %v10578_v4  ;;  %v6957_v8 = vor.u32 %v6956_v25, %v6952_v37  ;;  %v16128_v46 = vrot.slane %v6960_v5, 5 }
 0x49c   : > { %v6953_v21 = vsel %vm12019_vm6, %v6948_v35, %v6952_v37  ;;  %v8327_v6 = vmax.f32 %v8211_v31, 0.0  ;;  %v8086_v42 = vadd.f32 %v16123_v28, %v16019_v45  ;;  %v7293_v50 = vshrl.u32 %v6627_v41, 16 }
 0x49d   : > { %v8411_v18 = vsel %vm7895_vm1, %v8323_v63, -inf  ;;  %v8324_v39 = vmax.f32 %v8198_v62, 0.0  ;;  %v6958_v9 = vrot.slane %v6957_v8, 4  ;;  %7428 = vst.msk [vmem:[#allocation3 + $0xe4] sm:$0xf] %vm254_vm0, %v6953_v21  ;;  %v7296_v32 = vshll.u32 %v6627_v41, 16 }
 0x49e   : > { %v10581_v7 = vunpack.c.l.b16 %v11295_v44  ;;  %v8412_v38 = vsel %vm7895_vm1, %v8327_v6, -inf  ;;  %v8296_v27 = vmax.f32 %v8086_v42, 0.0  ;;  %v7302_v2 = vshll.u32 %v6628_v30, 16  ;;  %v16139_v58 = vpop.f32.mrf.mxu0 }
 0x49f   : > { %v8366_v3 = vsel %vm7895_vm1, %v8292_v0, -inf  ;;  %v10711_v45 = vsel %vm10684_vm4, %v10580_v57, %v10710_v19  ;;  %v6963_v60 = vsel %vm12019_vm6, %v6958_v9, %v16128_v46  ;;  %v8413_v63 = vmax.f32 %v8411_v18, %v8412_v38 }
 0x4a0   : > { %7429 = vst.msk [vmem:[#allocation3 + $0xec] sm:$0xf] %vm254_vm0, %v6963_v60  ;;  %v8367_v26 = vsel %vm7895_vm1, %v8296_v27, -inf  ;;  %v16150_v33 = vrot.slane %v7293_v50, 4  ;;  %v16152_v17 = vrot.slane %v7296_v32, 5  ;;  %v7306_v15 = vshrl.u32 %v6628_v30, 16  ;;  %v8100_v23 = vpop.f32.mrf.mxu0 }
 0x4a1   : > { %v16155_v61 = vsel %vm7895_vm1, %v8324_v39, -inf  ;;  %v8847_v13 = vcombine.high %v8413_v63, %v8413_v63  ;;  %v8854_v48 = vrot.slane %v8413_v63, %v15524_v16  ;;  %v8368_v34 = vmax.f32 %v8366_v3, %v8367_v26 }
 0x4a2   : > { %v6964_v11 = vshrl.u32 %v16110_v51, 16  ;;  %v16160_v36 = vsel %vm10686_vm5, %v10581_v7, %v10711_v45  ;;  %v16162_v10 = vrot.slane %v7302_v2, 5  ;;  %v7312_v52 = vshll.u32 %v16146_v14, 16  ;;  %v16165_v37 = vpop.f32.mrf.mxu0  ;;  %v16167_v53 = vpop.f32.mrf.mxu1 }
 0x4a3   : > { %v8861_v43 = vrot.slane %v8847_v13, %v15524_v16  ;;  %v8862_v40 = vcombine.high %v8854_v48, %v8854_v48  ;;  %v9762_v54 = vsel %vm9145_vm2, %v8854_v48, -inf  ;;  %v8592_v62 = vcombine.high %v8368_v34, %v8368_v34 }
 0x4a4   : > { %v9763_v55 = vrot.slane %v9762_v54, 4  ;;  %v8599_v56 = vrot.slane %v8368_v34, %v15524_v16  ;;  %v7299_v49 = vor.u32 %v16152_v17, %v16150_v33  ;;  %v16174_v47 = vrot.slane %v7306_v15, 4  ;;  %v8103_v4 = vpop.f32.mrf.mxu0  ;;  %v8228_v25 = vpop.f32.mrf.mxu1 }
 0x4a5   : > { %v8863_v5 = vcombine.high %v8861_v43, %v8861_v43  ;;  %v9769_v41 = vsel %vm9145_vm2, %v8862_v40, -inf  ;;  %v9776_v0 = vsel %vm9145_vm2, %v8861_v43, -inf  ;;  %v8606_v44 = vrot.slane %v8592_v62, %v15524_v16 }
 0x4a6   : > { %v9764_v35 = vmax.f32 %v9762_v54, %v9763_v55  ;;  %v9770_v31 = vrot.slane %v9769_v41, 4  ;;  %v9777_v57 = vrot.slane %v9776_v0, 4  ;;  %v8607_v19 = vcombine.high %v8599_v56, %v8599_v56  ;;  %v16179_v8 = vpop.f32.mrf.mxu1 }
 0x4a7   : > { %v11565_v30 = vld [vmem:[#allocation3 + $0xe4] ss:$8 sps:$4 sm:$0xff]   ;;  %v9783_v21 = vsel %vm9145_vm2, %v8863_v5, -inf  ;;  %v8608_v6 = vcombine.high %v8606_v44, %v8606_v44  ;;  %v9342_v42 = vsel %vm9145_vm2, %v8599_v56, -inf  ;;  %v9356_v50 = vsel %vm9145_vm2, %v8606_v44, -inf }
 0x4a8   : > { %v9765_v18 = vrot.slane %v9764_v35, 2  ;;  %v9771_v39 = vmax.f32 %v9769_v41, %v9770_v31  ;;  %v9778_v9 = vmax.f32 %v9776_v0, %v9777_v57  ;;  %v9784_v32 = vrot.slane %v9783_v21, 4  ;;  %v8231_v7 = vpop.f32.mrf.mxu1  ;;  %11110 = vmatprep.mubr.msk.bf16.mxu0 %vm7895_vm1, %v11565_v30 }
 0x4a9   : > { %v9343_v38 = vrot.slane %v9342_v42, 4  ;;  %v9349_v27 = vsel %vm9145_vm2, %v8607_v19, -inf  ;;  %v9357_v2 = vrot.slane %v9356_v50, 4  ;;  %v9363_v3 = vsel %vm9145_vm2, %v8608_v6, -inf }
 0x4aa   : > { %v9766_v45 = vmax.f32 %v9764_v35, %v9765_v18  ;;  %v9772_v60 = vrot.slane %v9771_v39, 2  ;;  %v9779_v63 = vrot.slane %v9778_v9, 2  ;;  %v9785_v26 = vmax.f32 %v9783_v21, %v9784_v32 }
 0x4ab   : > { %v9344_v15 = vmax.f32 %v9342_v42, %v9343_v38  ;;  %v9350_v23 = vrot.slane %v9349_v27, 4  ;;  %v9358_v13 = vmax.f32 %v9356_v50, %v9357_v2  ;;  %v9364_v48 = vrot.slane %v9363_v3, 4  ;;  %v7492_v42 = vld [vmem:[#allocation3 + $0xe0] sm:$0xff]  ;;  %v7493_v50 = vld [vmem:[#allocation3 + $0xe8] sm:$0xff] }
 0x4ac   : > { %v9767_v34 = vrot.slane %v9766_v45, 1  ;;  %v9773_v43 = vmax.f32 %v9771_v39, %v9772_v60  ;;  %v9780_v40 = vmax.f32 %v9778_v9, %v9779_v63  ;;  %v9786_v54 = vrot.slane %v9785_v26, 2 }
 0x4ad   : > { %v9345_v62 = vrot.slane %v9344_v15, 2  ;;  %v9351_v55 = vmax.f32 %v9349_v27, %v9350_v23  ;;  %v9359_v56 = vrot.slane %v9358_v13, 2  ;;  %v9365_v4 = vmax.f32 %v9363_v3, %v9364_v48 }
 0x4ae   : > { %v9768_v25 = vmax.f32 %v9766_v45, %v9767_v34  ;;  %v9774_v5 = vrot.slane %v9773_v43, 1  ;;  %v9781_v41 = vrot.slane %v9780_v40, 1  ;;  %v9787_v0 = vmax.f32 %v9785_v26, %v9786_v54 }
 0x4af   : > { %v9346_v44 = vmax.f32 %v9344_v15, %v9345_v62  ;;  %v9352_v35 = vrot.slane %v9351_v55, 2  ;;  %v9360_v31 = vmax.f32 %v9358_v13, %v9359_v56  ;;  %v9366_v57 = vrot.slane %v9365_v4, 2 }
 0x4b0   : > { %v9775_v19 = vmax.f32 %v9773_v43, %v9774_v5  ;;  %v9788_v30 = vrot.slane %v9787_v0, 1  ;;  %v16187_v21 = vrot.slane %v7312_v52, 5  ;;  %v7316_v6 = vshrl.u32 %v16146_v14, 16 }
 0x4b1   : > { %v9347_v18 = vrot.slane %v9346_v44, 1  ;;  %v9353_v39 = vmax.f32 %v9351_v55, %v9352_v35  ;;  %v9361_v9 = vrot.slane %v9360_v31, 1  ;;  %v9367_v32 = vmax.f32 %v9365_v4, %v9366_v57 }
 0x4b2   : > { %v9782_v7 = vmax.f32 %v9780_v40, %v9781_v41  ;;  %v11356_v38 = vpack.c.bf16 %v9768_v25, %v9768_v25  ;;  %v7300_v27 = vrot.slane %v7299_v49, 4  ;;  %v7309_v2 = vor.u32 %v16174_v47, %v16162_v10 }
 0x4b3   : > { %v9348_v3 = vmax.f32 %v9346_v44, %v9347_v18  ;;  %v9354_v52 = vrot.slane %v9353_v39, 1  ;;  %v9362_v45 = vmax.f32 %v9360_v31, %v9361_v9  ;;  %v9368_v60 = vrot.slane %v9367_v32, 1 }
 0x4b4   : > { %v9789_v63 = vmax.f32 %v9787_v0, %v9788_v30  ;;  %v11357_v26 = vpack.c.bf16 %v9775_v19, %v9775_v19  ;;  %v11051_v15 = vcombine.low %v7492_v42, %v7493_v50  ;;  %v8214_v23 = vadd.f32 %v16123_v28, %v16030_v22  ;;  %v6590_v22 = vld [vmem:[#allocation2 + $0x110] sm:$0xf] }
 0x4b5   : > { %v9355_v13 = vmax.f32 %v9353_v39, %v9354_v52  ;;  %v9369_v48 = vmax.f32 %v9367_v32, %v9368_v60  ;;  %v11296_v34 = vpack.c.bf16 %v9348_v3, %v9348_v3  ;;  %v11298_v43 = vpack.c.bf16 %v9362_v45, %v9362_v45 }
 0x4b6   : > { %v11358_v40 = vpack.c.bf16 %v9782_v7, %v9782_v7  ;;  %8137 = vmatmul.mubr.bf16.gmra.mxu0 %v11051_v15  ;;  %v7305_v33 = vsel %vm12019_vm6, %v7300_v27, %v16162_v10  ;;  %v7310_v17 = vrot.slane %v7309_v2, 4  ;;  %v16202_v49 = vadd.f32 %v16123_v28, %v16082_v12  ;;  %v6591_v10 = vld [vmem:[#allocation2 + $0x114] sm:$0x1] }
 0x4b7   : > { %v10642_v47 = vunpack.c.l.b16 %v11356_v38  ;;  %v11297_v54 = vpack.c.bf16 %v9355_v13, %v9355_v13  ;;  %v11299_v62 = vpack.c.bf16 %v9369_v48, %v9369_v48  ;;  %v10582_v55 = vunpack.c.l.b16 %v11296_v34  ;;  %7460 = vst.msk [vmem:[#allocation3 + $0x1e4] sm:$0xf] %vm254_vm0, %v7305_v33 }
 0x4b8   : > { %v11359_v56 = vpack.c.bf16 %v9789_v63, %v9789_v63  ;;  %v10584_v4 = vunpack.c.l.b16 %v11298_v43  ;;  %v7315_v25 = vsel %vm12019_vm6, %v7310_v17, %v16187_v21  ;;  %v8328_v5 = vmax.f32 %v8214_v23, 0.0 }
 0x4b9   : > { %v10643_v41 = vunpack.c.l.b16 %v11357_v26  ;;  %v10583_v0 = vunpack.c.l.b16 %v11297_v54  ;;  %v10585_v44 = vunpack.c.l.b16 %v11299_v62  ;;  %v10713_v12 = vsel %vm10688_vm7, %v10582_v55, %v16160_v36  ;;  %7461 = vst.msk [vmem:[#allocation3 + $0x1ec] sm:$0xf] %vm254_vm0, %v7315_v25  ;;  %v504_v26 = vld [vmem:[#allocation2 + $0x1f4] sm:$0x1] }
 0x4ba   : > { %v8415_v35 = vsel %vm7895_vm1, %v8328_v5, -inf  ;;  %v6966_v31 = vrot.slane %v6964_v11, 4  ;;  %v6970_v57 = vshll.u32 %v6590_v22, 16  ;;  %v6974_v19 = vshrl.u32 %v6590_v22, 16 }
 0x4bb   : > { %v10644_v30 = vunpack.c.l.b16 %v11358_v40  ;;  %v10714_v42 = vsel %vm10690_vm9, %v10583_v0, %v10713_v12  ;;  %v8416_v50 = vmax.f32 %v16155_v61, %v8415_v35  ;;  %v6980_v18 = vshll.u32 %v6591_v10, 16 }
 0x4bc   : > { %v10715_v39 = vsel %vm10692_vm10, %v10584_v4, %v10714_v42  ;;  %v6967_v9 = vor.u32 %v6966_v31, %v16128_v46  ;;  %v6972_v36 = vrot.slane %v6970_v57, 5  ;;  %v6976_v32 = vrot.slane %v6974_v19, 4 }
 0x4bd   : > { %v10766_v7 = vsel %vm10682_vm3, %v10643_v41, %v10642_v47  ;;  %v10716_v51 = vsel %vm10694_vm11, %v10585_v44, %v10715_v39  ;;  %v8864_v11 = vcombine.high %v8416_v50, %v8416_v50  ;;  %v8871_v38 = vrot.slane %v8416_v50, %v15524_v16 }
 0x4be   : > { %v10804_v27 = vpack.c.b16 %v10716_v51, %v10716_v51  ;;  %v7524_v2 = vld [vmem:[#allocation3 + $0x1e0] sm:$0xff]  ;;  %v6968_v3 = vrot.slane %v6967_v9, 4  ;;  %v6977_v52 = vor.u32 %v6976_v32, %v6972_v36  ;;  %v6982_v61 = vrot.slane %v6980_v18, 5 }
 0x4bf   : > { %v10645_v45 = vunpack.c.l.b16 %v11359_v56  ;;  %v8878_v60 = vrot.slane %v8864_v11, %v15524_v16  ;;  %v8879_v63 = vcombine.high %v8871_v38, %v8871_v38  ;;  %v9790_v46 = vsel %vm9145_vm2, %v8871_v38, -inf  ;;  %v6630_v56 = vld [vmem:[#allocation2 + $0x1f0] sm:$0xf] }
 0x4c0   : > { %v10767_v15 = vsel %vm10684_vm4, %v10644_v30, %v10766_v7  ;;  %10836 = vst.msk [vmem:[%s11922_s24 + $0xc] sm:$0xf] %vm254_vm0, %v10804_v27  ;;  %v7525_v23 = vld [vmem:[#allocation3 + $0x1e8] sm:$0xff]  ;;  %v9791_v48 = vrot.slane %v9790_v46, 4  ;;  %v6973_v34 = vsel %vm12019_vm6, %v6968_v3, %v6972_v36  ;;  %v6978_v43 = vrot.slane %v6977_v52, 4 }
 0x4c1   : > { %v11567_v13 = vld [vmem:[#allocation3 + $0x1e4] ss:$8 sps:$4 sm:$0xff]   ;;  %v8880_v40 = vcombine.high %v8878_v60, %v8878_v60  ;;  %v9797_v33 = vsel %vm9145_vm2, %v8879_v63, -inf  ;;  %v9804_v17 = vsel %vm9145_vm2, %v8878_v60, -inf  ;;  %v11083_v47 = vcombine.low %v7524_v2, %v7525_v23  ;;  %7430 = vst.msk [vmem:[#allocation3 + $0xf4] sm:$0xf] %vm254_vm0, %v6973_v34 }
 0x4c2   : > { %11126 = vmatprep.mubr.msk.bf16.mxu1 %vm7895_vm1, %v11567_v13  ;;  %v9792_v54 = vmax.f32 %v9790_v46, %v9791_v48  ;;  %v9798_v62 = vrot.slane %v9797_v33, 4  ;;  %v9805_v55 = vrot.slane %v9804_v17, 4  ;;  %v6983_v22 = vsel %vm12019_vm6, %v6978_v43, %v6982_v61  ;;  %v11571_v52 = vld [vmem:[#allocation3 + $0xf0] ss:$8 sps:$4 sm:$0xff]  }
 0x4c3   : > { %v9811_v4 = vsel %vm9145_vm2, %v8880_v40, -inf  ;;  %8265 = vmatmul.mubr.bf16.gmra.mxu1 %v11083_v47  ;;  %v8297_v25 = vmax.f32 %v16202_v49, 0.0  ;;  %7431 = vst.msk [vmem:[#allocation3 + $0xfc] sm:$0xf] %vm254_vm0, %v6983_v22  ;;  %v8094_v5 = vadd.f32 %v16123_v28, %v16091_v59  ;;  %v505_v10 = vsel %vm12054_vm8, 0, %v504_v26 }
 0x4c4   : > { %v9793_v41 = vrot.slane %v9792_v54, 2  ;;  %v9799_v0 = vmax.f32 %v9797_v33, %v9798_v62  ;;  %v9806_v44 = vmax.f32 %v9804_v17, %v9805_v55  ;;  %v9812_v12 = vrot.slane %v9811_v4, 4  ;;  %506 = vst [vmem:[#allocation2 + $0x1f4] sm:$0x1] %v505_v10 }
 0x4c5   : > { %v8219_v35 = vadd.f32 %v16123_v28, %v16093_v20  ;;  %v7318_v31 = vrot.slane %v7316_v6, 4  ;;  %v7322_v49 = vshll.u32 %v6630_v56, 16  ;;  %v7326_v57 = vshrl.u32 %v6630_v56, 16 }
 0x4c6   : > { %v9794_v19 = vmax.f32 %v9792_v54, %v9793_v41  ;;  %v9800_v30 = vrot.slane %v9799_v0, 2  ;;  %v9807_v42 = vrot.slane %v9806_v44, 2  ;;  %v9813_v59 = vmax.f32 %v9811_v4, %v9812_v12 }
 0x4c7   : > { %v8298_v50 = vmax.f32 %v8094_v5, 0.0  ;;  %v7319_v29 = vor.u32 %v7318_v31, %v16187_v21  ;;  %v7324_v18 = vrot.slane %v7322_v49, 5  ;;  %v7328_v39 = vrot.slane %v7326_v57, 4 }
 0x4c8   : > { %v9795_v9 = vrot.slane %v9794_v19, 1  ;;  %v9801_v36 = vmax.f32 %v9799_v0, %v9800_v30  ;;  %v9808_v32 = vmax.f32 %v9806_v44, %v9807_v42  ;;  %v9814_v7 = vrot.slane %v9813_v59, 2 }
 0x4c9   : > { %v10768_v20 = vsel %vm10686_vm5, %v10645_v45, %v10767_v15  ;;  %v16248_v14 = vsel %vm7895_vm1, %v8297_v25, -inf  ;;  %v7320_v6 = vrot.slane %v7319_v29, 4  ;;  %v7329_v51 = vor.u32 %v7328_v39, %v7324_v18 }
 0x4ca   : > { %v9796_v11 = vmax.f32 %v9794_v19, %v9795_v9  ;;  %v9802_v38 = vrot.slane %v9801_v36, 1  ;;  %v9809_v27 = vrot.slane %v9808_v32, 1  ;;  %v9815_v2 = vmax.f32 %v9813_v59, %v9814_v7  ;;  %v11569_v3 = vld [vmem:[#allocation3 + $0xf4] ss:$8 sps:$4 sm:$0xff]  }
 0x4cb   : > { %v16251_v21 = vsel %vm7895_vm1, %v8298_v50, -inf  ;;  %v8329_v61 = vmax.f32 %v8219_v35, 0.0  ;;  %v6631_v60 = vld [vmem:[#allocation2 + $0x1f4] sm:$0x1]  ;;  %v7325_v63 = vsel %vm12019_vm6, %v7320_v6, %v7324_v18  ;;  %v8222_v45 = vadd.f32 %v16123_v28, %v16101_v24  ;;  %11111 = vmatprep.mubr.msk.bf16.mxu0 %vm7895_vm1, %v11569_v3 }
 0x4cc   : > { %v9803_v46 = vmax.f32 %v9801_v36, %v9802_v38  ;;  %v9810_v26 = vmax.f32 %v9808_v32, %v9809_v27  ;;  %v9816_v15 = vrot.slane %v9815_v2, 1  ;;  %v11360_v23 = vpack.c.bf16 %v9796_v11, %v9796_v11  ;;  %7462 = vst.msk [vmem:[#allocation3 + $0x1f4] sm:$0xf] %vm254_vm0, %v7325_v63  ;;  %8145 = vmatmul.mubr.bf16.gmra.mxu0 %v11571_v52 }
 0x4cd   : > { %v7330_v13 = vrot.slane %v7329_v51, 4  ;;  %v7332_v48 = vshll.u32 %v6631_v60, 16  ;;  %v8099_v34 = vadd.f32 %v16123_v28, %v16139_v58  ;;  %v8102_v43 = vadd.f32 %v16123_v28, %v16165_v37  ;;  %v8106_v40 = vpop.f32.mrf.mxu0 }
 0x4ce   : > { %v9817_v33 = vmax.f32 %v9815_v2, %v9816_v15  ;;  %v11361_v24 = vpack.c.bf16 %v9803_v46, %v9803_v46  ;;  %v11362_v17 = vpack.c.bf16 %v9810_v26, %v9810_v26  ;;  %v10646_v47 = vunpack.c.l.b16 %v11360_v23  ;;  %v11574_v46 = vld [vmem:[#allocation3 + $0x1f0] ss:$8 sps:$4 sm:$0xff]  }
 0x4cf   : > { %v8417_v54 = vsel %vm7895_vm1, %v8329_v61, -inf  ;;  %v7334_v62 = vrot.slane %v7332_v48, 5  ;;  %v8330_v55 = vmax.f32 %v8222_v45, 0.0  ;;  %v8227_v22 = vadd.f32 %v16123_v28, %v16167_v53  ;;  %v8108_v56 = vpop.f32.mrf.mxu0  ;;  %v8234_v4 = vpop.f32.mrf.mxu1 }
 0x4d0   : > { %v11363_v25 = vpack.c.bf16 %v9817_v33, %v9817_v33  ;;  %v10647_v5 = vunpack.c.l.b16 %v11361_v24  ;;  %v10648_v58 = vunpack.c.l.b16 %v11362_v17  ;;  %v10769_v10 = vsel %vm10688_vm7, %v10646_v47, %v10768_v20 }
 0x4d1   : > { %v7335_v37 = vsel %vm12019_vm6, %v7330_v13, %v7334_v62  ;;  %v8299_v41 = vmax.f32 %v8099_v34, 0.0  ;;  %v8300_v0 = vmax.f32 %v8102_v43, 0.0  ;;  %v8107_v44 = vadd.f32 %v16123_v28, %v8106_v40  ;;  %v8109_v12 = vpop.f32.mrf.mxu0  ;;  %v8236_v35 = vpop.f32.mrf.mxu1 }
 0x4d2   : > { %v10649_v31 = vunpack.c.l.b16 %v11363_v25  ;;  %v10770_v49 = vsel %vm10690_vm9, %v10647_v5, %v10769_v10  ;;  %7463 = vst.msk [vmem:[#allocation3 + $0x1fc] sm:$0xf] %vm254_vm0, %v7335_v37  ;;  %v8110_v53 = vadd.f32 %v16123_v28, %v8109_v12  ;;  %v8235_v57 = vadd.f32 %v16123_v28, %v8234_v4 }
 0x4d3   : > { %v10771_v19 = vsel %vm10692_vm10, %v10648_v58, %v10770_v49  ;;  %v8331_v30 = vmax.f32 %v8227_v22, 0.0  ;;  %v16277_v1 = vadd.f32 %v16123_v28, %v16179_v8  ;;  %v8301_v42 = vmax.f32 %v8107_v44, 0.0  ;;  %v8111_v59 = vpop.f32.mrf.mxu0  ;;  %v8237_v50 = vpop.f32.mrf.mxu1 }
 0x4d4   : > { %v10772_v29 = vsel %vm10694_vm11, %v10649_v31, %v10771_v19  ;;  %v8302_v18 = vmax.f32 %v8110_v53, 0.0  ;;  %v8333_v39 = vmax.f32 %v8235_v57, 0.0  ;;  %v8238_v9 = vadd.f32 %v16123_v28, %v8237_v50 }
 0x4d5   : > { %v10812_v36 = vpack.c.b16 %v10772_v29, %v10772_v29  ;;  %v8420_v32 = vsel %vm7895_vm1, %v8330_v55, -inf  ;;  %v16283_v7 = vsel %vm7895_vm1, %v8299_v41, -inf  ;;  %v8370_v20 = vsel %vm7895_vm1, %v8301_v42, -inf  ;;  %v8239_v8 = vpop.f32.mrf.mxu1 }
 0x4d6   : > { %v8371_v6 = vmax.f32 %v16248_v14, %v8370_v20  ;;  %v8373_v51 = vsel %vm7895_vm1, %v8302_v18, -inf  ;;  %v8418_v11 = vsel %vm7895_vm1, %v8333_v39, -inf  ;;  %v8334_v38 = vmax.f32 %v8238_v9, 0.0 }
 0x4d7   : > { %10844 = vst.msk [vmem:[%s11922_s24 + $0x2c] sm:$0xf] %vm254_vm0, %v10812_v36  ;;  %v16292_v27 = vsel %vm7895_vm1, %v8300_v0, -inf  ;;  %v16295_v2 = vsel %vm7895_vm1, %v8331_v30, -inf  ;;  %v8374_v3 = vmax.f32 %v16251_v21, %v8373_v51  ;;  %v16298_v52 = vmax.f32 %v8417_v54, %v8418_v11 }
 0x4d8   : > { %v8332_v61 = vmax.f32 %v16277_v1, 0.0  ;;  %v8609_v14 = vcombine.high %v8371_v6, %v8371_v6  ;;  %v8616_v60 = vrot.slane %v8371_v6, %v15524_v16  ;;  %v8421_v63 = vsel %vm7895_vm1, %v8334_v38, -inf }
 0x4d9   : > { %v11572_v45 = vld [vmem:[#allocation3 + $0x1f4] ss:$8 sps:$4 sm:$0xff]   ;;  %v8626_v26 = vcombine.high %v8374_v3, %v8374_v3  ;;  %v8633_v15 = vrot.slane %v8374_v3, %v15524_v16  ;;  %v8881_v23 = vcombine.high %v16298_v52, %v16298_v52  ;;  %v16308_v21 = vrot.slane %v16298_v52, %v15524_v16 }
 0x4da   : > { %v8623_v13 = vrot.slane %v8609_v14, %v15524_v16  ;;  %v8624_v48 = vcombine.high %v8616_v60, %v8616_v60  ;;  %v9370_v34 = vsel %vm9145_vm2, %v8616_v60, -inf  ;;  %v16312_v43 = vmax.f32 %v8420_v32, %v8421_v63  ;;  %11127 = vmatprep.mubr.msk.bf16.mxu1 %vm7895_vm1, %v11572_v45 }
 0x4db   : > { %v9371_v40 = vrot.slane %v9370_v34, 4  ;;  %v8640_v33 = vrot.slane %v8626_v26, %v15524_v16  ;;  %v8641_v24 = vcombine.high %v8633_v15, %v8633_v15  ;;  %v9398_v17 = vsel %vm9145_vm2, %v8633_v15, -inf  ;;  %8273 = vmatmul.mubr.bf16.gmra.mxu1 %v11574_v46 }
 0x4dc   : > { %v8625_v47 = vcombine.high %v8623_v13, %v8623_v13  ;;  %v9377_v54 = vsel %vm9145_vm2, %v8624_v48, -inf  ;;  %v9384_v62 = vsel %vm9145_vm2, %v8623_v13, -inf  ;;  %v9399_v55 = vrot.slane %v9398_v17, 4 }
 0x4dd   : > { %v9372_v22 = vmax.f32 %v9370_v34, %v9371_v40  ;;  %v9378_v56 = vrot.slane %v9377_v54, 4  ;;  %v9385_v4 = vrot.slane %v9384_v62, 4  ;;  %v8642_v25 = vcombine.high %v8640_v33, %v8640_v33 }
 0x4de   : > { %v9391_v5 = vsel %vm9145_vm2, %v8625_v47, -inf  ;;  %v9400_v58 = vmax.f32 %v9398_v17, %v9399_v55  ;;  %v9405_v10 = vsel %vm9145_vm2, %v8641_v24, -inf  ;;  %v9412_v37 = vsel %vm9145_vm2, %v8640_v33, -inf }
 0x4df   : > { %v9373_v41 = vrot.slane %v9372_v22, 2  ;;  %v9379_v0 = vmax.f32 %v9377_v54, %v9378_v56  ;;  %v9386_v44 = vmax.f32 %v9384_v62, %v9385_v4  ;;  %v9392_v12 = vrot.slane %v9391_v5, 4 }
 0x4e0   : > { %v9401_v35 = vrot.slane %v9400_v58, 2  ;;  %v9406_v31 = vrot.slane %v9405_v10, 4  ;;  %v9413_v49 = vrot.slane %v9412_v37, 4  ;;  %v9419_v53 = vsel %vm9145_vm2, %v8642_v25, -inf }
 0x4e1   : > { %v9374_v57 = vmax.f32 %v9372_v22, %v9373_v41  ;;  %v9380_v19 = vrot.slane %v9379_v0, 2  ;;  %v9387_v30 = vrot.slane %v9386_v44, 2  ;;  %v9393_v42 = vmax.f32 %v9391_v5, %v9392_v12 }
 0x4e2   : > { %v9402_v59 = vmax.f32 %v9400_v58, %v9401_v35  ;;  %v9407_v50 = vmax.f32 %v9405_v10, %v9406_v31  ;;  %v9414_v29 = vmax.f32 %v9412_v37, %v9413_v49  ;;  %v9420_v18 = vrot.slane %v9419_v53, 4 }
 0x4e3   : > { %v9375_v39 = vrot.slane %v9374_v57, 1  ;;  %v9381_v9 = vmax.f32 %v9379_v0, %v9380_v19  ;;  %v9388_v36 = vmax.f32 %v9386_v44, %v9387_v30  ;;  %v9394_v32 = vrot.slane %v9393_v42, 2 }
 0x4e4   : > { %v9403_v20 = vrot.slane %v9402_v59, 1  ;;  %v9408_v8 = vrot.slane %v9407_v50, 2  ;;  %v9415_v6 = vrot.slane %v9414_v29, 2  ;;  %v9421_v51 = vmax.f32 %v9419_v53, %v9420_v18 }
 0x4e5   : > { %v9376_v11 = vmax.f32 %v9374_v57, %v9375_v39  ;;  %v9382_v38 = vrot.slane %v9381_v9, 1  ;;  %v9389_v3 = vrot.slane %v9388_v36, 1  ;;  %v9395_v14 = vmax.f32 %v9393_v42, %v9394_v32 }
 0x4e6   : > { %v9404_v60 = vmax.f32 %v9402_v59, %v9403_v20  ;;  %v9409_v63 = vmax.f32 %v9407_v50, %v9408_v8  ;;  %v9416_v45 = vmax.f32 %v9414_v29, %v9415_v6  ;;  %v9422_v46 = vrot.slane %v9421_v51, 2 }
 0x4e7   : > { %v9383_v26 = vmax.f32 %v9381_v9, %v9382_v38  ;;  %v9390_v15 = vmax.f32 %v9388_v36, %v9389_v3  ;;  %v9396_v13 = vrot.slane %v9395_v14, 1  ;;  %v11300_v48 = vpack.c.bf16 %v9376_v11, %v9376_v11 }
 0x4e8   : > { %v9410_v34 = vrot.slane %v9409_v63, 1  ;;  %v9417_v40 = vrot.slane %v9416_v45, 1  ;;  %v9423_v33 = vmax.f32 %v9421_v51, %v9422_v46  ;;  %v11304_v24 = vpack.c.bf16 %v9404_v60, %v9404_v60 }
 0x4e9   : > { %v9397_v17 = vmax.f32 %v9395_v14, %v9396_v13  ;;  %v11301_v47 = vpack.c.bf16 %v9383_v26, %v9383_v26  ;;  %v11302_v54 = vpack.c.bf16 %v9390_v15, %v9390_v15  ;;  %v10586_v62 = vunpack.c.l.b16 %v11300_v48 }
 0x4ea   : > { %v9411_v55 = vmax.f32 %v9409_v63, %v9410_v34  ;;  %v9418_v22 = vmax.f32 %v9416_v45, %v9417_v40  ;;  %v9424_v56 = vrot.slane %v9423_v33, 1  ;;  %v10590_v4 = vunpack.c.l.b16 %v11304_v24 }
 0x4eb   : > { %v11303_v25 = vpack.c.bf16 %v9397_v17, %v9397_v17  ;;  %v10587_v5 = vunpack.c.l.b16 %v11301_v47  ;;  %v10588_v58 = vunpack.c.l.b16 %v11302_v54  ;;  %v8895_v10 = vrot.slane %v8881_v23, %v15524_v16 }
 0x4ec   : > { %v9425_v37 = vmax.f32 %v9423_v33, %v9424_v56  ;;  %v11305_v41 = vpack.c.bf16 %v9411_v55, %v9411_v55  ;;  %v11306_v0 = vpack.c.bf16 %v9418_v22, %v9418_v22  ;;  %v8896_v44 = vcombine.high %v16308_v21, %v16308_v21 }
 0x4ed   : > { %v10589_v12 = vunpack.c.l.b16 %v11303_v25  ;;  %v10717_v35 = vsel %vm10682_vm3, %v10587_v5, %v10586_v62  ;;  %v8897_v31 = vcombine.high %v8895_v10, %v8895_v10  ;;  %v9818_v49 = vsel %vm9145_vm2, %v16308_v21, -inf }
 0x4ee   : > { %v10718_v53 = vsel %vm10684_vm4, %v10588_v58, %v10717_v35  ;;  %v11307_v57 = vpack.c.bf16 %v9425_v37, %v9425_v37  ;;  %v10591_v19 = vunpack.c.l.b16 %v11305_v41  ;;  %v10592_v30 = vunpack.c.l.b16 %v11306_v0 }
 0x4ef   : > { %v10719_v52 = vsel %vm10686_vm5, %v10589_v12, %v10718_v53  ;;  %v9819_v23 = vrot.slane %v9818_v49, 4  ;;  %v9825_v42 = vsel %vm9145_vm2, %v8896_v44, -inf  ;;  %v9832_v59 = vsel %vm9145_vm2, %v8895_v10, -inf }
 0x4f0   : > { %v10593_v50 = vunpack.c.l.b16 %v11307_v57  ;;  %v10720_v29 = vsel %vm10688_vm7, %v10590_v4, %v10719_v52  ;;  %v9826_v18 = vrot.slane %v9825_v42, 4  ;;  %v9833_v39 = vrot.slane %v9832_v59, 4 }
 0x4f1   : > { %v10721_v9 = vsel %vm10690_vm9, %v10591_v19, %v10720_v29  ;;  %v9820_v21 = vmax.f32 %v9818_v49, %v9819_v23  ;;  %v9839_v36 = vsel %vm9145_vm2, %v8897_v31, -inf  ;;  %v8898_v32 = vcombine.high %v16312_v43, %v16312_v43 }
 0x4f2   : > { %v10722_v20 = vsel %vm10692_vm10, %v10592_v30, %v10721_v9  ;;  %v9827_v8 = vmax.f32 %v9825_v42, %v9826_v18  ;;  %v9834_v6 = vmax.f32 %v9832_v59, %v9833_v39  ;;  %v9840_v51 = vrot.slane %v9839_v36, 4 }
 0x4f3   : > { %v10723_v11 = vsel %vm10694_vm11, %v10593_v50, %v10722_v20  ;;  %v9821_v38 = vrot.slane %v9820_v21, 2  ;;  %v8905_v3 = vrot.slane %v16312_v43, %v15524_v16  ;;  %v8912_v14 = vrot.slane %v8898_v32, %v15524_v16 }
 0x4f4   : > { %v10805_v60 = vpack.c.b16 %v10723_v11, %v10723_v11  ;;  %v9828_v63 = vrot.slane %v9827_v8, 2  ;;  %v9835_v45 = vrot.slane %v9834_v6, 2  ;;  %v9841_v46 = vmax.f32 %v9839_v36, %v9840_v51 }
 0x4f5   : > { %v9822_v26 = vmax.f32 %v9820_v21, %v9821_v38  ;;  %v8913_v15 = vcombine.high %v8905_v3, %v8905_v3  ;;  %v8914_v13 = vcombine.high %v8912_v14, %v8912_v14  ;;  %v9846_v48 = vsel %vm9145_vm2, %v8905_v3, -inf }
 0x4f6   : > { %10837 = vst.msk [vmem:[%s11922_s24 + $0x10] sm:$0xf] %vm254_vm0, %v10805_v60  ;;  %v9829_v34 = vmax.f32 %v9827_v8, %v9828_v63  ;;  %v9836_v40 = vmax.f32 %v9834_v6, %v9835_v45  ;;  %v9842_v33 = vrot.slane %v9841_v46, 2  ;;  %v9847_v24 = vrot.slane %v9846_v48, 4 }
 0x4f7   : > { %v9823_v17 = vrot.slane %v9822_v26, 1  ;;  %v9853_v43 = vsel %vm9145_vm2, %v8913_v15, -inf  ;;  %v9860_v47 = vsel %vm9145_vm2, %v8912_v14, -inf  ;;  %v9867_v54 = vsel %vm9145_vm2, %v8914_v13, -inf }
 0x4f8   : > { %v9830_v62 = vrot.slane %v9829_v34, 1  ;;  %v9837_v55 = vrot.slane %v9836_v40, 1  ;;  %v9843_v22 = vmax.f32 %v9841_v46, %v9842_v33  ;;  %v9848_v56 = vmax.f32 %v9846_v48, %v9847_v24 }
 0x4f9   : > { %v9824_v4 = vmax.f32 %v9822_v26, %v9823_v17  ;;  %v9854_v25 = vrot.slane %v9853_v43, 4  ;;  %v9861_v5 = vrot.slane %v9860_v47, 4  ;;  %v9868_v58 = vrot.slane %v9867_v54, 4 }
 0x4fa   : > { %v9831_v10 = vmax.f32 %v9829_v34, %v9830_v62  ;;  %v9838_v37 = vmax.f32 %v9836_v40, %v9837_v55  ;;  %v9844_v41 = vrot.slane %v9843_v22, 1  ;;  %v9849_v0 = vrot.slane %v9848_v56, 2 }
 0x4fb   : > { %v11364_v44 = vpack.c.bf16 %v9824_v4, %v9824_v4  ;;  %v9855_v12 = vmax.f32 %v9853_v43, %v9854_v25  ;;  %v9862_v35 = vmax.f32 %v9860_v47, %v9861_v5  ;;  %v9869_v31 = vmax.f32 %v9867_v54, %v9868_v58 }
 0x4fc   : > { %v9845_v49 = vmax.f32 %v9843_v22, %v9844_v41  ;;  %v11365_v53 = vpack.c.bf16 %v9831_v10, %v9831_v10  ;;  %v11366_v57 = vpack.c.bf16 %v9838_v37, %v9838_v37  ;;  %v9850_v19 = vmax.f32 %v9848_v56, %v9849_v0 }
 0x4fd   : > { %v10650_v30 = vunpack.c.l.b16 %v11364_v44  ;;  %v9856_v52 = vrot.slane %v9855_v12, 2  ;;  %v9863_v23 = vrot.slane %v9862_v35, 2  ;;  %v9870_v42 = vrot.slane %v9869_v31, 2  ;;  %v8114_v59 = vpop.f32.mrf.mxu0 }
 0x4fe   : > { %v11367_v50 = vpack.c.bf16 %v9845_v49, %v9845_v49  ;;  %v10651_v29 = vunpack.c.l.b16 %v11365_v53  ;;  %v10652_v18 = vunpack.c.l.b16 %v11366_v57  ;;  %v9851_v39 = vrot.slane %v9850_v19, 1 }
 0x4ff   : > { %v9857_v9 = vmax.f32 %v9855_v12, %v9856_v52  ;;  %v9864_v21 = vmax.f32 %v9862_v35, %v9863_v23  ;;  %v9871_v36 = vmax.f32 %v9869_v31, %v9870_v42  ;;  %v8115_v32 = vadd.f32 %v16123_v28, %v8114_v59  ;;  %v8116_v20 = vpop.f32.mrf.mxu0  ;;  %v8242_v8 = vpop.f32.mrf.mxu1 }
 0x500   : > { %v10653_v6 = vunpack.c.l.b16 %v11367_v50  ;;  %v10773_v51 = vsel %vm10682_vm3, %v10651_v29, %v10650_v30  ;;  %v9852_v11 = vmax.f32 %v9850_v19, %v9851_v39  ;;  %v8243_v38 = vadd.f32 %v16123_v28, %v8242_v8 }
 0x501   : > { %v10774_v3 = vsel %vm10684_vm4, %v10652_v18, %v10773_v51  ;;  %v9858_v14 = vrot.slane %v9857_v9, 1  ;;  %v9865_v60 = vrot.slane %v9864_v21, 1  ;;  %v9872_v63 = vrot.slane %v9871_v36, 1  ;;  %v8117_v45 = vpop.f32.mrf.mxu0  ;;  %v8244_v46 = vpop.f32.mrf.mxu1 }
 0x502   : > { %v11368_v26 = vpack.c.bf16 %v9852_v11, %v9852_v11  ;;  %v10775_v15 = vsel %vm10686_vm5, %v10653_v6, %v10774_v3  ;;  %v8303_v13 = vmax.f32 %v8115_v32, 0.0  ;;  %v8118_v48 = vadd.f32 %v16123_v28, %v8117_v45 }
 0x503   : > { %v9859_v34 = vmax.f32 %v9857_v9, %v9858_v14  ;;  %v9866_v40 = vmax.f32 %v9864_v21, %v9865_v60  ;;  %v9873_v33 = vmax.f32 %v9871_v36, %v9872_v63  ;;  %v8335_v24 = vmax.f32 %v8243_v38, 0.0  ;;  %v8119_v17 = vpop.f32.mrf.mxu0  ;;  %v8245_v43 = vpop.f32.mrf.mxu1 }
 0x504   : > { %v10654_v47 = vunpack.c.l.b16 %v11368_v26  ;;  %v8376_v54 = vsel %vm7895_vm1, %v8303_v13, -inf  ;;  %v8304_v62 = vmax.f32 %v8118_v48, 0.0  ;;  %v8246_v55 = vadd.f32 %v16123_v28, %v8245_v43 }
 0x505   : > { %v11369_v22 = vpack.c.bf16 %v9859_v34, %v9859_v34  ;;  %v11370_v56 = vpack.c.bf16 %v9866_v40, %v9866_v40  ;;  %v11371_v4 = vpack.c.bf16 %v9873_v33, %v9873_v33  ;;  %v8377_v25 = vmax.f32 %v16283_v7, %v8376_v54  ;;  %v8247_v5 = vpop.f32.mrf.mxu1 }
 0x506   : > { %v10776_v58 = vsel %vm10688_vm7, %v10654_v47, %v10775_v15  ;;  %v8379_v10 = vsel %vm7895_vm1, %v8304_v62, -inf  ;;  %v8424_v37 = vsel %vm7895_vm1, %v8335_v24, -inf  ;;  %v8336_v41 = vmax.f32 %v8246_v55, 0.0 }
 0x507   : > { %v10655_v0 = vunpack.c.l.b16 %v11369_v22  ;;  %v10656_v44 = vunpack.c.l.b16 %v11370_v56  ;;  %v10657_v12 = vunpack.c.l.b16 %v11371_v4  ;;  %v8643_v35 = vcombine.high %v8377_v25, %v8377_v25 }
 0x508   : > { %v8426_v28 = vsel %vm7895_vm1, %v8332_v61, -inf  ;;  %v8650_v31 = vrot.slane %v8377_v25, %v15524_v16  ;;  %v8380_v7 = vmax.f32 %v16292_v27, %v8379_v10  ;;  %v8427_v49 = vsel %vm7895_vm1, %v8336_v41, -inf }
 0x509   : > { %v10777_v53 = vsel %vm10690_vm9, %v10655_v0, %v10776_v58  ;;  %v8657_v57 = vrot.slane %v8643_v35, %v15524_v16  ;;  %v16373_v19 = vmax.f32 %v16295_v2, %v8424_v37  ;;  %v16375_v30 = vmax.f32 %v8426_v28, %v8427_v49 }
 0x50a   : > { %v10778_v52 = vsel %vm10692_vm10, %v10656_v44, %v10777_v53  ;;  %v8658_v1 = vcombine.high %v8650_v31, %v8650_v31  ;;  %v9426_v61 = vsel %vm9145_vm2, %v8650_v31, -inf  ;;  %v8660_v23 = vcombine.high %v8380_v7, %v8380_v7 }
 0x50b   : > { %v10779_v27 = vsel %vm10694_vm11, %v10657_v12, %v10778_v52  ;;  %v8659_v42 = vcombine.high %v8657_v57, %v8657_v57  ;;  %v9427_v59 = vrot.slane %v9426_v61, 4  ;;  %v9440_v50 = vsel %vm9145_vm2, %v8657_v57, -inf }
 0x50c   : > { %v10813_v29 = vpack.c.b16 %v10779_v27, %v10779_v27  ;;  %v9433_v18 = vsel %vm9145_vm2, %v8658_v1, -inf  ;;  %v9441_v2 = vrot.slane %v9440_v50, 4  ;;  %v8667_v39 = vrot.slane %v8380_v7, %v15524_v16 }
 0x50d   : > { %v9428_v9 = vmax.f32 %v9426_v61, %v9427_v59  ;;  %v9434_v21 = vrot.slane %v9433_v18, 4  ;;  %v9447_v36 = vsel %vm9145_vm2, %v8659_v42, -inf  ;;  %v8674_v32 = vrot.slane %v8660_v23, %v15524_v16 }
 0x50e   : > { %10845 = vst.msk [vmem:[%s11922_s24 + $0x30] sm:$0xf] %vm254_vm0, %v10813_v29  ;;  %v9442_v20 = vmax.f32 %v9440_v50, %v9441_v2  ;;  %v9448_v8 = vrot.slane %v9447_v36, 4  ;;  %v8675_v6 = vcombine.high %v8667_v39, %v8667_v39  ;;  %v9454_v51 = vsel %vm9145_vm2, %v8667_v39, -inf }
 0x50f   : > { %v9429_v11 = vrot.slane %v9428_v9, 2  ;;  %v9435_v38 = vmax.f32 %v9433_v18, %v9434_v21  ;;  %v8676_v3 = vcombine.high %v8674_v32, %v8674_v32  ;;  %v9455_v14 = vrot.slane %v9454_v51, 4 }
 0x510   : > { %v9443_v60 = vrot.slane %v9442_v20, 2  ;;  %v9449_v63 = vmax.f32 %v9447_v36, %v9448_v8  ;;  %v9461_v45 = vsel %vm9145_vm2, %v8675_v6, -inf  ;;  %v9468_v46 = vsel %vm9145_vm2, %v8674_v32, -inf  ;;  %v16390_v26 = vpop.f32.mrf.mxu0 }
 0x511   : > { %v9430_v15 = vmax.f32 %v9428_v9, %v9429_v11  ;;  %v9436_v13 = vrot.slane %v9435_v38, 2  ;;  %v9456_v48 = vmax.f32 %v9454_v51, %v9455_v14  ;;  %v9462_v34 = vrot.slane %v9461_v45, 4 }
 0x512   : > { %v9444_v40 = vmax.f32 %v9442_v20, %v9443_v60  ;;  %v9450_v33 = vrot.slane %v9449_v63, 2  ;;  %v9469_v24 = vrot.slane %v9468_v46, 4  ;;  %v9475_v17 = vsel %vm9145_vm2, %v8676_v3, -inf  ;;  %v8124_v43 = vpop.f32.mrf.mxu0  ;;  %v16393_v47 = vpop.f32.mrf.mxu1 }
 0x513   : > { %v9431_v54 = vrot.slane %v9430_v15, 1  ;;  %v9437_v62 = vmax.f32 %v9435_v38, %v9436_v13  ;;  %v9457_v55 = vrot.slane %v9456_v48, 2  ;;  %v9463_v22 = vmax.f32 %v9461_v45, %v9462_v34 }
 0x514   : > { %v9445_v56 = vrot.slane %v9444_v40, 1  ;;  %v9451_v4 = vmax.f32 %v9449_v63, %v9450_v33  ;;  %v9470_v25 = vmax.f32 %v9468_v46, %v9469_v24  ;;  %v9476_v5 = vrot.slane %v9475_v17, 4  ;;  %v16395_v58 = vpop.f32.mrf.mxu0  ;;  %v8252_v10 = vpop.f32.mrf.mxu1 }
 0x515   : > { %v9432_v37 = vmax.f32 %v9430_v15, %v9431_v54  ;;  %v9438_v41 = vrot.slane %v9437_v62, 1  ;;  %v9458_v0 = vmax.f32 %v9456_v48, %v9457_v55  ;;  %v9464_v44 = vrot.slane %v9463_v22, 2 }
 0x516   : > { %v9446_v12 = vmax.f32 %v9444_v40, %v9445_v56  ;;  %v9452_v35 = vrot.slane %v9451_v4, 1  ;;  %v9471_v28 = vrot.slane %v9470_v25, 2  ;;  %v9477_v31 = vmax.f32 %v9475_v17, %v9476_v5  ;;  %v8127_v7 = vpop.f32.mrf.mxu0  ;;  %v16397_v49 = vpop.f32.mrf.mxu1 }
 0x517   : > { %v9439_v53 = vmax.f32 %v9437_v62, %v9438_v41  ;;  %v11308_v57 = vpack.c.bf16 %v9432_v37, %v9432_v37  ;;  %v9459_v52 = vrot.slane %v9458_v0, 1  ;;  %v9465_v1 = vmax.f32 %v9463_v22, %v9464_v44 }
 0x518   : > { %v9453_v61 = vmax.f32 %v9451_v4, %v9452_v35  ;;  %v11310_v23 = vpack.c.bf16 %v9446_v12, %v9446_v12  ;;  %v9472_v27 = vmax.f32 %v9470_v25, %v9471_v28  ;;  %v9478_v42 = vrot.slane %v9477_v31, 2  ;;  %v8255_v59 = vpop.f32.mrf.mxu1 }
 0x519   : > { %v11309_v50 = vpack.c.bf16 %v9439_v53, %v9439_v53  ;;  %v10594_v29 = vunpack.c.l.b16 %v11308_v57  ;;  %v9460_v18 = vmax.f32 %v9458_v0, %v9459_v52  ;;  %v9466_v2 = vrot.slane %v9465_v1, 1 }
 0x51a   : > { %v11311_v39 = vpack.c.bf16 %v9453_v61, %v9453_v61  ;;  %v10596_v9 = vunpack.c.l.b16 %v11310_v23  ;;  %v9473_v21 = vrot.slane %v9472_v27, 1  ;;  %v9479_v36 = vmax.f32 %v9477_v31, %v9478_v42 }
 0x51b   : > { %v10595_v32 = vunpack.c.l.b16 %v11309_v50  ;;  %v9467_v20 = vmax.f32 %v9465_v1, %v9466_v2  ;;  %v11312_v8 = vpack.c.bf16 %v9460_v18, %v9460_v18  ;;  %v8915_v6 = vcombine.high %v16373_v19, %v16373_v19 }
 0x51c   : > { %v10597_v51 = vunpack.c.l.b16 %v11311_v39  ;;  %v9474_v11 = vmax.f32 %v9472_v27, %v9473_v21  ;;  %v9480_v38 = vrot.slane %v9479_v36, 1  ;;  %v8922_v3 = vrot.slane %v16373_v19, %v15524_v16 }
 0x51d   : > { %v10724_v14 = vsel %vm10682_vm3, %v10595_v32, %v10594_v29  ;;  %v11313_v60 = vpack.c.bf16 %v9467_v20, %v9467_v20  ;;  %v10598_v63 = vunpack.c.l.b16 %v11312_v8  ;;  %v8929_v45 = vrot.slane %v8915_v6, %v15524_v16 }
 0x51e   : > { %v10725_v46 = vsel %vm10684_vm4, %v10596_v9, %v10724_v14  ;;  %v9481_v15 = vmax.f32 %v9479_v36, %v9480_v38  ;;  %v11314_v13 = vpack.c.bf16 %v9474_v11, %v9474_v11  ;;  %v8930_v48 = vcombine.high %v8922_v3, %v8922_v3 }
 0x51f   : > { %v10599_v34 = vunpack.c.l.b16 %v11313_v60  ;;  %v10726_v40 = vsel %vm10686_vm5, %v10597_v51, %v10725_v46  ;;  %v8931_v33 = vcombine.high %v8929_v45, %v8929_v45  ;;  %v9874_v24 = vsel %vm9145_vm2, %v8922_v3, -inf }
 0x520   : > { %v11315_v17 = vpack.c.bf16 %v9481_v15, %v9481_v15  ;;  %v10600_v43 = vunpack.c.l.b16 %v11314_v13  ;;  %v10727_v19 = vsel %vm10688_vm7, %v10598_v63, %v10726_v40  ;;  %v9875_v54 = vrot.slane %v9874_v24, 4 }
 0x521   : > { %v10728_v62 = vsel %vm10690_vm9, %v10599_v34, %v10727_v19  ;;  %v9881_v55 = vsel %vm9145_vm2, %v8930_v48, -inf  ;;  %v9888_v22 = vsel %vm9145_vm2, %v8929_v45, -inf  ;;  %v9895_v56 = vsel %vm9145_vm2, %v8931_v33, -inf }
 0x522   : > { %v10601_v4 = vunpack.c.l.b16 %v11315_v17  ;;  %v10729_v25 = vsel %vm10692_vm10, %v10600_v43, %v10728_v62  ;;  %v9876_v5 = vmax.f32 %v9874_v24, %v9875_v54  ;;  %v9882_v10 = vrot.slane %v9881_v55, 4 }
 0x523   : > { %v9889_v37 = vrot.slane %v9888_v22, 4  ;;  %v9896_v41 = vrot.slane %v9895_v56, 4  ;;  %v8932_v0 = vcombine.high %v16375_v30, %v16375_v30  ;;  %v8939_v44 = vrot.slane %v16375_v30, %v15524_v16 }
 0x524   : > { %v10730_v12 = vsel %vm10694_vm11, %v10601_v4, %v10729_v25  ;;  %v9877_v35 = vrot.slane %v9876_v5, 2  ;;  %v9883_v28 = vmax.f32 %v9881_v55, %v9882_v10 }
 0x525   : > { %v10806_v31 = vpack.c.b16 %v10730_v12, %v10730_v12  ;;  %v9890_v7 = vmax.f32 %v9888_v22, %v9889_v37  ;;  %v9897_v53 = vmax.f32 %v9895_v56, %v9896_v41  ;;  %v8946_v57 = vrot.slane %v8932_v0, %v15524_v16 }
 0x526   : > { %v9878_v52 = vmax.f32 %v9876_v5, %v9877_v35  ;;  %v9884_v1 = vrot.slane %v9883_v28, 2  ;;  %v8947_v61 = vcombine.high %v8939_v44, %v8939_v44  ;;  %v9902_v23 = vsel %vm9145_vm2, %v8939_v44, -inf }
 0x527   : > { %10838 = vst.msk [vmem:[%s11922_s24 + $0x14] sm:$0xf] %vm254_vm0, %v10806_v31  ;;  %v9891_v27 = vrot.slane %v9890_v7, 2  ;;  %v9898_v42 = vrot.slane %v9897_v53, 2  ;;  %v8948_v59 = vcombine.high %v8946_v57, %v8946_v57  ;;  %v9903_v30 = vrot.slane %v9902_v23, 4 }
 0x528   : > { %v9879_v50 = vrot.slane %v9878_v52, 1  ;;  %v9885_v29 = vmax.f32 %v9883_v28, %v9884_v1  ;;  %v9909_v18 = vsel %vm9145_vm2, %v8947_v61, -inf  ;;  %v9916_v2 = vsel %vm9145_vm2, %v8946_v57, -inf }
 0x529   : > { %v9892_v39 = vmax.f32 %v9890_v7, %v9891_v27  ;;  %v9899_v9 = vmax.f32 %v9897_v53, %v9898_v42  ;;  %v9904_v21 = vmax.f32 %v9902_v23, %v9903_v30  ;;  %v9910_v36 = vrot.slane %v9909_v18, 4 }
 0x52a   : > { %v9880_v32 = vmax.f32 %v9878_v52, %v9879_v50  ;;  %v9886_v20 = vrot.slane %v9885_v29, 1  ;;  %v9917_v8 = vrot.slane %v9916_v2, 4  ;;  %v9923_v6 = vsel %vm9145_vm2, %v8948_v59, -inf }
 0x52b   : > { %v9893_v51 = vrot.slane %v9892_v39, 1  ;;  %v9900_v11 = vrot.slane %v9899_v9, 1  ;;  %v9905_v38 = vrot.slane %v9904_v21, 2  ;;  %v9911_v3 = vmax.f32 %v9909_v18, %v9910_v36 }
 0x52c   : > { %v9887_v14 = vmax.f32 %v9885_v29, %v9886_v20  ;;  %v11372_v60 = vpack.c.bf16 %v9880_v32, %v9880_v32  ;;  %v9918_v63 = vmax.f32 %v9916_v2, %v9917_v8  ;;  %v9924_v45 = vrot.slane %v9923_v6, 4  ;;  %v16438_v8 = vld [vmem:[%s16663_s2] ss:$0 sm:$0xff] }
 0x52d   : > { %v9894_v46 = vmax.f32 %v9892_v39, %v9893_v51  ;;  %v9901_v15 = vmax.f32 %v9899_v9, %v9900_v11  ;;  %v9906_v13 = vmax.f32 %v9904_v21, %v9905_v38  ;;  %v9912_v48 = vrot.slane %v9911_v3, 2 }
 0x52e   : > { %v11373_v34 = vpack.c.bf16 %v9887_v14, %v9887_v14  ;;  %v9919_v40 = vrot.slane %v9918_v63, 2  ;;  %v9925_v33 = vmax.f32 %v9923_v6, %v9924_v45  ;;  %v10658_v54 = vunpack.c.l.b16 %v11372_v60 }
 0x52f   : > { %v11374_v24 = vpack.c.bf16 %v9894_v46, %v9894_v46  ;;  %v11375_v17 = vpack.c.bf16 %v9901_v15, %v9901_v15  ;;  %v9907_v43 = vrot.slane %v9906_v13, 1  ;;  %v9913_v19 = vmax.f32 %v9911_v3, %v9912_v48 }
 0x530   : > { %v10659_v62 = vunpack.c.l.b16 %v11373_v34  ;;  %v9920_v55 = vmax.f32 %v9918_v63, %v9919_v40  ;;  %v9926_v22 = vrot.slane %v9925_v33, 2  ;;  %v8123_v6 = vadd.f32 %v16438_v8, %v16390_v26 }
 0x531   : > { %v10660_v56 = vunpack.c.l.b16 %v11374_v24  ;;  %v10661_v4 = vunpack.c.l.b16 %v11375_v17  ;;  %v9908_v25 = vmax.f32 %v9906_v13, %v9907_v43  ;;  %v9914_v5 = vrot.slane %v9913_v19, 1 }
 0x532   : > { %v10780_v10 = vsel %vm10682_vm3, %v10659_v62, %v10658_v54  ;;  %v9921_v37 = vrot.slane %v9920_v55, 1  ;;  %v9927_v41 = vmax.f32 %v9925_v33, %v9926_v22  ;;  %v8305_v51 = vmax.f32 %v8123_v6, 0.0 }
 0x533   : > { %v10781_v0 = vsel %vm10684_vm4, %v10660_v56, %v10780_v10  ;;  %v9915_v44 = vmax.f32 %v9913_v19, %v9914_v5  ;;  %v11376_v12 = vpack.c.bf16 %v9908_v25, %v9908_v25  ;;  %v8126_v11 = vadd.f32 %v16438_v8, %v16395_v58 }
 0x534   : > { %v9922_v35 = vmax.f32 %v9920_v55, %v9921_v37  ;;  %v9928_v28 = vrot.slane %v9927_v41, 1  ;;  %v10782_v31 = vsel %vm10686_vm5, %v10661_v4, %v10781_v0  ;;  %v8251_v38 = vadd.f32 %v16438_v8, %v16393_v47 }
 0x535   : > { %v11377_v7 = vpack.c.bf16 %v9915_v44, %v9915_v44  ;;  %v10662_v53 = vunpack.c.l.b16 %v11376_v12  ;;  %v8254_v14 = vadd.f32 %v16438_v8, %v16397_v49  ;;  %v8381_v13 = vsel %vm7895_vm1, %v8305_v51, -inf }
 0x536   : > { %v9929_v57 = vmax.f32 %v9927_v41, %v9928_v28  ;;  %v11378_v52 = vpack.c.bf16 %v9922_v35, %v9922_v35  ;;  %v8306_v58 = vmax.f32 %v8126_v11, 0.0  ;;  %v8337_v48 = vmax.f32 %v8251_v38, 0.0 }
 0x537   : > { %v10663_v1 = vunpack.c.l.b16 %v11377_v7  ;;  %v10783_v61 = vsel %vm10688_vm7, %v10662_v53, %v10782_v31  ;;  %v8130_v23 = vpop.f32.mrf.mxu0  ;;  %v8338_v47 = vmax.f32 %v8254_v14, 0.0 }
 0x538   : > { %v11379_v27 = vpack.c.bf16 %v9929_v57, %v9929_v57  ;;  %v10664_v42 = vunpack.c.l.b16 %v11378_v52  ;;  %v8131_v45 = vadd.f32 %v16438_v8, %v8130_v23  ;;  %v8384_v55 = vsel %vm7895_vm1, %v8306_v58, -inf }
 0x539   : > { %v10784_v59 = vsel %vm10690_vm9, %v10663_v1, %v10783_v61  ;;  %v8132_v30 = vpop.f32.mrf.mxu0  ;;  %v16459_v4 = vsel %vm7895_vm1, %v8337_v48, -inf  ;;  %v16462_v25 = vsel %vm7895_vm1, %v8338_v47, -inf }
 0x53a   : > { %v10665_v50 = vunpack.c.l.b16 %v11379_v27  ;;  %v10785_v29 = vsel %vm10692_vm10, %v10664_v42, %v10784_v59  ;;  %v8307_v43 = vmax.f32 %v8131_v45, 0.0 }
 0x53b   : > { %v8133_v18 = vpop.f32.mrf.mxu0 }
 0x53c   : > { %v10786_v2 = vsel %vm10694_vm11, %v10665_v50, %v10785_v29  ;;  %v8134_v46 = vadd.f32 %v16438_v8, %v8133_v18  ;;  %v16468_v12 = vsel %vm7895_vm1, %v8307_v43, -inf }
 0x53d   : > { %v10814_v39 = vpack.c.b16 %v10786_v2, %v10786_v2  ;;  %v8135_v9 = vpop.f32.mrf.mxu0 }
 0x53e   : > { %v8308_v19 = vmax.f32 %v8134_v46, 0.0 }
 0x53f   : > { %10846 = vst.msk [vmem:[%s11922_s24 + $0x34] sm:$0xf] %vm254_vm0, %v10814_v39 }
 0x540   : > { %v16471_v35 = vsel %vm7895_vm1, %v8308_v19, -inf }
 0x54a   : > { %v8258_v21 = vpop.f32.mrf.mxu1 }
 0x54b   : > { %v8259_v26 = vadd.f32 %v16438_v8, %v8258_v21 }
 0x54c   : > { %v8260_v36 = vpop.f32.mrf.mxu1 }
 0x54d   : > { %v8339_v54 = vmax.f32 %v8259_v26, 0.0 }
 0x54e   : > { %v8261_v32 = vpop.f32.mrf.mxu1 }
 0x54f   : > { %v8262_v40 = vadd.f32 %v16438_v8, %v8261_v32  ;;  %v16474_v28 = vsel %vm7895_vm1, %v8339_v54, -inf }
 0x550   : > { %v8263_v20 = vpop.f32.mrf.mxu1 }
 0x551   : > { %v8340_v5 = vmax.f32 %v8262_v40, 0.0 }
 0x553   : > { %v16480_v59 = vsel %vm7895_vm1, %v8340_v5, -inf }
 0x576   : > { %v8138_v3 = vpop.f32.mrf.mxu0 }
 0x577   : > { %v8139_v60 = vadd.f32 %v16438_v8, %v8138_v3 }
 0x578   : > { %v8140_v63 = vpop.f32.mrf.mxu0 }
 0x579   : > { %v8309_v15 = vmax.f32 %v8139_v60, 0.0 }
 0x57a   : > { %v8141_v34 = vpop.f32.mrf.mxu0 }
 0x57b   : > { %v8382_v49 = vsel %vm7895_vm1, %v8309_v15, -inf  ;;  %v8142_v33 = vadd.f32 %v16438_v8, %v8141_v34 }
 0x57c   : > { %v8383_v24 = vmax.f32 %v8381_v13, %v8382_v49  ;;  %v8143_v17 = vpop.f32.mrf.mxu0 }
 0x57d   : > { %v8310_v62 = vmax.f32 %v8142_v33, 0.0 }
 0x57e   : > { %v8677_v22 = vcombine.high %v8383_v24, %v8383_v24  ;;  %v8684_v56 = vrot.slane %v8383_v24, %v15524_v16 }
 0x57f   : > { %v8385_v10 = vsel %vm7895_vm1, %v8310_v62, -inf }
 0x580   : > { %v8691_v37 = vrot.slane %v8677_v22, %v15524_v16  ;;  %v8692_v41 = vcombine.high %v8684_v56, %v8684_v56  ;;  %v9482_v0 = vsel %vm9145_vm2, %v8684_v56, -inf  ;;  %v8386_v44 = vmax.f32 %v8384_v55, %v8385_v10 }
 0x581   : > { %v9483_v31 = vrot.slane %v9482_v0, 4 }
 0x582   : > { %v8693_v7 = vcombine.high %v8691_v37, %v8691_v37  ;;  %v9489_v53 = vsel %vm9145_vm2, %v8692_v41, -inf  ;;  %v9496_v57 = vsel %vm9145_vm2, %v8691_v37, -inf  ;;  %v8694_v52 = vcombine.high %v8386_v44, %v8386_v44 }
 0x583   : > { %v9484_v1 = vmax.f32 %v9482_v0, %v9483_v31  ;;  %v9490_v61 = vrot.slane %v9489_v53, 4  ;;  %v9497_v23 = vrot.slane %v9496_v57, 4  ;;  %v8701_v27 = vrot.slane %v8386_v44, %v15524_v16  ;;  %v8266_v42 = vpop.f32.mrf.mxu1 }
 0x584   : > { %v9503_v30 = vsel %vm9145_vm2, %v8693_v7, -inf  ;;  %v8708_v50 = vrot.slane %v8694_v52, %v15524_v16  ;;  %v16485_v29 = vadd.f32 %v16438_v8, %v8266_v42 }
 0x585   : > { %v9485_v18 = vrot.slane %v9484_v1, 2  ;;  %v9491_v2 = vmax.f32 %v9489_v53, %v9490_v61  ;;  %v9498_v39 = vmax.f32 %v9496_v57, %v9497_v23  ;;  %v9504_v9 = vrot.slane %v9503_v30, 4  ;;  %v8268_v21 = vpop.f32.mrf.mxu1 }
 0x586   : > { %v8709_v36 = vcombine.high %v8701_v27, %v8701_v27  ;;  %v8710_v32 = vcombine.high %v8708_v50, %v8708_v50  ;;  %v9510_v20 = vsel %vm9145_vm2, %v8701_v27, -inf  ;;  %v9524_v6 = vsel %vm9145_vm2, %v8708_v50, -inf }
 0x587   : > { %v9486_v51 = vmax.f32 %v9484_v1, %v9485_v18  ;;  %v9492_v11 = vrot.slane %v9491_v2, 2  ;;  %v9499_v38 = vrot.slane %v9498_v39, 2  ;;  %v9505_v3 = vmax.f32 %v9503_v30, %v9504_v9  ;;  %v8269_v14 = vpop.f32.mrf.mxu1 }
 0x588   : > { %v9511_v60 = vrot.slane %v9510_v20, 4  ;;  %v9517_v63 = vsel %vm9145_vm2, %v8709_v36, -inf  ;;  %v9525_v45 = vrot.slane %v9524_v6, 4  ;;  %v9531_v46 = vsel %vm9145_vm2, %v8710_v32, -inf }
 0x589   : > { %v9487_v26 = vrot.slane %v9486_v51, 1  ;;  %v9493_v15 = vmax.f32 %v9491_v2, %v9492_v11  ;;  %v9500_v13 = vmax.f32 %v9498_v39, %v9499_v38  ;;  %v9506_v58 = vrot.slane %v9505_v3, 2  ;;  %v8271_v48 = vpop.f32.mrf.mxu1 }
 0x58a   : > { %v9512_v34 = vmax.f32 %v9510_v20, %v9511_v60  ;;  %v9518_v47 = vrot.slane %v9517_v63, 4  ;;  %v9526_v40 = vmax.f32 %v9524_v6, %v9525_v45  ;;  %v9532_v49 = vrot.slane %v9531_v46, 4 }
 0x58b   : > { %v9488_v33 = vmax.f32 %v9486_v51, %v9487_v26  ;;  %v9494_v24 = vrot.slane %v9493_v15, 1  ;;  %v9501_v17 = vrot.slane %v9500_v13, 1  ;;  %v9507_v43 = vmax.f32 %v9505_v3, %v9506_v58 }
 0x58c   : > { %v9513_v19 = vrot.slane %v9512_v34, 2  ;;  %v9519_v54 = vmax.f32 %v9517_v63, %v9518_v47  ;;  %v9527_v62 = vrot.slane %v9526_v40, 2  ;;  %v9533_v55 = vmax.f32 %v9531_v46, %v9532_v49  ;;  %v8146_v37 = vpop.f32.mrf.mxu0 }
 0x58d   : > { %v9495_v22 = vmax.f32 %v9493_v15, %v9494_v24  ;;  %v9502_v56 = vmax.f32 %v9500_v13, %v9501_v17  ;;  %v9508_v5 = vrot.slane %v9507_v43, 1  ;;  %v11316_v10 = vpack.c.bf16 %v9488_v33, %v9488_v33 }
 0x58e   : > { %v9514_v41 = vmax.f32 %v9512_v34, %v9513_v19  ;;  %v9520_v0 = vrot.slane %v9519_v54, 2  ;;  %v9528_v44 = vmax.f32 %v9526_v40, %v9527_v62  ;;  %v9534_v31 = vrot.slane %v9533_v55, 2  ;;  %v8148_v1 = vpop.f32.mrf.mxu0 }
 0x58f   : > { %v9509_v7 = vmax.f32 %v9507_v43, %v9508_v5  ;;  %v11317_v53 = vpack.c.bf16 %v9495_v22, %v9495_v22  ;;  %v11318_v57 = vpack.c.bf16 %v9502_v56, %v9502_v56  ;;  %v10602_v52 = vunpack.c.l.b16 %v11316_v10 }
 0x590   : > { %v9515_v61 = vrot.slane %v9514_v41, 1  ;;  %v9521_v23 = vmax.f32 %v9519_v54, %v9520_v0  ;;  %v9529_v27 = vrot.slane %v9528_v44, 1  ;;  %v9535_v42 = vmax.f32 %v9533_v55, %v9534_v31  ;;  %v16492_v39 = vpop.f32.mrf.mxu0 }
 0x591   : > { %v11319_v30 = vpack.c.bf16 %v9509_v7, %v9509_v7  ;;  %v10603_v50 = vunpack.c.l.b16 %v11317_v53  ;;  %v10604_v18 = vunpack.c.l.b16 %v11318_v57  ;;  %v8341_v2 = vmax.f32 %v16485_v29, 0.0 }
 0x592   : > { %v9516_v9 = vmax.f32 %v9514_v41, %v9515_v61  ;;  %v9522_v21 = vrot.slane %v9521_v23, 1  ;;  %v9530_v36 = vmax.f32 %v9528_v44, %v9529_v27  ;;  %v9536_v32 = vrot.slane %v9535_v42, 1  ;;  %v8151_v38 = vpop.f32.mrf.mxu0 }
 0x593   : > { %v10605_v20 = vunpack.c.l.b16 %v11319_v30  ;;  %v10731_v6 = vsel %vm10682_vm3, %v10603_v50, %v10602_v52  ;;  %v8430_v51 = vsel %vm7895_vm1, %v8341_v2, -inf  ;;  %v8270_v11 = vadd.f32 %v16438_v8, %v8269_v14 }
 0x594   : > { %v10732_v3 = vsel %vm10684_vm4, %v10604_v18, %v10731_v6  ;;  %v9523_v60 = vmax.f32 %v9521_v23, %v9522_v21  ;;  %v9537_v63 = vmax.f32 %v9535_v42, %v9536_v32  ;;  %v11320_v45 = vpack.c.bf16 %v9516_v9, %v9516_v9 }
 0x595   : > { %v11322_v29 = vpack.c.bf16 %v9530_v36, %v9530_v36  ;;  %v10733_v46 = vsel %vm10686_vm5, %v10605_v20, %v10732_v3  ;;  %v8431_v26 = vmax.f32 %v16459_v4, %v8430_v51  ;;  %v8342_v15 = vmax.f32 %v8270_v11, 0.0 }
 0x596   : > { %v11321_v13 = vpack.c.bf16 %v9523_v60, %v9523_v60  ;;  %v11323_v58 = vpack.c.bf16 %v9537_v63, %v9537_v63  ;;  %v10606_v48 = vunpack.c.l.b16 %v11320_v45  ;;  %v16501_v34 = vadd.f32 %v16438_v8, %v8146_v37 }
 0x597   : > { %v10608_v47 = vunpack.c.l.b16 %v11322_v29  ;;  %v8949_v14 = vcombine.high %v8431_v26, %v8431_v26  ;;  %v8956_v40 = vrot.slane %v8431_v26, %v15524_v16  ;;  %v8433_v49 = vsel %vm7895_vm1, %v8342_v15, -inf }
 0x598   : > { %v10607_v33 = vunpack.c.l.b16 %v11321_v13  ;;  %v10609_v24 = vunpack.c.l.b16 %v11323_v58  ;;  %v10734_v17 = vsel %vm10688_vm7, %v10606_v48, %v10733_v46  ;;  %v8434_v43 = vmax.f32 %v16462_v25, %v8433_v49 }
 0x599   : > { %v8963_v4 = vrot.slane %v8949_v14, %v15524_v16  ;;  %v8964_v19 = vcombine.high %v8956_v40, %v8956_v40  ;;  %v9930_v54 = vsel %vm9145_vm2, %v8956_v40, -inf  ;;  %v8311_v62 = vmax.f32 %v16501_v34, 0.0 }
 0x59a   : > { %v10735_v55 = vsel %vm10690_vm9, %v10607_v33, %v10734_v17  ;;  %v9931_v22 = vrot.slane %v9930_v54, 4  ;;  %v8966_v56 = vcombine.high %v8434_v43, %v8434_v43  ;;  %v8973_v5 = vrot.slane %v8434_v43, %v15524_v16 }
 0x59b   : > { %v10736_v10 = vsel %vm10692_vm10, %v10608_v47, %v10735_v55  ;;  %v8965_v37 = vcombine.high %v8963_v4, %v8963_v4  ;;  %v9937_v41 = vsel %vm9145_vm2, %v8964_v19, -inf  ;;  %v9944_v25 = vsel %vm9145_vm2, %v8963_v4, -inf  ;;  %v16516_v53 = vpop.f32.mrf.mxu1 }
 0x59c   : > { %v10737_v0 = vsel %vm10694_vm11, %v10609_v24, %v10736_v10  ;;  %v9932_v44 = vmax.f32 %v9930_v54, %v9931_v22  ;;  %v9938_v31 = vrot.slane %v9937_v41, 4  ;;  %v9945_v7 = vrot.slane %v9944_v25, 4 }
 0x59d   : > { %v10807_v57 = vpack.c.b16 %v10737_v0, %v10737_v0  ;;  %v9951_v52 = vsel %vm9145_vm2, %v8965_v37, -inf  ;;  %v8980_v1 = vrot.slane %v8966_v56, %v15524_v16  ;;  %v8981_v61 = vcombine.high %v8973_v5, %v8973_v5  ;;  %v8276_v50 = vpop.f32.mrf.mxu1 }
 0x59e   : > { %v9933_v23 = vrot.slane %v9932_v44, 2  ;;  %v9939_v27 = vmax.f32 %v9937_v41, %v9938_v31  ;;  %v9946_v42 = vmax.f32 %v9944_v25, %v9945_v7  ;;  %v9952_v30 = vrot.slane %v9951_v52, 4 }
 0x59f   : > { %10839 = vst.msk [vmem:[%s11922_s24 + $0x18] sm:$0xf] %vm254_vm0, %v10807_v57  ;;  %v8982_v18 = vcombine.high %v8980_v1, %v8980_v1  ;;  %v9958_v2 = vsel %vm9145_vm2, %v8973_v5, -inf  ;;  %v9965_v9 = vsel %vm9145_vm2, %v8981_v61, -inf  ;;  %v9972_v21 = vsel %vm9145_vm2, %v8980_v1, -inf  ;;  %v16525_v51 = vpop.f32.mrf.mxu1 }
 0x5a0   : > { %v9934_v36 = vmax.f32 %v9932_v44, %v9933_v23  ;;  %v9940_v32 = vrot.slane %v9939_v27, 2  ;;  %v9947_v20 = vrot.slane %v9946_v42, 2  ;;  %v9953_v6 = vmax.f32 %v9951_v52, %v9952_v30 }
 0x5a1   : > { %v9959_v11 = vrot.slane %v9958_v2, 4  ;;  %v9966_v38 = vrot.slane %v9965_v9, 4  ;;  %v9973_v3 = vrot.slane %v9972_v21, 4  ;;  %v9979_v60 = vsel %vm9145_vm2, %v8982_v18, -inf  ;;  %v8279_v26 = vpop.f32.mrf.mxu1 }
 0x5a2   : > { %v9935_v63 = vrot.slane %v9934_v36, 1  ;;  %v9941_v45 = vmax.f32 %v9939_v27, %v9940_v32  ;;  %v9948_v29 = vmax.f32 %v9946_v42, %v9947_v20  ;;  %v9954_v46 = vrot.slane %v9953_v6, 2 }
 0x5a3   : > { %v9960_v15 = vmax.f32 %v9958_v2, %v9959_v11  ;;  %v9967_v13 = vmax.f32 %v9965_v9, %v9966_v38  ;;  %v9974_v58 = vmax.f32 %v9972_v21, %v9973_v3  ;;  %v9980_v48 = vrot.slane %v9979_v60, 4 }
 0x5a4   : > { %v9936_v47 = vmax.f32 %v9934_v36, %v9935_v63  ;;  %v9942_v14 = vrot.slane %v9941_v45, 1  ;;  %v9949_v40 = vrot.slane %v9948_v29, 1  ;;  %v9955_v49 = vmax.f32 %v9953_v6, %v9954_v46 }
 0x5a5   : > { %v9961_v33 = vrot.slane %v9960_v15, 2  ;;  %v9968_v24 = vrot.slane %v9967_v13, 2  ;;  %v9975_v17 = vrot.slane %v9974_v58, 2  ;;  %v9981_v43 = vmax.f32 %v9979_v60, %v9980_v48 }
 0x5a6   : > { %v9943_v4 = vmax.f32 %v9941_v45, %v9942_v14  ;;  %v9950_v19 = vmax.f32 %v9948_v29, %v9949_v40  ;;  %v9956_v54 = vrot.slane %v9955_v49, 1  ;;  %v11380_v55 = vpack.c.bf16 %v9936_v47, %v9936_v47 }
 0x5a7   : > { %v9962_v22 = vmax.f32 %v9960_v15, %v9961_v33  ;;  %v9969_v56 = vmax.f32 %v9967_v13, %v9968_v24  ;;  %v9976_v5 = vmax.f32 %v9974_v58, %v9975_v17  ;;  %v9982_v10 = vrot.slane %v9981_v43, 2 }
 0x5a8   : > { %v9957_v37 = vmax.f32 %v9955_v49, %v9956_v54  ;;  %v11381_v41 = vpack.c.bf16 %v9943_v4, %v9943_v4  ;;  %v11382_v25 = vpack.c.bf16 %v9950_v19, %v9950_v19  ;;  %v10666_v0 = vunpack.c.l.b16 %v11380_v55 }
 0x5a9   : > { %v9963_v44 = vrot.slane %v9962_v22, 1  ;;  %v9970_v31 = vrot.slane %v9969_v56, 1  ;;  %v9977_v7 = vrot.slane %v9976_v5, 1  ;;  %v9983_v57 = vmax.f32 %v9981_v43, %v9982_v10 }
 0x5aa   : > { %v11383_v52 = vpack.c.bf16 %v9957_v37, %v9957_v37  ;;  %v10667_v1 = vunpack.c.l.b16 %v11381_v41  ;;  %v10668_v61 = vunpack.c.l.b16 %v11382_v25  ;;  %v8388_v23 = vsel %vm7895_vm1, %v8311_v62, -inf }
 0x5ab   : > { %v9964_v27 = vmax.f32 %v9962_v22, %v9963_v44  ;;  %v9971_v42 = vmax.f32 %v9969_v56, %v9970_v31  ;;  %v9978_v30 = vmax.f32 %v9976_v5, %v9977_v7  ;;  %v9984_v50 = vrot.slane %v9983_v57, 1 }
 0x5ac   : > { %v10669_v18 = vunpack.c.l.b16 %v11383_v52  ;;  %v10787_v2 = vsel %vm10682_vm3, %v10667_v1, %v10666_v0  ;;  %v8389_v9 = vmax.f32 %v16468_v12, %v8388_v23  ;;  %v8150_v21 = vadd.f32 %v16438_v8, %v16492_v39 }
 0x5ad   : > { %v10788_v36 = vsel %vm10684_vm4, %v10668_v61, %v10787_v2  ;;  %v9985_v32 = vmax.f32 %v9983_v57, %v9984_v50  ;;  %v11384_v20 = vpack.c.bf16 %v9964_v27, %v9964_v27  ;;  %v11385_v6 = vpack.c.bf16 %v9971_v42, %v9971_v42 }
 0x5ae   : > { %v11386_v34 = vpack.c.bf16 %v9978_v30, %v9978_v30  ;;  %v10789_v62 = vsel %vm10686_vm5, %v10669_v18, %v10788_v36  ;;  %v8711_v11 = vcombine.high %v8389_v9, %v8389_v9  ;;  %v8718_v38 = vrot.slane %v8389_v9, %v15524_v16 }
 0x5af   : > { %v11387_v3 = vpack.c.bf16 %v9985_v32, %v9985_v32  ;;  %v10670_v60 = vunpack.c.l.b16 %v11384_v20  ;;  %v10671_v63 = vunpack.c.l.b16 %v11385_v6  ;;  %v8312_v45 = vmax.f32 %v8150_v21, 0.0 }
 0x5b0   : > { %v10672_v29 = vunpack.c.l.b16 %v11386_v34  ;;  %v8725_v12 = vrot.slane %v8711_v11, %v15524_v16  ;;  %v8726_v46 = vcombine.high %v8718_v38, %v8718_v38  ;;  %v9538_v39 = vsel %vm9145_vm2, %v8718_v38, -inf }
 0x5b1   : > { %v10673_v26 = vunpack.c.l.b16 %v11387_v3  ;;  %v10790_v15 = vsel %vm10688_vm7, %v10670_v60, %v10789_v62  ;;  %v9539_v13 = vrot.slane %v9538_v39, 4  ;;  %v8391_v58 = vsel %vm7895_vm1, %v8312_v45, -inf }
 0x5b2   : > { %v10791_v48 = vsel %vm10690_vm9, %v10671_v63, %v10790_v15  ;;  %v8727_v47 = vcombine.high %v8725_v12, %v8725_v12  ;;  %v9545_v14 = vsel %vm9145_vm2, %v8726_v46, -inf  ;;  %v9552_v40 = vsel %vm9145_vm2, %v8725_v12, -inf }
 0x5b3   : > { %v10792_v49 = vsel %vm10692_vm10, %v10672_v29, %v10791_v48  ;;  %v9540_v33 = vmax.f32 %v9538_v39, %v9539_v13  ;;  %v9546_v24 = vrot.slane %v9545_v14, 4  ;;  %v9553_v17 = vrot.slane %v9552_v40, 4 }
 0x5b4   : > { %v10793_v43 = vsel %vm10694_vm11, %v10673_v26, %v10792_v49  ;;  %v9559_v4 = vsel %vm9145_vm2, %v8727_v47, -inf  ;;  %v8392_v19 = vmax.f32 %v16471_v35, %v8391_v58  ;;  %v8275_v54 = vadd.f32 %v16438_v8, %v16516_v53 }
 0x5b5   : > { %v10815_v55 = vpack.c.b16 %v10793_v43, %v10793_v43  ;;  %v9541_v22 = vrot.slane %v9540_v33, 2  ;;  %v9547_v56 = vmax.f32 %v9545_v14, %v9546_v24  ;;  %v9554_v5 = vmax.f32 %v9552_v40, %v9553_v17 }
 0x5b6   : > { %v9560_v10 = vrot.slane %v9559_v4, 4  ;;  %v8728_v37 = vcombine.high %v8392_v19, %v8392_v19  ;;  %v8735_v41 = vrot.slane %v8392_v19, %v15524_v16  ;;  %v8343_v25 = vmax.f32 %v8275_v54, 0.0 }
 0x5b7   : > { %10847 = vst.msk [vmem:[%s11922_s24 + $0x38] sm:$0xf] %vm254_vm0, %v10815_v55  ;;  %v9542_v0 = vmax.f32 %v9540_v33, %v9541_v22  ;;  %v9548_v44 = vrot.slane %v9547_v56, 2  ;;  %v9555_v31 = vrot.slane %v9554_v5, 2  ;;  %v8278_v35 = vadd.f32 %v16438_v8, %v16525_v51 }
 0x5b8   : > { %v9561_v7 = vmax.f32 %v9559_v4, %v9560_v10  ;;  %v8742_v53 = vrot.slane %v8728_v37, %v15524_v16  ;;  %v8743_v57 = vcombine.high %v8735_v41, %v8735_v41  ;;  %v9566_v52 = vsel %vm9145_vm2, %v8735_v41, -inf }
 0x5b9   : > { %v9543_v1 = vrot.slane %v9542_v0, 1  ;;  %v9549_v61 = vmax.f32 %v9547_v56, %v9548_v44  ;;  %v9556_v23 = vmax.f32 %v9554_v5, %v9555_v31  ;;  %v9567_v27 = vrot.slane %v9566_v52, 4 }
 0x5ba   : > { %v9562_v42 = vrot.slane %v9561_v7, 2  ;;  %v8744_v30 = vcombine.high %v8742_v53, %v8742_v53  ;;  %v9573_v50 = vsel %vm9145_vm2, %v8743_v57, -inf  ;;  %v9580_v18 = vsel %vm9145_vm2, %v8742_v53, -inf }
 0x5bb   : > { %v9544_v2 = vmax.f32 %v9542_v0, %v9543_v1  ;;  %v9550_v9 = vrot.slane %v9549_v61, 1  ;;  %v9557_v21 = vrot.slane %v9556_v23, 1  ;;  %v9568_v8 = vmax.f32 %v9566_v52, %v9567_v27 }
 0x5bc   : > { %v9563_v51 = vmax.f32 %v9561_v7, %v9562_v42  ;;  %v9574_v36 = vrot.slane %v9573_v50, 4  ;;  %v9581_v32 = vrot.slane %v9580_v18, 4  ;;  %v9587_v20 = vsel %vm9145_vm2, %v8744_v30, -inf }
 0x5bd   : > { %v9551_v6 = vmax.f32 %v9549_v61, %v9550_v9  ;;  %v9558_v34 = vmax.f32 %v9556_v23, %v9557_v21  ;;  %v11324_v62 = vpack.c.bf16 %v9544_v2, %v9544_v2  ;;  %v9569_v11 = vrot.slane %v9568_v8, 2 }
 0x5be   : > { %v9564_v38 = vrot.slane %v9563_v51, 1  ;;  %v9575_v3 = vmax.f32 %v9573_v50, %v9574_v36  ;;  %v9582_v60 = vmax.f32 %v9580_v18, %v9581_v32  ;;  %v9588_v63 = vrot.slane %v9587_v20, 4 }
 0x5bf   : > { %v11325_v45 = vpack.c.bf16 %v9551_v6, %v9551_v6  ;;  %v11326_v29 = vpack.c.bf16 %v9558_v34, %v9558_v34  ;;  %v10610_v12 = vunpack.c.l.b16 %v11324_v62  ;;  %v9570_v46 = vmax.f32 %v9568_v8, %v9569_v11 }
 0x5c0   : > { %v9565_v39 = vmax.f32 %v9563_v51, %v9564_v38  ;;  %v9576_v26 = vrot.slane %v9575_v3, 2  ;;  %v9583_v15 = vrot.slane %v9582_v60, 2  ;;  %v9589_v13 = vmax.f32 %v9587_v20, %v9588_v63 }
 0x5c1   : > { %v10611_v58 = vunpack.c.l.b16 %v11325_v45  ;;  %v10612_v48 = vunpack.c.l.b16 %v11326_v29  ;;  %v9571_v47 = vrot.slane %v9570_v46, 1  ;;  %v8436_v14 = vsel %vm7895_vm1, %v8343_v25, -inf }
 0x5c2   : > { %v11327_v40 = vpack.c.bf16 %v9565_v39, %v9565_v39  ;;  %v9577_v49 = vmax.f32 %v9575_v3, %v9576_v26  ;;  %v9584_v33 = vmax.f32 %v9582_v60, %v9583_v15  ;;  %v9590_v24 = vrot.slane %v9589_v13, 2 }
 0x5c3   : > { %v10738_v17 = vsel %vm10682_vm3, %v10611_v58, %v10610_v12  ;;  %v9572_v43 = vmax.f32 %v9570_v46, %v9571_v47  ;;  %v8437_v4 = vmax.f32 %v16474_v28, %v8436_v14  ;;  %v8344_v19 = vmax.f32 %v8278_v35, 0.0 }
 0x5c4   : > { %v10613_v54 = vunpack.c.l.b16 %v11327_v40  ;;  %v10739_v55 = vsel %vm10684_vm4, %v10612_v48, %v10738_v17  ;;  %v9578_v22 = vrot.slane %v9577_v49, 1  ;;  %v9585_v56 = vrot.slane %v9584_v33, 1 }
 0x5c5   : > { %v9591_v5 = vmax.f32 %v9589_v13, %v9590_v24  ;;  %v11328_v10 = vpack.c.bf16 %v9572_v43, %v9572_v43  ;;  %v8983_v37 = vcombine.high %v8437_v4, %v8437_v4  ;;  %v8990_v41 = vrot.slane %v8437_v4, %v15524_v16 }
 0x5c6   : > { %v9579_v25 = vmax.f32 %v9577_v49, %v9578_v22  ;;  %v9586_v0 = vmax.f32 %v9584_v33, %v9585_v56  ;;  %v10740_v44 = vsel %vm10686_vm5, %v10613_v54, %v10739_v55  ;;  %v8439_v31 = vsel %vm7895_vm1, %v8344_v19, -inf }
 0x5c7   : > { %v9592_v7 = vrot.slane %v9591_v5, 1  ;;  %v10614_v53 = vunpack.c.l.b16 %v11328_v10  ;;  %v8997_v28 = vrot.slane %v8983_v37, %v15524_v16  ;;  %v8998_v35 = vcombine.high %v8990_v41, %v8990_v41 }
 0x5c8   : > { %v11329_v57 = vpack.c.bf16 %v9579_v25, %v9579_v25  ;;  %v11330_v52 = vpack.c.bf16 %v9586_v0, %v9586_v0  ;;  %v9986_v1 = vsel %vm9145_vm2, %v8990_v41, -inf  ;;  %v8440_v61 = vmax.f32 %v16480_v59, %v8439_v31 }
 0x5c9   : > { %v9593_v23 = vmax.f32 %v9591_v5, %v9592_v7  ;;  %v10741_v27 = vsel %vm10688_vm7, %v10614_v53, %v10740_v44  ;;  %v8999_v42 = vcombine.high %v8997_v28, %v8997_v28  ;;  %v9987_v30 = vrot.slane %v9986_v1, 4 }
 0x5ca   : > { %v10615_v50 = vunpack.c.l.b16 %v11329_v57  ;;  %v10616_v18 = vunpack.c.l.b16 %v11330_v52  ;;  %v9993_v2 = vsel %vm9145_vm2, %v8998_v35, -inf  ;;  %v10000_v9 = vsel %vm9145_vm2, %v8997_v28, -inf }
 0x5cb   : > { %v11331_v21 = vpack.c.bf16 %v9593_v23, %v9593_v23  ;;  %v9988_v8 = vmax.f32 %v9986_v1, %v9987_v30  ;;  %v9994_v51 = vrot.slane %v9993_v2, 4  ;;  %v10001_v36 = vrot.slane %v10000_v9, 4 }
 0x5cc   : > { %v10742_v32 = vsel %vm10690_vm9, %v10615_v50, %v10741_v27  ;;  %v10007_v20 = vsel %vm9145_vm2, %v8999_v42, -inf  ;;  %v9000_v59 = vcombine.high %v8440_v61, %v8440_v61  ;;  %v9007_v6 = vrot.slane %v8440_v61, %v15524_v16 }
 0x5cd   : > { %v10617_v34 = vunpack.c.l.b16 %v11331_v21  ;;  %v10743_v62 = vsel %vm10692_vm10, %v10616_v18, %v10742_v32  ;;  %v9989_v11 = vrot.slane %v9988_v8, 2  ;;  %v9995_v38 = vmax.f32 %v9993_v2, %v9994_v51 }
 0x5ce   : > { %v10002_v3 = vmax.f32 %v10000_v9, %v10001_v36  ;;  %v10008_v60 = vrot.slane %v10007_v20, 4  ;;  %v9014_v63 = vrot.slane %v9000_v59, %v15524_v16  ;;  %v9015_v45 = vcombine.high %v9007_v6, %v9007_v6 }
 0x5cf   : > { %v10744_v29 = vsel %vm10694_vm11, %v10617_v34, %v10743_v62  ;;  %v9990_v12 = vmax.f32 %v9988_v8, %v9989_v11  ;;  %v9996_v46 = vrot.slane %v9995_v38, 2  ;;  %v10014_v39 = vsel %vm9145_vm2, %v9007_v6, -inf }
 0x5d0   : > { %v10808_v26 = vpack.c.b16 %v10744_v29, %v10744_v29  ;;  %v10003_v15 = vrot.slane %v10002_v3, 2  ;;  %v10009_v13 = vmax.f32 %v10007_v20, %v10008_v60  ;;  %v9016_v58 = vcombine.high %v9014_v63, %v9014_v63 }
 0x5d1   : > { %v9991_v48 = vrot.slane %v9990_v12, 1  ;;  %v9997_v47 = vmax.f32 %v9995_v38, %v9996_v46  ;;  %v10015_v14 = vrot.slane %v10014_v39, 4  ;;  %v10021_v40 = vsel %vm9145_vm2, %v9015_v45, -inf }
 0x5d2   : > { %10840 = vst.msk [vmem:[%s11922_s24 + $0x1c] sm:$0xf] %vm254_vm0, %v10808_v26  ;;  %v10004_v49 = vmax.f32 %v10002_v3, %v10003_v15  ;;  %v10010_v16 = vrot.slane %v10009_v13, 2  ;;  %v10022_v33 = vrot.slane %v10021_v40, 4  ;;  %v10028_v24 = vsel %vm9145_vm2, %v9014_v63, -inf }
 0x5d3   : > { %v9992_v17 = vmax.f32 %v9990_v12, %v9991_v48  ;;  %v9998_v43 = vrot.slane %v9997_v47, 1  ;;  %v10016_v4 = vmax.f32 %v10014_v39, %v10015_v14  ;;  %v10029_v19 = vrot.slane %v10028_v24, 4 }
 0x5d4   : > { %v10005_v54 = vrot.slane %v10004_v49, 1  ;;  %v10011_v55 = vmax.f32 %v10009_v13, %v10010_v16  ;;  %v10023_v22 = vmax.f32 %v10021_v40, %v10022_v33  ;;  %v10035_v56 = vsel %vm9145_vm2, %v9016_v58, -inf }
 0x5d5   : > { %v9999_v5 = vmax.f32 %v9997_v47, %v9998_v43  ;;  %v11388_v10 = vpack.c.bf16 %v9992_v17, %v9992_v17  ;;  %v10017_v37 = vrot.slane %v10016_v4, 2  ;;  %v10030_v41 = vmax.f32 %v10028_v24, %v10029_v19 }
 0x5d6   : > { %v10006_v25 = vmax.f32 %v10004_v49, %v10005_v54  ;;  %v10012_v0 = vrot.slane %v10011_v55, 1  ;;  %v10024_v44 = vrot.slane %v10023_v22, 2  ;;  %v10036_v31 = vrot.slane %v10035_v56, 4 }
 0x5d7   : > { %v11389_v7 = vpack.c.bf16 %v9999_v5, %v9999_v5  ;;  %v10018_v53 = vmax.f32 %v10016_v4, %v10017_v37  ;;  %v10031_v28 = vrot.slane %v10030_v41, 2  ;;  %v10674_v61 = vunpack.c.l.b16 %v11388_v10 }
 0x5d8   : > { %v10013_v35 = vmax.f32 %v10011_v55, %v10012_v0  ;;  %v11390_v57 = vpack.c.bf16 %v10006_v25, %v10006_v25  ;;  %v10025_v52 = vmax.f32 %v10023_v22, %v10024_v44  ;;  %v10037_v1 = vmax.f32 %v10035_v56, %v10036_v31 }
 0x5d9   : > { %v10675_v23 = vunpack.c.l.b16 %v11389_v7  ;;  %v10019_v27 = vrot.slane %v10018_v53, 1  ;;  %v10032_v42 = vmax.f32 %v10030_v41, %v10031_v28 }
 0x5da   : > { %v11391_v30 = vpack.c.bf16 %v10013_v35, %v10013_v35  ;;  %v10676_v50 = vunpack.c.l.b16 %v11390_v57  ;;  %v10026_v18 = vrot.slane %v10025_v52, 1  ;;  %v10038_v2 = vrot.slane %v10037_v1, 2 }
 0x5db   : > { %v10794_v9 = vsel %vm10682_vm3, %v10675_v23, %v10674_v61  ;;  %v10020_v21 = vmax.f32 %v10018_v53, %v10019_v27  ;;  %v10033_v8 = vrot.slane %v10032_v42, 1 }
 0x5dc   : > { %v10677_v51 = vunpack.c.l.b16 %v11391_v30  ;;  %v10795_v36 = vsel %vm10684_vm4, %v10676_v50, %v10794_v9  ;;  %v10027_v32 = vmax.f32 %v10025_v52, %v10026_v18  ;;  %v10039_v20 = vmax.f32 %v10037_v1, %v10038_v2 }
 0x5dd   : > { %v10034_v59 = vmax.f32 %v10032_v42, %v10033_v8  ;;  %v11392_v6 = vpack.c.bf16 %v10020_v21, %v10020_v21 }
 0x5de   : > { %v10040_v34 = vrot.slane %v10039_v20, 1  ;;  %v11393_v62 = vpack.c.bf16 %v10027_v32, %v10027_v32  ;;  %v10796_v11 = vsel %vm10686_vm5, %v10677_v51, %v10795_v36 }
 0x5df   : > { %v11394_v38 = vpack.c.bf16 %v10034_v59, %v10034_v59  ;;  %v10678_v3 = vunpack.c.l.b16 %v11392_v6 }
 0x5e0   : > { %v10041_v60 = vmax.f32 %v10039_v20, %v10040_v34  ;;  %v10679_v63 = vunpack.c.l.b16 %v11393_v62 }
 0x5e1   : > { %v10680_v45 = vunpack.c.l.b16 %v11394_v38  ;;  %v10797_v29 = vsel %vm10688_vm7, %v10678_v3, %v10796_v11 }
 0x5e2   : > { %v11395_v12 = vpack.c.bf16 %v10041_v60, %v10041_v60  ;;  %v10798_v46 = vsel %vm10690_vm9, %v10679_v63, %v10797_v29 }
 0x5e3   : > { %v10799_v39 = vsel %vm10692_vm10, %v10680_v45, %v10798_v46 }
 0x5e4   : > { %v10681_v26 = vunpack.c.l.b16 %v11395_v12 }
 0x5e6   : > { %v10800_v15 = vsel %vm10694_vm11, %v10681_v26, %v10799_v39 }
 0x5e7   : > { %v10816_v13 = vpack.c.b16 %v10800_v15, %v10800_v15 }
 0x5e9   : > { %10848 = vst.msk [vmem:[%s11922_s24 + $0x3c] sm:$0xf] %vm254_vm0, %v10816_v13 }
 0x5ea   : > { %11591 = shalt.err (!%p11588_p11)
}
 0x5eb   : > { %s11592_s4 = scalar_lea.hbm %s16600_s27, 1024  ;;  %s11596_s8 = scalar_lea.hbm %s16664_s3, 4096 }
 0x5ec   : > { %p11593_p12 = scmp.ne.s32.totalorder %s16600_s27, %s11592_s4  ;;  %p11597_p1 = scmp.lt.s32.totalorder %s16600_s27, %s16664_s3 }
 0x5ed   : > { %p11598_p2 = scmp.lt.s32.totalorder %s11596_s8, %s11592_s4 }
 0x5ee   : > { %p11594_p13 = pnand %p11593_p12, %p11756_p3 }
 0x5ef   : > { %p11599_p4 = por %p11598_p2, %p11597_p1 }
 0x5f0   : > { %p11595_p0 = pneg %p11594_p13 }
 0x5f2   : > { %p11600_p5 = pnand %p11599_p4, %p11595_p0 }
 0x5f4   : > { %11603 = shalt.err (!%p11600_p5)
}
 0x5f5   : > { %s11684_s21 = smov 4  }
 0x5f6   : > { %11415 = dma.vmem_to_hbm [thread:$0]  (%p11756_p3), %s16602_s20, 1024, %s16600_s27, %s16608_s15, %s11677_s9, %s11677_s9, %s11684_s21  }
 0x5f7 PF: > { %p11421_p6 = scmp.ge.s32.totalorder %s11670_s19, 2  ;;  %s10881_s10 = sand.u32 1, %s11642_s12  }
 0x5f8   : > { %s10882_s6 = scalar_lea.sflag [#allocation5], %s10881_s10 }
 0x5f9   : > { %p11418_p7 = pnand %p11421_p6, %p11765_p8 }
 0x5fb   : > { %p11419_p9 = pneg %p11418_p7 }
 0x5fd   : > { %11637 = dma.done.wait (%p11419_p9), %s10882_s6, 1024  }
 0x5fe   : > { %11639 = vsyncadd (%p11419_p9), %s10882_s6, 4294966272  ;;  %s16_s19 = sadd.s32 1, %s11670_s19   ;;  %s16753_s12 = smov %s11646_s13 }
 0x5ff   : > { %p13_p10 = scmp.ge.s32.totalorder %s16_s19, 6   ;;  %s16754_s13 = smov %s11650_s14 }
 0x600   : > { %s16755_s14 = smov %s11774_s30  ;;  %s16756_s15 = smov %s11662_s17 }
 0x601   : > { %s16757_s16 = smov %s11666_s18  ;;  %s16758_s17 = smov %s16761_s22 }
 0x602   : > { %s16759_s18 = smov %s16765_s23  ;;  %15 = sbr.rel (!%p13_p10) target bundleno = 5 (0x5), region = 90 }
 0x607   :  { %10887 = vsyncpa [#allocation5], 1 }
 0x608   :  { %10889 = vsyncpa [#allocation5 + $0x1], 1 }

</bundles_post_ra>
